<compile_context>
chip_gen: v7x
topology: tpu7x:2x2x1
jax: 0.10.0
libtpu: 0.0.40
codegen_flags: <defaults>
</compile_context>

<pallas_src>
import numpy as np
import jax
import jax.numpy as jnp
from jax.experimental import pallas as pl
from jax.experimental.pallas import tpu as pltpu

KP = 384                 # 19*4*4 = 304 patch features + 1 ones-row (bias fold), padded to 3*128
BF16 = jnp.bfloat16


# ----------------------------------------------------------------------------
# Kernel 1: cond layer + SFT scale/shift heads (one grid step per batch elem).
# ----------------------------------------------------------------------------
def _cond_kernel(pT_ref, wc0, wc1, wc2, ws0, ws1, wt0, wt1, b_ref,
                 scale_ref, shift_ref):
    def lrelu(v):
        return jnp.where(v > 0, v, 0.1 * v)

    def inorm(v):                        # (C, S) f32, per-channel over spatial
        m = jnp.mean(v, axis=1, keepdims=True)
        c = v - m
        var = jnp.mean(c * c, axis=1, keepdims=True)
        return c * jax.lax.rsqrt(var + 1e-5)

    def mm(w_ref, v):                    # (Co,Ci) bf16 @ (Ci,S) bf16 -> (Co,S) f32
        return jnp.dot(w_ref[...], v, preferred_element_type=jnp.float32)

    def bias(j, co):                     # packed biases: column j, rows [0, co)
        return b_ref[0:co, j:j + 1]

    p = pT_ref[0]                                             # (KP, S_c) bf16
    h = inorm(lrelu(mm(wc0, p)))                              # conv0 bias folded (ones row)
    h = lrelu(mm(wc1, h.astype(BF16)) + bias(0, 256))
    h = lrelu(mm(wc2, h.astype(BF16)) + bias(1, 256))
    seg = inorm(h).astype(BF16)                               # (256, S_c)

    sc = mm(ws1, lrelu(mm(ws0, seg) + bias(2, 512)).astype(BF16)) + bias(3, 512)
    sh = mm(wt1, lrelu(mm(wt0, seg) + bias(4, 512)).astype(BF16)) + bias(5, 512)

    scale_ref[0] = sc
    shift_ref[0] = sh


# ----------------------------------------------------------------------------
# Kernel 2: lane-dense fused upsample + SFT modulation (per spatial tile).
# ----------------------------------------------------------------------------
def _fuse_kernel(scale_ref, shift_ref, aT_ref, x_ref, out_ref):
    a = aT_ref[...]                                           # (S_cp, TS) f32
    s_up = jnp.dot(scale_ref[0], a, preferred_element_type=jnp.float32)
    t_up = jnp.dot(shift_ref[0], a, preferred_element_type=jnp.float32)
    out_ref[0] = x_ref[0] * (s_up + 1.0) + t_up               # whole-block, lane-dense


# ----------------------------------------------------------------------------
# Glue helpers.
# ----------------------------------------------------------------------------
def _interp_matrix_1d(n_out, n_in):
    """PyTorch bilinear upsample, align_corners=True, as a (n_out, n_in) matrix."""
    m = np.zeros((n_out, n_in), np.float32)
    if n_in == 1 or n_out == 1:
        m[:, 0] = 1.0
        return m
    coords = np.arange(n_out) * (n_in - 1) / (n_out - 1)
    lo = np.floor(coords).astype(np.int64)
    hi = np.minimum(lo + 1, n_in - 1)
    frac = (coords - lo).astype(np.float32)
    np.add.at(m, (np.arange(n_out), lo), 1.0 - frac)
    np.add.at(m, (np.arange(n_out), hi), frac)
    return m


def _vmem_capacity_bytes():
    try:
        return int(pltpu.get_tpu_info().vmem_capacity_bytes)
    except Exception:
        return 64 << 20                       # conservative (v7x-sized) fallback


def _pick_spatial_tile(S_x, bytes_per_pos, cap_bytes):
    """Largest 128-aligned divisor of S_x whose x-tile fits the per-gen budget."""
    tile_budget = (8 << 20) if cap_bytes >= (96 << 20) else (3 << 20)
    ts_max = max(128, tile_budget // bytes_per_pos)
    if S_x <= ts_max:
        return S_x
    for ts in range((ts_max // 128) * 128, 127, -128):
        if S_x % ts == 0:
            return ts
    # TODO(synk): pad the flattened spatial dim to a 128-multiple for shapes
    # with no 128-aligned divisor; falling back to one full-extent tile here.
    return S_x


def make_params(key):
    """Deterministic parameter init matching the PyTorch module's shapes."""
    ks = jax.random.split(key, 14)

    def conv_w(k, cout, cin, kh, kw):
        fan_in = cin * kh * kw
        return (jax.random.normal(k, (cout, cin, kh, kw), jnp.float32)
                / np.sqrt(fan_in))

    def conv_b(k, cout):
        return 0.05 * jax.random.normal(k, (cout,), jnp.float32)

    return {
        "c0_w": conv_w(ks[0], 128, 19, 4, 4), "c0_b": conv_b(ks[1], 128),
        "c1_w": conv_w(ks[2], 256, 128, 1, 1), "c1_b": conv_b(ks[3], 256),
        "c2_w": conv_w(ks[4], 256, 256, 1, 1), "c2_b": conv_b(ks[5], 256),
        "s0_w": conv_w(ks[6], 512, 256, 1, 1), "s0_b": conv_b(ks[7], 512),
        "s1_w": conv_w(ks[8], 512, 512, 1, 1), "s1_b": conv_b(ks[9], 512),
        "t0_w": conv_w(ks[10], 512, 256, 1, 1), "t0_b": conv_b(ks[11], 512),
        "t1_w": conv_w(ks[12], 512, 512, 1, 1), "t1_b": conv_b(ks[13], 512),
    }


# ----------------------------------------------------------------------------
# Forward pass: NCHW in, NCHW out, two pallas_calls.
# ----------------------------------------------------------------------------
def integrated_model_forward(x, y, params):
    """x: (B, 512, Hx, Wx) ; y: (B, 19, Hy, Wy) -> (B, 512, Hx, Wx)."""
    B, Cx, Hx, Wx = x.shape
    _, Cy, Hy, Wy = y.shape
    assert Cx == 512 and Cy == 19
    Hc, Wc = (Hy - 4) // 4 + 1, (Wy - 4) // 4 + 1
    S_c, S_x = Hc * Wc, Hx * Wx
    f32 = jnp.float32

    # ---- channels-first im2col of y for the 4x4/stride-4 conv: (B, KP, S_c).
    # Feature order (ci, kh, kw) matches w.reshape(Cout, -1); a ones-row at
    # index 304 folds conv0's bias into the matmul; zero pad to KP = 384.
    yc = y[:, :, :Hc * 4, :Wc * 4]
    patches = (yc.reshape(B, Cy, Hc, 4, Wc, 4)
                 .transpose(0, 1, 3, 5, 2, 4)
                 .reshape(B, Cy * 16, S_c))
    pT = jnp.concatenate(
        [patches,
         jnp.ones((B, 1, S_c), patches.dtype),
         jnp.zeros((B, KP - Cy * 16 - 1, S_c), patches.dtype)], axis=1
    ).astype(BF16)

    def wmat(name, bias_name=None, pad_to=None):   # conv weight -> (Cout, Ci*kh*kw) bf16
        w = params[name].reshape(params[name].shape[0], -1)
        if bias_name is not None:
            w = jnp.concatenate([w, params[bias_name].reshape(-1, 1)], axis=1)
        if pad_to is not None and w.shape[1] < pad_to:
            w = jnp.pad(w, ((0, 0), (0, pad_to - w.shape[1])))
        return w.astype(BF16)

    wc0 = wmat("c0_w", "c0_b", KP)
    wc1, wc2 = wmat("c1_w"), wmat("c2_w")
    ws0, ws1 = wmat("s0_w"), wmat("s1_w")
    wt0, wt1 = wmat("t0_w"), wmat("t1_w")

    # Remaining six biases packed into one (512, 8) buffer (zero-padded rows).
    bcols = [jnp.pad(params[n], (0, 512 - params[n].shape[0])).reshape(512, 1)
             for n in ("c1_b", "c2_b", "s0_b", "s1_b", "t0_b", "t1_b")]
    bias_pack = jnp.pad(jnp.concatenate(bcols, axis=1),
                        ((0, 0), (0, 2))).astype(f32)          # (512, 8)

    weights = (wc0, wc1, wc2, ws0, ws1, wt0, wt1, bias_pack)

    def cspec(a):        # constant operand: same block every grid step -> one DMA
        return pl.BlockSpec(a.shape, lambda b: (0,) * a.ndim)

    cond_cost = pl.CostEstimate(
        flops=int(2 * B * S_c * (KP * 128 + 128 * 256 + 256 * 256
                                 + 2 * (256 * 512 + 512 * 512))),
        transcendentals=int(B * (128 + 256)),
        bytes_accessed=int(B * (KP * S_c * 2 + 2 * 512 * S_c * 4)
                           + sum(int(np.prod(w.shape)) * w.dtype.itemsize
                                 for w in weights)))

    scale_s, shift_s = pl.pallas_call(
        _cond_kernel,
        out_shape=(jax.ShapeDtypeStruct((B, 512, S_c), f32),
                   jax.ShapeDtypeStruct((B, 512, S_c), f32)),
        grid_spec=pltpu.PrefetchScalarGridSpec(
            num_scalar_prefetch=0,
            grid=(B,),
            in_specs=[pl.BlockSpec((1, KP, S_c), lambda b: (b, 0, 0))]
                     + [cspec(w) for w in weights],
            out_specs=(pl.BlockSpec((1, 512, S_c), lambda b: (b, 0, 0)),
                       pl.BlockSpec((1, 512, S_c), lambda b: (b, 0, 0)))),
        compiler_params=pltpu.CompilerParams(
            dimension_semantics=("parallel",)),
        cost_estimate=cond_cost,
    )(pT, *weights)

    # ---- dense bilinear (align_corners=True) upsample matrix, (S_cp, S_x).
    Ah = _interp_matrix_1d(Hx, Hc)
    Aw = _interp_matrix_1d(Wx, Wc)
    S_cp = -(-S_c // 8) * 8                        # sublane-pad the K dim only
    aT_np = np.zeros((S_cp, S_x), np.float32)
    aT_np[:S_c, :] = np.kron(Ah, Aw).T
    aT = jnp.asarray(aT_np)

    scale_p = jnp.pad(scale_s, ((0, 0), (0, 0), (0, S_cp - S_c)))
    shift_p = jnp.pad(shift_s, ((0, 0), (0, 0), (0, S_cp - S_c)))

    x2 = x.reshape(B, Cx, S_x)                     # lane-dense view (free reshape)

    cap = _vmem_capacity_bytes()
    TS = _pick_spatial_tile(S_x, Cx * 4, cap)
    assert S_x % TS == 0
    n_tiles = S_x // TS

    est = (4 * Cx * TS * 4          # x + out tiles, double-buffered
           + 3 * Cx * TS * 4        # in-kernel f32 upsample temporaries
           + 4 * Cx * S_cp * 4      # scale/shift (small), double-buffered
           + 2 * S_cp * TS * 4)     # interp-matrix tile, double-buffered
    vmem_limit = int(min(max(est + (16 << 20), 32 << 20), int(cap * 0.85)))

    fuse_cost = pl.CostEstimate(
        flops=int(B * Cx * S_x * (4 * S_cp + 3)),
        transcendentals=0,
        bytes_accessed=int(2 * B * Cx * S_x * 4 + B * S_cp * S_x * 4
                           + 4 * B * Cx * S_cp * 4))

    out = pl.pallas_call(
        _fuse_kernel,
        out_shape=jax.ShapeDtypeStruct((B, Cx, S_x), f32),
        grid_spec=pltpu.PrefetchScalarGridSpec(
            num_scalar_prefetch=0,
            grid=(B, n_tiles),
            in_specs=[pl.BlockSpec((1, Cx, S_cp), lambda b, t: (b, 0, 0)),
                      pl.BlockSpec((1, Cx, S_cp), lambda b, t: (b, 0, 0)),
                      pl.BlockSpec((S_cp, TS), lambda b, t: (0, t)),
                      pl.BlockSpec((1, Cx, TS), lambda b, t: (b, 0, t))],
            out_specs=pl.BlockSpec((1, Cx, TS), lambda b, t: (b, 0, t))),
        compiler_params=pltpu.CompilerParams(
            dimension_semantics=("parallel", "parallel"),
            vmem_limit_bytes=vmem_limit),
        cost_estimate=fuse_cost,
    )(scale_p, shift_p, aT, x2)

    return out.reshape(B, Cx, Hx, Wx)


# ----------------------------------------------------------------------------
# Pure-JAX reference.  Conv operands are quantized to bf16 with f32
# accumulation to mirror the kernel's precision; interpolation stays f32.
# ----------------------------------------------------------------------------
def reference_forward(x, y, params):
    f32 = jnp.float32
    bf16 = jnp.bfloat16

    def lrelu(v):
        return jnp.where(v > 0, v, 0.1 * v)

    def inorm(v):
        m = jnp.mean(v, axis=(2, 3), keepdims=True)
        c = v - m
        var = jnp.mean(c * c, axis=(2, 3), keepdims=True)
        return c * jax.lax.rsqrt(var + 1e-5)

    def conv(v, w, b, stride):
        out = jax.lax.conv_general_dilated(
            v.astype(bf16), w.astype(bf16), (stride, stride), "VALID",
            dimension_numbers=("NCHW", "OIHW", "NCHW"),
            preferred_element_type=f32)
        return out + b[None, :, None, None]

    h = inorm(lrelu(conv(y, params["c0_w"], params["c0_b"], 4)))
    h = lrelu(conv(h, params["c1_w"], params["c1_b"], 1))
    h = lrelu(conv(h, params["c2_w"], params["c2_b"], 1))
    seg = inorm(h)

    scale = conv(lrelu(conv(seg, params["s0_w"], params["s0_b"], 1)),
                 params["s1_w"], params["s1_b"], 1)
    shift = conv(lrelu(conv(seg, params["t0_w"], params["t0_b"], 1)),
                 params["t1_w"], params["t1_b"], 1)

    Hc, Wc = scale.shape[2], scale.shape[3]
    Hx, Wx = x.shape[2], x.shape[3]
    Ah = jnp.asarray(_interp_matrix_1d(Hx, Hc))
    Aw = jnp.asarray(_interp_matrix_1d(Wx, Wc))

    def up(v):   # bilinear, align_corners=True, separable, f32
        v = jnp.einsum("ih,bchw->bciw", Ah, v,
                       precision=jax.lax.Precision.HIGHEST)
        return jnp.einsum("jw,bciw->bcij", Aw, v,
                          precision=jax.lax.Precision.HIGHEST)

    return x * (up(scale) + 1.0) + up(shift)


if __name__ == "__main__":
    key = jax.random.PRNGKey(0)
    kp, kx, ky = jax.random.split(key, 3)

    params = make_params(kp)

    B, Hx, Wx = 2, 8, 8          # x spatial
    Hy, Wy = 16, 16              # y spatial -> cond feature map is 4x4
    x = jax.random.normal(kx, (B, 512, Hx, Wx), jnp.float32)
    y = jax.random.normal(ky, (B, 19, Hy, Wy), jnp.float32)

    out = jax.block_until_ready(integrated_model_forward(x, y, params))
    ref = jax.block_until_ready(reference_forward(x, y, params))

    assert out.shape == (B, 512, Hx, Wx)
    # bf16 matmul operands in the cond branch -> loosened tolerance vs f32 math.
    np.testing.assert_allclose(np.asarray(out), np.asarray(ref),
                               rtol=2e-2, atol=2e-2)

    print("KERNEL_OK")
</pallas_src>

<mosaic_0001>
module attributes {stable_mosaic.version = 11 : i64} {
  func.func @_cond_kernel(%arg0: i32, %arg1: memref<1x384x16xbf16, #tpu.memory_space<vmem>>, %arg2: memref<128x384xbf16, #tpu.memory_space<vmem>>, %arg3: memref<256x128xbf16, #tpu.memory_space<vmem>>, %arg4: memref<256x256xbf16, #tpu.memory_space<vmem>>, %arg5: memref<512x256xbf16, #tpu.memory_space<vmem>>, %arg6: memref<512x512xbf16, #tpu.memory_space<vmem>>, %arg7: memref<512x256xbf16, #tpu.memory_space<vmem>>, %arg8: memref<512x512xbf16, #tpu.memory_space<vmem>>, %arg9: memref<512x8xf32, #tpu.memory_space<vmem>>, %arg10: memref<1x512x16xf32, #tpu.memory_space<vmem>>, %arg11: memref<1x512x16xf32, #tpu.memory_space<vmem>>) attributes {dimension_semantics = [#tpu.dimension_semantics<parallel>], iteration_bounds = array<i64: 2>, scalar_prefetch = 0 : i64, scratch_operands = 0 : i64, tpu.core_type = #tpu.core_type<tc>, window_params = [{transform_indices = @transform_0, window_bounds = array<i64: 1, 384, 16>}, {pipeline_mode = #tpu.pipeline_mode<synchronous>, transform_indices = @transform_1, window_bounds = array<i64: 128, 384>}, {pipeline_mode = #tpu.pipeline_mode<synchronous>, transform_indices = @transform_2, window_bounds = array<i64: 256, 128>}, {pipeline_mode = #tpu.pipeline_mode<synchronous>, transform_indices = @transform_3, window_bounds = array<i64: 256, 256>}, {pipeline_mode = #tpu.pipeline_mode<synchronous>, transform_indices = @transform_4, window_bounds = array<i64: 512, 256>}, {pipeline_mode = #tpu.pipeline_mode<synchronous>, transform_indices = @transform_5, window_bounds = array<i64: 512, 512>}, {pipeline_mode = #tpu.pipeline_mode<synchronous>, transform_indices = @transform_6, window_bounds = array<i64: 512, 256>}, {pipeline_mode = #tpu.pipeline_mode<synchronous>, transform_indices = @transform_7, window_bounds = array<i64: 512, 512>}, {pipeline_mode = #tpu.pipeline_mode<synchronous>, transform_indices = @transform_8, window_bounds = array<i64: 512, 8>}, {transform_indices = @transform_9, window_bounds = array<i64: 1, 512, 16>}, {transform_indices = @transform_10, window_bounds = array<i64: 1, 512, 16>}]} {
    %c0 = arith.constant 0 : index
    %c0_0 = arith.constant 0 : index
    %c0_1 = arith.constant 0 : index
    %0 = vector.load %arg1[%c0, %c0_0, %c0_1] : memref<1x384x16xbf16, #tpu.memory_space<vmem>>, vector<1x384x16xbf16>
    %1 = vector.shape_cast %0 : vector<1x384x16xbf16> to vector<384x16xbf16>
    %c0_2 = arith.constant 0 : index
    %c0_3 = arith.constant 0 : index
    %2 = vector.load %arg2[%c0_2, %c0_3] : memref<128x384xbf16, #tpu.memory_space<vmem>>, vector<128x384xbf16>
    %cst = arith.constant dense<0.000000e+00> : vector<128x16xf32>
    %3 = tpu.matmul %2, %1, %cst {dimension_numbers = #tpu.dot_dimension_numbers<[1], [0], [0], [1], [0, 0, 1, 1], [], []>} : vector<128x384xbf16>, vector<384x16xbf16>, vector<128x16xf32> -> vector<128x16xf32>
    %cst_4 = arith.constant 0.000000e+00 : f32
    %4 = vector.broadcast %cst_4 : f32 to vector<128x16xf32>
    %5 = arith.cmpf ogt, %3, %4 : vector<128x16xf32>
    %cst_5 = arith.constant 1.000000e-01 : f32
    %6 = vector.broadcast %cst_5 : f32 to vector<128x16xf32>
    %7 = arith.mulf %6, %3 : vector<128x16xf32>
    %8 = arith.select %5, %3, %7 : vector<128x16xi1>, vector<128x16xf32>
    %cst_6 = arith.constant dense<0.000000e+00> : vector<128xf32>
    %9 = vector.multi_reduction <add>, %8, %cst_6 [1] : vector<128x16xf32> to vector<128xf32>
    %10 = vector.shape_cast %9 : vector<128xf32> to vector<128x1xf32>
    %cst_7 = arith.constant 1.600000e+01 : f32
    %11 = vector.broadcast %cst_7 : f32 to vector<128x1xf32>
    %12 = arith.divf %10, %11 : vector<128x1xf32>
    %13 = vector.broadcast %12 : vector<128x1xf32> to vector<128x16xf32>
    %14 = arith.subf %8, %13 : vector<128x16xf32>
    %15 = arith.mulf %14, %14 : vector<128x16xf32>
    %cst_8 = arith.constant dense<0.000000e+00> : vector<128xf32>
    %16 = vector.multi_reduction <add>, %15, %cst_8 [1] : vector<128x16xf32> to vector<128xf32>
    %17 = vector.shape_cast %16 : vector<128xf32> to vector<128x1xf32>
    %cst_9 = arith.constant 1.600000e+01 : f32
    %18 = vector.broadcast %cst_9 : f32 to vector<128x1xf32>
    %19 = arith.divf %17, %18 : vector<128x1xf32>
    %cst_10 = arith.constant 9.99999974E-6 : f32
    %20 = vector.broadcast %cst_10 : f32 to vector<128x1xf32>
    %21 = arith.addf %19, %20 : vector<128x1xf32>
    %22 = math.rsqrt %21 : vector<128x1xf32>
    %23 = vector.broadcast %22 : vector<128x1xf32> to vector<128x16xf32>
    %24 = arith.mulf %14, %23 : vector<128x16xf32>
    %25 = arith.truncf %24 : vector<128x16xf32> to vector<128x16xbf16>
    %c0_11 = arith.constant 0 : index
    %c0_12 = arith.constant 0 : index
    %26 = vector.load %arg3[%c0_11, %c0_12] : memref<256x128xbf16, #tpu.memory_space<vmem>>, vector<256x128xbf16>
    %cst_13 = arith.constant dense<0.000000e+00> : vector<256x16xf32>
    %27 = tpu.matmul %26, %25, %cst_13 {dimension_numbers = #tpu.dot_dimension_numbers<[1], [0], [0], [1], [0, 0, 1, 1], [], []>} : vector<256x128xbf16>, vector<128x16xbf16>, vector<256x16xf32> -> vector<256x16xf32>
    %c0_14 = arith.constant 0 : index
    %c0_15 = arith.constant 0 : index
    %28 = vector.load %arg9[%c0_14, %c0_15] : memref<512x8xf32, #tpu.memory_space<vmem>>, vector<256x1xf32>
    %29 = vector.broadcast %28 : vector<256x1xf32> to vector<256x16xf32>
    %30 = arith.addf %27, %29 : vector<256x16xf32>
    %cst_16 = arith.constant 0.000000e+00 : f32
    %31 = vector.broadcast %cst_16 : f32 to vector<256x16xf32>
    %32 = arith.cmpf ogt, %30, %31 : vector<256x16xf32>
    %cst_17 = arith.constant 1.000000e-01 : f32
    %33 = vector.broadcast %cst_17 : f32 to vector<256x16xf32>
    %34 = arith.mulf %33, %30 : vector<256x16xf32>
    %35 = arith.select %32, %30, %34 : vector<256x16xi1>, vector<256x16xf32>
    %36 = arith.truncf %35 : vector<256x16xf32> to vector<256x16xbf16>
    %c0_18 = arith.constant 0 : index
    %c0_19 = arith.constant 0 : index
    %37 = vector.load %arg4[%c0_18, %c0_19] : memref<256x256xbf16, #tpu.memory_space<vmem>>, vector<256x256xbf16>
    %cst_20 = arith.constant dense<0.000000e+00> : vector<256x16xf32>
    %38 = tpu.matmul %37, %36, %cst_20 {dimension_numbers = #tpu.dot_dimension_numbers<[1], [0], [0], [1], [0, 0, 1, 1], [], []>} : vector<256x256xbf16>, vector<256x16xbf16>, vector<256x16xf32> -> vector<256x16xf32>
    %c0_21 = arith.constant 0 : index
    %c1 = arith.constant 1 : index
    %39 = vector.load %arg9[%c0_21, %c1] : memref<512x8xf32, #tpu.memory_space<vmem>>, vector<256x1xf32>
    %40 = vector.broadcast %39 : vector<256x1xf32> to vector<256x16xf32>
    %41 = arith.addf %38, %40 : vector<256x16xf32>
    %cst_22 = arith.constant 0.000000e+00 : f32
    %42 = vector.broadcast %cst_22 : f32 to vector<256x16xf32>
    %43 = arith.cmpf ogt, %41, %42 : vector<256x16xf32>
    %cst_23 = arith.constant 1.000000e-01 : f32
    %44 = vector.broadcast %cst_23 : f32 to vector<256x16xf32>
    %45 = arith.mulf %44, %41 : vector<256x16xf32>
    %46 = arith.select %43, %41, %45 : vector<256x16xi1>, vector<256x16xf32>
    %cst_24 = arith.constant dense<0.000000e+00> : vector<256xf32>
    %47 = vector.multi_reduction <add>, %46, %cst_24 [1] : vector<256x16xf32> to vector<256xf32>
    %48 = vector.shape_cast %47 : vector<256xf32> to vector<256x1xf32>
    %cst_25 = arith.constant 1.600000e+01 : f32
    %49 = vector.broadcast %cst_25 : f32 to vector<256x1xf32>
    %50 = arith.divf %48, %49 : vector<256x1xf32>
    %51 = vector.broadcast %50 : vector<256x1xf32> to vector<256x16xf32>
    %52 = arith.subf %46, %51 : vector<256x16xf32>
    %53 = arith.mulf %52, %52 : vector<256x16xf32>
    %cst_26 = arith.constant dense<0.000000e+00> : vector<256xf32>
    %54 = vector.multi_reduction <add>, %53, %cst_26 [1] : vector<256x16xf32> to vector<256xf32>
    %55 = vector.shape_cast %54 : vector<256xf32> to vector<256x1xf32>
    %cst_27 = arith.constant 1.600000e+01 : f32
    %56 = vector.broadcast %cst_27 : f32 to vector<256x1xf32>
    %57 = arith.divf %55, %56 : vector<256x1xf32>
    %cst_28 = arith.constant 9.99999974E-6 : f32
    %58 = vector.broadcast %cst_28 : f32 to vector<256x1xf32>
    %59 = arith.addf %57, %58 : vector<256x1xf32>
    %60 = math.rsqrt %59 : vector<256x1xf32>
    %61 = vector.broadcast %60 : vector<256x1xf32> to vector<256x16xf32>
    %62 = arith.mulf %52, %61 : vector<256x16xf32>
    %63 = arith.truncf %62 : vector<256x16xf32> to vector<256x16xbf16>
    %c0_29 = arith.constant 0 : index
    %c0_30 = arith.constant 0 : index
    %64 = vector.load %arg5[%c0_29, %c0_30] : memref<512x256xbf16, #tpu.memory_space<vmem>>, vector<512x256xbf16>
    %cst_31 = arith.constant dense<0.000000e+00> : vector<512x16xf32>
    %65 = tpu.matmul %64, %63, %cst_31 {dimension_numbers = #tpu.dot_dimension_numbers<[1], [0], [0], [1], [0, 0, 1, 1], [], []>} : vector<512x256xbf16>, vector<256x16xbf16>, vector<512x16xf32> -> vector<512x16xf32>
    %c0_32 = arith.constant 0 : index
    %c2 = arith.constant 2 : index
    %66 = vector.load %arg9[%c0_32, %c2] : memref<512x8xf32, #tpu.memory_space<vmem>>, vector<512x1xf32>
    %67 = vector.broadcast %66 : vector<512x1xf32> to vector<512x16xf32>
    %68 = arith.addf %65, %67 : vector<512x16xf32>
    %cst_33 = arith.constant 0.000000e+00 : f32
    %69 = vector.broadcast %cst_33 : f32 to vector<512x16xf32>
    %70 = arith.cmpf ogt, %68, %69 : vector<512x16xf32>
    %cst_34 = arith.constant 1.000000e-01 : f32
    %71 = vector.broadcast %cst_34 : f32 to vector<512x16xf32>
    %72 = arith.mulf %71, %68 : vector<512x16xf32>
    %73 = arith.select %70, %68, %72 : vector<512x16xi1>, vector<512x16xf32>
    %74 = arith.truncf %73 : vector<512x16xf32> to vector<512x16xbf16>
    %c0_35 = arith.constant 0 : index
    %c0_36 = arith.constant 0 : index
    %75 = vector.load %arg6[%c0_35, %c0_36] : memref<512x512xbf16, #tpu.memory_space<vmem>>, vector<512x512xbf16>
    %cst_37 = arith.constant dense<0.000000e+00> : vector<512x16xf32>
    %76 = tpu.matmul %75, %74, %cst_37 {dimension_numbers = #tpu.dot_dimension_numbers<[1], [0], [0], [1], [0, 0, 1, 1], [], []>} : vector<512x512xbf16>, vector<512x16xbf16>, vector<512x16xf32> -> vector<512x16xf32>
    %c0_38 = arith.constant 0 : index
    %c3 = arith.constant 3 : index
    %77 = vector.load %arg9[%c0_38, %c3] : memref<512x8xf32, #tpu.memory_space<vmem>>, vector<512x1xf32>
    %78 = vector.broadcast %77 : vector<512x1xf32> to vector<512x16xf32>
    %79 = arith.addf %76, %78 : vector<512x16xf32>
    %c0_39 = arith.constant 0 : index
    %c0_40 = arith.constant 0 : index
    %80 = vector.load %arg7[%c0_39, %c0_40] : memref<512x256xbf16, #tpu.memory_space<vmem>>, vector<512x256xbf16>
    %cst_41 = arith.constant dense<0.000000e+00> : vector<512x16xf32>
    %81 = tpu.matmul %80, %63, %cst_41 {dimension_numbers = #tpu.dot_dimension_numbers<[1], [0], [0], [1], [0, 0, 1, 1], [], []>} : vector<512x256xbf16>, vector<256x16xbf16>, vector<512x16xf32> -> vector<512x16xf32>
    %c0_42 = arith.constant 0 : index
    %c4 = arith.constant 4 : index
    %82 = vector.load %arg9[%c0_42, %c4] : memref<512x8xf32, #tpu.memory_space<vmem>>, vector<512x1xf32>
    %83 = vector.broadcast %82 : vector<512x1xf32> to vector<512x16xf32>
    %84 = arith.addf %81, %83 : vector<512x16xf32>
    %cst_43 = arith.constant 0.000000e+00 : f32
    %85 = vector.broadcast %cst_43 : f32 to vector<512x16xf32>
    %86 = arith.cmpf ogt, %84, %85 : vector<512x16xf32>
    %cst_44 = arith.constant 1.000000e-01 : f32
    %87 = vector.broadcast %cst_44 : f32 to vector<512x16xf32>
    %88 = arith.mulf %87, %84 : vector<512x16xf32>
    %89 = arith.select %86, %84, %88 : vector<512x16xi1>, vector<512x16xf32>
    %90 = arith.truncf %89 : vector<512x16xf32> to vector<512x16xbf16>
    %c0_45 = arith.constant 0 : index
    %c0_46 = arith.constant 0 : index
    %91 = vector.load %arg8[%c0_45, %c0_46] : memref<512x512xbf16, #tpu.memory_space<vmem>>, vector<512x512xbf16>
    %cst_47 = arith.constant dense<0.000000e+00> : vector<512x16xf32>
    %92 = tpu.matmul %91, %90, %cst_47 {dimension_numbers = #tpu.dot_dimension_numbers<[1], [0], [0], [1], [0, 0, 1, 1], [], []>} : vector<512x512xbf16>, vector<512x16xbf16>, vector<512x16xf32> -> vector<512x16xf32>
    %c0_48 = arith.constant 0 : index
    %c5 = arith.constant 5 : index
    %93 = vector.load %arg9[%c0_48, %c5] : memref<512x8xf32, #tpu.memory_space<vmem>>, vector<512x1xf32>
    %94 = vector.broadcast %93 : vector<512x1xf32> to vector<512x16xf32>
    %95 = arith.addf %92, %94 : vector<512x16xf32>
    %c0_49 = arith.constant 0 : index
    %c0_50 = arith.constant 0 : index
    %c0_51 = arith.constant 0 : index
    %96 = vector.load %arg10[%c0_49, %c0_50, %c0_51] : memref<1x512x16xf32, #tpu.memory_space<vmem>>, vector<1x512x16xf32>
    %97 = vector.shape_cast %96 : vector<1x512x16xf32> to vector<512x16xf32>
    %98 = vector.shape_cast %79 : vector<512x16xf32> to vector<1x512x16xf32>
    tpu.vector_store %arg10[%c0_49, %c0_50, %c0_51], %98 {strides = array<i32>} : memref<1x512x16xf32, #tpu.memory_space<vmem>>, vector<1x512x16xf32>,
    %c0_52 = arith.constant 0 : index
    %c0_53 = arith.constant 0 : index
    %c0_54 = arith.constant 0 : index
    %99 = vector.load %arg11[%c0_52, %c0_53, %c0_54] : memref<1x512x16xf32, #tpu.memory_space<vmem>>, vector<1x512x16xf32>
    %100 = vector.shape_cast %99 : vector<1x512x16xf32> to vector<512x16xf32>
    %101 = vector.shape_cast %95 : vector<512x16xf32> to vector<1x512x16xf32>
    tpu.vector_store %arg11[%c0_52, %c0_53, %c0_54], %101 {strides = array<i32>} : memref<1x512x16xf32, #tpu.memory_space<vmem>>, vector<1x512x16xf32>,
    return
  }
  func.func @transform_0(%arg0: i32) -> (i32, i32, i32) {
    %c0_i32 = arith.constant 0 : i32
    %c0_i32_0 = arith.constant 0 : i32
    %c0_i32_1 = arith.constant 0 : i32
    return %arg0, %c0_i32, %c0_i32_0 : i32, i32, i32
  }
  func.func @transform_1(%arg0: i32) -> (i32, i32) {
    %c0_i32 = arith.constant 0 : i32
    %c0_i32_0 = arith.constant 0 : i32
    %c0_i32_1 = arith.constant 0 : i32
    return %c0_i32, %c0_i32_0 : i32, i32
  }
  func.func @transform_2(%arg0: i32) -> (i32, i32) {
    %c0_i32 = arith.constant 0 : i32
    %c0_i32_0 = arith.constant 0 : i32
    %c0_i32_1 = arith.constant 0 : i32
    return %c0_i32, %c0_i32_0 : i32, i32
  }
  func.func @transform_3(%arg0: i32) -> (i32, i32) {
    %c0_i32 = arith.constant 0 : i32
    %c0_i32_0 = arith.constant 0 : i32
    %c0_i32_1 = arith.constant 0 : i32
    return %c0_i32, %c0_i32_0 : i32, i32
  }
  func.func @transform_4(%arg0: i32) -> (i32, i32) {
    %c0_i32 = arith.constant 0 : i32
    %c0_i32_0 = arith.constant 0 : i32
    %c0_i32_1 = arith.constant 0 : i32
    return %c0_i32, %c0_i32_0 : i32, i32
  }
  func.func @transform_5(%arg0: i32) -> (i32, i32) {
    %c0_i32 = arith.constant 0 : i32
    %c0_i32_0 = arith.constant 0 : i32
    %c0_i32_1 = arith.constant 0 : i32
    return %c0_i32, %c0_i32_0 : i32, i32
  }
  func.func @transform_6(%arg0: i32) -> (i32, i32) {
    %c0_i32 = arith.constant 0 : i32
    %c0_i32_0 = arith.constant 0 : i32
    %c0_i32_1 = arith.constant 0 : i32
    return %c0_i32, %c0_i32_0 : i32, i32
  }
  func.func @transform_7(%arg0: i32) -> (i32, i32) {
    %c0_i32 = arith.constant 0 : i32
    %c0_i32_0 = arith.constant 0 : i32
    %c0_i32_1 = arith.constant 0 : i32
    return %c0_i32, %c0_i32_0 : i32, i32
  }
  func.func @transform_8(%arg0: i32) -> (i32, i32) {
    %c0_i32 = arith.constant 0 : i32
    %c0_i32_0 = arith.constant 0 : i32
    %c0_i32_1 = arith.constant 0 : i32
    return %c0_i32, %c0_i32_0 : i32, i32
  }
  func.func @transform_9(%arg0: i32) -> (i32, i32, i32) {
    %c0_i32 = arith.constant 0 : i32
    %c0_i32_0 = arith.constant 0 : i32
    %c0_i32_1 = arith.constant 0 : i32
    return %arg0, %c0_i32, %c0_i32_0 : i32, i32, i32
  }
  func.func @transform_10(%arg0: i32) -> (i32, i32, i32) {
    %c0_i32 = arith.constant 0 : i32
    %c0_i32_0 = arith.constant 0 : i32
    %c0_i32_1 = arith.constant 0 : i32
    return %arg0, %c0_i32, %c0_i32_0 : i32, i32, i32
  }
}

</mosaic_0001>

<bundles_post_ra>
// kernel: tpu_custom_call.1
= control target key start
LH: loop header
LB: loop body
LE: loop exit
PB: predicated region body
PF: predicated region fallthrough
CT: control target
= control target key end

     0   :  { %16 = vsyncpa [#allocation3], 0  ;;  %s14384_s0 = inlined_call_operand.vmem [shape: bf16[2,384,16], index: 0, kind: input, shape index: {}]   ;;  %s14385_s1 = inlined_call_operand.vmem [shape: bf16[128,384], index: 1, kind: input, shape index: {}]   ;;  %s14386_s2 = inlined_call_operand.hbm [shape: bf16[256,128], index: 2, kind: input, shape index: {}]   ;;  %s14387_s3 = inlined_call_operand.vmem [shape: bf16[256,256], index: 3, kind: input, shape index: {}]   ;;  %s14388_s4 = inlined_call_operand.vmem [shape: bf16[512,256], index: 4, kind: input, shape index: {}]   ;;  %s14389_s5 = inlined_call_operand.hbm [shape: bf16[512,512], index: 5, kind: input, shape index: {}]   ;;  %s14390_s6 = inlined_call_operand.hbm [shape: bf16[512,256], index: 6, kind: input, shape index: {}]   ;;  %s14391_s7 = inlined_call_operand.hbm [shape: bf16[512,512], index: 7, kind: input, shape index: {}]   ;;  %s14392_s8 = inlined_call_operand.vmem [shape: f32[512,8], index: 8, kind: input, shape index: {}]   ;;  %s14393_s9 = inlined_call_operand.vmem [shape: f32[2,512,16], index: 9, kind: output, shape index: {0}]   ;;  %s14394_s10 = inlined_call_operand.vmem [shape: f32[2,512,16], index: 10, kind: output, shape index: {1}]  }
   0x1   :  { %17 = vsyncpa [#allocation5], 0 }
   0x2   :  { %18 = vsyncpa [#allocation8], 0  ;;  %s11089_s13 = smov 0  }
   0x3 LB: > { %s11018_s14 = smov [#allocation4]   ;;  %s11095_s16 = sadd.s32 4294967295, %s11016_s13   ;;  %s11016_s13 = sphi %s11089_s13, %s24_s13  }
   0x4   : > { %s309_s15 = sshll.u32 %s11018_s14, 4  ;;  %p8744_p0 = scmp.ge.s32.totalorder %s11016_s13, 1  ;;  %s11100_s15 = int_to_ptr.vmem [resolvable:$true] %s309_s15 }
   0x5   : > { %p275_p1 = scmp.lt.s32.totalorder %s11016_s13, 3  ;;  %p14395_p2 = scmp.eq.s32.totalorder %s11095_s16, 0 }
   0x6   : > { %s11019_s18 = smov [#allocation2]   ;;  %s11020_s21 = smov [#allocation6]  }
   0x7   : > { %p11102_p3 = pnand %p8744_p0, %p275_p1  ;;  %s290_s19 = sshll.u32 %s11019_s18, 4  ;;  %s11108_s19 = int_to_ptr.vmem [resolvable:$true] %s290_s19 }
   0x8   : > { %s11116_s22 = sshll.u32 %s11020_s21, 4  ;;  %s10886_s25 = scalar_lea.hbm %s14389_s5, 16384  ;;  %s323_s22 = int_to_ptr.vmem [resolvable:$true] %s11116_s22 }
   0x9   : > { %s14439_s17 = scalar_select %p11102_p3, 1, 0 }
   0xa   : > { %p9921_p4 = pneg %p11102_p3  ;;  %p10887_p6 = scmp.ne.s32.totalorder %s14389_s5, %s10886_s25 }
   0xb   : > { %p10893_p10 = scmp.lt.u32.totalorder %s10886_s25, %s14389_s5 }
   0xc   : > { %p11112_p5 = pnand %p14395_p2, %p9921_p4 }
   0xe   : > { %p11126_p7 = pneg %p11112_p5 }
  0x10   : > { %p10889_p8 = pnand %p11126_p7, %p10887_p6 }
  0x12   : > { %p10890_p9 = pneg %p10889_p8 }
  0x14   : > { %p10895_p11 = pnand %p10893_p10, %p10890_p9 }
  0x16   : > { %10898 = shalt.err (!%p10895_p11)
}
  0x17   : > { %s10899_s11 = scalar_lea.vmem %s11100_s15, 16384  ;;  %p10907_p1 = scmp.lt.s32.totalorder %s11100_s15, %s11100_s15 }
  0x18   : > { %p10900_p12 = scmp.ne.s32.totalorder %s11100_s15, %s10899_s11  ;;  %p10908_p4 = scmp.lt.s32.totalorder %s10899_s11, %s10899_s11 }
  0x1a   : > { %p10902_p13 = pnand %p10900_p12, %p11126_p7  ;;  %p10909_p6 = por %p10908_p4, %p10907_p1 }
  0x1c   : > { %p10903_p0 = pneg %p10902_p13 }
  0x1e   : > { %p10910_p8 = pnand %p10909_p6, %p10903_p0 }
  0x20   : > { %10913 = shalt.err (!%p10910_p8)
}
  0x21   : > { %s14397_s12 = smov 256   ;;  %s11022_s14 = smov 16  }
  0x22   : > { %9927 = dma.hbm_to_vmem [thread:$0]  (!%p11112_p5), %s14389_s5, 16384, %s11100_s15, [#allocation5], %s14397_s12, %s14397_s12, %s11022_s14  }
  0x23   : > { %s10914_s25 = scalar_lea.hbm %s14386_s2, 2048 }
  0x24   : > { %p10915_p9 = scmp.ne.s32.totalorder %s14386_s2, %s10914_s25  ;;  %p10921_p12 = scmp.lt.u32.totalorder %s10914_s25, %s14386_s2 }
  0x26   : > { %p10917_p10 = pnand %p10915_p9, %p11126_p7 }
  0x28   : > { %p10918_p11 = pneg %p10917_p10 }
  0x2a   : > { %p10923_p13 = pnand %p10921_p12, %p10918_p11 }
  0x2c   : > { %10926 = shalt.err (!%p10923_p13)
}
  0x2d   : > { %s10927_s15 = scalar_lea.vmem %s11108_s19, 2048  ;;  %p10935_p6 = scmp.lt.s32.totalorder %s11108_s19, %s11108_s19 }
  0x2e   : > { %p10928_p0 = scmp.ne.s32.totalorder %s11108_s19, %s10927_s15  ;;  %p10936_p8 = scmp.lt.s32.totalorder %s10927_s15, %s10927_s15 }
  0x30   : > { %p10930_p1 = pnand %p10928_p0, %p11126_p7  ;;  %p10937_p9 = por %p10936_p8, %p10935_p6 }
  0x32   : > { %p10931_p4 = pneg %p10930_p1 }
  0x34   : > { %p10938_p10 = pnand %p10937_p9, %p10931_p4 }
  0x36   : > { %10941 = shalt.err (!%p10938_p10)
}
  0x37   : > { %s11023_s11 = smov 64   ;;  %s11024_s18 = smov 4  }
  0x38   : > { %9924 = dma.hbm_to_vmem [thread:$0]  (!%p11112_p5), %s14386_s2, 2048, %s11108_s19, [#allocation3], %s11023_s11, %s11023_s11, %s11024_s18  }
  0x39   : > { %s10942_s26 = scalar_lea.hbm %s14390_s6, 8192 }
  0x3a   : > { %p10943_p11 = scmp.ne.s32.totalorder %s14390_s6, %s10942_s26  ;;  %p10949_p0 = scmp.lt.u32.totalorder %s10942_s26, %s14390_s6 }
  0x3c   : > { %p10945_p12 = pnand %p10943_p11, %p11126_p7 }
  0x3e   : > { %p10946_p13 = pneg %p10945_p12 }
  0x40   : > { %p10951_p1 = pnand %p10949_p0, %p10946_p13 }
  0x42   : > { %10954 = shalt.err (!%p10951_p1)
}
  0x43   : > { %s10955_s21 = scalar_lea.vmem %s323_s22, 8192  ;;  %p10963_p9 = scmp.lt.s32.totalorder %s323_s22, %s323_s22 }
  0x44   : > { %p10956_p4 = scmp.ne.s32.totalorder %s323_s22, %s10955_s21  ;;  %p10964_p10 = scmp.lt.s32.totalorder %s10955_s21, %s10955_s21 }
  0x46   : > { %p10958_p6 = pnand %p10956_p4, %p11126_p7  ;;  %p10965_p2 = por %p10964_p10, %p10963_p9 }
  0x48   : > { %p10959_p8 = pneg %p10958_p6 }
  0x4a   : > { %p10966_p3 = pnand %p10965_p2, %p10959_p8 }
  0x4c   : > { %10969 = shalt.err (!%p10966_p3)
}
  0x4d   : > { %s11025_s19 = smov 128   ;;  %s11026_s11 = smov 8  }
  0x4e   : > { %9930 = dma.hbm_to_vmem [thread:$0]  (!%p11112_p5), %s14390_s6, 8192, %s323_s22, [#allocation5], %s11025_s19, %s11025_s19, %s11026_s11  }
  0x4f   : > { %s11027_s24 = smov [#allocation7]   ;;  %s10970_s29 = scalar_lea.hbm %s14391_s7, 16384 }
  0x50   : > { %s335_s25 = sshll.u32 %s11027_s24, 4  ;;  %p10971_p2 = scmp.ne.s32.totalorder %s14391_s7, %s10970_s29  ;;  %s336_s25 = int_to_ptr.vmem [resolvable:$true] %s335_s25 }
  0x51   : > { %p10977_p12 = scmp.lt.u32.totalorder %s10970_s29, %s14391_s7 }
  0x52   : > { %p10973_p3 = pnand %p10971_p2, %p11126_p7 }
  0x54   : > { %p10974_p11 = pneg %p10973_p3 }
  0x56   : > { %p10979_p13 = pnand %p10977_p12, %p10974_p11 }
  0x58   : > { %10982 = shalt.err (!%p10979_p13)
}
  0x59   : > { %s10983_s22 = scalar_lea.vmem %s336_s25, 16384  ;;  %p10991_p6 = scmp.lt.s32.totalorder %s336_s25, %s336_s25 }
  0x5a   : > { %p10984_p0 = scmp.ne.s32.totalorder %s336_s25, %s10983_s22  ;;  %p10992_p8 = scmp.lt.s32.totalorder %s10983_s22, %s10983_s22 }
  0x5c   : > { %p10986_p1 = pnand %p10984_p0, %p11126_p7  ;;  %p10993_p9 = por %p10992_p8, %p10991_p6 }
  0x5e   : > { %p10987_p4 = pneg %p10986_p1 }
  0x60   : > { %p10994_p10 = pnand %p10993_p9, %p10987_p4 }
  0x62   : > { %10997 = shalt.err (!%p10994_p10)
}
  0x63   : > { %s14442_s19 = smov 256   ;;  %p14443_p2 = scmp.ne.s32.totalorder %s14439_s17, 0 }
  0x64   : > { %9933 = dma.hbm_to_vmem [thread:$0]  (!%p11112_p5), %s14391_s7, 16384, %s336_s25, [#allocation8], %s14442_s19, %s14442_s19, %s11022_s14  }
  0x65   : > { %362 = sbr.rel (%p14443_p2) target bundleno = 2965 (0xb95), region = 56 }
  0x6c   : > { %p14444_p7 = scmp.eq.s32.totalorder %s11095_s16, 0 }
  0x6e   : > { %11003 = dma.done.wait (%p14444_p7), [#allocation3], 2048   ;;  %p14445_p3 = pmov %p14444_p7 }
  0x70   : > { %11005 = vsyncadd (%p14445_p3), [#allocation3], 4294965248  ;;  %p14446_p11 = pmov %p14445_p3 }
  0x71   : > { %p14447_p12 = pmov %p14445_p3 }
  0x72   : > { %11007 = dma.done.wait (%p14446_p11), [#allocation5], 24576  }
  0x73   : > { %11009 = vsyncadd (%p14447_p12), [#allocation5], 4294942720  ;;  %p14448_p13 = pmov %p14445_p3 }
  0x74   : > { %p14449_p5 = pmov %p14445_p3 }
  0x75   : > { %11011 = dma.done.wait (%p14448_p13), [#allocation8], 16384  }
  0x76   : > { %11013 = vsyncadd (%p14449_p5), [#allocation8], 4294950912  ;;  %p417_p0 = scmp.lt.s32.totalorder %s11095_s16, 1  ;;  %v10005_v23 = vld [vmem:[%s14385_s1 + $0x4] ss:$12 sps:$4 sm:$0xff]   ;;  %vm1027_vm1 = vcmask 130048  }
  0x77   : > { %v10006_v24 = vld [vmem:[%s14385_s1 + $0x8] ss:$12 sps:$4 sm:$0xff]   ;;  %817 = vmatprep.mubr.bf16.mxu0 %v10005_v23  ;;  %v10003_v26 = vld [vmem:[%s14385_s1] ss:$12 sps:$4 sm:$0xff]   ;;  %v10014_v29 = vld [vmem:[%s14385_s1 + $0x38] ss:$12 sps:$4 sm:$0xff]  }
  0x78   : > { %s14590_s16 = smov (!%p417_p0, %s11095_s16), 1  ;;  %9476 = vmatprep.mubr.bf16.mxu1 %v10006_v24  ;;  %v10008_v27 = vld [vmem:[%s14385_s1 + $0x1c] ss:$12 sps:$4 sm:$0xff]   ;;  %v10007_v28 = vld [vmem:[%s14385_s1 + $0x20] ss:$12 sps:$4 sm:$0xff]  }
  0x79   : > { %s9904_s17 = smul.u32 192, %s14590_s16  ;;  %v10010_v30 = vld [vmem:[%s14385_s1 + $0x18] ss:$12 sps:$4 sm:$0xff]   ;;  %v10011_v31 = vld [vmem:[%s14385_s1 + $0x34] ss:$12 sps:$4 sm:$0xff]  }
  0x7a   : > { %v10015_v32 = vld [vmem:[%s14385_s1 + $0x50] ss:$12 sps:$4 sm:$0xff]   ;;  %v10022_v33 = vld [vmem:[%s14385_s1 + $0x68] ss:$12 sps:$4 sm:$0xff]   ;;  %v10016_v35 = vld [vmem:[%s14385_s1 + $0x4c] ss:$12 sps:$4 sm:$0xff]  }
  0x7b   : > { %s11235_s14 = scalar_lea.vmem %s14384_s0, %s9904_s17  ;;  %v10013_v34 = vld [vmem:[%s14385_s1 + $0x30] ss:$12 sps:$4 sm:$0xff]   ;;  %v10023_v36 = vld [vmem:[%s14385_s1 + $0x80] ss:$12 sps:$4 sm:$0xff]   ;;  %v10030_v37 = vld [vmem:[%s14385_s1 + $0x98] ss:$12 sps:$4 sm:$0xff]  }
  0x7c   : > { %v9979_v0 = vld [vmem:[%s11235_s14 + $0x40] sm:$0xff]   ;;  %v9982_v3 = vld [vmem:[%s11235_s14 + $0x48] sm:$0xff]   ;;  %v9985_v6 = vld [vmem:[%s11235_s14 + $0x50] sm:$0xff]   ;;  %s9242_s17 = sshll.u32 %s14590_s16, 9 }
  0x7d   : > { %v9980_v1 = vld [vmem:[%s11235_s14] sm:$0xff]   ;;  %9244 = vmatprep.subr.bf16.mxu0 %v9979_v0  ;;  %v9983_v4 = vld [vmem:[%s11235_s14 + $0x8] sm:$0xff]   ;;  %v9986_v7 = vld [vmem:[%s11235_s14 + $0x10] sm:$0xff]   ;;  %s13780_s25 = scalar_lea.vmem %s14393_s9, %s9242_s17  ;;  %s14199_s29 = scalar_lea.vmem %s14394_s10, %s9242_s17 }
  0x7e   : > { %v9981_v2 = vld [vmem:[%s11235_s14 + $0x80] sm:$0xff]   ;;  %9245 = vmatpush3.bf16.msra.mxu0 %v9980_v1  ;;  %v9984_v5 = vld [vmem:[%s11235_s14 + $0x88] sm:$0xff]   ;;  %v9987_v8 = vld [vmem:[%s11235_s14 + $0x90] sm:$0xff]  }
  0x7f   : > { %9460 = vmatprep.subr.bf16.mxu1 %v9981_v2  ;;  %9246 = vmatprep.subr.bf16.mxu0 %v9982_v3  ;;  %v9988_v9 = vld [vmem:[%s11235_s14 + $0x58] sm:$0xff]   ;;  %v9991_v12 = vld [vmem:[%s11235_s14 + $0x60] sm:$0xff]   ;;  %v9994_v15 = vld [vmem:[%s11235_s14 + $0x68] sm:$0xff]  }
  0x80   : > { %9461 = vmatpush3.bf16.msra.mxu1 %v9981_v2  ;;  %v9989_v10 = vld [vmem:[%s11235_s14 + $0x18] sm:$0xff]   ;;  %v9993_v13 = vld [vmem:[%s11235_s14 + $0xa0] sm:$0xff]   ;;  %v9996_v16 = vld [vmem:[%s11235_s14 + $0xa8] sm:$0xff]  }
  0x81   : > { %9462 = vmatprep.subr.bf16.mxu1 %v9984_v5  ;;  %v9990_v11 = vld [vmem:[%s11235_s14 + $0x98] sm:$0xff]   ;;  %v9992_v14 = vld [vmem:[%s11235_s14 + $0x20] sm:$0xff]   ;;  %v9995_v17 = vld [vmem:[%s11235_s14 + $0x28] sm:$0xff]  }
  0x82   : > { %9247 = vmatpush3.bf16.msra.mxu0 %v9983_v4  ;;  %v9997_v18 = vld [vmem:[%s11235_s14 + $0x70] sm:$0xff]   ;;  %v10000_v21 = vld [vmem:[%s11235_s14 + $0x78] sm:$0xff]   ;;  %v10021_v41 = vld [vmem:[%s14385_s1 + $0x60] ss:$12 sps:$4 sm:$0xff]  }
  0x83   : > { %9248 = vmatprep.subr.bf16.mxu0 %v9985_v6  ;;  %v9998_v19 = vld [vmem:[%s11235_s14 + $0x30] sm:$0xff]   ;;  %v10002_v22 = vld [vmem:[%s11235_s14 + $0xb8] sm:$0xff]  }
  0x84   : > { %9463 = vmatpush3.bf16.msra.mxu1 %v9984_v5  ;;  %v9999_v20 = vld [vmem:[%s11235_s14 + $0xb0] sm:$0xff]   ;;  %v10001_v25 = vld [vmem:[%s11235_s14 + $0x38] sm:$0xff]  }
  0x85   : > { %9464 = vmatprep.subr.bf16.mxu1 %v9987_v8  ;;  %v10018_v38 = vld [vmem:[%s14385_s1 + $0x48] ss:$12 sps:$4 sm:$0xff]   ;;  %v10019_v39 = vld [vmem:[%s14385_s1 + $0x64] ss:$12 sps:$4 sm:$0xff]   ;;  %v10032_v46 = vld [vmem:[%s14385_s1 + $0xac] ss:$12 sps:$4 sm:$0xff]  }
  0x86   : > { %9249 = vmatpush3.bf16.msra.mxu0 %v9986_v7  ;;  %v10031_v40 = vld [vmem:[%s14385_s1 + $0xb0] ss:$12 sps:$4 sm:$0xff]   ;;  %v10026_v43 = vld [vmem:[%s14385_s1 + $0x78] ss:$12 sps:$4 sm:$0xff]   ;;  %v10027_v44 = vld [vmem:[%s14385_s1 + $0x94] ss:$12 sps:$4 sm:$0xff]  }
  0x87   : > { %9250 = vmatprep.subr.bf16.mxu0 %v9988_v9  ;;  %v10024_v42 = vld [vmem:[%s14385_s1 + $0x7c] ss:$12 sps:$4 sm:$0xff]  }
  0x88   : > { %9465 = vmatpush3.bf16.msra.mxu1 %v9987_v8  ;;  %v10029_v45 = vld [vmem:[%s14385_s1 + $0x90] ss:$12 sps:$4 sm:$0xff]   ;;  %v10034_v47 = vld [vmem:[%s14385_s1 + $0xa8] ss:$12 sps:$4 sm:$0xff]  }
  0x89   : > { %9466 = vmatprep.subr.bf16.mxu1 %v9990_v11 }
  0x8a   : > { %9251 = vmatpush3.bf16.msra.mxu0 %v9989_v10 }
  0x8b   : > { %9252 = vmatprep.subr.bf16.mxu0 %v9991_v12 }
  0x8c   : > { %9467 = vmatpush3.bf16.msra.mxu1 %v9990_v11 }
  0x8d   : > { %9468 = vmatprep.subr.bf16.mxu1 %v9993_v13 }
  0x8e   : > { %9253 = vmatpush3.bf16.msra.mxu0 %v9992_v14 }
  0x8f   : > { %9254 = vmatprep.subr.bf16.mxu0 %v9994_v15 }
  0x90   : > { %9469 = vmatpush3.bf16.msra.mxu1 %v9993_v13 }
  0x91   : > { %9470 = vmatprep.subr.bf16.mxu1 %v9996_v16 }
  0x92   : > { %9255 = vmatpush3.bf16.msra.mxu0 %v9995_v17 }
  0x93   : > { %9256 = vmatprep.subr.bf16.mxu0 %v9997_v18 }
  0x94   : > { %9471 = vmatpush3.bf16.msra.mxu1 %v9996_v16 }
  0x95   : > { %9472 = vmatprep.subr.bf16.mxu1 %v9999_v20 }
  0x96   : > { %9257 = vmatpush3.bf16.msra.mxu0 %v9998_v19 }
  0x97   : > { %9258 = vmatprep.subr.bf16.mxu0 %v10000_v21 }
  0x98   : > { %9473 = vmatpush3.bf16.msra.mxu1 %v9999_v20 }
  0x99   : > { %9474 = vmatprep.subr.bf16.mxu1 %v10002_v22 }
  0x9a   : > { %9259 = vmatpush3.bf16.msra.mxu0 %v10001_v25 }
  0x9c   : > { %9475 = vmatpush3.bf16.msra.mxu1 %v10002_v22 }
  0x9d   : > { %818 = vmatmul.mubr.bf16.vlgmr.msra.gmra.mrb[0].mxu0 %v10003_v26 }
  0x9e   : > { %825 = vmatprep.mubr.bf16.mxu0 %v10008_v27 }
  0x9f   : > { %9477 = vmatmul.mubr.bf16.vlgmr.msra.gmra.mrb[0].mxu1 %v10007_v28 }
  0xa0   : > { %9480 = vmatprep.mubr.bf16.mxu1 %v10014_v29 }
  0xa5   : > { %826 = vmatmul.mubr.bf16.gmra.mrb[4].mxu0 %v10010_v30 }
  0xa6   : > { %833 = vmatprep.mubr.bf16.mxu0 %v10011_v31 }
  0xa7   : > { %9481 = vmatmul.mubr.bf16.gmra.mrb[4].mxu1 %v10015_v32 }
  0xa8   : > { %9484 = vmatprep.mubr.bf16.mxu1 %v10022_v33 }
  0xad   : > { %834 = vmatmul.mubr.bf16.gmra.mrb[8].mxu0 %v10013_v34 }
  0xae   : > { %841 = vmatprep.mubr.bf16.mxu0 %v10016_v35 }
  0xaf   : > { %9485 = vmatmul.mubr.bf16.gmra.mrb[8].mxu1 %v10023_v36 }
  0xb0   : > { %9488 = vmatprep.mubr.bf16.mxu1 %v10030_v37 }
  0xb5   : > { %842 = vmatmul.mubr.bf16.gmra.mrb[12].mxu0 %v10018_v38 }
  0xb6   : > { %849 = vmatprep.mubr.bf16.mxu0 %v10019_v39 }
  0xb7   : > { %9489 = vmatmul.mubr.bf16.gmra.mrb[12].mxu1 %v10031_v40 }
  0xbd   : > { %850 = vmatmul.mubr.bf16.gmra.mrb[16].mxu0 %v10021_v41 }
  0xbe   : > { %857 = vmatprep.mubr.bf16.mxu0 %v10024_v42 }
  0xc5   : > { %858 = vmatmul.mubr.bf16.gmra.mrb[20].mxu0 %v10026_v43 }
  0xc6   : > { %865 = vmatprep.mubr.bf16.mxu0 %v10027_v44 }
  0xcd   : > { %866 = vmatmul.mubr.bf16.gmra.mrb[24].mxu0 %v10029_v45 }
  0xce   : > { %873 = vmatprep.mubr.bf16.mxu0 %v10032_v46 }
  0xd5   : > { %874 = vmatmul.mubr.bf16.gmra.mrb[28].mxu0 %v10034_v47 }
 0x170   : > { %v9260_v48 = vpop.f32.mrb[0].mxu0 }
 0x171   : > { %v9261_v49 = vpop.f32.mrb[1].mxu0 }
 0x172   : > { %v9262_v50 = vadd.f32 %v9261_v49, %v9260_v48  ;;  %v9263_v51 = vpop.f32.mrb[2].mxu0  ;;  %v9478_v52 = vpop.f32.mrb[0].mxu1 }
 0x173   : > { %v9264_v53 = vpop.f32.mrb[3].mxu0  ;;  %v916_v54 = vpop.f32.mrb[1].mxu1 }
 0x174   : > { %v9265_v55 = vadd.f32 %v9264_v53, %v9263_v51  ;;  %v917_v56 = vadd.f32 %v9262_v50, %v916_v54  ;;  %v9479_v57 = vpop.f32.mrb[2].mxu1 }
 0x175   : > { %v919_v58 = vpop.f32.mrb[3].mxu1 }
 0x176   : > { %v920_v59 = vadd.f32 %v9265_v55, %v919_v58  ;;  %vm979_vm0 = vcmp.gt.f32.partialorder %v917_v56, 0.0  ;;  %v995_v60 = vmul.f32 0.1, %v917_v56 }
 0x178   : > { %v9266_v61 = vpop.f32.mrb[4].mxu0  ;;  %v11333_v62 = vsel %vm979_vm0, %v917_v56, %v995_v60  ;;  %vm980_vm2 = vcmp.gt.f32.partialorder %v920_v59, 0.0  ;;  %v996_v63 = vmul.f32 0.1, %v920_v59 }
 0x179   : > { %v9267_v0 = vpop.f32.mrb[5].mxu0  ;;  %v1028_v1 = vsel %vm1027_vm1, %v11333_v62, 0.0 }
 0x17a   : > { %v9268_v2 = vadd.f32 %v9267_v0, %v9266_v61  ;;  %v9269_v3 = vpop.f32.mrb[6].mxu0  ;;  %1029 = vadd.xlane.f32.xlu0 %v1028_v1  ;;  %v11337_v4 = vsel %vm980_vm2, %v920_v59, %v996_v63  ;;  %v9482_v5 = vpop.f32.mrb[4].mxu1 }
 0x17b   : > { %v9270_v6 = vpop.f32.mrb[7].mxu0  ;;  %v932_v7 = vpop.f32.mrb[5].mxu1  ;;  %v1031_v11 = vsel %vm1027_vm1, %v11337_v4, 0.0 }
 0x17c   : > { %v9271_v8 = vadd.f32 %v9270_v6, %v9269_v3  ;;  %v925_v9 = vadd.f32 %v9478_v52, %v9268_v2  ;;  %v9483_v10 = vpop.f32.mrb[6].mxu1 }
 0x17d   : > { %v935_v12 = vpop.f32.mrb[7].mxu1 }
 0x17e   : > { %v928_v13 = vadd.f32 %v9479_v57, %v9271_v8  ;;  %1032 = vadd.xlane.f32.xlu0 %v1031_v11  ;;  %vm981_vm3 = vcmp.gt.f32.partialorder %v925_v9, 0.0  ;;  %v997_v14 = vmul.f32 0.1, %v925_v9 }
 0x180   : > { %v9272_v15 = vpop.f32.mrb[8].mxu0  ;;  %v11341_v16 = vsel %vm981_vm3, %v925_v9, %v997_v14  ;;  %vm982_vm4 = vcmp.gt.f32.partialorder %v928_v13, 0.0  ;;  %v998_v17 = vmul.f32 0.1, %v928_v13 }
 0x181   : > { %v9273_v18 = vpop.f32.mrb[9].mxu0  ;;  %v1034_v19 = vsel %vm1027_vm1, %v11341_v16, 0.0 }
 0x182   : > { %v9274_v20 = vadd.f32 %v9273_v18, %v9272_v15  ;;  %v9275_v21 = vpop.f32.mrb[10].mxu0  ;;  %1035 = vadd.xlane.f32.xlu1 %v1034_v19  ;;  %v11345_v22 = vsel %vm982_vm4, %v928_v13, %v998_v17  ;;  %v11347_v23 = vpop.f32.mrb[8].mxu1 }
 0x183   : > { %v9276_v24 = vpop.f32.mrb[11].mxu0  ;;  %v948_v25 = vpop.f32.mrb[9].mxu1  ;;  %v1037_v29 = vsel %vm1027_vm1, %v11345_v22, 0.0 }
 0x184   : > { %v9277_v26 = vadd.f32 %v9276_v24, %v9275_v21  ;;  %v933_v27 = vadd.f32 %v9274_v20, %v932_v7  ;;  %v9487_v28 = vpop.f32.mrb[10].mxu1 }
 0x185   : > { %v951_v30 = vpop.f32.mrb[11].mxu1 }
 0x186   : > { %v936_v31 = vadd.f32 %v9277_v26, %v935_v12  ;;  %1038 = vadd.xlane.f32.xlu1 %v1037_v29  ;;  %vm983_vm5 = vcmp.gt.f32.partialorder %v933_v27, 0.0  ;;  %v999_v32 = vmul.f32 0.1, %v933_v27 }
 0x188   : > { %v9278_v33 = vpop.f32.mrb[12].mxu0  ;;  %v11351_v34 = vsel %vm983_vm5, %v933_v27, %v999_v32  ;;  %vm984_vm6 = vcmp.gt.f32.partialorder %v936_v31, 0.0  ;;  %v1000_v35 = vmul.f32 0.1, %v936_v31 }
 0x189   : > { %v9279_v36 = vpop.f32.mrb[13].mxu0  ;;  %v1040_v37 = vsel %vm1027_vm1, %v11351_v34, 0.0 }
 0x18a   : > { %v9280_v38 = vadd.f32 %v9279_v36, %v9278_v33  ;;  %v9281_v39 = vpop.f32.mrb[14].mxu0  ;;  %1041 = vadd.xlane.f32.xlu0 %v1040_v37  ;;  %v11355_v40 = vsel %vm984_vm6, %v936_v31, %v1000_v35  ;;  %v11357_v41 = vpop.f32.mrb[12].mxu1 }
 0x18b   : > { %v9282_v42 = vpop.f32.mrb[15].mxu0  ;;  %v1043_v43 = vsel %vm1027_vm1, %v11355_v40, 0.0  ;;  %v964_v44 = vpop.f32.mrb[13].mxu1 }
 0x18c   : > { %v941_v45 = vadd.f32 %v9482_v5, %v9280_v38  ;;  %v9283_v46 = vadd.f32 %v9282_v42, %v9281_v39  ;;  %1044 = vadd.xlane.f32.xlu1 %v1043_v43  ;;  %v11361_v47 = vpop.f32.mrb[14].mxu1 }
 0x18d   : > { %v967_v48 = vpop.f32.mrb[15].mxu1 }
 0x18e   : > { %v944_v49 = vadd.f32 %v9483_v10, %v9283_v46  ;;  %vm985_vm7 = vcmp.gt.f32.partialorder %v941_v45, 0.0  ;;  %v1001_v50 = vmul.f32 0.1, %v941_v45 }
 0x190   : > { %v9284_v51 = vpop.f32.mrb[16].mxu0  ;;  %v11363_v52 = vsel %vm985_vm7, %v941_v45, %v1001_v50  ;;  %vm986_vm8 = vcmp.gt.f32.partialorder %v944_v49, 0.0  ;;  %v1002_v53 = vmul.f32 0.1, %v944_v49 }
 0x191   : > { %v9285_v54 = vpop.f32.mrb[17].mxu0  ;;  %v1046_v55 = vsel %vm1027_vm1, %v11363_v52, 0.0 }
 0x192   : > { %v9286_v56 = vadd.f32 %v9285_v54, %v9284_v51  ;;  %v9287_v57 = vpop.f32.mrb[18].mxu0  ;;  %1047 = vadd.xlane.f32.xlu0 %v1046_v55  ;;  %v11367_v58 = vsel %vm986_vm8, %v944_v49, %v1002_v53 }
 0x193   : > { %v9288_v59 = vpop.f32.mrb[19].mxu0  ;;  %v1049_v60 = vsel %vm1027_vm1, %v11367_v58, 0.0 }
 0x194   : > { %v9289_v61 = vadd.f32 %v9288_v59, %v9287_v57  ;;  %v949_v63 = vadd.f32 %v9286_v56, %v948_v25  ;;  %1050 = vadd.xlane.f32.xlu1 %v1049_v60 }
 0x196   : > { %v952_v0 = vadd.f32 %v9289_v61, %v951_v30  ;;  %vm987_vm9 = vcmp.gt.f32.partialorder %v949_v63, 0.0  ;;  %v1003_v1 = vmul.f32 0.1, %v949_v63 }
 0x198   : > { %v9290_v2 = vpop.f32.mrb[20].mxu0  ;;  %v11371_v3 = vsel %vm987_vm9, %v949_v63, %v1003_v1  ;;  %vm988_vm10 = vcmp.gt.f32.partialorder %v952_v0, 0.0  ;;  %v1004_v5 = vmul.f32 0.1, %v952_v0 }
 0x199   : > { %v9291_v6 = vpop.f32.mrb[21].mxu0  ;;  %v1052_v7 = vsel %vm1027_vm1, %v11371_v3, 0.0 }
 0x19a   : > { %v9292_v8 = vadd.f32 %v9291_v6, %v9290_v2  ;;  %v9293_v9 = vpop.f32.mrb[22].mxu0  ;;  %1053 = vadd.xlane.f32.xlu0 %v1052_v7  ;;  %v11375_v10 = vsel %vm988_vm10, %v952_v0, %v1004_v5 }
 0x19b   : > { %v9294_v11 = vpop.f32.mrb[23].mxu0  ;;  %v1055_v12 = vsel %vm1027_vm1, %v11375_v10, 0.0 }
 0x19c   : > { %v957_v13 = vadd.f32 %v11347_v23, %v9292_v8  ;;  %v9295_v14 = vadd.f32 %v9294_v11, %v9293_v9  ;;  %1056 = vadd.xlane.f32.xlu1 %v1055_v12 }
 0x19e   : > { %v960_v15 = vadd.f32 %v9487_v28, %v9295_v14  ;;  %vm989_vm11 = vcmp.gt.f32.partialorder %v957_v13, 0.0  ;;  %v1005_v17 = vmul.f32 0.1, %v957_v13 }
 0x1a0   : > { %v9296_v18 = vpop.f32.mrb[24].mxu0  ;;  %v11380_v19 = vsel %vm989_vm11, %v957_v13, %v1005_v17  ;;  %vm990_vm12 = vcmp.gt.f32.partialorder %v960_v15, 0.0  ;;  %v1006_v20 = vmul.f32 0.1, %v960_v15 }
 0x1a1   : > { %v9297_v21 = vpop.f32.mrb[25].mxu0  ;;  %v1058_v24 = vsel %vm1027_vm1, %v11380_v19, 0.0 }
 0x1a2   : > { %v9298_v25 = vadd.f32 %v9297_v21, %v9296_v18  ;;  %v9299_v26 = vpop.f32.mrb[26].mxu0  ;;  %1059 = vadd.xlane.f32.xlu0 %v1058_v24  ;;  %v11384_v27 = vsel %vm990_vm12, %v960_v15, %v1006_v20 }
 0x1a3   : > { %v9300_v23 = vpop.f32.mrb[27].mxu0  ;;  %v1061_v28 = vsel %vm1027_vm1, %v11384_v27, 0.0 }
 0x1a4   : > { %v9301_v29 = vadd.f32 %v9300_v23, %v9299_v26  ;;  %v965_v30 = vadd.f32 %v9298_v25, %v964_v44  ;;  %1062 = vadd.xlane.f32.xlu1 %v1061_v28 }
 0x1a6   : > { %v968_v31 = vadd.f32 %v9301_v29, %v967_v48  ;;  %vm991_vm13 = vcmp.gt.f32.partialorder %v965_v30, 0.0  ;;  %v1007_v32 = vmul.f32 0.1, %v965_v30 }
 0x1a8   : > { %v9302_v33 = vpop.f32.mrb[28].mxu0  ;;  %v11388_v35 = vsel %vm991_vm13, %v965_v30, %v1007_v32  ;;  %vm992_vm14 = vcmp.gt.f32.partialorder %v968_v31, 0.0  ;;  %v1008_v36 = vmul.f32 0.1, %v968_v31 }
 0x1a9   : > { %v9303_v37 = vpop.f32.mrb[29].mxu0  ;;  %v1064_v38 = vsel %vm1027_vm1, %v11388_v35, 0.0 }
 0x1aa   : > { %v9304_v39 = vadd.f32 %v9303_v37, %v9302_v33  ;;  %v9305_v42 = vpop.f32.mrb[30].mxu0  ;;  %1065 = vadd.xlane.f32.xlu0 %v1064_v38  ;;  %v11392_v43 = vsel %vm992_vm14, %v968_v31, %v1008_v36 }
 0x1ab   : > { %v9306_v45 = vpop.f32.mrb[31].mxu0  ;;  %v1067_v44 = vsel %vm1027_vm1, %v11392_v43, 0.0 }
 0x1ac   : > { %v973_v46 = vadd.f32 %v11357_v41, %v9304_v39  ;;  %v9307_v48 = vadd.f32 %v9306_v45, %v9305_v42  ;;  %1068 = vadd.xlane.f32.xlu1 %v1067_v44 }
 0x1ae   : > { %v976_v49 = vadd.f32 %v11361_v47, %v9307_v48  ;;  %vm993_vm15 = vcmp.gt.f32.partialorder %v973_v46, 0.0  ;;  %v1009_v50 = vmul.f32 0.1, %v973_v46 }
 0x1b0   : > { %v11398_v51 = vsel %vm993_vm15, %v973_v46, %v1009_v50  ;;  %vm994_vm0 = vcmp.gt.f32.partialorder %v976_v49, 0.0  ;;  %v1010_v53 = vmul.f32 0.1, %v976_v49 }
 0x1b1   : > { %v1070_v54 = vsel %vm1027_vm1, %v11398_v51, 0.0 }
 0x1b2   : > { %1071 = vadd.xlane.f32.xlu0 %v1070_v54  ;;  %v11402_v55 = vsel %vm994_vm0, %v976_v49, %v1010_v53 }
 0x1b3   : > { %v1073_v56 = vsel %vm1027_vm1, %v11402_v55, 0.0 }
 0x1b4   : > { %1074 = vadd.xlane.f32.xlu1 %v1073_v56 }
 0x207   : > { %v1030_v41 = vpop.xlane.xlu0 %1029 }
 0x208   : > { %v1077_v57 = vmul.f32 0.0625, %v1030_v41 }
 0x20a   : > { %v11407_v47 = vsub.f32 %v11333_v62, %v1077_v57 }
 0x20b   : > { %v1033_v59 = vpop.xlane.xlu0 %1032 }
 0x20c   : > { %v1078_v60 = vmul.f32 0.0625, %v1033_v59  ;;  %v1109_v61 = vmul.f32 %v11407_v47, %v11407_v47 }
 0x20e   : > { %v11412_v63 = vsub.f32 %v11337_v4, %v1078_v60  ;;  %v1125_v0 = vsel %vm1027_vm1, %v1109_v61, 0.0 }
 0x20f   : > { %v1036_v1 = vpop.xlane.xlu1 %1035  ;;  %1126 = vadd.xlane.f32.xlu0 %v1125_v0 }
 0x210   : > { %v1079_v2 = vmul.f32 0.0625, %v1036_v1  ;;  %v1110_v5 = vmul.f32 %v11412_v63, %v11412_v63 }
 0x212   : > { %v11418_v6 = vsub.f32 %v11341_v16, %v1079_v2  ;;  %v1128_v62 = vsel %vm1027_vm1, %v1110_v5, 0.0 }
 0x213   : > { %v1039_v7 = vpop.xlane.xlu1 %1038  ;;  %1129 = vadd.xlane.f32.xlu1 %v1128_v62 }
 0x214   : > { %v1080_v8 = vmul.f32 0.0625, %v1039_v7  ;;  %v1111_v4 = vmul.f32 %v11418_v6, %v11418_v6 }
 0x216   : > { %v11424_v9 = vsub.f32 %v11345_v22, %v1080_v8  ;;  %v1131_v11 = vsel %vm1027_vm1, %v1111_v4, 0.0 }
 0x217   : > { %1132 = vadd.xlane.f32.xlu0 %v1131_v11  ;;  %v1042_v12 = vpop.xlane.xlu0 %1041 }
 0x218   : > { %v1081_v13 = vmul.f32 0.0625, %v1042_v12  ;;  %v1112_v16 = vmul.f32 %v11424_v9, %v11424_v9 }
 0x219   : > { %v1045_v14 = vpop.xlane.xlu1 %1044 }
 0x21a   : > { %v11430_v15 = vsub.f32 %v11351_v34, %v1081_v13  ;;  %v1082_v17 = vmul.f32 0.0625, %v1045_v14  ;;  %v1134_v18 = vsel %vm1027_vm1, %v1112_v16, 0.0 }
 0x21b   : > { %1135 = vadd.xlane.f32.xlu1 %v1134_v18  ;;  %v11513_v18 = vld [vmem:[%s14392_s8] sm:$0xff] }
 0x21c   : > { %v11434_v20 = vsub.f32 %v11355_v40, %v1082_v17  ;;  %v1113_v22 = vmul.f32 %v11430_v15, %v11430_v15  ;;  %v10035_v17 = vld [vmem:[#allocation2] sm:$0xff]  }
 0x21d   : > { %9508 = vmatprep.mubr.bf16.mxu1 %v10035_v17  ;;  %v11646_v17 = vld [vmem:[%s14392_s8 + $0xf0] sm:$0xff] }
 0x21e   : > { %v1137_v21 = vsel %vm1027_vm1, %v1113_v22, 0.0  ;;  %v1114_v24 = vmul.f32 %v11434_v20, %v11434_v20  ;;  %v11519_v22 = vld [vmem:[%s14392_s8 + $0x8] sm:$0xff]  ;;  %14460 = vst [vmem:[#allocation22_spill] sm:$0xff] %v11646_v17 }
 0x21f   : > { %1138 = vadd.xlane.f32.xlu0 %v1137_v21  ;;  %v1048_v25 = vpop.xlane.xlu0 %1047  ;;  %v11525_v21 = vld [vmem:[%s14392_s8 + $0x90] sm:$0xff] }
 0x220   : > { %v1083_v26 = vmul.f32 0.0625, %v1048_v25  ;;  %v1140_v34 = vsel %vm1027_vm1, %v1114_v24, 0.0  ;;  %v11531_v24 = vld [vmem:[%s14392_s8 + $0x98] sm:$0xff]  ;;  %v11537_v25 = vld [vmem:[%s14392_s8 + $0x10] sm:$0xff] }
 0x221   : > { %v1051_v23 = vpop.xlane.xlu1 %1050  ;;  %1141 = vadd.xlane.f32.xlu1 %v1140_v34  ;;  %14451 = vst [vmem:[#allocation13_spill] sm:$0xff] %v11531_v24  ;;  %v11549_v34 = vld [vmem:[%s14392_s8 + $0xa0] sm:$0xff] }
 0x222   : > { %v11443_v28 = vsub.f32 %v11363_v52, %v1083_v26  ;;  %v1084_v40 = vmul.f32 0.0625, %v1051_v23  ;;  %v11543_v26 = vld [vmem:[%s14392_s8 + $0x18] sm:$0xff]  ;;  %14452 = vst [vmem:[#allocation14_spill] sm:$0xff] %v11549_v34  ;;  %v11555_v23 = vld [vmem:[%s14392_s8 + $0x20] sm:$0xff] }
 0x224   : > { %v11446_v29 = vsub.f32 %v11367_v58, %v1084_v40  ;;  %v1115_v30 = vmul.f32 %v11443_v28, %v11443_v28  ;;  %v11561_v40 = vld [vmem:[%s14392_s8 + $0xb0] sm:$0xff] }
 0x225   : > { %14453 = vst [vmem:[#allocation15_spill] sm:$0xff] %v11561_v40 }
 0x226   : > { %v1143_v31 = vsel %vm1027_vm1, %v1115_v30, 0.0  ;;  %v1116_v32 = vmul.f32 %v11446_v29, %v11446_v29  ;;  %v11567_v30 = vld [vmem:[%s14392_s8 + $0x30] sm:$0xff] }
 0x227   : > { %1144 = vadd.xlane.f32.xlu0 %v1143_v31  ;;  %v1054_v33 = vpop.xlane.xlu0 %1053 }
 0x228   : > { %v1085_v36 = vmul.f32 0.0625, %v1054_v33  ;;  %v1146_v37 = vsel %vm1027_vm1, %v1116_v32, 0.0  ;;  %v11573_v33 = vld [vmem:[%s14392_s8 + $0xc0] sm:$0xff] }
 0x229   : > { %v1057_v38 = vpop.xlane.xlu1 %1056  ;;  %1147 = vadd.xlane.f32.xlu1 %v1146_v37  ;;  %14454 = vst [vmem:[#allocation16_spill] sm:$0xff] %v11573_v33 }
 0x22a   : > { %v11455_v52 = vsub.f32 %v11371_v3, %v1085_v36  ;;  %v1086_v58 = vmul.f32 0.0625, %v1057_v38 }
 0x22c   : > { %v11458_v39 = vsub.f32 %v11375_v10, %v1086_v58  ;;  %v1117_v42 = vmul.f32 %v11455_v52, %v11455_v52  ;;  %v11579_v58 = vld [vmem:[%s14392_s8 + $0x80] sm:$0xff] }
 0x22e   : > { %v1149_v45 = vsel %vm1027_vm1, %v1117_v42, 0.0  ;;  %v1118_v44 = vmul.f32 %v11458_v39, %v11458_v39  ;;  %v11584_v42 = vld [vmem:[%s14392_s8 + $0x40] sm:$0xff] }
 0x22f   : > { %1150 = vadd.xlane.f32.xlu0 %v1149_v45  ;;  %v1060_v46 = vpop.xlane.xlu0 %1059 }
 0x230   : > { %v1087_v48 = vmul.f32 0.0625, %v1060_v46  ;;  %v1152_v49 = vsel %vm1027_vm1, %v1118_v44, 0.0 }
 0x231   : > { %v1063_v50 = vpop.xlane.xlu1 %1062  ;;  %1153 = vadd.xlane.f32.xlu1 %v1152_v49  ;;  %v11596_v49 = vld [vmem:[%s14392_s8 + $0xd0] sm:$0xff] }
 0x232   : > { %v11467_v3 = vsub.f32 %v11380_v19, %v1087_v48  ;;  %v1088_v10 = vmul.f32 0.0625, %v1063_v50  ;;  %v11591_v48 = vld [vmem:[%s14392_s8 + $0xa8] sm:$0xff]  ;;  %14456 = vst [vmem:[#allocation18_spill] sm:$0xff] %v11596_v49 }
 0x233   : > { %14455 = vst [vmem:[#allocation17_spill] sm:$0xff] %v11591_v48 }
 0x234   : > { %v11470_v53 = vsub.f32 %v11384_v27, %v1088_v10  ;;  %v1119_v54 = vmul.f32 %v11467_v3, %v11467_v3  ;;  %v11603_v10 = vld [vmem:[%s14392_s8 + $0x28] sm:$0xff] }
 0x236   : > { %v1155_v56 = vsel %vm1027_vm1, %v1119_v54, 0.0  ;;  %v1120_v41 = vmul.f32 %v11470_v53, %v11470_v53  ;;  %v11608_v54 = vld [vmem:[%s14392_s8 + $0x50] sm:$0xff] }
 0x237   : > { %1156 = vadd.xlane.f32.xlu0 %v1155_v56  ;;  %v1066_v57 = vpop.xlane.xlu0 %1065 }
 0x238   : > { %v1089_v59 = vmul.f32 0.0625, %v1066_v57  ;;  %v1158_v60 = vsel %vm1027_vm1, %v1120_v41, 0.0 }
 0x239   : > { %v1069_v61 = vpop.xlane.xlu1 %1068  ;;  %1159 = vadd.xlane.f32.xlu1 %v1158_v60  ;;  %v11620_v60 = vld [vmem:[%s14392_s8 + $0xe0] sm:$0xff] }
 0x23a   : > { %v11479_v19 = vsub.f32 %v11388_v35, %v1089_v59  ;;  %v1090_v27 = vmul.f32 0.0625, %v1069_v61  ;;  %v11615_v59 = vld [vmem:[%s14392_s8 + $0xb8] sm:$0xff]  ;;  %14458 = vst [vmem:[#allocation20_spill] sm:$0xff] %v11620_v60 }
 0x23b   : > { %14457 = vst [vmem:[#allocation19_spill] sm:$0xff] %v11615_v59 }
 0x23c   : > { %v11482_v0 = vsub.f32 %v11392_v43, %v1090_v27  ;;  %v1121_v1 = vmul.f32 %v11479_v19, %v11479_v19 }
 0x23e   : > { %v1161_v2 = vsel %vm1027_vm1, %v1121_v1, 0.0  ;;  %v1122_v5 = vmul.f32 %v11482_v0, %v11482_v0 }
 0x23f   : > { %1162 = vadd.xlane.f32.xlu0 %v1161_v2  ;;  %v1072_v62 = vpop.xlane.xlu0 %1071 }
 0x240   : > { %v1091_v7 = vmul.f32 0.0625, %v1072_v62  ;;  %v1164_v8 = vsel %vm1027_vm1, %v1122_v5, 0.0 }
 0x241   : > { %v1075_v4 = vpop.xlane.xlu1 %1074  ;;  %1165 = vadd.xlane.f32.xlu1 %v1164_v8  ;;  %v11627_v8 = vld [vmem:[%s14392_s8 + $0x38] sm:$0xff] }
 0x242   : > { %v11491_v35 = vsub.f32 %v11398_v51, %v1091_v7  ;;  %v1092_v43 = vmul.f32 0.0625, %v1075_v4  ;;  %v14398_v51 = vmov 0   ;;  %v11632_v4 = vld [vmem:[%s14392_s8 + $0x60] sm:$0xff] }
 0x243   : > { %9967 = vset.pattern.permute.xlu1 %v14398_v51  ;;  %9966 = vset.pattern.permute.xlu0 %v14398_v51 }
 0x244   : > { %v11494_v11 = vsub.f32 %v11402_v55, %v1092_v43  ;;  %v1123_v12 = vmul.f32 %v11491_v35, %v11491_v35  ;;  %v11506_v55 = vld [vmem:[%s14392_s8 + $0x88] sm:$0xff] }
 0x245   : > { %14450 = vst [vmem:[#allocation12_spill] sm:$0xff] %v11506_v55 }
 0x246   : > { %v1167_v13 = vsel %vm1027_vm1, %v1123_v12, 0.0  ;;  %v1124_v16 = vmul.f32 %v11494_v11, %v11494_v11 }
 0x247   : > { %1168 = vadd.xlane.f32.xlu0 %v1167_v13 }
 0x248   : > { %v1170_v14 = vsel %vm1027_vm1, %v1124_v16, 0.0 }
 0x249   : > { %1171 = vadd.xlane.f32.xlu1 %v1170_v14  ;;  %v11641_v14 = vld [vmem:[%s14392_s8 + $0xc8] sm:$0xff] }
 0x24a   : > { %14459 = vst [vmem:[#allocation21_spill] sm:$0xff] %v11641_v14 }
 0x25a   : > { %1396 = vperm.xlu1 %9967, %v11506_v55  }
 0x25d   : > { %1391 = vperm.xlu0 %9966, %v11579_v58  }
 0x25e   : > { %1311 = vperm.xlu1 %9967, %v11513_v18  }
 0x261   : > { %1416 = vperm.xlu0 %9966, %v11591_v48  }
 0x262   : > { %1316 = vperm.xlu1 %9967, %v11519_v22  }
 0x265   : > { %1336 = vperm.xlu0 %9966, %v11603_v10  }
 0x266   : > { %1401 = vperm.xlu1 %9967, %v11525_v21  }
 0x269   : > { %1426 = vperm.xlu0 %9966, %v11615_v59  }
 0x26a   : > { %1406 = vperm.xlu1 %9967, %v11531_v24  }
 0x26d   : > { %1346 = vperm.xlu0 %9966, %v11627_v8  }
 0x26e   : > { %1321 = vperm.xlu1 %9967, %v11537_v25  }
 0x271   : > { %1436 = vperm.xlu0 %9966, %v11641_v14  }
 0x272   : > { %1326 = vperm.xlu1 %9967, %v11543_v26  }
 0x276   : > { %1411 = vperm.xlu1 %9967, %v11549_v34  }
 0x27a   : > { %1331 = vperm.xlu1 %9967, %v11555_v23  }
 0x27e   : > { %1421 = vperm.xlu1 %9967, %v11561_v40  }
 0x282   : > { %1341 = vperm.xlu1 %9967, %v11567_v30  }
 0x286   : > { %1431 = vperm.xlu1 %9967, %v11573_v33  }
 0x28a   : > { %1351 = vperm.xlu1 %9967, %v11584_v42  }
 0x28e   : > { %1441 = vperm.xlu1 %9967, %v11596_v49  }
 0x292   : > { %1361 = vperm.xlu1 %9967, %v11608_v54  }
 0x296   : > { %1451 = vperm.xlu1 %9967, %v11620_v60  }
 0x29a   : > { %1371 = vperm.xlu1 %9967, %v11632_v4  }
 0x29c   : > { %v1127_v31 = vpop.xlane.xlu0 %1126 }
 0x29d   : > { %v1173_v32 = vmul.f32 0.0625, %v1127_v31 }
 0x29e   : > { %1461 = vperm.xlu1 %9967, %v11646_v17  }
 0x29f   : > { %v1189_v36 = vadd.f32 1e-05, %v1173_v32 }
 0x2a0   : > { %v1130_v37 = vpop.xlane.xlu1 %1129 }
 0x2a1   : > { %v1174_v38 = vmul.f32 0.0625, %v1130_v37  ;;  %10675 = vrsqrt.f32 %v1189_v36 }
 0x2a3   : > { %v1190_v45 = vadd.f32 1e-05, %v1174_v38 }
 0x2a4   : > { %v1133_v44 = vpop.xlane.xlu0 %1132 }
 0x2a5   : > { %10677 = vrsqrt.f32 %v1190_v45  ;;  %v1175_v46 = vmul.f32 0.0625, %v1133_v44  ;;  %v11653_v45 = vld [vmem:[%s14392_s8 + $0x48] sm:$0xff]  ;;  %v11658_v44 = vld [vmem:[%s14392_s8 + $0x70] sm:$0xff] }
 0x2a6   : > { %1356 = vperm.xlu0 %9966, %v11653_v45   ;;  %1381 = vperm.xlu1 %9967, %v11658_v44  }
 0x2a7   : > { %v1191_v50 = vadd.f32 1e-05, %v1175_v46 }
 0x2a8   : > { %v1136_v56 = vpop.xlane.xlu1 %1135 }
 0x2a9   : > { %v1176_v41 = vmul.f32 0.0625, %v1136_v56  ;;  %10679 = vrsqrt.f32 %v1191_v50 }
 0x2ab   : > { %v1192_v57 = vadd.f32 1e-05, %v1176_v41  ;;  %v10676_v27 = vpop.eup %10675 }
 0x2ac   : > { %v1139_v61 = vpop.xlane.xlu0 %1138  ;;  %v1221_v43 = vmul.f32 %v10676_v27, %v11407_v47 }
 0x2ad   : > { %10681 = vrsqrt.f32 %v1192_v57  ;;  %v1177_v1 = vmul.f32 0.0625, %v1139_v61  ;;  %v11667_v61 = vld [vmem:[%s14392_s8 + $0xd8] sm:$0xff] }
 0x2ae   : > { %v1142_v2 = vpop.xlane.xlu1 %1141  ;;  %14461 = vst [vmem:[#allocation23_spill] sm:$0xff] %v11667_v61  ;;  %1446 = vperm.xlu0 %9966, %v11667_v61  }
 0x2af   : > { %v10678_v5 = vpop.eup %10677  ;;  %v1193_v62 = vadd.f32 1e-05, %v1177_v1  ;;  %v1178_v7 = vmul.f32 0.0625, %v1142_v2 }
 0x2b0   : > { %v1222_v12 = vmul.f32 %v10678_v5, %v11412_v63 }
 0x2b1   : > { %10683 = vrsqrt.f32 %v1193_v62  ;;  %v1194_v13 = vadd.f32 1e-05, %v1178_v7 }
 0x2b2   : > { %v1237_v16 = vpack.c.bf16 %v1222_v12, %v1221_v43  ;;  %v11675_v43 = vld [vmem:[%s14392_s8 + $0x58] sm:$0xff] }
 0x2b3   : > { %10685 = vrsqrt.f32 %v1194_v13  ;;  %v10680_v63 = vpop.eup %10679  ;;  %1366 = vperm.xlu0 %9966, %v11675_v43  }
 0x2b4   : > { %9492 = vmatprep.subr.bf16.mxu1 %v1237_v16  ;;  %v1145_v47 = vpop.xlane.xlu0 %1144  ;;  %v1223_v46 = vmul.f32 %v10680_v63, %v11418_v6 }
 0x2b5   : > { %v1179_v31 = vmul.f32 0.0625, %v1145_v47  ;;  %9493 = vmatpush3.bf16.msra.mxu1 %v1237_v16 }
 0x2b6   : > { %v1148_v32 = vpop.xlane.xlu1 %1147 }
 0x2b7   : > { %v10682_v36 = vpop.eup %10681  ;;  %v1195_v37 = vadd.f32 1e-05, %v1179_v31  ;;  %v1180_v38 = vmul.f32 0.0625, %v1148_v32 }
 0x2b8   : > { %v1224_v50 = vmul.f32 %v10682_v36, %v11424_v9 }
 0x2b9   : > { %10687 = vrsqrt.f32 %v1195_v37  ;;  %v1196_v56 = vadd.f32 1e-05, %v1180_v38 }
 0x2ba   : > { %v1238_v41 = vpack.c.bf16 %v1224_v50, %v1223_v46  ;;  %v11689_v46 = vld [vmem:[%s14392_s8 + $0x68] sm:$0xff] }
 0x2bb   : > { %v10684_v57 = vpop.eup %10683  ;;  %10689 = vrsqrt.f32 %v1196_v56 }
 0x2bc   : > { %9494 = vmatprep.subr.bf16.mxu1 %v1238_v41  ;;  %v1151_v27 = vpop.xlane.xlu0 %1150  ;;  %v1225_v2 = vmul.f32 %v10684_v57, %v11430_v15  ;;  %v11681_v15 = vld [vmem:[%s14392_s8 + $0xe8] sm:$0xff] }
 0x2bd   : > { %v10686_v1 = vpop.eup %10685  ;;  %v1181_v6 = vmul.f32 0.0625, %v1151_v27  ;;  %9495 = vmatpush3.bf16.msra.mxu1 %v1238_v41  ;;  %14462 = vst [vmem:[#allocation24_spill] sm:$0xff] %v11681_v15  ;;  %1456 = vperm.xlu0 %9966, %v11681_v15  }
 0x2be   : > { %v1154_v9 = vpop.xlane.xlu1 %1153  ;;  %v1226_v5 = vmul.f32 %v10686_v1, %v11434_v20 }
 0x2bf   : > { %v1197_v62 = vadd.f32 1e-05, %v1181_v6  ;;  %v1182_v7 = vmul.f32 0.0625, %v1154_v9 }
 0x2c0   : > { %v1239_v12 = vpack.c.bf16 %v1226_v5, %v1225_v2 }
 0x2c1   : > { %10691 = vrsqrt.f32 %v1197_v62  ;;  %v1198_v13 = vadd.f32 1e-05, %v1182_v7  ;;  %1376 = vperm.xlu0 %9966, %v11689_v46   ;;  %v11703_v62 = vld [vmem:[%s14392_s8 + $0x78] sm:$0xff] }
 0x2c2   : > { %9496 = vmatprep.subr.bf16.mxu1 %v1239_v12 }
 0x2c3   : > { %v10688_v16 = vpop.eup %10687  ;;  %10693 = vrsqrt.f32 %v1198_v13  ;;  %9497 = vmatpush3.bf16.msra.mxu1 %v1239_v12 }
 0x2c4   : > { %v1157_v20 = vpop.xlane.xlu0 %1156  ;;  %v1227_v32 = vmul.f32 %v10688_v16, %v11443_v28  ;;  %v11695_v28 = vld [vmem:[%s14392_s8 + $0xf8] sm:$0xff] }
 0x2c5   : > { %v10690_v47 = vpop.eup %10689  ;;  %v1183_v63 = vmul.f32 0.0625, %v1157_v20  ;;  %14463 = vst [vmem:[#allocation25_spill] sm:$0xff] %v11695_v28  ;;  %1466 = vperm.xlu0 %9966, %v11695_v28  }
 0x2c6   : > { %v1160_v31 = vpop.xlane.xlu1 %1159  ;;  %v1228_v36 = vmul.f32 %v10690_v47, %v11446_v29 }
 0x2c7   : > { %v1199_v37 = vadd.f32 1e-05, %v1183_v63  ;;  %v1184_v38 = vmul.f32 0.0625, %v1160_v31 }
 0x2c8   : > { %v1240_v50 = vpack.c.bf16 %v1228_v36, %v1227_v32 }
 0x2c9   : > { %10695 = vrsqrt.f32 %v1199_v37  ;;  %v1200_v56 = vadd.f32 1e-05, %v1184_v38  ;;  %1386 = vperm.xlu0 %9966, %v11703_v62  }
 0x2ca   : > { %9498 = vmatprep.subr.bf16.mxu1 %v1240_v50 }
 0x2cb   : > { %v10692_v41 = vpop.eup %10691  ;;  %10697 = vrsqrt.f32 %v1200_v56  ;;  %9499 = vmatpush3.bf16.msra.mxu1 %v1240_v50 }
 0x2cc   : > { %v1163_v29 = vpop.xlane.xlu0 %1162  ;;  %v1229_v6 = vmul.f32 %v10692_v41, %v11455_v52 }
 0x2cd   : > { %v10694_v57 = vpop.eup %10693  ;;  %v1185_v27 = vmul.f32 0.0625, %v1163_v29 }
 0x2ce   : > { %v1166_v1 = vpop.xlane.xlu1 %1165  ;;  %v1230_v9 = vmul.f32 %v10694_v57, %v11458_v39 }
 0x2cf   : > { %v1201_v2 = vadd.f32 1e-05, %v1185_v27  ;;  %v1186_v5 = vmul.f32 0.0625, %v1166_v1 }
 0x2d0   : > { %v1241_v7 = vpack.c.bf16 %v1230_v9, %v1229_v6  ;;  %v10036_v6 = vld [vmem:[#allocation2 + $0x8] sm:$0xff]   ;;  %v10037_v9 = vld [vmem:[#allocation2 + $0x10] sm:$0xff]  }
 0x2d1   : > { %10699 = vrsqrt.f32 %v1201_v2  ;;  %v1202_v12 = vadd.f32 1e-05, %v1186_v5  ;;  %v10040_v2 = vld [vmem:[#allocation2 + $0x28] sm:$0xff]   ;;  %v10041_v5 = vld [vmem:[#allocation2 + $0x30] sm:$0xff]  }
 0x2d2   : > { %9500 = vmatprep.subr.bf16.mxu1 %v1241_v7 }
 0x2d3   : > { %v10696_v13 = vpop.eup %10695  ;;  %10701 = vrsqrt.f32 %v1202_v12  ;;  %9501 = vmatpush3.bf16.msra.mxu1 %v1241_v7  ;;  %v10043_v7 = vld [vmem:[#allocation2 + $0x40] sm:$0xff]   ;;  %v10045_v12 = vld [vmem:[#allocation2 + $0x50] sm:$0xff]  }
 0x2d4   : > { %v1169_v52 = vpop.xlane.xlu0 %1168  ;;  %v1231_v47 = vmul.f32 %v10696_v13, %v11467_v3  ;;  %v10046_v13 = vld [vmem:[#allocation2 + $0x58] sm:$0xff]  }
 0x2d5   : > { %v10698_v39 = vpop.eup %10697  ;;  %v1187_v16 = vmul.f32 0.0625, %v1169_v52  ;;  %v10047_v52 = vld [vmem:[#allocation2 + $0x60] sm:$0xff]  }
 0x2d6   : > { %v1172_v20 = vpop.xlane.xlu1 %1171  ;;  %v1232_v63 = vmul.f32 %v10698_v39, %v11470_v53  ;;  %v10048_v39 = vld [vmem:[#allocation2 + $0x68] sm:$0xff]  }
 0x2d7   : > { %v1203_v31 = vadd.f32 1e-05, %v1187_v16  ;;  %v1188_v32 = vmul.f32 0.0625, %v1172_v20  ;;  %v10049_v16 = vld [vmem:[#allocation2 + $0x70] sm:$0xff]   ;;  %v10050_v20 = vld [vmem:[#allocation2 + $0x78] sm:$0xff]  }
 0x2d8   : > { %v1242_v36 = vpack.c.bf16 %v1232_v63, %v1231_v47 }
 0x2d9   : > { %10703 = vrsqrt.f32 %v1203_v31  ;;  %v1204_v37 = vadd.f32 1e-05, %v1188_v32 }
 0x2da   : > { %9502 = vmatprep.subr.bf16.mxu1 %v1242_v36  ;;  %v11713_v47 = vpop.permute.xlu1 %1396 }
 0x2db   : > { %v10700_v38 = vpop.eup %10699  ;;  %10705 = vrsqrt.f32 %v1204_v37  ;;  %9503 = vmatpush3.bf16.msra.mxu1 %v1242_v36  ;;  %v10053_v37 = vld [vmem:[%s14387_s3 + $0x4] ss:$8 sps:$4 sm:$0xff]  }
 0x2dc   : > { %v1233_v56 = vmul.f32 %v10700_v38, %v11479_v19  ;;  %v10038_v19 = vld [vmem:[#allocation2 + $0x18] sm:$0xff]   ;;  %2190 = vmatprep.mubr.bf16.mxu0 %v10053_v37 }
 0x2dd   : > { %v10702_v50 = vpop.eup %10701 }
 0x2de   : > { %v1234_v41 = vmul.f32 %v10702_v50, %v11482_v0  ;;  %v10039_v0 = vld [vmem:[#allocation2 + $0x20] sm:$0xff]   ;;  %v1312_v63 = vpop.permute.xlu1 %1311 }
 0x2e0   : > { %v1243_v29 = vpack.c.bf16 %v1234_v41, %v1233_v56  ;;  %v11722_v56 = vpop.permute.xlu0 %1391 }
 0x2e2   : > { %9504 = vmatprep.subr.bf16.mxu1 %v1243_v29  ;;  %v1317_v31 = vpop.permute.xlu1 %1316 }
 0x2e3   : > { %v10704_v57 = vpop.eup %10703  ;;  %9505 = vmatpush3.bf16.msra.mxu1 %v1243_v29 }
 0x2e4   : > { %v1235_v53 = vmul.f32 %v10704_v57, %v11491_v35  ;;  %v10042_v35 = vld [vmem:[#allocation2 + $0x38] sm:$0xff]   ;;  %v11726_v29 = vpop.permute.xlu0 %1416 }
 0x2e5   : > { %v10706_v3 = vpop.eup %10705 }
 0x2e6   : > { %v1236_v27 = vmul.f32 %v10706_v3, %v11494_v11  ;;  %v10044_v11 = vld [vmem:[#allocation2 + $0x48] sm:$0xff]   ;;  %v11715_v32 = vpop.permute.xlu1 %1401 }
 0x2e8   : > { %v1244_v1 = vpack.c.bf16 %v1236_v27, %v1235_v53  ;;  %v1337_v3 = vpop.permute.xlu0 %1336 }
 0x2ea   : > { %9506 = vmatprep.subr.bf16.mxu1 %v1244_v1  ;;  %v11717_v36 = vpop.permute.xlu1 %1406 }
 0x2eb   : > { %9507 = vmatpush3.bf16.msra.mxu1 %v1244_v1 }
 0x2ec   : > { %3615 = vmatprep.subr.bf16.mxu1 %v14398_v51  ;;  %v11730_v27 = vpop.permute.xlu0 %1426 }
 0x2ee   : > { %9509 = vmatmul.mubr.bf16.vlgmr.msra.gmra.mrb[16].mxu1 %v10036_v6  ;;  %v1322_v38 = vpop.permute.xlu1 %1321 }
 0x2ef   : > { %9512 = vmatprep.mubr.bf16.mxu1 %v10037_v9 }
 0x2f0   : > { %v1347_v6 = vpop.permute.xlu0 %1346 }
 0x2f2   : > { %v1327_v50 = vpop.permute.xlu1 %1326 }
 0x2f6   : > { %9513 = vmatmul.mubr.bf16.gmra.mrb[20].mxu1 %v10038_v19  ;;  %v11724_v41 = vpop.permute.xlu1 %1411  ;;  %v11734_v19 = vpop.permute.xlu0 %1436 }
 0x2f7   : > { %9516 = vmatprep.mubr.bf16.mxu1 %v10039_v0 }
 0x2fa   : > { %v1332_v57 = vpop.permute.xlu1 %1331 }
 0x2fe   : > { %9517 = vmatmul.mubr.bf16.gmra.mrb[24].mxu1 %v10040_v2  ;;  %v11728_v53 = vpop.permute.xlu1 %1421 }
 0x2ff   : > { %9520 = vmatprep.mubr.bf16.mxu1 %v10041_v5 }
 0x302   : > { %v1342_v1 = vpop.permute.xlu1 %1341 }
 0x306   : > { %9521 = vmatmul.mubr.bf16.gmra.mrb[28].mxu1 %v10042_v35  ;;  %v11732_v9 = vpop.permute.xlu1 %1431 }
 0x307   : > { %9524 = vmatprep.mubr.bf16.mxu1 %v10043_v7 }
 0x30a   : > { %v1352_v0 = vpop.permute.xlu1 %1351 }
 0x30e   : > { %9525 = vmatmul.mubr.bf16.gmra.mrb[32].mxu1 %v10044_v11  ;;  %v11738_v5 = vpop.permute.xlu1 %1441 }
 0x30f   : > { %9528 = vmatprep.mubr.bf16.mxu1 %v10045_v12 }
 0x312   : > { %v1362_v11 = vpop.permute.xlu1 %1361 }
 0x316   : > { %9529 = vmatmul.mubr.bf16.gmra.mrb[36].mxu1 %v10046_v13  ;;  %v11742_v60 = vpop.permute.xlu1 %1451 }
 0x317   : > { %9532 = vmatprep.mubr.bf16.mxu1 %v10047_v52 }
 0x31e   : > { %9533 = vmatmul.mubr.bf16.gmra.mrb[40].mxu1 %v10048_v39 }
 0x31f   : > { %9536 = vmatprep.mubr.bf16.mxu1 %v10049_v16 }
 0x325   : > { %v11736_v2 = vpop.permute.xlu0 %1356 }
 0x326   : > { %9537 = vmatmul.mubr.bf16.gmra.mrb[44].mxu1 %v10050_v20 }
 0x32d   : > { %v11740_v35 = vpop.permute.xlu0 %1446 }
 0x332   : > { %v1367_v16 = vpop.permute.xlu0 %1366 }
 0x3c1   : > { %v9510_v7 = vpop.f32.mrb[16].mxu1 }
 0x3c2   : > { %v1608_v12 = vadd.f32 %v9510_v7, %v1322_v38  ;;  %v1599_v13 = vpop.f32.mrb[17].mxu1 }
 0x3c3   : > { %v1600_v52 = vadd.f32 %v1599_v13, %v1312_v63  ;;  %v9511_v39 = vpop.f32.mrb[18].mxu1  ;;  %v11752_v13 = vpop.permute.xlu0 %1456 }
 0x3c4   : > { %v1760_v20 = vmul.f32 0.1, %v1608_v12  ;;  %v1611_v37 = vadd.f32 %v9511_v39, %v1327_v50  ;;  %v1602_v51 = vpop.f32.mrb[19].mxu1  ;;  %vm1728_vm2 = vcmp.gt.f32.partialorder %v1608_v12, 0.0 }
 0x3c5   : > { %v1758_v28 = vmul.f32 0.1, %v1600_v52  ;;  %v1603_v15 = vadd.f32 %v1602_v51, %v1317_v31  ;;  %vm1726_vm3 = vcmp.gt.f32.partialorder %v1600_v52, 0.0 }
 0x3c6   : > { %vm1729_vm4 = vcmp.gt.f32.partialorder %v1611_v37, 0.0  ;;  %v1761_v17 = vmul.f32 0.1, %v1611_v37  ;;  %v11744_v14 = vsel %vm1728_vm2, %v1608_v12, %v1760_v20 }
 0x3c7   : > { %vm1727_vm5 = vcmp.gt.f32.partialorder %v1603_v15, 0.0  ;;  %v1759_v61 = vmul.f32 0.1, %v1603_v15  ;;  %v11748_v63 = vsel %vm1726_vm3, %v1600_v52, %v1758_v28  ;;  %v1377_v51 = vpop.permute.xlu0 %1376 }
 0x3c8   : > { %v11746_v38 = vsel %vm1729_vm4, %v1611_v37, %v1761_v17 }
 0x3c9   : > { %v11750_v7 = vsel %vm1727_vm5, %v1603_v15, %v1759_v61  ;;  %v9514_v50 = vpop.f32.mrb[20].mxu1  ;;  %v1372_v15 = vpop.permute.xlu1 %1371 }
 0x3ca   : > { %v1624_v31 = vadd.f32 %v9514_v50, %v1342_v1  ;;  %v1615_v39 = vpop.f32.mrb[21].mxu1 }
 0x3cb   : > { %v1616_v59 = vadd.f32 %v1615_v39, %v1332_v57  ;;  %v9515_v12 = vpop.f32.mrb[22].mxu1 }
 0x3cc   : > { %v1764_v20 = vmul.f32 0.1, %v1624_v31  ;;  %v1627_v17 = vadd.f32 %v9515_v12, %v1347_v6  ;;  %v1618_v37 = vpop.f32.mrb[23].mxu1  ;;  %vm1732_vm6 = vcmp.gt.f32.partialorder %v1624_v31, 0.0 }
 0x3cd   : > { %v1762_v28 = vmul.f32 0.1, %v1616_v59  ;;  %v1619_v61 = vadd.f32 %v1618_v37, %v1337_v3  ;;  %vm1730_vm7 = vcmp.gt.f32.partialorder %v1616_v59, 0.0  ;;  %v11770_v48 = vpop.permute.xlu1 %1461 }
 0x3ce   : > { %vm1733_vm8 = vcmp.gt.f32.partialorder %v1627_v17, 0.0  ;;  %v1765_v52 = vmul.f32 0.1, %v1627_v17  ;;  %v11758_v1 = vsel %vm1732_vm6, %v1624_v31, %v1764_v20 }
 0x3cf   : > { %vm1731_vm9 = vcmp.gt.f32.partialorder %v1619_v61, 0.0  ;;  %v1763_v33 = vmul.f32 0.1, %v1619_v61  ;;  %v11762_v49 = vsel %vm1730_vm7, %v1616_v59, %v1762_v28  ;;  %v11773_v28 = vpop.permute.xlu0 %1466 }
 0x3d0   : > { %v11760_v50 = vsel %vm1733_vm8, %v1627_v17, %v1765_v52 }
 0x3d1   : > { %v11764_v57 = vsel %vm1731_vm9, %v1619_v61, %v1763_v33  ;;  %v9518_v6 = vpop.f32.mrb[24].mxu1 }
 0x3d2   : > { %v1640_v3 = vadd.f32 %v9518_v6, %v1362_v11  ;;  %v1631_v12 = vpop.f32.mrb[25].mxu1 }
 0x3d3   : > { %v1632_v40 = vadd.f32 %v1631_v12, %v1352_v0  ;;  %v9519_v31 = vpop.f32.mrb[26].mxu1 }
 0x3d4   : > { %v1768_v20 = vmul.f32 0.1, %v1640_v3  ;;  %v1643_v17 = vadd.f32 %v9519_v31, %v1367_v16  ;;  %v1634_v52 = vpop.f32.mrb[27].mxu1  ;;  %vm1736_vm10 = vcmp.gt.f32.partialorder %v1640_v3, 0.0  ;;  %v1382_v16 = vpop.permute.xlu1 %1381 }
 0x3d5   : > { %v1766_v59 = vmul.f32 0.1, %v1632_v40  ;;  %v1635_v33 = vadd.f32 %v1634_v52, %v11736_v2  ;;  %vm1734_vm11 = vcmp.gt.f32.partialorder %v1632_v40, 0.0 }
 0x3d6   : > { %vm1737_vm12 = vcmp.gt.f32.partialorder %v1643_v17, 0.0  ;;  %v1769_v11 = vmul.f32 0.1, %v1643_v17  ;;  %v11775_v6 = vsel %vm1736_vm10, %v1640_v3, %v1768_v20  ;;  %v1387_v3 = vpop.permute.xlu0 %1386 }
 0x3d7   : > { %vm1735_vm13 = vcmp.gt.f32.partialorder %v1635_v33, 0.0  ;;  %v1767_v61 = vmul.f32 0.1, %v1635_v33  ;;  %v11779_v0 = vsel %vm1734_vm11, %v1632_v40, %v1766_v59  ;;  %v11029_v40 = vmov 1  }
 0x3d8   : > { %v11777_v39 = vsel %vm1737_vm12, %v1643_v17, %v1769_v11  ;;  %9968 = vset.pattern.permute.xlu1 %v11029_v40  ;;  %9969 = vset.pattern.permute.xlu0 %v11029_v40 }
 0x3d9   : > { %v11781_v12 = vsel %vm1735_vm13, %v1635_v33, %v1767_v61  ;;  %v9522_v31 = vpop.f32.mrb[28].mxu1  ;;  %v1827_v2 = vpack.c.bf16 %v11777_v39, %v11775_v6  ;;  %1871 = vperm.xlu1 %9968, %v11513_v18   ;;  %1875 = vperm.xlu0 %9969, %v11519_v22   ;;  %v10051_v39 = vld [vmem:[%s14387_s3] ss:$8 sps:$4 sm:$0xff]  }
 0x3da   : > { %v1656_v52 = vadd.f32 %v9522_v31, %v1382_v16  ;;  %v1647_v37 = vpop.f32.mrb[29].mxu1  ;;  %v1826_v24 = vpack.c.bf16 %v11781_v12, %v11779_v0  ;;  %v14468_v0 = vld [vmem:[#allocation12_spill] sm:$0xff]  ;;  %v14469_v12 = vld [vmem:[#allocation14_spill] sm:$0xff] }
 0x3db   : > { %v1648_v34 = vadd.f32 %v1647_v37, %v1372_v15  ;;  %v9523_v55 = vpop.f32.mrb[30].mxu1 }
 0x3dc   : > { %v1772_v20 = vmul.f32 0.1, %v1656_v52  ;;  %v1659_v17 = vadd.f32 %v9523_v55, %v1387_v3  ;;  %v1650_v11 = vpop.f32.mrb[31].mxu1  ;;  %vm1740_vm14 = vcmp.gt.f32.partialorder %v1656_v52, 0.0 }
 0x3dd   : > { %v1770_v59 = vmul.f32 0.1, %v1648_v34  ;;  %v1651_v33 = vadd.f32 %v1650_v11, %v1377_v51  ;;  %vm1738_vm15 = vcmp.gt.f32.partialorder %v1648_v34, 0.0  ;;  %1879 = vperm.xlu1 %9968, %v11537_v25   ;;  %1887 = vperm.xlu0 %9969, %v11555_v23  }
 0x3de   : > { %vm1741_vm0 = vcmp.gt.f32.partialorder %v1659_v17, 0.0  ;;  %v1773_v61 = vmul.f32 0.1, %v1659_v17  ;;  %v11789_v37 = vsel %vm1740_vm14, %v1656_v52, %v1772_v20 }
 0x3df   : > { %vm1739_vm2 = vcmp.gt.f32.partialorder %v1651_v33, 0.0  ;;  %v1771_v15 = vmul.f32 0.1, %v1651_v33  ;;  %v11793_v55 = vsel %vm1738_vm15, %v1648_v34, %v1770_v59 }
 0x3e0   : > { %v11791_v16 = vsel %vm1741_vm0, %v1659_v17, %v1773_v61 }
 0x3e1   : > { %v11797_v3 = vsel %vm1739_vm2, %v1651_v33, %v1771_v15  ;;  %v9526_v51 = vpop.f32.mrb[32].mxu1  ;;  %1883 = vperm.xlu1 %9968, %v11543_v26   ;;  %1895 = vperm.xlu0 %9969, %v11567_v30   ;;  %v14472_v6 = vpack.c.bf16 %v11791_v16, %v11789_v37  ;;  %v10056_v37 = vld [vmem:[%s14387_s3 + $0x10] ss:$8 sps:$4 sm:$0xff]   ;;  %v10057_v16 = vld [vmem:[%s14387_s3 + $0x24] ss:$8 sps:$4 sm:$0xff]  }
 0x3e2   : > { %v1672_v18 = vadd.f32 %v9526_v51, %v11715_v32  ;;  %v1663_v22 = vpop.f32.mrb[33].mxu1  ;;  %v1828_v52 = vpack.c.bf16 %v11797_v3, %v11793_v55  ;;  %v14474_v55 = vld [vmem:[#allocation16_spill] sm:$0xff]  ;;  %v14475_v3 = vmov 0  }
 0x3e3   : > { %v1664_v20 = vadd.f32 %v1663_v22, %v11722_v56  ;;  %v9527_v34 = vpop.f32.mrb[34].mxu1 }
 0x3e4   : > { %v1776_v17 = vmul.f32 0.1, %v1672_v18  ;;  %v1675_v11 = vadd.f32 %v9527_v34, %v11717_v36  ;;  %v1666_v40 = vpop.f32.mrb[35].mxu1  ;;  %vm1744_vm3 = vcmp.gt.f32.partialorder %v1672_v18, 0.0 }
 0x3e5   : > { %v1774_v59 = vmul.f32 0.1, %v1664_v20  ;;  %v1667_v33 = vadd.f32 %v1666_v40, %v11713_v47  ;;  %vm1742_vm4 = vcmp.gt.f32.partialorder %v1664_v20, 0.0  ;;  %1891 = vperm.xlu1 %9968, %v11603_v10   ;;  %1903 = vperm.xlu0 %9969, %v11584_v42   ;;  %v14464_v10 = vpack.c.bf16 %v11750_v7, %v11748_v63 }
 0x3e6   : > { %v1777_v25 = vmul.f32 0.1, %v1675_v11  ;;  %vm1745_vm5 = vcmp.gt.f32.partialorder %v1675_v11, 0.0  ;;  %v1808_v32 = vsel %vm1744_vm3, %v1672_v18, %v1776_v17 }
 0x3e7   : > { %v1775_v23 = vmul.f32 0.1, %v1667_v33  ;;  %vm1743_vm6 = vcmp.gt.f32.partialorder %v1667_v33, 0.0  ;;  %v1806_v15 = vsel %vm1742_vm4, %v1664_v20, %v1774_v59 }
 0x3e8   : > { %v1809_v56 = vsel %vm1745_vm5, %v1675_v11, %v1777_v25 }
 0x3e9   : > { %v9530_v61 = vpop.f32.mrb[36].mxu1  ;;  %v1807_v51 = vsel %vm1743_vm6, %v1667_v33, %v1775_v23  ;;  %v1831_v36 = vpack.c.bf16 %v1809_v56, %v1808_v32  ;;  %1899 = vperm.xlu1 %9968, %v11627_v8   ;;  %1911 = vperm.xlu0 %9969, %v11608_v54  }
 0x3ea   : > { %v1688_v47 = vadd.f32 %v9530_v61, %v11728_v53  ;;  %v1679_v26 = vpop.f32.mrb[37].mxu1  ;;  %v1830_v22 = vpack.c.bf16 %v1807_v51, %v1806_v15 }
 0x3eb   : > { %v1680_v30 = vadd.f32 %v1679_v26, %v11724_v41  ;;  %v9531_v34 = vpop.f32.mrb[38].mxu1 }
 0x3ec   : > { %v1780_v40 = vmul.f32 0.1, %v1688_v47  ;;  %v1691_v31 = vadd.f32 %v9531_v34, %v11730_v27  ;;  %v1682_v18 = vpop.f32.mrb[39].mxu1  ;;  %9348 = vmatprep.subr.bf16.mxu0 %v1830_v22  ;;  %vm1748_vm7 = vcmp.gt.f32.partialorder %v1688_v47, 0.0  ;;  %v14471_v34 = vld [vmem:[#allocation15_spill] sm:$0xff] }
 0x3ed   : > { %v1778_v17 = vmul.f32 0.1, %v1680_v30  ;;  %v1683_v20 = vadd.f32 %v1682_v18, %v11726_v29  ;;  %9349 = vmatpush3.bf16.msra.mxu0 %v14464_v10  ;;  %vm1746_vm8 = vcmp.gt.f32.partialorder %v1680_v30, 0.0  ;;  %v14465_v29 = vpack.c.bf16 %v11746_v38, %v11744_v14  ;;  %1907 = vperm.xlu1 %9968, %v11653_v45   ;;  %v14477_v18 = vld [vmem:[#allocation18_spill] sm:$0xff]  ;;  %v14480_v10 = vld [vmem:[#allocation23_spill] sm:$0xff] }
 0x3ee   : > { %v1781_v42 = vmul.f32 0.1, %v1691_v31  ;;  %9350 = vmatprep.subr.bf16.mxu0 %v1831_v36  ;;  %vm1749_vm9 = vcmp.gt.f32.partialorder %v1691_v31, 0.0  ;;  %v1812_v53 = vsel %vm1748_vm7, %v1688_v47, %v1780_v40  ;;  %1919 = vperm.xlu0 %9969, %v11632_v4   ;;  %v14466_v45 = vpack.c.bf16 %v11764_v57, %v11762_v49  ;;  %v14473_v40 = vld [vmem:[#allocation17_spill] sm:$0xff] }
 0x3ef   : > { %v1779_v41 = vmul.f32 0.1, %v1683_v20  ;;  %vm1747_vm10 = vcmp.gt.f32.partialorder %v1683_v20, 0.0  ;;  %v1810_v63 = vsel %vm1746_vm8, %v1680_v30, %v1778_v17  ;;  %v14478_v17 = vld [vmem:[#allocation21_spill] sm:$0xff] }
 0x3f0   : > { %v1813_v27 = vsel %vm1749_vm9, %v1691_v31, %v1781_v42  ;;  %v14481_v42 = vld [vmem:[#allocation22_spill] sm:$0xff] }
 0x3f1   : > { %v9534_v11 = vpop.f32.mrb[40].mxu1  ;;  %9351 = vmatpush3.bf16.msra.mxu0 %v14465_v29  ;;  %v1811_v7 = vsel %vm1747_vm10, %v1683_v20, %v1779_v41  ;;  %v1833_v59 = vpack.c.bf16 %v1813_v27, %v1812_v53  ;;  %1915 = vperm.xlu1 %9968, %v11675_v43   ;;  %v14479_v20 = vld [vmem:[#allocation20_spill] sm:$0xff]  ;;  %v10060_v53 = vld [vmem:[%s14387_s3 + $0x34] ss:$8 sps:$4 sm:$0xff]   ;;  %v10062_v29 = vld [vmem:[%s14387_s3 + $0x30] ss:$8 sps:$4 sm:$0xff]  }
 0x3f2   : > { %v1704_v8 = vadd.f32 %v9534_v11, %v11738_v5  ;;  %v1695_v33 = vpop.f32.mrb[41].mxu1  ;;  %v1832_v25 = vpack.c.bf16 %v1811_v7, %v1810_v63  ;;  %1927 = vperm.xlu0 %9969, %v11658_v44   ;;  %v10059_v41 = vld [vmem:[%s14387_s3 + $0x20] ss:$8 sps:$4 sm:$0xff]   ;;  %v10063_v63 = vld [vmem:[%s14387_s3 + $0x44] ss:$8 sps:$4 sm:$0xff]  }
 0x3f3   : > { %v1696_v54 = vadd.f32 %v1695_v33, %v11732_v9  ;;  %v9535_v23 = vpop.f32.mrb[42].mxu1  ;;  %v14482_v27 = vld [vmem:[#allocation24_spill] sm:$0xff]  ;;  %v14483_v11 = vld [vmem:[#allocation25_spill] sm:$0xff] }
 0x3f4   : > { %v1784_v31 = vmul.f32 0.1, %v1704_v8  ;;  %v1707_v32 = vadd.f32 %v9535_v23, %v11740_v35  ;;  %v1698_v56 = vpop.f32.mrb[43].mxu1  ;;  %9352 = vmatprep.subr.bf16.mxu0 %v1832_v25  ;;  %vm1752_vm11 = vcmp.gt.f32.partialorder %v1704_v8, 0.0  ;;  %v10065_v7 = vld [vmem:[%s14387_s3 + $0x40] ss:$8 sps:$4 sm:$0xff]  }
 0x3f5   : > { %v1782_v14 = vmul.f32 0.1, %v1696_v54  ;;  %v1699_v38 = vadd.f32 %v1698_v56, %v11734_v19  ;;  %9353 = vmatpush3.bf16.msra.mxu0 %v14466_v45  ;;  %vm1750_vm12 = vcmp.gt.f32.partialorder %v1696_v54, 0.0  ;;  %v14467_v19 = vpack.c.bf16 %v11760_v50, %v11758_v1  ;;  %1923 = vperm.xlu1 %9968, %v11689_v46   ;;  %v10069_v33 = vld [vmem:[%s14387_s3 + $0x64] ss:$8 sps:$4 sm:$0xff]  }
 0x3f6   : > { %v1785_v5 = vmul.f32 0.1, %v1707_v32  ;;  %9354 = vmatprep.subr.bf16.mxu0 %v1833_v59  ;;  %vm1753_vm13 = vcmp.gt.f32.partialorder %v1707_v32, 0.0  ;;  %v1816_v9 = vsel %vm1752_vm11, %v1704_v8, %v1784_v31  ;;  %1935 = vperm.xlu0 %9969, %v11579_v58   ;;  %v10066_v59 = vld [vmem:[%s14387_s3 + $0x54] ss:$8 sps:$4 sm:$0xff]  }
 0x3f7   : > { %v1783_v4 = vmul.f32 0.1, %v1699_v38  ;;  %vm1751_vm14 = vcmp.gt.f32.partialorder %v1699_v38, 0.0  ;;  %v1814_v49 = vsel %vm1750_vm12, %v1696_v54, %v1782_v14  ;;  %v10068_v8 = vld [vmem:[%s14387_s3 + $0x50] ss:$8 sps:$4 sm:$0xff]  }
 0x3f8   : > { %v1817_v35 = vsel %vm1753_vm13, %v1707_v32, %v1785_v5  ;;  %v10071_v25 = vld [vmem:[%s14387_s3 + $0x60] ss:$8 sps:$4 sm:$0xff]   ;;  %v10072_v54 = vld [vmem:[%s14387_s3 + $0x74] ss:$8 sps:$4 sm:$0xff]   ;;  %v10074_v23 = vld [vmem:[%s14387_s3 + $0x70] ss:$8 sps:$4 sm:$0xff]  }
 0x3f9   : > { %v9538_v61 = vpop.f32.mrb[44].mxu1  ;;  %9355 = vmatpush3.bf16.msra.mxu0 %v14467_v19  ;;  %v1815_v57 = vsel %vm1751_vm14, %v1699_v38, %v1783_v4  ;;  %v1835_v15 = vpack.c.bf16 %v1817_v35, %v1816_v9  ;;  %1931 = vperm.xlu1 %9968, %v11703_v62   ;;  %v10075_v31 = vld [vmem:[%s14387_s3 + $0x84] ss:$8 sps:$4 sm:$0xff]   ;;  %v10077_v32 = vld [vmem:[%s14387_s3 + $0x80] ss:$8 sps:$4 sm:$0xff]  }
 0x3fa   : > { %v1720_v43 = vadd.f32 %v9538_v61, %v11770_v48  ;;  %v1711_v51 = vpop.f32.mrb[45].mxu1  ;;  %v1834_v36 = vpack.c.bf16 %v1815_v57, %v1814_v49  ;;  %1943 = vperm.xlu0 %9969, %v11525_v21   ;;  %v14470_v21 = vld [vmem:[#allocation13_spill] sm:$0xff]  ;;  %v10078_v56 = vld [vmem:[%s14387_s3 + $0x94] ss:$8 sps:$4 sm:$0xff]   ;;  %v10080_v14 = vld [vmem:[%s14387_s3 + $0x90] ss:$8 sps:$4 sm:$0xff]  }
 0x3fb   : > { %v1712_v44 = vadd.f32 %v1711_v51, %v11742_v60  ;;  %v9539_v47 = vpop.f32.mrb[46].mxu1  ;;  %v10081_v38 = vld [vmem:[%s14387_s3 + $0xa4] ss:$8 sps:$4 sm:$0xff]   ;;  %v10083_v45 = vld [vmem:[%s14387_s3 + $0xa0] ss:$8 sps:$4 sm:$0xff]  }
 0x3fc   : > { %v1788_v26 = vmul.f32 0.1, %v1720_v43  ;;  %v1723_v22 = vadd.f32 %v9539_v47, %v11773_v28  ;;  %v1714_v30 = vpop.f32.mrb[47].mxu1  ;;  %9356 = vmatprep.subr.bf16.mxu0 %v1834_v36  ;;  %vm1756_vm15 = vcmp.gt.f32.partialorder %v1720_v43, 0.0  ;;  %v10084_v5 = vld [vmem:[%s14387_s3 + $0xb4] ss:$8 sps:$4 sm:$0xff]  }
 0x3fd   : > { %v1786_v1 = vmul.f32 0.1, %v1712_v44  ;;  %v1715_v50 = vadd.f32 %v1714_v30, %v11752_v13  ;;  %9357 = vmatpush3.bf16.msra.mxu0 %v1826_v24  ;;  %vm1754_vm0 = vcmp.gt.f32.partialorder %v1712_v44, 0.0  ;;  %1939 = vperm.xlu1 %9968, %v14468_v0   ;;  %v10086_v4 = vld [vmem:[%s14387_s3 + $0xb0] ss:$8 sps:$4 sm:$0xff]  }
 0x3fe   : > { %v1789_v48 = vmul.f32 0.1, %v1723_v22  ;;  %9358 = vmatprep.subr.bf16.mxu0 %v1835_v15  ;;  %vm1757_vm2 = vcmp.gt.f32.partialorder %v1723_v22, 0.0  ;;  %v1820_v60 = vsel %vm1756_vm15, %v1720_v43, %v1788_v26  ;;  %1951 = vperm.xlu0 %9969, %v14469_v12   ;;  %v10087_v9 = vld [vmem:[%s14387_s3 + $0xc4] ss:$8 sps:$4 sm:$0xff]  }
 0x3ff   : > { %v1787_v58 = vmul.f32 0.1, %v1715_v50  ;;  %vm1755_vm3 = vcmp.gt.f32.partialorder %v1715_v50, 0.0  ;;  %v1818_v13 = vsel %vm1754_vm0, %v1712_v44, %v1786_v1  ;;  %v10089_v35 = vld [vmem:[%s14387_s3 + $0xc0] ss:$8 sps:$4 sm:$0xff]  }
 0x400   : > { %v1821_v46 = vsel %vm1757_vm2, %v1723_v22, %v1789_v48  ;;  %v10090_v61 = vld [vmem:[%s14387_s3 + $0xd4] ss:$8 sps:$4 sm:$0xff]   ;;  %v10092_v19 = vld [vmem:[%s14387_s3 + $0xd0] ss:$8 sps:$4 sm:$0xff]   ;;  %v10093_v49 = vld [vmem:[%s14387_s3 + $0xe4] ss:$8 sps:$4 sm:$0xff]  }
 0x401   : > { %9359 = vmatpush3.bf16.msra.mxu0 %v1827_v2  ;;  %v1819_v28 = vsel %vm1755_vm3, %v1715_v50, %v1787_v58  ;;  %v1837_v24 = vpack.c.bf16 %v1821_v46, %v1820_v60  ;;  %1947 = vperm.xlu1 %9968, %v14470_v21   ;;  %v10054_v2 = vld [vmem:[%s14387_s3 + $0x14] ss:$8 sps:$4 sm:$0xff]   ;;  %v10095_v57 = vld [vmem:[%s14387_s3 + $0xe0] ss:$8 sps:$4 sm:$0xff]   ;;  %v10098_v43 = vld [vmem:[%s14387_s3 + $0xf0] ss:$8 sps:$4 sm:$0xff]  }
 0x402   : > { %v1836_v62 = vpack.c.bf16 %v1819_v28, %v1818_v13  ;;  %1959 = vperm.xlu0 %9969, %v14471_v34   ;;  %v10096_v15 = vld [vmem:[%s14387_s3 + $0xf4] ss:$8 sps:$4 sm:$0xff]  }
 0x404   : > { %9360 = vmatprep.subr.bf16.mxu0 %v1836_v62 }
 0x405   : > { %9361 = vmatpush3.bf16.msra.mxu0 %v1828_v52  ;;  %1955 = vperm.xlu1 %9968, %v14473_v40   ;;  %v14476_v52 = vld [vmem:[#allocation19_spill] sm:$0xff] }
 0x406   : > { %9362 = vmatprep.subr.bf16.mxu0 %v1837_v24  ;;  %1967 = vperm.xlu0 %9969, %v14474_v55  }
 0x409   : > { %9363 = vmatpush3.bf16.msra.mxu0 %v14472_v6  ;;  %1963 = vperm.xlu1 %9968, %v14476_v52  }
 0x40a   : > { %5152 = vmatprep.subr.bf16.mxu0 %v14475_v3  ;;  %1975 = vperm.xlu0 %9969, %v14477_v18  }
 0x40c   : > { %2191 = vmatmul.mubr.bf16.vlgmr.msra.gmra.mrb[32].mxu0 %v10051_v39 }
 0x40d   : > { %2198 = vmatprep.mubr.bf16.mxu0 %v10054_v2  ;;  %1971 = vperm.xlu1 %9968, %v14478_v17  }
 0x40e   : > { %1983 = vperm.xlu0 %9969, %v14479_v20  }
 0x411   : > { %1979 = vperm.xlu1 %9968, %v14480_v10  }
 0x412   : > { %1991 = vperm.xlu0 %9969, %v14481_v42  }
 0x414   : > { %2199 = vmatmul.mubr.bf16.gmra.mrb[36].mxu0 %v10056_v37 }
 0x415   : > { %2206 = vmatprep.mubr.bf16.mxu0 %v10057_v16  ;;  %1987 = vperm.xlu1 %9968, %v14482_v27  }
 0x419   : > { %1995 = vperm.xlu1 %9968, %v14483_v11  }
 0x41c   : > { %2207 = vmatmul.mubr.bf16.gmra.mrb[40].mxu0 %v10059_v41 }
 0x41d   : > { %2214 = vmatprep.mubr.bf16.mxu0 %v10060_v53 }
 0x424   : > { %2215 = vmatmul.mubr.bf16.gmra.mrb[44].mxu0 %v10062_v29 }
 0x425   : > { %2222 = vmatprep.mubr.bf16.mxu0 %v10063_v63 }
 0x42c   : > { %2223 = vmatmul.mubr.bf16.gmra.mrb[48].mxu0 %v10065_v7 }
 0x42d   : > { %2230 = vmatprep.mubr.bf16.mxu0 %v10066_v59 }
 0x434   : > { %2231 = vmatmul.mubr.bf16.gmra.mrb[52].mxu0 %v10068_v8 }
 0x435   : > { %2238 = vmatprep.mubr.bf16.mxu0 %v10069_v33 }
 0x43c   : > { %2239 = vmatmul.mubr.bf16.gmra.mrb[56].mxu0 %v10071_v25 }
 0x43d   : > { %2246 = vmatprep.mubr.bf16.mxu0 %v10072_v54 }
 0x444   : > { %2247 = vmatmul.mubr.bf16.gmra.mrb[60].mxu0 %v10074_v23 }
 0x445   : > { %2254 = vmatprep.mubr.bf16.mxu0 %v10075_v31 }
 0x44c   : > { %2255 = vmatmul.mubr.bf16.gmra.mrb[64].mxu0 %v10077_v32 }
 0x44d   : > { %2262 = vmatprep.mubr.bf16.mxu0 %v10078_v56 }
 0x454   : > { %2263 = vmatmul.mubr.bf16.gmra.mrb[68].mxu0 %v10080_v14 }
 0x455   : > { %2270 = vmatprep.mubr.bf16.mxu0 %v10081_v38 }
 0x458   : > { %v1872_v44 = vpop.permute.xlu1 %1871  ;;  %v1876_v30 = vpop.permute.xlu0 %1875 }
 0x45c   : > { %2271 = vmatmul.mubr.bf16.gmra.mrb[72].mxu0 %v10083_v45  ;;  %v1880_v60 = vpop.permute.xlu1 %1879  ;;  %v1888_v27 = vpop.permute.xlu0 %1887 }
 0x45d   : > { %2278 = vmatprep.mubr.bf16.mxu0 %v10084_v5 }
 0x460   : > { %v1884_v40 = vpop.permute.xlu1 %1883  ;;  %v1896_v45 = vpop.permute.xlu0 %1895 }
 0x464   : > { %2279 = vmatmul.mubr.bf16.gmra.mrb[76].mxu0 %v10086_v4  ;;  %v1892_v63 = vpop.permute.xlu1 %1891 }
 0x465   : > { %2286 = vmatprep.mubr.bf16.mxu0 %v10087_v9 }
 0x46c   : > { %2287 = vmatmul.mubr.bf16.gmra.mrb[80].mxu0 %v10089_v35  ;;  %v1900_v35 = vpop.permute.xlu1 %1899 }
 0x46d   : > { %2294 = vmatprep.mubr.bf16.mxu0 %v10090_v61 }
 0x474   : > { %2295 = vmatmul.mubr.bf16.gmra.mrb[84].mxu0 %v10092_v19 }
 0x475   : > { %2302 = vmatprep.mubr.bf16.mxu0 %v10093_v49 }
 0x47c   : > { %2303 = vmatmul.mubr.bf16.gmra.mrb[88].mxu0 %v10095_v57 }
 0x47d   : > { %2310 = vmatprep.mubr.bf16.mxu0 %v10096_v15 }
 0x484   : > { %2311 = vmatmul.mubr.bf16.gmra.mrb[92].mxu0 %v10098_v43 }
 0x4df   : > { %v9364_v51 = vpop.f32.mrb[32].mxu0 }
 0x4e0   : > { %v9365_v36 = vpop.f32.mrb[33].mxu0 }
 0x4e1   : > { %v9366_v47 = vadd.f32 %v9365_v36, %v9364_v51  ;;  %v9367_v26 = vpop.f32.mrb[34].mxu0 }
 0x4e2   : > { %v9368_v22 = vpop.f32.mrb[35].mxu0 }
 0x4e3   : > { %v2193_v1 = vadd.f32 %v9366_v47, %v1872_v44  ;;  %v9369_v50 = vadd.f32 %v9368_v22, %v9367_v26  ;;  %v1904_v22 = vpop.permute.xlu0 %1903 }
 0x4e5   : > { %v2196_v48 = vadd.f32 %v9369_v50, %v1876_v30  ;;  %vm2319_vm4 = vcmp.gt.f32.partialorder %v2193_v1, 0.0  ;;  %v2351_v58 = vmul.f32 0.1, %v2193_v1 }
 0x4e7   : > { %v2352_v46 = vmul.f32 0.1, %v2196_v48  ;;  %v9370_v13 = vpop.f32.mrb[36].mxu0  ;;  %v11965_v28 = vsel %vm2319_vm4, %v2193_v1, %v2351_v58  ;;  %vm2320_vm5 = vcmp.gt.f32.partialorder %v2196_v48, 0.0 }
 0x4e8   : > { %v9371_v24 = vpop.f32.mrb[37].mxu0  ;;  %v2415_v0 = vsel %vm1027_vm1, %v11965_v28, 0.0 }
 0x4e9   : > { %v9372_v62 = vadd.f32 %v9371_v24, %v9370_v13  ;;  %2416 = vadd.xlane.f32.xlu0 %v2415_v0  ;;  %v9373_v12 = vpop.f32.mrb[38].mxu0  ;;  %v11969_v21 = vsel %vm2320_vm5, %v2196_v48, %v2352_v46  ;;  %v1908_v48 = vpop.permute.xlu1 %1907 }
 0x4ea   : > { %v2418_v34 = vsel %vm1027_vm1, %v11969_v21, 0.0  ;;  %v9374_v39 = vpop.f32.mrb[39].mxu0 }
 0x4eb   : > { %v2201_v6 = vadd.f32 %v9372_v62, %v1880_v60  ;;  %2419 = vadd.xlane.f32.xlu1 %v2418_v34  ;;  %v9375_v2 = vadd.f32 %v9374_v39, %v9373_v12 }
 0x4ed   : > { %v2204_v55 = vadd.f32 %v9375_v2, %v1884_v40  ;;  %vm2321_vm6 = vcmp.gt.f32.partialorder %v2201_v6, 0.0  ;;  %v2353_v52 = vmul.f32 0.1, %v2201_v6  ;;  %v1912_v2 = vpop.permute.xlu0 %1911 }
 0x4ef   : > { %v9376_v18 = vpop.f32.mrb[40].mxu0  ;;  %v11973_v37 = vsel %vm2321_vm6, %v2201_v6, %v2353_v52  ;;  %vm2322_vm7 = vcmp.gt.f32.partialorder %v2204_v55, 0.0  ;;  %v2354_v16 = vmul.f32 0.1, %v2204_v55 }
 0x4f0   : > { %v9377_v17 = vpop.f32.mrb[41].mxu0  ;;  %v2421_v20 = vsel %vm1027_vm1, %v11973_v37, 0.0 }
 0x4f1   : > { %v9378_v10 = vadd.f32 %v9377_v17, %v9376_v18  ;;  %v9379_v42 = vpop.f32.mrb[42].mxu0  ;;  %2422 = vadd.xlane.f32.xlu0 %v2421_v20  ;;  %v11977_v41 = vsel %vm2322_vm7, %v2204_v55, %v2354_v16  ;;  %v1916_v18 = vpop.permute.xlu1 %1915 }
 0x4f2   : > { %v9380_v53 = vpop.f32.mrb[43].mxu0  ;;  %v2424_v7 = vsel %vm1027_vm1, %v11977_v41, 0.0 }
 0x4f3   : > { %v9381_v11 = vadd.f32 %v9380_v53, %v9379_v42  ;;  %v2209_v29 = vadd.f32 %v9378_v10, %v1888_v27 }
 0x4f5   : > { %v2355_v59 = vmul.f32 0.1, %v2209_v29  ;;  %v2212_v8 = vadd.f32 %v9381_v11, %v1892_v63  ;;  %2425 = vadd.xlane.f32.xlu0 %v2424_v7  ;;  %vm2323_vm8 = vcmp.gt.f32.partialorder %v2209_v29, 0.0 }
 0x4f7   : > { %v9382_v33 = vpop.f32.mrb[44].mxu0  ;;  %v11981_v25 = vsel %vm2323_vm8, %v2209_v29, %v2355_v59  ;;  %vm2324_vm9 = vcmp.gt.f32.partialorder %v2212_v8, 0.0  ;;  %v2356_v54 = vmul.f32 0.1, %v2212_v8  ;;  %v1920_v59 = vpop.permute.xlu0 %1919 }
 0x4f8   : > { %v9383_v23 = vpop.f32.mrb[45].mxu0  ;;  %v2427_v31 = vsel %vm1027_vm1, %v11981_v25, 0.0 }
 0x4f9   : > { %v9384_v32 = vadd.f32 %v9383_v23, %v9382_v33  ;;  %v9385_v56 = vpop.f32.mrb[46].mxu0  ;;  %2428 = vadd.xlane.f32.xlu1 %v2427_v31  ;;  %v11985_v14 = vsel %vm2324_vm9, %v2212_v8, %v2356_v54  ;;  %v1924_v23 = vpop.permute.xlu1 %1923 }
 0x4fa   : > { %v9386_v38 = vpop.f32.mrb[47].mxu0  ;;  %v2430_v5 = vsel %vm1027_vm1, %v11985_v14, 0.0 }
 0x4fb   : > { %v9387_v4 = vadd.f32 %v9386_v38, %v9385_v56  ;;  %v2217_v9 = vadd.f32 %v9384_v32, %v1896_v45  ;;  %2431 = vadd.xlane.f32.xlu0 %v2430_v5 }
 0x4fd   : > { %v2357_v61 = vmul.f32 0.1, %v2217_v9  ;;  %v2220_v19 = vadd.f32 %v9387_v4, %v1900_v35  ;;  %vm2325_vm10 = vcmp.gt.f32.partialorder %v2217_v9, 0.0 }
 0x4ff   : > { %v9388_v49 = vpop.f32.mrb[48].mxu0  ;;  %v11989_v57 = vsel %vm2325_vm10, %v2217_v9, %v2357_v61  ;;  %vm2326_vm11 = vcmp.gt.f32.partialorder %v2220_v19, 0.0  ;;  %v2358_v15 = vmul.f32 0.1, %v2220_v19 }
 0x500   : > { %v9389_v43 = vpop.f32.mrb[49].mxu0  ;;  %v2433_v51 = vsel %vm1027_vm1, %v11989_v57, 0.0 }
 0x501   : > { %v9390_v36 = vadd.f32 %v9389_v43, %v9388_v49  ;;  %v9391_v44 = vpop.f32.mrb[50].mxu0  ;;  %2434 = vadd.xlane.f32.xlu1 %v2433_v51  ;;  %v11993_v47 = vsel %vm2326_vm11, %v2220_v19, %v2358_v15  ;;  %v1928_v49 = vpop.permute.xlu0 %1927 }
 0x502   : > { %v9392_v26 = vpop.f32.mrb[51].mxu0  ;;  %v2436_v30 = vsel %vm1027_vm1, %v11993_v47, 0.0 }
 0x503   : > { %v9393_v1 = vadd.f32 %v9392_v26, %v9391_v44  ;;  %v2225_v50 = vadd.f32 %v9390_v36, %v1904_v22  ;;  %2437 = vadd.xlane.f32.xlu0 %v2436_v30  ;;  %v1932_v36 = vpop.permute.xlu1 %1931 }
 0x505   : > { %v2359_v58 = vmul.f32 0.1, %v2225_v50  ;;  %v2228_v60 = vadd.f32 %v9393_v1, %v1908_v48  ;;  %vm2327_vm12 = vcmp.gt.f32.partialorder %v2225_v50, 0.0 }
 0x507   : > { %v2360_v46 = vmul.f32 0.1, %v2228_v60  ;;  %v9394_v13 = vpop.f32.mrb[52].mxu0  ;;  %v11997_v24 = vsel %vm2327_vm12, %v2225_v50, %v2359_v58  ;;  %vm2328_vm13 = vcmp.gt.f32.partialorder %v2228_v60, 0.0 }
 0x508   : > { %v9395_v0 = vpop.f32.mrb[53].mxu0  ;;  %v2439_v62 = vsel %vm1027_vm1, %v11997_v24, 0.0 }
 0x509   : > { %v9396_v12 = vadd.f32 %v9395_v0, %v9394_v13  ;;  %v9397_v34 = vpop.f32.mrb[54].mxu0  ;;  %2440 = vadd.xlane.f32.xlu1 %v2439_v62  ;;  %v12001_v39 = vsel %vm2328_vm13, %v2228_v60, %v2360_v46  ;;  %v1936_v13 = vpop.permute.xlu0 %1935 }
 0x50a   : > { %v9398_v6 = vpop.f32.mrb[55].mxu0  ;;  %v2442_v40 = vsel %vm1027_vm1, %v12001_v39, 0.0 }
 0x50b   : > { %v9399_v55 = vadd.f32 %v9398_v6, %v9397_v34  ;;  %v2233_v52 = vadd.f32 %v9396_v12, %v1912_v2  ;;  %2443 = vadd.xlane.f32.xlu0 %v2442_v40  ;;  %v1940_v6 = vpop.permute.xlu1 %1939 }
 0x50d   : > { %v2361_v16 = vmul.f32 0.1, %v2233_v52  ;;  %v2236_v17 = vadd.f32 %v9399_v55, %v1916_v18  ;;  %vm2329_vm14 = vcmp.gt.f32.partialorder %v2233_v52, 0.0 }
 0x50f   : > { %v2362_v20 = vmul.f32 0.1, %v2236_v17  ;;  %v9400_v10 = vpop.f32.mrb[56].mxu0  ;;  %v12005_v42 = vsel %vm2329_vm14, %v2233_v52, %v2361_v16  ;;  %vm2330_vm15 = vcmp.gt.f32.partialorder %v2236_v17, 0.0 }
 0x510   : > { %v9401_v53 = vpop.f32.mrb[57].mxu0  ;;  %v2445_v27 = vsel %vm1027_vm1, %v12005_v42, 0.0 }
 0x511   : > { %v9402_v11 = vadd.f32 %v9401_v53, %v9400_v10  ;;  %v9403_v29 = vpop.f32.mrb[58].mxu0  ;;  %2446 = vadd.xlane.f32.xlu1 %v2445_v27  ;;  %v12009_v63 = vsel %vm2330_vm15, %v2236_v17, %v2362_v20  ;;  %v1944_v27 = vpop.permute.xlu0 %1943 }
 0x512   : > { %v9404_v7 = vpop.f32.mrb[59].mxu0  ;;  %v2448_v8 = vsel %vm1027_vm1, %v12009_v63, 0.0 }
 0x513   : > { %v9405_v33 = vadd.f32 %v9404_v7, %v9403_v29  ;;  %v2241_v54 = vadd.f32 %v9402_v11, %v1920_v59  ;;  %2449 = vadd.xlane.f32.xlu0 %v2448_v8  ;;  %v1948_v8 = vpop.permute.xlu1 %1947 }
 0x515   : > { %v2363_v31 = vmul.f32 0.1, %v2241_v54  ;;  %v2244_v32 = vadd.f32 %v9405_v33, %v1924_v23  ;;  %vm2331_vm0 = vcmp.gt.f32.partialorder %v2241_v54, 0.0 }
 0x517   : > { %v2364_v56 = vmul.f32 0.1, %v2244_v32  ;;  %v9406_v38 = vpop.f32.mrb[60].mxu0  ;;  %v12013_v45 = vsel %vm2331_vm0, %v2241_v54, %v2363_v31  ;;  %vm2332_vm2 = vcmp.gt.f32.partialorder %v2244_v32, 0.0 }
 0x518   : > { %v9407_v5 = vpop.f32.mrb[61].mxu0  ;;  %v2451_v4 = vsel %vm1027_vm1, %v12013_v45, 0.0 }
 0x519   : > { %v9408_v9 = vadd.f32 %v9407_v5, %v9406_v38  ;;  %v9409_v35 = vpop.f32.mrb[62].mxu0  ;;  %2452 = vadd.xlane.f32.xlu1 %v2451_v4  ;;  %v12017_v61 = vsel %vm2332_vm2, %v2244_v32, %v2364_v56 }
 0x51a   : > { %v9410_v19 = vpop.f32.mrb[63].mxu0  ;;  %v2454_v15 = vsel %vm1027_vm1, %v12017_v61, 0.0 }
 0x51b   : > { %v9411_v43 = vadd.f32 %v9410_v19, %v9409_v35  ;;  %v2249_v51 = vadd.f32 %v9408_v9, %v1928_v49  ;;  %2455 = vadd.xlane.f32.xlu0 %v2454_v15  ;;  %v1952_v35 = vpop.permute.xlu0 %1951 }
 0x51d   : > { %v2252_v44 = vadd.f32 %v9411_v43, %v1932_v36  ;;  %v2365_v26 = vmul.f32 0.1, %v2249_v51  ;;  %vm2333_vm3 = vcmp.gt.f32.partialorder %v2249_v51, 0.0 }
 0x51f   : > { %v9412_v22 = vpop.f32.mrb[64].mxu0  ;;  %v12021_v30 = vsel %vm2333_vm3, %v2249_v51, %v2365_v26  ;;  %vm2334_vm4 = vcmp.gt.f32.partialorder %v2252_v44, 0.0  ;;  %v2366_v1 = vmul.f32 0.1, %v2252_v44  ;;  %v1956_v51 = vpop.permute.xlu1 %1955 }
 0x520   : > { %v9413_v50 = vpop.f32.mrb[65].mxu0  ;;  %v2457_v48 = vsel %vm1027_vm1, %v12021_v30, 0.0 }
 0x521   : > { %v9414_v58 = vadd.f32 %v9413_v50, %v9412_v22  ;;  %v9415_v60 = vpop.f32.mrb[66].mxu0  ;;  %2458 = vadd.xlane.f32.xlu1 %v2457_v48  ;;  %v12025_v46 = vsel %vm2334_vm4, %v2252_v44, %v2366_v1 }
 0x522   : > { %v9416_v0 = vpop.f32.mrb[67].mxu0  ;;  %v2460_v62 = vsel %vm1027_vm1, %v12025_v46, 0.0 }
 0x523   : > { %v2257_v12 = vadd.f32 %v9414_v58, %v1936_v13  ;;  %v9417_v34 = vadd.f32 %v9416_v0, %v9415_v60  ;;  %2461 = vadd.xlane.f32.xlu0 %v2460_v62  ;;  %v1960_v0 = vpop.permute.xlu0 %1959 }
 0x525   : > { %v2367_v2 = vmul.f32 0.1, %v2257_v12  ;;  %v2260_v40 = vadd.f32 %v9417_v34, %v1940_v6  ;;  %vm2335_vm5 = vcmp.gt.f32.partialorder %v2257_v12, 0.0 }
 0x527   : > { %v9418_v55 = vpop.f32.mrb[68].mxu0  ;;  %v12029_v52 = vsel %vm2335_vm5, %v2257_v12, %v2367_v2  ;;  %vm2336_vm6 = vcmp.gt.f32.partialorder %v2260_v40, 0.0  ;;  %v2368_v18 = vmul.f32 0.1, %v2260_v40  ;;  %v1964_v2 = vpop.permute.xlu1 %1963 }
 0x528   : > { %v9419_v16 = vpop.f32.mrb[69].mxu0  ;;  %v2463_v17 = vsel %vm1027_vm1, %v12029_v52, 0.0 }
 0x529   : > { %v9420_v20 = vadd.f32 %v9419_v16, %v9418_v55  ;;  %v9421_v10 = vpop.f32.mrb[70].mxu0  ;;  %2464 = vadd.xlane.f32.xlu1 %v2463_v17  ;;  %v12033_v53 = vsel %vm2336_vm6, %v2260_v40, %v2368_v18 }
 0x52a   : > { %v9422_v11 = vpop.f32.mrb[71].mxu0  ;;  %v2466_v29 = vsel %vm1027_vm1, %v12033_v53, 0.0 }
 0x52b   : > { %v2265_v7 = vadd.f32 %v9420_v20, %v1944_v27  ;;  %v9423_v59 = vadd.f32 %v9422_v11, %v9421_v10  ;;  %2467 = vadd.xlane.f32.xlu0 %v2466_v29 }
 0x52d   : > { %v2268_v33 = vadd.f32 %v9423_v59, %v1948_v8  ;;  %vm2337_vm7 = vcmp.gt.f32.partialorder %v2265_v7, 0.0  ;;  %v2369_v54 = vmul.f32 0.1, %v2265_v7 }
 0x52f   : > { %v9424_v23 = vpop.f32.mrb[72].mxu0  ;;  %v12037_v31 = vsel %vm2337_vm7, %v2265_v7, %v2369_v54  ;;  %vm2338_vm8 = vcmp.gt.f32.partialorder %v2268_v33, 0.0  ;;  %v2370_v32 = vmul.f32 0.1, %v2268_v33  ;;  %v1968_v7 = vpop.permute.xlu0 %1967 }
 0x530   : > { %v9425_v56 = vpop.f32.mrb[73].mxu0  ;;  %v2469_v38 = vsel %vm1027_vm1, %v12037_v31, 0.0 }
 0x531   : > { %v9426_v5 = vadd.f32 %v9425_v56, %v9424_v23  ;;  %v9427_v4 = vpop.f32.mrb[74].mxu0  ;;  %2470 = vadd.xlane.f32.xlu1 %v2469_v38  ;;  %v12041_v9 = vsel %vm2338_vm8, %v2268_v33, %v2370_v32  ;;  %v1972_v23 = vpop.permute.xlu1 %1971 }
 0x532   : > { %v9428_v19 = vpop.f32.mrb[75].mxu0  ;;  %v2472_v49 = vsel %vm1027_vm1, %v12041_v9, 0.0 }
 0x533   : > { %v2273_v15 = vadd.f32 %v9426_v5, %v1952_v35  ;;  %v9429_v43 = vadd.f32 %v9428_v19, %v9427_v4  ;;  %2473 = vadd.xlane.f32.xlu0 %v2472_v49 }
 0x535   : > { %v2371_v36 = vmul.f32 0.1, %v2273_v15  ;;  %v2276_v44 = vadd.f32 %v9429_v43, %v1956_v51  ;;  %vm2339_vm9 = vcmp.gt.f32.partialorder %v2273_v15, 0.0  ;;  %v1976_v51 = vpop.permute.xlu0 %1975 }
 0x537   : > { %v2372_v26 = vmul.f32 0.1, %v2276_v44  ;;  %v9430_v22 = vpop.f32.mrb[76].mxu0  ;;  %v12045_v1 = vsel %vm2339_vm9, %v2273_v15, %v2371_v36  ;;  %vm2340_vm10 = vcmp.gt.f32.partialorder %v2276_v44, 0.0 }
 0x538   : > { %v9431_v50 = vpop.f32.mrb[77].mxu0  ;;  %v2475_v48 = vsel %vm1027_vm1, %v12045_v1, 0.0 }
 0x539   : > { %v9432_v58 = vadd.f32 %v9431_v50, %v9430_v22  ;;  %v9433_v60 = vpop.f32.mrb[78].mxu0  ;;  %2476 = vadd.xlane.f32.xlu1 %v2475_v48  ;;  %v12049_v13 = vsel %vm2340_vm10, %v2276_v44, %v2372_v26  ;;  %v1980_v50 = vpop.permute.xlu1 %1979 }
 0x53a   : > { %v9434_v62 = vpop.f32.mrb[79].mxu0  ;;  %v2478_v12 = vsel %vm1027_vm1, %v12049_v13, 0.0 }
 0x53b   : > { %v2281_v34 = vadd.f32 %v9432_v58, %v1960_v0  ;;  %v9435_v6 = vadd.f32 %v9434_v62, %v9433_v60  ;;  %2479 = vadd.xlane.f32.xlu0 %v2478_v12 }
 0x53d   : > { %v2373_v40 = vmul.f32 0.1, %v2281_v34  ;;  %v2284_v55 = vadd.f32 %v9435_v6, %v1964_v2  ;;  %vm2341_vm11 = vcmp.gt.f32.partialorder %v2281_v34, 0.0 }
 0x53f   : > { %v2374_v18 = vmul.f32 0.1, %v2284_v55  ;;  %v9436_v16 = vpop.f32.mrb[80].mxu0  ;;  %v12053_v17 = vsel %vm2341_vm11, %v2281_v34, %v2373_v40  ;;  %vm2342_vm12 = vcmp.gt.f32.partialorder %v2284_v55, 0.0 }
 0x540   : > { %v9437_v20 = vpop.f32.mrb[81].mxu0  ;;  %v2481_v10 = vsel %vm1027_vm1, %v12053_v17, 0.0 }
 0x541   : > { %v9438_v27 = vadd.f32 %v9437_v20, %v9436_v16  ;;  %v9439_v11 = vpop.f32.mrb[82].mxu0  ;;  %2482 = vadd.xlane.f32.xlu1 %v2481_v10  ;;  %v12057_v29 = vsel %vm2342_vm12, %v2284_v55, %v2374_v18  ;;  %v1984_v55 = vpop.permute.xlu0 %1983 }
 0x542   : > { %v9440_v59 = vpop.f32.mrb[83].mxu0  ;;  %v2484_v8 = vsel %vm1027_vm1, %v12057_v29, 0.0 }
 0x543   : > { %v2289_v33 = vadd.f32 %v9438_v27, %v1968_v7  ;;  %v9441_v54 = vadd.f32 %v9440_v59, %v9439_v11  ;;  %2485 = vadd.xlane.f32.xlu0 %v2484_v8  ;;  %v1988_v27 = vpop.permute.xlu1 %1987 }
 0x545   : > { %v2375_v32 = vmul.f32 0.1, %v2289_v33  ;;  %v2292_v56 = vadd.f32 %v9441_v54, %v1972_v23  ;;  %vm2343_vm13 = vcmp.gt.f32.partialorder %v2289_v33, 0.0 }
 0x547   : > { %v2376_v38 = vmul.f32 0.1, %v2292_v56  ;;  %v9442_v5 = vpop.f32.mrb[84].mxu0  ;;  %v12061_v4 = vsel %vm2343_vm13, %v2289_v33, %v2375_v32  ;;  %vm2344_vm14 = vcmp.gt.f32.partialorder %v2292_v56, 0.0 }
 0x548   : > { %v9443_v35 = vpop.f32.mrb[85].mxu0  ;;  %v2487_v19 = vsel %vm1027_vm1, %v12061_v4, 0.0 }
 0x549   : > { %v9444_v49 = vadd.f32 %v9443_v35, %v9442_v5  ;;  %v9445_v15 = vpop.f32.mrb[86].mxu0  ;;  %2488 = vadd.xlane.f32.xlu1 %v2487_v19  ;;  %v12065_v43 = vsel %vm2344_vm14, %v2292_v56, %v2376_v38  ;;  %v1992_v5 = vpop.permute.xlu0 %1991 }
 0x54a   : > { %v9446_v36 = vpop.f32.mrb[87].mxu0  ;;  %v2490_v44 = vsel %vm1027_vm1, %v12065_v43, 0.0 }
 0x54b   : > { %v2297_v26 = vadd.f32 %v9444_v49, %v1976_v51  ;;  %v9447_v22 = vadd.f32 %v9446_v36, %v9445_v15  ;;  %2491 = vadd.xlane.f32.xlu0 %v2490_v44  ;;  %v1996_v51 = vpop.permute.xlu1 %1995 }
 0x54d   : > { %v2377_v48 = vmul.f32 0.1, %v2297_v26  ;;  %v2300_v58 = vadd.f32 %v9447_v22, %v1980_v50  ;;  %vm2345_vm15 = vcmp.gt.f32.partialorder %v2297_v26, 0.0 }
 0x54f   : > { %v2378_v60 = vmul.f32 0.1, %v2300_v58  ;;  %v9448_v0 = vpop.f32.mrb[88].mxu0  ;;  %v12069_v62 = vsel %vm2345_vm15, %v2297_v26, %v2377_v48  ;;  %vm2346_vm0 = vcmp.gt.f32.partialorder %v2300_v58, 0.0 }
 0x550   : > { %v9449_v12 = vpop.f32.mrb[89].mxu0  ;;  %v2493_v34 = vsel %vm1027_vm1, %v12069_v62, 0.0 }
 0x551   : > { %v9450_v6 = vadd.f32 %v9449_v12, %v9448_v0  ;;  %v9451_v2 = vpop.f32.mrb[90].mxu0  ;;  %2494 = vadd.xlane.f32.xlu1 %v2493_v34  ;;  %v12073_v40 = vsel %vm2346_vm0, %v2300_v58, %v2378_v60 }
 0x552   : > { %v9452_v18 = vpop.f32.mrb[91].mxu0  ;;  %v2496_v16 = vsel %vm1027_vm1, %v12073_v40, 0.0 }
 0x553   : > { %v2305_v20 = vadd.f32 %v9450_v6, %v1984_v55  ;;  %v9453_v10 = vadd.f32 %v9452_v18, %v9451_v2  ;;  %2497 = vadd.xlane.f32.xlu0 %v2496_v16 }
 0x555   : > { %v2379_v11 = vmul.f32 0.1, %v2305_v20  ;;  %v2308_v7 = vadd.f32 %v9453_v10, %v1988_v27  ;;  %vm2347_vm2 = vcmp.gt.f32.partialorder %v2305_v20, 0.0 }
 0x557   : > { %v2380_v59 = vmul.f32 0.1, %v2308_v7  ;;  %v9454_v8 = vpop.f32.mrb[92].mxu0  ;;  %v12077_v33 = vsel %vm2347_vm2, %v2305_v20, %v2379_v11  ;;  %vm2348_vm3 = vcmp.gt.f32.partialorder %v2308_v7, 0.0 }
 0x558   : > { %v9455_v54 = vpop.f32.mrb[93].mxu0  ;;  %v2499_v23 = vsel %vm1027_vm1, %v12077_v33, 0.0 }
 0x559   : > { %v9456_v32 = vadd.f32 %v9455_v54, %v9454_v8  ;;  %v9457_v56 = vpop.f32.mrb[94].mxu0  ;;  %2500 = vadd.xlane.f32.xlu1 %v2499_v23  ;;  %v12081_v38 = vsel %vm2348_vm3, %v2308_v7, %v2380_v59 }
 0x55a   : > { %v9458_v35 = vpop.f32.mrb[95].mxu0  ;;  %v2502_v19 = vsel %vm1027_vm1, %v12081_v38, 0.0 }
 0x55b   : > { %v2313_v49 = vadd.f32 %v9456_v32, %v1992_v5  ;;  %v9459_v15 = vadd.f32 %v9458_v35, %v9457_v56  ;;  %2503 = vadd.xlane.f32.xlu0 %v2502_v19 }
 0x55d   : > { %v2381_v36 = vmul.f32 0.1, %v2313_v49  ;;  %v2316_v44 = vadd.f32 %v9459_v15, %v1996_v51  ;;  %vm2349_vm4 = vcmp.gt.f32.partialorder %v2313_v49, 0.0 }
 0x55f   : > { %v2382_v26 = vmul.f32 0.1, %v2316_v44  ;;  %v12085_v22 = vsel %vm2349_vm4, %v2313_v49, %v2381_v36  ;;  %vm2350_vm5 = vcmp.gt.f32.partialorder %v2316_v44, 0.0 }
 0x560   : > { %v2505_v50 = vsel %vm1027_vm1, %v12085_v22, 0.0 }
 0x561   : > { %2506 = vadd.xlane.f32.xlu1 %v2505_v50  ;;  %v12089_v48 = vsel %vm2350_vm5, %v2316_v44, %v2382_v26 }
 0x562   : > { %v2508_v58 = vsel %vm1027_vm1, %v12089_v48, 0.0 }
 0x563   : > { %2509 = vadd.xlane.f32.xlu0 %v2508_v58 }
 0x576   : > { %v2417_v60 = vpop.xlane.xlu0 %2416 }
 0x577   : > { %v2511_v0 = vmul.f32 0.0625, %v2417_v60 }
 0x578   : > { %v2420_v12 = vpop.xlane.xlu1 %2419 }
 0x579   : > { %v12094_v34 = vsub.f32 %v11965_v28, %v2511_v0  ;;  %v2512_v6 = vmul.f32 0.0625, %v2420_v12 }
 0x57b   : > { %v12097_v2 = vsub.f32 %v11969_v21, %v2512_v6  ;;  %v2575_v55 = vmul.f32 %v12094_v34, %v12094_v34 }
 0x57d   : > { %v2607_v18 = vsel %vm1027_vm1, %v2575_v55, 0.0  ;;  %v2576_v16 = vmul.f32 %v12097_v2, %v12097_v2 }
 0x57e   : > { %2608 = vadd.xlane.f32.xlu1 %v2607_v18  ;;  %v2423_v20 = vpop.xlane.xlu0 %2422 }
 0x57f   : > { %v2513_v10 = vmul.f32 0.0625, %v2423_v20  ;;  %v2610_v27 = vsel %vm1027_vm1, %v2576_v16, 0.0 }
 0x580   : > { %2611 = vadd.xlane.f32.xlu0 %v2610_v27 }
 0x581   : > { %v12106_v28 = vsub.f32 %v11973_v37, %v2513_v10 }
 0x582   : > { %v2426_v11 = vpop.xlane.xlu0 %2425 }
 0x583   : > { %v2514_v21 = vmul.f32 0.0625, %v2426_v11  ;;  %v2577_v7 = vmul.f32 %v12106_v28, %v12106_v28 }
 0x585   : > { %v12111_v59 = vsub.f32 %v11977_v41, %v2514_v21  ;;  %v2613_v8 = vsel %vm1027_vm1, %v2577_v7, 0.0 }
 0x586   : > { %v2429_v54 = vpop.xlane.xlu1 %2428  ;;  %2614 = vadd.xlane.f32.xlu1 %v2613_v8 }
 0x587   : > { %v2515_v23 = vmul.f32 0.0625, %v2429_v54  ;;  %v2578_v32 = vmul.f32 %v12111_v59, %v12111_v59 }
 0x588   : > { %v2432_v56 = vpop.xlane.xlu0 %2431 }
 0x589   : > { %v12117_v37 = vsub.f32 %v11981_v25, %v2515_v23  ;;  %v2516_v5 = vmul.f32 0.0625, %v2432_v56  ;;  %v2616_v35 = vsel %vm1027_vm1, %v2578_v32, 0.0 }
 0x58a   : > { %2617 = vadd.xlane.f32.xlu0 %v2616_v35 }
 0x58b   : > { %v12121_v19 = vsub.f32 %v11985_v14, %v2516_v5  ;;  %v2579_v41 = vmul.f32 %v12117_v37, %v12117_v37 }
 0x58d   : > { %v2619_v49 = vsel %vm1027_vm1, %v2579_v41, 0.0  ;;  %v2580_v15 = vmul.f32 %v12121_v19, %v12121_v19 }
 0x58e   : > { %v2435_v51 = vpop.xlane.xlu1 %2434  ;;  %2620 = vadd.xlane.f32.xlu1 %v2619_v49 }
 0x58f   : > { %v2517_v36 = vmul.f32 0.0625, %v2435_v51  ;;  %v2622_v25 = vsel %vm1027_vm1, %v2580_v15, 0.0 }
 0x590   : > { %2623 = vadd.xlane.f32.xlu0 %v2622_v25  ;;  %v2438_v44 = vpop.xlane.xlu0 %2437 }
 0x591   : > { %v12130_v26 = vsub.f32 %v11989_v57, %v2517_v36  ;;  %v2518_v14 = vmul.f32 0.0625, %v2438_v44 }
 0x593   : > { %v12133_v50 = vsub.f32 %v11993_v47, %v2518_v14  ;;  %v2581_v58 = vmul.f32 %v12130_v26, %v12130_v26 }
 0x595   : > { %v2625_v60 = vsel %vm1027_vm1, %v2581_v58, 0.0  ;;  %v2582_v0 = vmul.f32 %v12133_v50, %v12133_v50 }
 0x596   : > { %v2441_v12 = vpop.xlane.xlu1 %2440  ;;  %2626 = vadd.xlane.f32.xlu1 %v2625_v60 }
 0x597   : > { %v2519_v6 = vmul.f32 0.0625, %v2441_v12  ;;  %v2628_v55 = vsel %vm1027_vm1, %v2582_v0, 0.0 }
 0x598   : > { %2629 = vadd.xlane.f32.xlu0 %v2628_v55  ;;  %v2444_v57 = vpop.xlane.xlu0 %2443 }
 0x599   : > { %v12142_v18 = vsub.f32 %v11997_v24, %v2519_v6  ;;  %v2520_v47 = vmul.f32 0.0625, %v2444_v57 }
 0x59b   : > { %v12145_v16 = vsub.f32 %v12001_v39, %v2520_v47  ;;  %v2583_v20 = vmul.f32 %v12142_v18, %v12142_v18 }
 0x59d   : > { %v2631_v10 = vsel %vm1027_vm1, %v2583_v20, 0.0  ;;  %v2584_v27 = vmul.f32 %v12145_v16, %v12145_v16 }
 0x59e   : > { %v2447_v11 = vpop.xlane.xlu1 %2446  ;;  %2632 = vadd.xlane.f32.xlu1 %v2631_v10 }
 0x59f   : > { %v2521_v21 = vmul.f32 0.0625, %v2447_v11  ;;  %v2634_v7 = vsel %vm1027_vm1, %v2584_v27, 0.0 }
 0x5a0   : > { %2635 = vadd.xlane.f32.xlu0 %v2634_v7  ;;  %v2450_v24 = vpop.xlane.xlu0 %2449 }
 0x5a1   : > { %v12154_v8 = vsub.f32 %v12005_v42, %v2521_v21  ;;  %v2522_v39 = vmul.f32 0.0625, %v2450_v24 }
 0x5a3   : > { %v12157_v54 = vsub.f32 %v12009_v63, %v2522_v39  ;;  %v2585_v23 = vmul.f32 %v12154_v8, %v12154_v8 }
 0x5a5   : > { %v2637_v32 = vsel %vm1027_vm1, %v2585_v23, 0.0  ;;  %v2586_v56 = vmul.f32 %v12157_v54, %v12157_v54 }
 0x5a6   : > { %v2453_v5 = vpop.xlane.xlu1 %2452  ;;  %2638 = vadd.xlane.f32.xlu1 %v2637_v32 }
 0x5a7   : > { %v2523_v35 = vmul.f32 0.0625, %v2453_v5  ;;  %v2640_v41 = vsel %vm1027_vm1, %v2586_v56, 0.0 }
 0x5a8   : > { %2641 = vadd.xlane.f32.xlu0 %v2640_v41  ;;  %v2456_v42 = vpop.xlane.xlu0 %2455 }
 0x5a9   : > { %v12166_v49 = vsub.f32 %v12013_v45, %v2523_v35  ;;  %v2524_v63 = vmul.f32 0.0625, %v2456_v42 }
 0x5ab   : > { %v12169_v15 = vsub.f32 %v12017_v61, %v2524_v63  ;;  %v2587_v51 = vmul.f32 %v12166_v49, %v12166_v49 }
 0x5ad   : > { %v2643_v36 = vsel %vm1027_vm1, %v2587_v51, 0.0  ;;  %v2588_v25 = vmul.f32 %v12169_v15, %v12169_v15 }
 0x5ae   : > { %v2459_v44 = vpop.xlane.xlu1 %2458  ;;  %2644 = vadd.xlane.f32.xlu1 %v2643_v36 }
 0x5af   : > { %v2525_v14 = vmul.f32 0.0625, %v2459_v44  ;;  %v2646_v58 = vsel %vm1027_vm1, %v2588_v25, 0.0 }
 0x5b0   : > { %2647 = vadd.xlane.f32.xlu0 %v2646_v58  ;;  %v2462_v45 = vpop.xlane.xlu0 %2461 }
 0x5b1   : > { %v12178_v60 = vsub.f32 %v12021_v30, %v2525_v14  ;;  %v2526_v61 = vmul.f32 0.0625, %v2462_v45 }
 0x5b3   : > { %v12181_v0 = vsub.f32 %v12025_v46, %v2526_v61  ;;  %v2589_v12 = vmul.f32 %v12178_v60, %v12178_v60 }
 0x5b5   : > { %v2649_v6 = vsel %vm1027_vm1, %v2589_v12, 0.0  ;;  %v2590_v55 = vmul.f32 %v12181_v0, %v12181_v0 }
 0x5b6   : > { %v2465_v57 = vpop.xlane.xlu1 %2464  ;;  %2650 = vadd.xlane.f32.xlu1 %v2649_v6 }
 0x5b7   : > { %v2527_v47 = vmul.f32 0.0625, %v2465_v57  ;;  %v2652_v20 = vsel %vm1027_vm1, %v2590_v55, 0.0 }
 0x5b8   : > { %2653 = vadd.xlane.f32.xlu0 %v2652_v20  ;;  %v2468_v30 = vpop.xlane.xlu0 %2467 }
 0x5b9   : > { %v12190_v10 = vsub.f32 %v12029_v52, %v2527_v47  ;;  %v2528_v46 = vmul.f32 0.0625, %v2468_v30 }
 0x5bb   : > { %v12193_v27 = vsub.f32 %v12033_v53, %v2528_v46  ;;  %v2591_v11 = vmul.f32 %v12190_v10, %v12190_v10 }
 0x5bd   : > { %v2655_v21 = vsel %vm1027_vm1, %v2591_v11, 0.0  ;;  %v2592_v7 = vmul.f32 %v12193_v27, %v12193_v27 }
 0x5be   : > { %v2471_v24 = vpop.xlane.xlu1 %2470  ;;  %2656 = vadd.xlane.f32.xlu1 %v2655_v21 }
 0x5bf   : > { %v2529_v39 = vmul.f32 0.0625, %v2471_v24  ;;  %v2658_v23 = vsel %vm1027_vm1, %v2592_v7, 0.0 }
 0x5c0   : > { %2659 = vadd.xlane.f32.xlu0 %v2658_v23  ;;  %v2474_v52 = vpop.xlane.xlu0 %2473 }
 0x5c1   : > { %v12202_v32 = vsub.f32 %v12037_v31, %v2529_v39  ;;  %v2530_v53 = vmul.f32 0.0625, %v2474_v52 }
 0x5c3   : > { %v12205_v56 = vsub.f32 %v12041_v9, %v2530_v53  ;;  %v2593_v5 = vmul.f32 %v12202_v32, %v12202_v32 }
 0x5c5   : > { %v2661_v35 = vsel %vm1027_vm1, %v2593_v5, 0.0  ;;  %v2594_v41 = vmul.f32 %v12205_v56, %v12205_v56 }
 0x5c6   : > { %v2477_v42 = vpop.xlane.xlu1 %2476  ;;  %2662 = vadd.xlane.f32.xlu1 %v2661_v35 }
 0x5c7   : > { %v2531_v63 = vmul.f32 0.0625, %v2477_v42  ;;  %v2664_v51 = vsel %vm1027_vm1, %v2594_v41, 0.0 }
 0x5c8   : > { %2665 = vadd.xlane.f32.xlu0 %v2664_v51  ;;  %v2480_v31 = vpop.xlane.xlu0 %2479 }
 0x5c9   : > { %v12214_v36 = vsub.f32 %v12045_v1, %v2531_v63  ;;  %v2532_v9 = vmul.f32 0.0625, %v2480_v31 }
 0x5cb   : > { %v12217_v25 = vsub.f32 %v12049_v13, %v2532_v9  ;;  %v2595_v44 = vmul.f32 %v12214_v36, %v12214_v36 }
 0x5cd   : > { %v2667_v14 = vsel %vm1027_vm1, %v2595_v44, 0.0  ;;  %v2596_v58 = vmul.f32 %v12217_v25, %v12217_v25 }
 0x5ce   : > { %v2483_v45 = vpop.xlane.xlu1 %2482  ;;  %2668 = vadd.xlane.f32.xlu1 %v2667_v14 }
 0x5cf   : > { %v2533_v61 = vmul.f32 0.0625, %v2483_v45  ;;  %v2670_v12 = vsel %vm1027_vm1, %v2596_v58, 0.0 }
 0x5d0   : > { %2671 = vadd.xlane.f32.xlu0 %v2670_v12  ;;  %v2486_v1 = vpop.xlane.xlu0 %2485 }
 0x5d1   : > { %v12226_v6 = vsub.f32 %v12053_v17, %v2533_v61  ;;  %v2534_v13 = vmul.f32 0.0625, %v2486_v1 }
 0x5d3   : > { %v12229_v55 = vsub.f32 %v12057_v29, %v2534_v13  ;;  %v2597_v57 = vmul.f32 %v12226_v6, %v12226_v6 }
 0x5d5   : > { %v2673_v47 = vsel %vm1027_vm1, %v2597_v57, 0.0  ;;  %v2598_v20 = vmul.f32 %v12229_v55, %v12229_v55 }
 0x5d6   : > { %v2489_v30 = vpop.xlane.xlu1 %2488  ;;  %2674 = vadd.xlane.f32.xlu1 %v2673_v47 }
 0x5d7   : > { %v2535_v46 = vmul.f32 0.0625, %v2489_v30  ;;  %v2676_v11 = vsel %vm1027_vm1, %v2598_v20, 0.0 }
 0x5d8   : > { %2677 = vadd.xlane.f32.xlu0 %v2676_v11  ;;  %v2492_v17 = vpop.xlane.xlu0 %2491 }
 0x5d9   : > { %v12238_v21 = vsub.f32 %v12061_v4, %v2535_v46  ;;  %v2536_v29 = vmul.f32 0.0625, %v2492_v17 }
 0x5db   : > { %v12241_v7 = vsub.f32 %v12065_v43, %v2536_v29  ;;  %v2599_v24 = vmul.f32 %v12238_v21, %v12238_v21  ;;  %v11030_v29 = vmov 2  }
 0x5dc   : > { %9970 = vset.pattern.permute.xlu1 %v11030_v29  ;;  %9971 = vset.pattern.permute.xlu0 %v11030_v29 }
 0x5dd   : > { %v2679_v39 = vsel %vm1027_vm1, %v2599_v24, 0.0  ;;  %v2600_v23 = vmul.f32 %v12241_v7, %v12241_v7 }
 0x5de   : > { %v2495_v52 = vpop.xlane.xlu1 %2494  ;;  %2680 = vadd.xlane.f32.xlu1 %v2679_v39 }
 0x5df   : > { %v2537_v53 = vmul.f32 0.0625, %v2495_v52  ;;  %v2682_v5 = vsel %vm1027_vm1, %v2600_v23, 0.0  ;;  %v2914_v23 = vld [vmem:[%s14392_s8 + $0x18] sm:$0xff] }
 0x5e0   : > { %2683 = vadd.xlane.f32.xlu0 %v2682_v5  ;;  %v2498_v4 = vpop.xlane.xlu0 %2497 }
 0x5e1   : > { %v12250_v35 = vsub.f32 %v12069_v62, %v2537_v53  ;;  %v2538_v43 = vmul.f32 0.0625, %v2498_v4 }
 0x5e3   : > { %v12253_v41 = vsub.f32 %v12073_v40, %v2538_v43  ;;  %v2601_v42 = vmul.f32 %v12250_v35, %v12250_v35  ;;  %v12300_v43 = vld [vmem:[%s14392_s8 + $0x20] sm:$0xff] }
 0x5e5   : > { %v2685_v63 = vsel %vm1027_vm1, %v2601_v42, 0.0  ;;  %v2602_v51 = vmul.f32 %v12253_v41, %v12253_v41 }
 0x5e6   : > { %v2501_v31 = vpop.xlane.xlu1 %2500  ;;  %2686 = vadd.xlane.f32.xlu1 %v2685_v63 }
 0x5e7   : > { %v2539_v9 = vmul.f32 0.0625, %v2501_v31  ;;  %v2688_v44 = vsel %vm1027_vm1, %v2602_v51, 0.0  ;;  %v2916_v51 = vld [vmem:[%s14392_s8 + $0x28] sm:$0xff] }
 0x5e8   : > { %2689 = vadd.xlane.f32.xlu0 %v2688_v44  ;;  %v2504_v62 = vpop.xlane.xlu0 %2503 }
 0x5e9   : > { %v12262_v14 = vsub.f32 %v12077_v33, %v2539_v9  ;;  %v2540_v40 = vmul.f32 0.0625, %v2504_v62  ;;  %v12309_v62 = vld [vmem:[%s14392_s8 + $0x30] sm:$0xff] }
 0x5eb   : > { %v12265_v58 = vsub.f32 %v12081_v38, %v2540_v40  ;;  %v2603_v45 = vmul.f32 %v12262_v14, %v12262_v14  ;;  %v10101_v40 = vld [vmem:[%s14388_s4 + $0x4] ss:$8 sps:$4 sm:$0xff]  }
 0x5ec   : > { %3647 = vmatprep.mubr.bf16.mxu1 %v10101_v40  ;;  %v12363_v40 = vld [vmem:[%s14392_s8 + $0x60] sm:$0xff] }
 0x5ed   : > { %v2691_v61 = vsel %vm1027_vm1, %v2603_v45, 0.0  ;;  %v2604_v12 = vmul.f32 %v12265_v58, %v12265_v58 }
 0x5ee   : > { %v2507_v1 = vpop.xlane.xlu1 %2506  ;;  %2692 = vadd.xlane.f32.xlu1 %v2691_v61 }
 0x5ef   : > { %v2541_v13 = vmul.f32 0.0625, %v2507_v1  ;;  %v2694_v57 = vsel %vm1027_vm1, %v2604_v12, 0.0 }
 0x5f0   : > { %2695 = vadd.xlane.f32.xlu0 %v2694_v57  ;;  %v2510_v33 = vpop.xlane.xlu0 %2509  ;;  %v12318_v57 = vld [vmem:[%s14392_s8 + $0x38] sm:$0xff] }
 0x5f1   : > { %v12274_v47 = vsub.f32 %v12085_v22, %v2541_v13  ;;  %v2542_v38 = vmul.f32 0.0625, %v2510_v33  ;;  %v2911_v22 = vld [vmem:[%s14392_s8] sm:$0xff] }
 0x5f3   : > { %v12277_v20 = vsub.f32 %v12089_v48, %v2542_v38  ;;  %v2605_v30 = vmul.f32 %v12274_v47, %v12274_v47  ;;  %v12291_v48 = vld [vmem:[%s14392_s8 + $0x10] sm:$0xff] }
 0x5f5   : > { %v2697_v46 = vsel %vm1027_vm1, %v2605_v30, 0.0  ;;  %v2606_v11 = vmul.f32 %v12277_v20, %v12277_v20 }
 0x5f6   : > { %2698 = vadd.xlane.f32.xlu1 %v2697_v46 }
 0x5f7   : > { %v2700_v17 = vsel %vm1027_vm1, %v2606_v11, 0.0 }
 0x5f8   : > { %2701 = vadd.xlane.f32.xlu0 %v2700_v17 }
 0x607   : > { %2977 = vperm.xlu1 %9970, %v2911_v22   ;;  %v12328_v22 = vld [vmem:[%s14392_s8 + $0x40] sm:$0xff] }
 0x60b   : > { %v2609_v24 = vpop.xlane.xlu1 %2608  ;;  %2987 = vperm.xlu1 %9970, %v12291_v48  }
 0x60c   : > { %v2703_v39 = vmul.f32 0.0625, %v2609_v24 }
 0x60d   : > { %v2612_v52 = vpop.xlane.xlu0 %2611 }
 0x60e   : > { %v2735_v53 = vadd.f32 1e-05, %v2703_v39  ;;  %v2704_v5 = vmul.f32 0.0625, %v2612_v52 }
 0x60f   : > { %2992 = vperm.xlu1 %9970, %v2914_v23   ;;  %v12342_v23 = vld [vmem:[%s14392_s8 + $0x48] sm:$0xff] }
 0x610   : > { %10707 = vrsqrt.f32 %v2735_v53  ;;  %v2736_v4 = vadd.f32 1e-05, %v2704_v5  ;;  %v12347_v53 = vld [vmem:[%s14392_s8 + $0x50] sm:$0xff] }
 0x612   : > { %10709 = vrsqrt.f32 %v2736_v4 }
 0x613   : > { %v2615_v42 = vpop.xlane.xlu1 %2614  ;;  %2997 = vperm.xlu1 %9970, %v12300_v43  }
 0x614   : > { %v2705_v63 = vmul.f32 0.0625, %v2615_v42 }
 0x616   : > { %v2737_v31 = vadd.f32 1e-05, %v2705_v63 }
 0x617   : > { %v2618_v9 = vpop.xlane.xlu0 %2617  ;;  %3002 = vperm.xlu1 %9970, %v2916_v51  }
 0x618   : > { %v2706_v44 = vmul.f32 0.0625, %v2618_v9  ;;  %10711 = vrsqrt.f32 %v2737_v31  ;;  %v12356_v9 = vld [vmem:[%s14392_s8 + $0x58] sm:$0xff] }
 0x61a   : > { %v10708_v45 = vpop.eup %10707  ;;  %v2738_v61 = vadd.f32 1e-05, %v2706_v44 }
 0x61b   : > { %v2621_v12 = vpop.xlane.xlu1 %2620  ;;  %3007 = vperm.xlu1 %9970, %v12309_v62   ;;  %v2799_v38 = vmul.f32 %v10708_v45, %v12094_v34  ;;  %v12334_v34 = vld [vmem:[%s14392_s8 + $0x8] sm:$0xff] }
 0x61c   : > { %v10710_v1 = vpop.eup %10709  ;;  %10713 = vrsqrt.f32 %v2738_v61  ;;  %v2707_v13 = vmul.f32 0.0625, %v2621_v12  ;;  %2982 = vperm.xlu0 %9971, %v12334_v34   ;;  %v12372_v12 = vld [vmem:[%s14392_s8 + $0x68] sm:$0xff] }
 0x61d   : > { %v2624_v33 = vpop.xlane.xlu0 %2623  ;;  %v2800_v30 = vmul.f32 %v10710_v1, %v12097_v2 }
 0x61e   : > { %v2739_v46 = vadd.f32 1e-05, %v2707_v13  ;;  %v2708_v11 = vmul.f32 0.0625, %v2624_v33 }
 0x61f   : > { %v12322_v17 = vpack.c.bf16 %v2800_v30, %v2799_v38  ;;  %3012 = vperm.xlu1 %9970, %v12318_v57   ;;  %v12379_v38 = vld [vmem:[%s14392_s8 + $0x70] sm:$0xff] }
 0x620   : > { %10715 = vrsqrt.f32 %v2739_v46  ;;  %v2740_v29 = vadd.f32 1e-05, %v2708_v11  ;;  %3027 = vperm.xlu0 %9971, %v12347_v53  }
 0x621   : > { %3616 = vmatpush1.bf16.msra.mxu1 %v12322_v17 }
 0x622   : > { %10717 = vrsqrt.f32 %v2740_v29  ;;  %3617 = vmatprep.subr.bf16.mxu1 %v14475_v3  ;;  %v10712_v24 = vpop.eup %10711 }
 0x623   : > { %v2627_v2 = vpop.xlane.xlu1 %2626  ;;  %3017 = vperm.xlu1 %9970, %v12328_v22   ;;  %v2801_v63 = vmul.f32 %v10712_v24, %v12106_v28 }
 0x624   : > { %v2709_v39 = vmul.f32 0.0625, %v2627_v2  ;;  %3037 = vperm.xlu0 %9971, %v12363_v40  }
 0x625   : > { %v2630_v52 = vpop.xlane.xlu0 %2629 }
 0x626   : > { %v10714_v5 = vpop.eup %10713  ;;  %v2741_v4 = vadd.f32 1e-05, %v2709_v39  ;;  %v2710_v42 = vmul.f32 0.0625, %v2630_v52 }
 0x627   : > { %v2802_v51 = vmul.f32 %v10714_v5, %v12111_v59  ;;  %3022 = vperm.xlu1 %9970, %v12342_v23   ;;  %v12402_v5 = vld [vmem:[%s14392_s8 + $0x88] sm:$0xff] }
 0x628   : > { %10719 = vrsqrt.f32 %v2741_v4  ;;  %v2742_v31 = vadd.f32 1e-05, %v2710_v42  ;;  %3047 = vperm.xlu0 %9971, %v12379_v38  }
 0x629   : > { %v12358_v44 = vpack.c.bf16 %v2802_v51, %v2801_v63  ;;  %v12409_v51 = vld [vmem:[%s14392_s8 + $0x90] sm:$0xff] }
 0x62a   : > { %v10716_v45 = vpop.eup %10715  ;;  %10721 = vrsqrt.f32 %v2742_v31 }
 0x62b   : > { %v2633_v28 = vpop.xlane.xlu1 %2632  ;;  %3618 = vmatpush1.bf16.msra.mxu1 %v12358_v44  ;;  %3032 = vperm.xlu1 %9970, %v12356_v9   ;;  %v2803_v13 = vmul.f32 %v10716_v45, %v12117_v37  ;;  %v12388_v37 = vld [vmem:[%s14392_s8 + $0x78] sm:$0xff] }
 0x62c   : > { %v10718_v59 = vpop.eup %10717  ;;  %v2711_v61 = vmul.f32 0.0625, %v2633_v28  ;;  %3619 = vmatprep.subr.bf16.mxu1 %v14475_v3 }
 0x62d   : > { %v2636_v1 = vpop.xlane.xlu0 %2635  ;;  %v2804_v33 = vmul.f32 %v10718_v59, %v12121_v19  ;;  %v12394_v19 = vld [vmem:[%s14392_s8 + $0x80] sm:$0xff] }
 0x62e   : > { %v2743_v30 = vadd.f32 1e-05, %v2711_v61  ;;  %v2712_v46 = vmul.f32 0.0625, %v2636_v1  ;;  %3057 = vperm.xlu0 %9971, %v12394_v19  }
 0x62f   : > { %v12382_v11 = vpack.c.bf16 %v2804_v33, %v2803_v13  ;;  %3042 = vperm.xlu1 %9970, %v12372_v12  }
 0x630   : > { %10723 = vrsqrt.f32 %v2743_v30  ;;  %v2744_v29 = vadd.f32 1e-05, %v2712_v46  ;;  %v12432_v30 = vld [vmem:[%s14392_s8 + $0xa8] sm:$0xff] }
 0x631   : > { %3620 = vmatpush1.bf16.msra.mxu1 %v12382_v11 }
 0x632   : > { %v10720_v2 = vpop.eup %10719  ;;  %10725 = vrsqrt.f32 %v2744_v29  ;;  %3621 = vmatprep.subr.bf16.mxu1 %v14475_v3  ;;  %3067 = vperm.xlu0 %9971, %v12409_v51  }
 0x633   : > { %v2639_v24 = vpop.xlane.xlu1 %2638  ;;  %3052 = vperm.xlu1 %9970, %v12388_v37   ;;  %v2805_v42 = vmul.f32 %v10720_v2, %v12130_v26  ;;  %v12418_v26 = vld [vmem:[%s14392_s8 + $0x98] sm:$0xff] }
 0x634   : > { %v10722_v39 = vpop.eup %10721  ;;  %v2713_v52 = vmul.f32 0.0625, %v2639_v24  ;;  %v12439_v24 = vld [vmem:[%s14392_s8 + $0xb0] sm:$0xff] }
 0x635   : > { %v2642_v4 = vpop.xlane.xlu0 %2641  ;;  %v2806_v63 = vmul.f32 %v10722_v39, %v12133_v50  ;;  %v12424_v50 = vld [vmem:[%s14392_s8 + $0xa0] sm:$0xff] }
 0x636   : > { %v2745_v31 = vadd.f32 1e-05, %v2713_v52  ;;  %v2714_v45 = vmul.f32 0.0625, %v2642_v4  ;;  %3077 = vperm.xlu0 %9971, %v12424_v50  }
 0x637   : > { %v12412_v28 = vpack.c.bf16 %v2806_v63, %v2805_v42  ;;  %3062 = vperm.xlu1 %9970, %v12402_v5  }
 0x638   : > { %10727 = vrsqrt.f32 %v2745_v31  ;;  %v2746_v59 = vadd.f32 1e-05, %v2714_v45 }
 0x639   : > { %3622 = vmatpush1.bf16.msra.mxu1 %v12412_v28 }
 0x63a   : > { %v10724_v61 = vpop.eup %10723  ;;  %10729 = vrsqrt.f32 %v2746_v59  ;;  %3623 = vmatprep.subr.bf16.mxu1 %v14475_v3  ;;  %3087 = vperm.xlu0 %9971, %v12439_v24  }
 0x63b   : > { %v2645_v1 = vpop.xlane.xlu1 %2644  ;;  %3072 = vperm.xlu1 %9970, %v12418_v26   ;;  %v2807_v29 = vmul.f32 %v10724_v61, %v12142_v18  ;;  %v12448_v18 = vld [vmem:[%s14392_s8 + $0xb8] sm:$0xff]  ;;  %v12462_v61 = vld [vmem:[%s14392_s8 + $0xc8] sm:$0xff] }
 0x63c   : > { %v10726_v13 = vpop.eup %10725  ;;  %v2715_v33 = vmul.f32 0.0625, %v2645_v1 }
 0x63d   : > { %v2648_v46 = vpop.xlane.xlu0 %2647  ;;  %v2808_v2 = vmul.f32 %v10726_v13, %v12145_v16  ;;  %v12454_v16 = vld [vmem:[%s14392_s8 + $0xc0] sm:$0xff] }
 0x63e   : > { %v2747_v39 = vadd.f32 1e-05, %v2715_v33  ;;  %v2716_v52 = vmul.f32 0.0625, %v2648_v46  ;;  %3097 = vperm.xlu0 %9971, %v12454_v16   ;;  %v12469_v46 = vld [vmem:[%s14392_s8 + $0xd0] sm:$0xff] }
 0x63f   : > { %v12442_v4 = vpack.c.bf16 %v2808_v2, %v2807_v29  ;;  %3082 = vperm.xlu1 %9970, %v12432_v30  }
 0x640   : > { %10731 = vrsqrt.f32 %v2747_v39  ;;  %v2748_v42 = vadd.f32 1e-05, %v2716_v52 }
 0x641   : > { %3624 = vmatpush1.bf16.msra.mxu1 %v12442_v4 }
 0x642   : > { %v10728_v63 = vpop.eup %10727  ;;  %10733 = vrsqrt.f32 %v2748_v42  ;;  %3625 = vmatprep.subr.bf16.mxu1 %v14475_v3  ;;  %3107 = vperm.xlu0 %9971, %v12469_v46  }
 0x643   : > { %v2651_v31 = vpop.xlane.xlu1 %2650  ;;  %3092 = vperm.xlu1 %9970, %v12448_v18   ;;  %v2809_v13 = vmul.f32 %v10728_v63, %v12154_v8  ;;  %v12478_v8 = vld [vmem:[%s14392_s8 + $0xd8] sm:$0xff] }
 0x644   : > { %v10730_v45 = vpop.eup %10729  ;;  %v2717_v59 = vmul.f32 0.0625, %v2651_v31  ;;  %14484 = vst [vmem:[#allocation12_spill] sm:$0xff] %v12478_v8 }
 0x645   : > { %v2654_v1 = vpop.xlane.xlu0 %2653  ;;  %v2810_v33 = vmul.f32 %v10730_v45, %v12157_v54  ;;  %v12484_v54 = vld [vmem:[%s14392_s8 + $0xe0] sm:$0xff] }
 0x646   : > { %v2749_v29 = vadd.f32 1e-05, %v2717_v59  ;;  %v2718_v2 = vmul.f32 0.0625, %v2654_v1  ;;  %3117 = vperm.xlu0 %9971, %v12484_v54   ;;  %v12492_v59 = vld [vmem:[%s14392_s8 + $0xe8] sm:$0xff] }
 0x647   : > { %v12472_v39 = vpack.c.bf16 %v2810_v33, %v2809_v13  ;;  %3102 = vperm.xlu1 %9970, %v12462_v61   ;;  %14485 = vst [vmem:[#allocation14_spill] sm:$0xff] %v12492_v59 }
 0x648   : > { %10735 = vrsqrt.f32 %v2749_v29  ;;  %v2750_v52 = vadd.f32 1e-05, %v2718_v2  ;;  %v12499_v29 = vld [vmem:[%s14392_s8 + $0xf0] sm:$0xff] }
 0x649   : > { %3626 = vmatpush1.bf16.msra.mxu1 %v12472_v39 }
 0x64a   : > { %v10732_v42 = vpop.eup %10731  ;;  %10737 = vrsqrt.f32 %v2750_v52  ;;  %3627 = vmatprep.subr.bf16.mxu1 %v14475_v3  ;;  %3127 = vperm.xlu0 %9971, %v12499_v29  }
 0x64b   : > { %v2657_v63 = vpop.xlane.xlu1 %2656  ;;  %3112 = vperm.xlu1 %9970, %v12478_v8   ;;  %v2811_v13 = vmul.f32 %v10732_v42, %v12166_v49  ;;  %v12508_v49 = vld [vmem:[%s14392_s8 + $0xf8] sm:$0xff] }
 0x64c   : > { %v10734_v31 = vpop.eup %10733  ;;  %v2719_v45 = vmul.f32 0.0625, %v2657_v63  ;;  %14486 = vst [vmem:[#allocation13_spill] sm:$0xff] %v12508_v49 }
 0x64d   : > { %v2660_v1 = vpop.xlane.xlu0 %2659  ;;  %v2812_v33 = vmul.f32 %v10734_v31, %v12169_v15  ;;  %v12514_v15 = vld [vmem:[%s14392_s8 + $0x100] sm:$0xff] }
 0x64e   : > { %v2751_v2 = vadd.f32 1e-05, %v2719_v45  ;;  %v2720_v52 = vmul.f32 0.0625, %v2660_v1  ;;  %14487 = vst [vmem:[#allocation15_spill] sm:$0xff] %v12514_v15  ;;  %3137 = vperm.xlu0 %9971, %v12514_v15  }
 0x64f   : > { %v12502_v63 = vpack.c.bf16 %v2812_v33, %v2811_v13  ;;  %3122 = vperm.xlu1 %9970, %v12492_v59   ;;  %v12522_v13 = vld [vmem:[%s14392_s8 + $0x108] sm:$0xff] }
 0x650   : > { %10739 = vrsqrt.f32 %v2751_v2  ;;  %v2752_v8 = vadd.f32 1e-05, %v2720_v52  ;;  %14488 = vst [vmem:[#allocation17_spill] sm:$0xff] %v12522_v13 }
 0x651   : > { %3628 = vmatpush1.bf16.msra.mxu1 %v12502_v63 }
 0x652   : > { %v10736_v42 = vpop.eup %10735  ;;  %10741 = vrsqrt.f32 %v2752_v8  ;;  %3629 = vmatprep.subr.bf16.mxu1 %v14475_v3  ;;  %v12529_v8 = vld [vmem:[%s14392_s8 + $0x110] sm:$0xff] }
 0x653   : > { %v2663_v31 = vpop.xlane.xlu1 %2662  ;;  %3132 = vperm.xlu1 %9970, %v12508_v49   ;;  %v2813_v2 = vmul.f32 %v10736_v42, %v12178_v60  ;;  %14489 = vst [vmem:[#allocation16_spill] sm:$0xff] %v12529_v8  ;;  %3147 = vperm.xlu0 %9971, %v12529_v8   ;;  %v12538_v60 = vld [vmem:[%s14392_s8 + $0x118] sm:$0xff] }
 0x654   : > { %v10738_v45 = vpop.eup %10737  ;;  %v2721_v1 = vmul.f32 0.0625, %v2663_v31  ;;  %14490 = vst [vmem:[#allocation19_spill] sm:$0xff] %v12538_v60 }
 0x655   : > { %v2666_v33 = vpop.xlane.xlu0 %2665  ;;  %v2814_v52 = vmul.f32 %v10738_v45, %v12181_v0  ;;  %v12544_v0 = vld [vmem:[%s14392_s8 + $0x120] sm:$0xff] }
 0x656   : > { %v2753_v15 = vadd.f32 1e-05, %v2721_v1  ;;  %v2722_v59 = vmul.f32 0.0625, %v2666_v33  ;;  %14491 = vst [vmem:[#allocation18_spill] sm:$0xff] %v12544_v0  ;;  %v12552_v1 = vld [vmem:[%s14392_s8 + $0x128] sm:$0xff]  ;;  %v12557_v33 = vld [vmem:[%s14392_s8 + $0x130] sm:$0xff] }
 0x657   : > { %v12532_v31 = vpack.c.bf16 %v2814_v52, %v2813_v2  ;;  %3142 = vperm.xlu1 %9970, %v12522_v13   ;;  %3157 = vperm.xlu0 %9971, %v12544_v0   ;;  %14492 = vst [vmem:[#allocation21_spill] sm:$0xff] %v12557_v33 }
 0x658   : > { %10743 = vrsqrt.f32 %v2753_v15  ;;  %v2754_v49 = vadd.f32 1e-05, %v2722_v59 }
 0x659   : > { %3630 = vmatpush1.bf16.msra.mxu1 %v12532_v31 }
 0x65a   : > { %v10740_v42 = vpop.eup %10739  ;;  %10745 = vrsqrt.f32 %v2754_v49  ;;  %3631 = vmatprep.subr.bf16.mxu1 %v14475_v3 }
 0x65b   : > { %v2669_v15 = vpop.xlane.xlu1 %2668  ;;  %3152 = vperm.xlu1 %9970, %v12538_v60   ;;  %v2815_v2 = vmul.f32 %v10740_v42, %v12190_v10  ;;  %3167 = vperm.xlu0 %9971, %v12557_v33   ;;  %v12568_v60 = vld [vmem:[%s14392_s8 + $0x140] sm:$0xff]  ;;  %v12573_v10 = vld [vmem:[%s14392_s8 + $0x138] sm:$0xff] }
 0x65c   : > { %v10742_v59 = vpop.eup %10741  ;;  %v2723_v45 = vmul.f32 0.0625, %v2669_v15  ;;  %14493 = vst [vmem:[#allocation20_spill] sm:$0xff] %v12568_v60  ;;  %14494 = vst [vmem:[#allocation23_spill] sm:$0xff] %v12573_v10 }
 0x65d   : > { %v2672_v49 = vpop.xlane.xlu0 %2671  ;;  %v2816_v52 = vmul.f32 %v10742_v59, %v12193_v27 }
 0x65e   : > { %v2755_v0 = vadd.f32 1e-05, %v2723_v45  ;;  %v2724_v8 = vmul.f32 0.0625, %v2672_v49 }
 0x65f   : > { %v12562_v15 = vpack.c.bf16 %v2816_v52, %v2815_v2  ;;  %3162 = vperm.xlu1 %9970, %v12552_v1   ;;  %3177 = vperm.xlu0 %9971, %v12568_v60  }
 0x660   : > { %10747 = vrsqrt.f32 %v2755_v0  ;;  %v2756_v13 = vadd.f32 1e-05, %v2724_v8  ;;  %v12582_v8 = vld [vmem:[%s14392_s8 + $0x148] sm:$0xff]  ;;  %v12587_v0 = vld [vmem:[%s14392_s8 + $0x150] sm:$0xff] }
 0x661   : > { %3632 = vmatpush1.bf16.msra.mxu1 %v12562_v15  ;;  %14495 = vst [vmem:[#allocation22_spill] sm:$0xff] %v12587_v0 }
 0x662   : > { %v10744_v27 = vpop.eup %10743  ;;  %10749 = vrsqrt.f32 %v2756_v13  ;;  %3633 = vmatprep.subr.bf16.mxu1 %v14475_v3 }
 0x663   : > { %v2675_v42 = vpop.xlane.xlu1 %2674  ;;  %3172 = vperm.xlu1 %9970, %v12573_v10   ;;  %v2817_v49 = vmul.f32 %v10744_v27, %v12202_v32  ;;  %3187 = vperm.xlu0 %9971, %v12587_v0   ;;  %v12598_v10 = vld [vmem:[%s14392_s8 + $0x160] sm:$0xff]  ;;  %v12603_v32 = vld [vmem:[%s14392_s8 + $0x158] sm:$0xff] }
 0x664   : > { %v10746_v59 = vpop.eup %10745  ;;  %v2725_v45 = vmul.f32 0.0625, %v2675_v42  ;;  %14496 = vst [vmem:[#allocation24_spill] sm:$0xff] %v12598_v10  ;;  %14497 = vst [vmem:[#allocation25_spill] sm:$0xff] %v12603_v32 }
 0x665   : > { %v2678_v13 = vpop.xlane.xlu0 %2677  ;;  %v2818_v2 = vmul.f32 %v10746_v59, %v12205_v56 }
 0x666   : > { %v2757_v52 = vadd.f32 1e-05, %v2725_v45  ;;  %v2726_v60 = vmul.f32 0.0625, %v2678_v13  ;;  %v12617_v13 = vld [vmem:[%s14392_s8 + $0x170] sm:$0xff] }
 0x667   : > { %v12592_v42 = vpack.c.bf16 %v2818_v2, %v2817_v49  ;;  %3182 = vperm.xlu1 %9970, %v12582_v8   ;;  %3197 = vperm.xlu0 %9971, %v12598_v10   ;;  %14498 = vst [vmem:[#allocation26_spill] sm:$0xff] %v12617_v13 }
 0x668   : > { %10751 = vrsqrt.f32 %v2757_v52  ;;  %v2758_v33 = vadd.f32 1e-05, %v2726_v60  ;;  %v12612_v60 = vld [vmem:[%s14392_s8 + $0x168] sm:$0xff] }
 0x669   : > { %3634 = vmatpush1.bf16.msra.mxu1 %v12592_v42 }
 0x66a   : > { %v10748_v56 = vpop.eup %10747  ;;  %10753 = vrsqrt.f32 %v2758_v33  ;;  %3635 = vmatprep.subr.bf16.mxu1 %v14475_v3 }
 0x66b   : > { %v2681_v27 = vpop.xlane.xlu1 %2680  ;;  %3192 = vperm.xlu1 %9970, %v12603_v32   ;;  %v2819_v49 = vmul.f32 %v10748_v56, %v12214_v36  ;;  %3207 = vperm.xlu0 %9971, %v12617_v13   ;;  %v12628_v32 = vld [vmem:[%s14392_s8 + $0x180] sm:$0xff]  ;;  %v12633_v36 = vld [vmem:[%s14392_s8 + $0x178] sm:$0xff] }
 0x66c   : > { %v10750_v59 = vpop.eup %10749  ;;  %v2727_v45 = vmul.f32 0.0625, %v2681_v27  ;;  %14499 = vst [vmem:[#allocation27_spill] sm:$0xff] %v12628_v32  ;;  %14500 = vst [vmem:[#allocation28_spill] sm:$0xff] %v12633_v36 }
 0x66d   : > { %v2684_v33 = vpop.xlane.xlu0 %2683  ;;  %v2820_v2 = vmul.f32 %v10750_v59, %v12217_v25 }
 0x66e   : > { %v2759_v52 = vadd.f32 1e-05, %v2727_v45  ;;  %v2728_v10 = vmul.f32 0.0625, %v2684_v33  ;;  %v12647_v33 = vld [vmem:[%s14392_s8 + $0x190] sm:$0xff] }
 0x66f   : > { %v12622_v27 = vpack.c.bf16 %v2820_v2, %v2819_v49  ;;  %3202 = vperm.xlu1 %9970, %v12612_v60   ;;  %3217 = vperm.xlu0 %9971, %v12628_v32   ;;  %14501 = vst [vmem:[#allocation29_spill] sm:$0xff] %v12647_v33 }
 0x670   : > { %10755 = vrsqrt.f32 %v2759_v52  ;;  %v2760_v0 = vadd.f32 1e-05, %v2728_v10  ;;  %v12642_v10 = vld [vmem:[%s14392_s8 + $0x188] sm:$0xff] }
 0x671   : > { %3636 = vmatpush1.bf16.msra.mxu1 %v12622_v27 }
 0x672   : > { %v10752_v25 = vpop.eup %10751  ;;  %10757 = vrsqrt.f32 %v2760_v0  ;;  %3637 = vmatprep.subr.bf16.mxu1 %v14475_v3 }
 0x673   : > { %v2687_v56 = vpop.xlane.xlu1 %2686  ;;  %3212 = vperm.xlu1 %9970, %v12633_v36   ;;  %v2821_v49 = vmul.f32 %v10752_v25, %v12226_v6  ;;  %3227 = vperm.xlu0 %9971, %v12647_v33   ;;  %v12658_v36 = vld [vmem:[%s14392_s8 + $0x1a0] sm:$0xff]  ;;  %v12663_v6 = vld [vmem:[%s14392_s8 + $0x198] sm:$0xff] }
 0x674   : > { %v10754_v59 = vpop.eup %10753  ;;  %v2729_v45 = vmul.f32 0.0625, %v2687_v56  ;;  %14502 = vst [vmem:[#allocation30_spill] sm:$0xff] %v12658_v36  ;;  %14503 = vst [vmem:[#allocation31_spill] sm:$0xff] %v12663_v6 }
 0x675   : > { %v2690_v0 = vpop.xlane.xlu0 %2689  ;;  %v2822_v2 = vmul.f32 %v10754_v59, %v12229_v55 }
 0x676   : > { %v2761_v52 = vadd.f32 1e-05, %v2729_v45  ;;  %v2730_v32 = vmul.f32 0.0625, %v2690_v0  ;;  %v12677_v0 = vld [vmem:[%s14392_s8 + $0x1b0] sm:$0xff] }
 0x677   : > { %v12652_v56 = vpack.c.bf16 %v2822_v2, %v2821_v49  ;;  %3222 = vperm.xlu1 %9970, %v12642_v10   ;;  %3237 = vperm.xlu0 %9971, %v12658_v36   ;;  %14504 = vst [vmem:[#allocation32_spill] sm:$0xff] %v12677_v0 }
 0x678   : > { %10759 = vrsqrt.f32 %v2761_v52  ;;  %v2762_v13 = vadd.f32 1e-05, %v2730_v32  ;;  %v12672_v32 = vld [vmem:[%s14392_s8 + $0x1a8] sm:$0xff] }
 0x679   : > { %3638 = vmatpush1.bf16.msra.mxu1 %v12652_v56 }
 0x67a   : > { %v10756_v55 = vpop.eup %10755  ;;  %10761 = vrsqrt.f32 %v2762_v13  ;;  %3639 = vmatprep.subr.bf16.mxu1 %v14475_v3 }
 0x67b   : > { %v2693_v25 = vpop.xlane.xlu1 %2692  ;;  %3232 = vperm.xlu1 %9970, %v12663_v6   ;;  %v2823_v49 = vmul.f32 %v10756_v55, %v12238_v21  ;;  %3247 = vperm.xlu0 %9971, %v12677_v0   ;;  %v12688_v6 = vld [vmem:[%s14392_s8 + $0x1c0] sm:$0xff]  ;;  %v12693_v21 = vld [vmem:[%s14392_s8 + $0x1b8] sm:$0xff] }
 0x67c   : > { %v10758_v59 = vpop.eup %10757  ;;  %v2731_v45 = vmul.f32 0.0625, %v2693_v25  ;;  %14505 = vst [vmem:[#allocation33_spill] sm:$0xff] %v12688_v6  ;;  %14506 = vst [vmem:[#allocation34_spill] sm:$0xff] %v12693_v21 }
 0x67d   : > { %v2696_v13 = vpop.xlane.xlu0 %2695  ;;  %v2824_v2 = vmul.f32 %v10758_v59, %v12241_v7 }
 0x67e   : > { %v2763_v52 = vadd.f32 1e-05, %v2731_v45  ;;  %v2732_v36 = vmul.f32 0.0625, %v2696_v13  ;;  %v12707_v13 = vld [vmem:[%s14392_s8 + $0x1d0] sm:$0xff] }
 0x67f   : > { %v12682_v25 = vpack.c.bf16 %v2824_v2, %v2823_v49  ;;  %3242 = vperm.xlu1 %9970, %v12672_v32   ;;  %3257 = vperm.xlu0 %9971, %v12688_v6  }
 0x680   : > { %10763 = vrsqrt.f32 %v2763_v52  ;;  %v2764_v33 = vadd.f32 1e-05, %v2732_v36  ;;  %v12702_v36 = vld [vmem:[%s14392_s8 + $0x1c8] sm:$0xff] }
 0x681   : > { %3640 = vmatpush1.bf16.msra.mxu1 %v12682_v25 }
 0x682   : > { %v10760_v7 = vpop.eup %10759  ;;  %10765 = vrsqrt.f32 %v2764_v33  ;;  %3641 = vmatprep.subr.bf16.mxu1 %v14475_v3 }
 0x683   : > { %v2699_v55 = vpop.xlane.xlu1 %2698  ;;  %3252 = vperm.xlu1 %9970, %v12693_v21   ;;  %v2825_v49 = vmul.f32 %v10760_v7, %v12250_v35  ;;  %3267 = vperm.xlu0 %9971, %v12707_v13   ;;  %v12718_v21 = vld [vmem:[%s14392_s8 + $0x1e0] sm:$0xff]  ;;  %v12723_v35 = vld [vmem:[%s14392_s8 + $0x1d8] sm:$0xff] }
 0x684   : > { %v10762_v59 = vpop.eup %10761  ;;  %v2733_v45 = vmul.f32 0.0625, %v2699_v55 }
 0x685   : > { %v2702_v33 = vpop.xlane.xlu0 %2701  ;;  %v2826_v2 = vmul.f32 %v10762_v59, %v12253_v41  ;;  %v12737_v59 = vld [vmem:[%s14392_s8 + $0x1f0] sm:$0xff] }
 0x686   : > { %v2765_v52 = vadd.f32 1e-05, %v2733_v45  ;;  %v2734_v6 = vmul.f32 0.0625, %v2702_v33 }
 0x687   : > { %v12712_v55 = vpack.c.bf16 %v2826_v2, %v2825_v49  ;;  %3262 = vperm.xlu1 %9970, %v12702_v36   ;;  %3277 = vperm.xlu0 %9971, %v12718_v21   ;;  %v12748_v49 = vld [vmem:[%s14392_s8 + $0x1f8] sm:$0xff] }
 0x688   : > { %10767 = vrsqrt.f32 %v2765_v52  ;;  %v2766_v0 = vadd.f32 1e-05, %v2734_v6  ;;  %v12732_v6 = vld [vmem:[%s14392_s8 + $0x1e8] sm:$0xff] }
 0x689   : > { %3642 = vmatpush1.bf16.msra.mxu1 %v12712_v55 }
 0x68a   : > { %v10764_v41 = vpop.eup %10763  ;;  %10769 = vrsqrt.f32 %v2766_v0  ;;  %3643 = vmatprep.subr.bf16.mxu1 %v14475_v3 }
 0x68b   : > { %3272 = vperm.xlu1 %9970, %v12723_v35   ;;  %v2827_v45 = vmul.f32 %v10764_v41, %v12262_v14  ;;  %3287 = vperm.xlu0 %9971, %v12737_v59  }
 0x68c   : > { %v10766_v7 = vpop.eup %10765 }
 0x68d   : > { %v2828_v0 = vmul.f32 %v10766_v7, %v12265_v58  ;;  %v10099_v7 = vld [vmem:[%s14388_s4] ss:$8 sps:$4 sm:$0xff]  }
 0x68f   : > { %v12742_v33 = vpack.c.bf16 %v2828_v0, %v2827_v45  ;;  %3282 = vperm.xlu1 %9970, %v12732_v6   ;;  %v10102_v45 = vld [vmem:[%s14388_s4 + $0x14] ss:$8 sps:$4 sm:$0xff]   ;;  %v10119_v0 = vld [vmem:[%s14388_s4 + $0x60] ss:$8 sps:$4 sm:$0xff]  }
 0x691   : > { %3644 = vmatpush1.bf16.msra.mxu1 %v12742_v33 }
 0x692   : > { %v10768_v2 = vpop.eup %10767  ;;  %3645 = vmatprep.subr.bf16.mxu1 %v14475_v3 }
 0x693   : > { %3292 = vperm.xlu1 %9970, %v12748_v49   ;;  %v2829_v58 = vmul.f32 %v10768_v2, %v12274_v47  ;;  %v10104_v47 = vld [vmem:[%s14388_s4 + $0x10] ss:$8 sps:$4 sm:$0xff]  }
 0x694   : > { %v10770_v14 = vpop.eup %10769  ;;  %v10122_v2 = vld [vmem:[%s14388_s4 + $0x70] ss:$8 sps:$4 sm:$0xff]  }
 0x695   : > { %v2830_v52 = vmul.f32 %v10770_v14, %v12277_v20  ;;  %v10105_v20 = vld [vmem:[%s14388_s4 + $0x24] ss:$8 sps:$4 sm:$0xff]  }
 0x697   : > { %v12755_v41 = vpack.c.bf16 %v2830_v52, %v2829_v58  ;;  %v10128_v52 = vld [vmem:[%s14388_s4 + $0x90] ss:$8 sps:$4 sm:$0xff]  }
 0x699   : > { %3646 = vmatpush1.bf16.msra.mxu1 %v12755_v41 }
 0x69a   : > { %6370 = vmatprep.subr.bf16.mxu1 %v14475_v3 }
 0x69c   : > { %3648 = vmatmul.mubr.bf16.vlgmr.msra.gmra.mrb[48].mxu1 %v10099_v7 }
 0x69d   : > { %6371 = vmatpush1.bf16.msra.mxu1 %v12322_v17  ;;  %3655 = vmatprep.mubr.bf16.mxu1 %v10102_v45  ;;  %v10107_v17 = vld [vmem:[%s14388_s4 + $0x20] ss:$8 sps:$4 sm:$0xff]  }
 0x69e   : > { %6372 = vmatprep.subr.bf16.mxu1 %v14475_v3  ;;  %v10131_v45 = vld [vmem:[%s14388_s4 + $0xa0] ss:$8 sps:$4 sm:$0xff]  }
 0x6a1   : > { %6373 = vmatpush1.bf16.msra.mxu1 %v12358_v44  ;;  %v10108_v44 = vld [vmem:[%s14388_s4 + $0x34] ss:$8 sps:$4 sm:$0xff]  }
 0x6a2   : > { %6374 = vmatprep.subr.bf16.mxu1 %v14475_v3 }
 0x6a4   : > { %3656 = vmatmul.mubr.bf16.gmra.mrb[52].mxu1 %v10104_v47  ;;  %v10132_v47 = vld [vmem:[%s14388_s4 + $0xb4] ss:$8 sps:$4 sm:$0xff]  }
 0x6a5   : > { %6375 = vmatpush1.bf16.msra.mxu1 %v12382_v11  ;;  %3663 = vmatprep.mubr.bf16.mxu1 %v10105_v20  ;;  %v10110_v11 = vld [vmem:[%s14388_s4 + $0x30] ss:$8 sps:$4 sm:$0xff]  }
 0x6a6   : > { %6376 = vmatprep.subr.bf16.mxu1 %v14475_v3 }
 0x6a9   : > { %6377 = vmatpush1.bf16.msra.mxu1 %v12412_v28  ;;  %v10111_v28 = vld [vmem:[%s14388_s4 + $0x44] ss:$8 sps:$4 sm:$0xff]  }
 0x6aa   : > { %6378 = vmatprep.subr.bf16.mxu1 %v14475_v3 }
 0x6ac   : > { %3664 = vmatmul.mubr.bf16.gmra.mrb[56].mxu1 %v10107_v17  ;;  %v14437_v17 = vmov 3  }
 0x6ad   : > { %6379 = vmatpush1.bf16.msra.mxu1 %v12442_v4  ;;  %3671 = vmatprep.mubr.bf16.mxu1 %v10108_v44  ;;  %v10113_v4 = vld [vmem:[%s14388_s4 + $0x40] ss:$8 sps:$4 sm:$0xff]   ;;  %v10134_v44 = vld [vmem:[%s14388_s4 + $0xb0] ss:$8 sps:$4 sm:$0xff]  }
 0x6ae   : > { %6380 = vmatprep.subr.bf16.mxu1 %v14475_v3  ;;  %9972 = vset.pattern.permute.xlu1 %v14437_v17 }
 0x6af   : > { %4261 = vperm.xlu1 %9972, %v12334_v34  }
 0x6b1   : > { %6381 = vmatpush1.bf16.msra.mxu1 %v12472_v39  ;;  %v10114_v39 = vld [vmem:[%s14388_s4 + $0x54] ss:$8 sps:$4 sm:$0xff]  }
 0x6b2   : > { %6382 = vmatprep.subr.bf16.mxu1 %v14475_v3 }
 0x6b3   : > { %4265 = vperm.xlu1 %9972, %v12291_v48   ;;  %v10140_v48 = vld [vmem:[%s14388_s4 + $0xd0] ss:$8 sps:$4 sm:$0xff]  }
 0x6b4   : > { %3672 = vmatmul.mubr.bf16.gmra.mrb[60].mxu1 %v10110_v11  ;;  %v10135_v11 = vld [vmem:[%s14388_s4 + $0xc4] ss:$8 sps:$4 sm:$0xff]  }
 0x6b5   : > { %6383 = vmatpush1.bf16.msra.mxu1 %v12502_v63  ;;  %3679 = vmatprep.mubr.bf16.mxu1 %v10111_v28  ;;  %v10116_v63 = vld [vmem:[%s14388_s4 + $0x50] ss:$8 sps:$4 sm:$0xff]  }
 0x6b6   : > { %6384 = vmatprep.subr.bf16.mxu1 %v14475_v3 }
 0x6b7   : > { %4273 = vperm.xlu1 %9972, %v12300_v43   ;;  %v10141_v43 = vld [vmem:[%s14388_s4 + $0xe4] ss:$8 sps:$4 sm:$0xff]  }
 0x6b9   : > { %6385 = vmatpush1.bf16.msra.mxu1 %v12532_v31  ;;  %v10117_v31 = vld [vmem:[%s14388_s4 + $0x64] ss:$8 sps:$4 sm:$0xff]  }
 0x6ba   : > { %6386 = vmatprep.subr.bf16.mxu1 %v14475_v3 }
 0x6bb   : > { %4281 = vperm.xlu1 %9972, %v12309_v62   ;;  %v10143_v62 = vld [vmem:[%s14388_s4 + $0xe0] ss:$8 sps:$4 sm:$0xff]  }
 0x6bc   : > { %3680 = vmatmul.mubr.bf16.gmra.mrb[64].mxu1 %v10113_v4 }
 0x6bd   : > { %6387 = vmatpush1.bf16.msra.mxu1 %v12562_v15  ;;  %3687 = vmatprep.mubr.bf16.mxu1 %v10114_v39  ;;  %v12817_v15 = vpop.permute.xlu1 %2977  ;;  %v10137_v39 = vld [vmem:[%s14388_s4 + $0xc0] ss:$8 sps:$4 sm:$0xff]  }
 0x6be   : > { %6388 = vmatprep.subr.bf16.mxu1 %v14475_v3 }
 0x6bf   : > { %4289 = vperm.xlu1 %9972, %v12328_v22  }
 0x6c1   : > { %6389 = vmatpush1.bf16.msra.mxu1 %v12592_v42  ;;  %v10120_v42 = vld [vmem:[%s14388_s4 + $0x74] ss:$8 sps:$4 sm:$0xff]  }
 0x6c2   : > { %6390 = vmatprep.subr.bf16.mxu1 %v14475_v3 }
 0x6c3   : > { %4297 = vperm.xlu1 %9972, %v12347_v53  }
 0x6c4   : > { %3688 = vmatmul.mubr.bf16.gmra.mrb[68].mxu1 %v10116_v63  ;;  %v10138_v63 = vld [vmem:[%s14388_s4 + $0xd4] ss:$8 sps:$4 sm:$0xff]  }
 0x6c5   : > { %6391 = vmatpush1.bf16.msra.mxu1 %v12622_v27  ;;  %3695 = vmatprep.mubr.bf16.mxu1 %v10117_v31  ;;  %v12828_v27 = vpop.permute.xlu1 %2987 }
 0x6c6   : > { %6392 = vmatprep.subr.bf16.mxu1 %v14475_v3 }
 0x6c7   : > { %4305 = vperm.xlu1 %9972, %v12363_v40  }
 0x6c9   : > { %6393 = vmatpush1.bf16.msra.mxu1 %v12652_v56  ;;  %v10123_v56 = vld [vmem:[%s14388_s4 + $0x84] ss:$8 sps:$4 sm:$0xff]   ;;  %v12839_v14 = vpop.permute.xlu1 %2992 }
 0x6ca   : > { %6394 = vmatprep.subr.bf16.mxu1 %v14475_v3 }
 0x6cb   : > { %4313 = vperm.xlu1 %9972, %v12379_v38  }
 0x6cc   : > { %3696 = vmatmul.mubr.bf16.gmra.mrb[72].mxu1 %v10119_v0 }
 0x6cd   : > { %6395 = vmatpush1.bf16.msra.mxu1 %v12682_v25  ;;  %3703 = vmatprep.mubr.bf16.mxu1 %v10120_v42  ;;  %v10125_v25 = vld [vmem:[%s14388_s4 + $0x80] ss:$8 sps:$4 sm:$0xff]   ;;  %v12850_v58 = vpop.permute.xlu1 %2997  ;;  %v10144_v42 = vld [vmem:[%s14388_s4 + $0xf4] ss:$8 sps:$4 sm:$0xff]  }
 0x6ce   : > { %6396 = vmatprep.subr.bf16.mxu1 %v14475_v3 }
 0x6cf   : > { %4321 = vperm.xlu1 %9972, %v12394_v19  }
 0x6d1   : > { %6397 = vmatpush1.bf16.msra.mxu1 %v12712_v55  ;;  %v10126_v55 = vld [vmem:[%s14388_s4 + $0x94] ss:$8 sps:$4 sm:$0xff]  }
 0x6d2   : > { %6398 = vmatprep.subr.bf16.mxu1 %v14475_v3 }
 0x6d3   : > { %4329 = vperm.xlu1 %9972, %v12409_v51  }
 0x6d4   : > { %3704 = vmatmul.mubr.bf16.gmra.mrb[76].mxu1 %v10122_v2 }
 0x6d5   : > { %6399 = vmatpush1.bf16.msra.mxu1 %v12742_v33  ;;  %3711 = vmatprep.mubr.bf16.mxu1 %v10123_v56  ;;  %v12853_v33 = vpop.permute.xlu1 %3002 }
 0x6d6   : > { %6400 = vmatprep.subr.bf16.mxu1 %v14475_v3 }
 0x6d7   : > { %4337 = vperm.xlu1 %9972, %v12424_v50  }
 0x6d9   : > { %6401 = vmatpush1.bf16.msra.mxu1 %v12755_v41  ;;  %v10129_v41 = vld [vmem:[%s14388_s4 + $0xa4] ss:$8 sps:$4 sm:$0xff]   ;;  %v12861_v7 = vpop.permute.xlu1 %3007 }
 0x6da   : > { %7907 = vmatprep.subr.bf16.mxu1 %v14475_v3 }
 0x6db   : > { %4345 = vperm.xlu1 %9972, %v12439_v24  }
 0x6dc   : > { %3712 = vmatmul.mubr.bf16.gmra.mrb[80].mxu1 %v10125_v25  ;;  %v10146_v25 = vld [vmem:[%s14388_s4 + $0xf0] ss:$8 sps:$4 sm:$0xff]  }
 0x6dd   : > { %3719 = vmatprep.mubr.bf16.mxu1 %v10126_v55  ;;  %v12869_v20 = vpop.permute.xlu1 %3012  ;;  %v10147_v55 = vld [vmem:[%s14388_s4 + $0x104] ss:$8 sps:$4 sm:$0xff]  }
 0x6df   : > { %4353 = vperm.xlu1 %9972, %v12454_v16  }
 0x6e1   : > { %v12879_v28 = vpop.permute.xlu1 %3017 }
 0x6e3   : > { %4361 = vperm.xlu1 %9972, %v12469_v46  }
 0x6e4   : > { %3720 = vmatmul.mubr.bf16.gmra.mrb[84].mxu1 %v10128_v52 }
 0x6e5   : > { %3727 = vmatprep.mubr.bf16.mxu1 %v10129_v41  ;;  %v12883_v4 = vpop.permute.xlu1 %3022  ;;  %v10149_v41 = vld [vmem:[%s14388_s4 + $0x100] ss:$8 sps:$4 sm:$0xff]  }
 0x6e7   : > { %4369 = vperm.xlu1 %9972, %v12484_v54  }
 0x6e9   : > { %v12892_v31 = vpop.permute.xlu1 %3032 }
 0x6eb   : > { %4377 = vperm.xlu1 %9972, %v12499_v29  }
 0x6ec   : > { %3728 = vmatmul.mubr.bf16.gmra.mrb[88].mxu1 %v10131_v45  ;;  %v10150_v45 = vld [vmem:[%s14388_s4 + $0x114] ss:$8 sps:$4 sm:$0xff]  }
 0x6ed   : > { %3735 = vmatprep.mubr.bf16.mxu1 %v10132_v47  ;;  %v12902_v0 = vpop.permute.xlu1 %3042 }
 0x6f1   : > { %v12911_v2 = vpop.permute.xlu1 %3052 }
 0x6f4   : > { %3736 = vmatmul.mubr.bf16.gmra.mrb[92].mxu1 %v10134_v44  ;;  %v10152_v44 = vld [vmem:[%s14388_s4 + $0x110] ss:$8 sps:$4 sm:$0xff]  }
 0x6f5   : > { %3743 = vmatprep.mubr.bf16.mxu1 %v10135_v11  ;;  %v12915_v56 = vpop.permute.xlu1 %3062  ;;  %v10153_v11 = vld [vmem:[%s14388_s4 + $0x124] ss:$8 sps:$4 sm:$0xff]  }
 0x6f9   : > { %v12924_v52 = vpop.permute.xlu1 %3072 }
 0x6fc   : > { %3744 = vmatmul.mubr.bf16.gmra.mrb[96].mxu1 %v10137_v39 }
 0x6fd   : > { %3751 = vmatprep.mubr.bf16.mxu1 %v10138_v63  ;;  %v12934_v47 = vpop.permute.xlu1 %3082 }
 0x701   : > { %v12943_v39 = vpop.permute.xlu1 %3092 }
 0x704   : > { %3752 = vmatmul.mubr.bf16.gmra.mrb[100].mxu1 %v10140_v48  ;;  %v10155_v48 = vld [vmem:[%s14388_s4 + $0x120] ss:$8 sps:$4 sm:$0xff]  }
 0x705   : > { %3759 = vmatprep.mubr.bf16.mxu1 %v10141_v43  ;;  %v12947_v63 = vpop.permute.xlu1 %3102  ;;  %v10156_v43 = vld [vmem:[%s14388_s4 + $0x134] ss:$8 sps:$4 sm:$0xff]  }
 0x70c   : > { %3760 = vmatmul.mubr.bf16.gmra.mrb[104].mxu1 %v10143_v62  ;;  %v12956_v62 = vpop.permute.xlu1 %3112 }
 0x70d   : > { %3767 = vmatprep.mubr.bf16.mxu1 %v10144_v42  ;;  %v10158_v42 = vld [vmem:[%s14388_s4 + $0x130] ss:$8 sps:$4 sm:$0xff]  }
 0x714   : > { %3768 = vmatmul.mubr.bf16.gmra.mrb[108].mxu1 %v10146_v25  ;;  %v10159_v25 = vld [vmem:[%s14388_s4 + $0x144] ss:$8 sps:$4 sm:$0xff]  }
 0x715   : > { %3775 = vmatprep.mubr.bf16.mxu1 %v10147_v55  ;;  %v12964_v55 = vpop.permute.xlu1 %3122 }
 0x716   : > { %14507 = vst [vmem:[#allocation35_spill] sm:$0xff] %v12964_v55 }
 0x71c   : > { %3776 = vmatmul.mubr.bf16.gmra.mrb[112].mxu1 %v10149_v41  ;;  %v11032_v41 = vmov 4  }
 0x71d   : > { %3783 = vmatprep.mubr.bf16.mxu1 %v10150_v45  ;;  %9974 = vset.pattern.permute.xlu1 %v11032_v41  ;;  %v12970_v45 = vld [vmem:[%s14392_s8] sm:$0xff] }
 0x71e   : > { %9973 = vset.pattern.permute.xlu0 %v11032_v41  ;;  %5799 = vperm.xlu1 %9974, %v12334_v34   ;;  %v10772_v34 = vld [vmem:[%s14392_s8 + $0x10] sm:$0xff] }
 0x71f   : > { %5795 = vperm.xlu0 %9973, %v12970_v45  }
 0x722   : > { %5803 = vperm.xlu1 %9974, %v10772_v34   ;;  %v13000_v34 = vld [vmem:[%s14392_s8 + $0x28] sm:$0xff] }
 0x724   : > { %3784 = vmatmul.mubr.bf16.gmra.mrb[116].mxu1 %v10152_v44  ;;  %v10161_v44 = vld [vmem:[%s14388_s4 + $0x140] ss:$8 sps:$4 sm:$0xff]  }
 0x725   : > { %3791 = vmatprep.mubr.bf16.mxu1 %v10153_v11  ;;  %v10162_v11 = vld [vmem:[%s14388_s4 + $0x154] ss:$8 sps:$4 sm:$0xff]  }
 0x72c   : > { %3792 = vmatmul.mubr.bf16.gmra.mrb[120].mxu1 %v10155_v48  ;;  %v12979_v48 = vpop.permute.xlu1 %3132 }
 0x72d   : > { %3799 = vmatprep.mubr.bf16.mxu1 %v10156_v43  ;;  %14508 = vst [vmem:[#allocation36_spill] sm:$0xff] %v12979_v48  ;;  %v12987_v43 = vld [vmem:[%s14392_s8 + $0x18] sm:$0xff]  ;;  %v10167_v48 = vld [vmem:[%s14388_s4 + $0x160] ss:$8 sps:$4 sm:$0xff]  }
 0x72e   : > { %5807 = vperm.xlu0 %9973, %v12987_v43  }
 0x730   : > { %v12995_v41 = vpop.permute.xlu1 %3142 }
 0x731   : > { %14509 = vst [vmem:[#allocation37_spill] sm:$0xff] %v12995_v41 }
 0x732   : > { %5815 = vperm.xlu0 %9973, %v13000_v34  }
 0x734   : > { %3800 = vmatmul.mubr.bf16.gmra.mrb[124].mxu1 %v10158_v42  ;;  %v12990_v42 = vpop.permute.xlu0 %2982  ;;  %v13015_v41 = vpop.permute.xlu1 %3152 }
 0x735   : > { %3807 = vmatprep.mubr.bf16.mxu1 %v10159_v25  ;;  %v10774_v25 = vld [vmem:[%s14392_s8 + $0x20] sm:$0xff] }
 0x736   : > { %5811 = vperm.xlu1 %9974, %v10774_v25   ;;  %v10776_v25 = vld [vmem:[%s14392_s8 + $0x30] sm:$0xff]  ;;  %5823 = vperm.xlu0 %9973, %v12318_v57  }
 0x738   : > { %v13013_v17 = vpop.permute.xlu0 %3027  ;;  %v13028_v57 = vpop.permute.xlu1 %3162 }
 0x73a   : > { %5819 = vperm.xlu1 %9974, %v10776_v25   ;;  %5831 = vperm.xlu0 %9973, %v12342_v23   ;;  %v10168_v25 = vld [vmem:[%s14388_s4 + $0x174] ss:$8 sps:$4 sm:$0xff]   ;;  %v10170_v23 = vld [vmem:[%s14388_s4 + $0x170] ss:$8 sps:$4 sm:$0xff]  }
 0x73c   : > { %3808 = vmatmul.mubr.bf16.gmra.mrb[128].mxu1 %v10161_v44  ;;  %v10164_v44 = vld [vmem:[%s14388_s4 + $0x150] ss:$8 sps:$4 sm:$0xff]   ;;  %v13025_v55 = vpop.permute.xlu0 %3037 }
 0x73d   : > { %3815 = vmatprep.mubr.bf16.mxu1 %v10162_v11  ;;  %v10165_v11 = vld [vmem:[%s14388_s4 + $0x164] ss:$8 sps:$4 sm:$0xff]  }
 0x73e   : > { %5827 = vperm.xlu1 %9974, %v12328_v22   ;;  %5839 = vperm.xlu0 %9973, %v12356_v9  }
 0x740   : > { %v13033_v22 = vpop.permute.xlu0 %3047 }
 0x742   : > { %5835 = vperm.xlu1 %9974, %v12347_v53   ;;  %5847 = vperm.xlu0 %9973, %v12372_v12   ;;  %v10171_v53 = vld [vmem:[%s14388_s4 + $0x184] ss:$8 sps:$4 sm:$0xff]   ;;  %v10173_v12 = vld [vmem:[%s14388_s4 + $0x180] ss:$8 sps:$4 sm:$0xff]  }
 0x744   : > { %3816 = vmatmul.mubr.bf16.gmra.mrb[132].mxu1 %v10164_v44  ;;  %v13041_v44 = vpop.permute.xlu1 %3172  ;;  %v13045_v9 = vpop.permute.xlu0 %3057 }
 0x745   : > { %3823 = vmatprep.mubr.bf16.mxu1 %v10165_v11 }
 0x746   : > { %5843 = vperm.xlu1 %9974, %v12363_v40   ;;  %5855 = vperm.xlu0 %9973, %v12388_v37  }
 0x748   : > { %v13048_v40 = vpop.permute.xlu1 %3182  ;;  %v13059_v37 = vpop.permute.xlu0 %3067 }
 0x74a   : > { %5851 = vperm.xlu1 %9974, %v12379_v38   ;;  %5863 = vperm.xlu0 %9973, %v12402_v5   ;;  %v10174_v38 = vld [vmem:[%s14388_s4 + $0x194] ss:$8 sps:$4 sm:$0xff]   ;;  %v10176_v5 = vld [vmem:[%s14388_s4 + $0x190] ss:$8 sps:$4 sm:$0xff]  }
 0x74c   : > { %3824 = vmatmul.mubr.bf16.gmra.mrb[136].mxu1 %v10167_v48  ;;  %v13071_v48 = vpop.permute.xlu0 %3077 }
 0x74d   : > { %3831 = vmatprep.mubr.bf16.mxu1 %v10168_v25 }
 0x74e   : > { %5859 = vperm.xlu1 %9974, %v12394_v19   ;;  %5871 = vperm.xlu0 %9973, %v12418_v26   ;;  %v13061_v19 = vpop.permute.xlu1 %3192 }
 0x752   : > { %5867 = vperm.xlu1 %9974, %v12409_v51   ;;  %5879 = vperm.xlu0 %9973, %v12432_v30   ;;  %v10177_v51 = vld [vmem:[%s14388_s4 + $0x1a4] ss:$8 sps:$4 sm:$0xff]   ;;  %v13074_v26 = vpop.permute.xlu1 %3202  ;;  %v10179_v30 = vld [vmem:[%s14388_s4 + $0x1a0] ss:$8 sps:$4 sm:$0xff]  }
 0x754   : > { %3832 = vmatmul.mubr.bf16.gmra.mrb[140].mxu1 %v10170_v23  ;;  %v14513_v23 = vld [vmem:[#allocation14_spill] sm:$0xff] }
 0x755   : > { %3839 = vmatprep.mubr.bf16.mxu1 %v10171_v53  ;;  %v10182_v53 = vld [vmem:[%s14388_s4 + $0x1b0] ss:$8 sps:$4 sm:$0xff]  }
 0x756   : > { %5875 = vperm.xlu1 %9974, %v12424_v50   ;;  %5887 = vperm.xlu0 %9973, %v12448_v18   ;;  %v13079_v50 = vpop.permute.xlu0 %3087  ;;  %v13084_v11 = vpop.permute.xlu1 %3212  ;;  %v14511_v18 = vld [vmem:[#allocation12_spill] sm:$0xff] }
 0x757   : > { %14510 = vst [vmem:[#allocation38_spill] sm:$0xff] %v13084_v11  ;;  %v14515_v11 = vld [vmem:[#allocation15_spill] sm:$0xff] }
 0x75a   : > { %5883 = vperm.xlu1 %9974, %v12439_v24   ;;  %5895 = vperm.xlu0 %9973, %v12462_v61   ;;  %v10180_v24 = vld [vmem:[%s14388_s4 + $0x1b4] ss:$8 sps:$4 sm:$0xff]   ;;  %v13094_v61 = vpop.permute.xlu1 %3222 }
 0x75b   : > { %14512 = vst [vmem:[#allocation12_spill] sm:$0xff] %v13094_v61 }
 0x75c   : > { %3840 = vmatmul.mubr.bf16.gmra.mrb[144].mxu1 %v10173_v12 }
 0x75d   : > { %3847 = vmatprep.mubr.bf16.mxu1 %v10174_v38  ;;  %v10183_v38 = vld [vmem:[%s14388_s4 + $0x1c4] ss:$8 sps:$4 sm:$0xff]  }
 0x75e   : > { %5891 = vperm.xlu1 %9974, %v12454_v16   ;;  %5903 = vperm.xlu0 %9973, %v14511_v18   ;;  %v13091_v16 = vpop.permute.xlu0 %3097  ;;  %v14514_v18 = vld [vmem:[#allocation13_spill] sm:$0xff] }
 0x762   : > { %5899 = vperm.xlu1 %9974, %v12469_v46   ;;  %5911 = vperm.xlu0 %9973, %v14513_v23   ;;  %v13107_v23 = vpop.permute.xlu0 %3107 }
 0x764   : > { %3848 = vmatmul.mubr.bf16.gmra.mrb[148].mxu1 %v10176_v5 }
 0x765   : > { %3855 = vmatprep.mubr.bf16.mxu1 %v10177_v51  ;;  %v10230_v51 = vld [vmem:[#allocation4 + $0x4] ss:$16 sps:$4 sm:$0xff]  }
 0x766   : > { %5907 = vperm.xlu1 %9974, %v12484_v54   ;;  %5919 = vperm.xlu0 %9973, %v14514_v18  }
 0x767   : > { %5184 = vmatprep.mubr.bf16.mxu0 %v10230_v51 }
 0x76a   : > { %5915 = vperm.xlu1 %9974, %v12499_v29   ;;  %v10185_v29 = vld [vmem:[%s14388_s4 + $0x1c0] ss:$8 sps:$4 sm:$0xff]  }
 0x76c   : > { %3856 = vmatmul.mubr.bf16.gmra.mrb[152].mxu1 %v10179_v30 }
 0x76d   : > { %3863 = vmatprep.mubr.bf16.mxu1 %v10180_v24 }
 0x76e   : > { %5923 = vperm.xlu1 %9974, %v14515_v11  }
 0x76f   : > { %v3649_v25 = vpop.f32.mrb[48].mxu1 }
 0x770   : > { %v3650_v12 = vadd.f32 %v3649_v25, %v12817_v15  ;;  %v3651_v46 = vpop.f32.mrb[49].mxu1  ;;  %v13109_v25 = vpop.permute.xlu1 %3232 }
 0x771   : > { %v3652_v5 = vpop.f32.mrb[50].mxu1 }
 0x772   : > { %v3968_v30 = vmul.f32 0.1, %v3650_v12  ;;  %v3653_v54 = vadd.f32 %v3652_v5, %v12990_v42  ;;  %v3654_v24 = vpop.f32.mrb[51].mxu1  ;;  %vm3904_vm6 = vcmp.gt.f32.partialorder %v3650_v12, 0.0 }
 0x773   : > { %v14516_v24 = vld [vmem:[#allocation17_spill] sm:$0xff] }
 0x774   : > { %3864 = vmatmul.mubr.bf16.gmra.mrb[156].mxu1 %v10182_v53  ;;  %vm3905_vm7 = vcmp.gt.f32.partialorder %v3653_v54, 0.0  ;;  %v3969_v15 = vmul.f32 0.1, %v3653_v54  ;;  %v4032_v46 = vsel %vm3904_vm6, %v3650_v12, %v3968_v30  ;;  %5927 = vperm.xlu0 %9973, %v14516_v24   ;;  %v13120_v12 = vpop.permute.xlu0 %3117  ;;  %v14519_v24 = vld [vmem:[#allocation18_spill] sm:$0xff] }
 0x775   : > { %3871 = vmatprep.mubr.bf16.mxu1 %v10183_v38  ;;  %v10186_v38 = vld [vmem:[%s14388_s4 + $0x1d4] ss:$8 sps:$4 sm:$0xff]  }
 0x776   : > { %v4033_v61 = vsel %vm3905_vm7, %v3653_v54, %v3969_v15  ;;  %v14517_v54 = vld [vmem:[#allocation16_spill] sm:$0xff]  ;;  %v13125_v15 = vpop.permute.xlu1 %3242 }
 0x777   : > { %v3657_v42 = vpop.f32.mrb[52].mxu1  ;;  %v4096_v5 = vpack.c.bf16 %v4033_v61, %v4032_v46  ;;  %5931 = vperm.xlu1 %9974, %v14517_v54  }
 0x778   : > { %v3658_v51 = vadd.f32 %v3657_v42, %v12828_v27  ;;  %v3659_v53 = vpop.f32.mrb[53].mxu1  ;;  %v14518_v27 = vld [vmem:[#allocation19_spill] sm:$0xff] }
 0x779   : > { %v3660_v18 = vpop.f32.mrb[54].mxu1  ;;  %5153 = vmatpush1.bf16.msra.mxu0 %v4096_v5  ;;  %5935 = vperm.xlu0 %9973, %v14518_v27  }
 0x77a   : > { %v3970_v11 = vmul.f32 0.1, %v3658_v51  ;;  %v3661_v61 = vadd.f32 %v3660_v18, %v12839_v14  ;;  %v3662_v30 = vpop.f32.mrb[55].mxu1  ;;  %5154 = vmatprep.subr.bf16.mxu0 %v14475_v3  ;;  %vm3906_vm8 = vcmp.gt.f32.partialorder %v3658_v51, 0.0  ;;  %v13130_v18 = vpop.permute.xlu0 %3127 }
 0x77b   : > { %5939 = vperm.xlu1 %9974, %v14519_v24   ;;  %v10188_v30 = vld [vmem:[%s14388_s4 + $0x1d0] ss:$8 sps:$4 sm:$0xff]   ;;  %v13136_v27 = vpop.permute.xlu1 %3252 }
 0x77c   : > { %3872 = vmatmul.mubr.bf16.gmra.mrb[160].mxu1 %v10185_v29  ;;  %vm3907_vm9 = vcmp.gt.f32.partialorder %v3661_v61, 0.0  ;;  %v3971_v46 = vmul.f32 0.1, %v3661_v61  ;;  %v4034_v42 = vsel %vm3906_vm8, %v3658_v51, %v3970_v11  ;;  %v10189_v51 = vld [vmem:[%s14388_s4 + $0x1e4] ss:$8 sps:$4 sm:$0xff]  }
 0x77d   : > { %3879 = vmatprep.mubr.bf16.mxu1 %v10186_v38  ;;  %5943 = vperm.xlu0 %9973, %v12552_v1  }
 0x77e   : > { %v4035_v5 = vsel %vm3907_vm9, %v3661_v61, %v3971_v46  ;;  %v14520_v46 = vld [vmem:[#allocation21_spill] sm:$0xff] }
 0x77f   : > { %v3665_v53 = vpop.f32.mrb[56].mxu1  ;;  %v4097_v14 = vpack.c.bf16 %v4035_v5, %v4034_v42  ;;  %5947 = vperm.xlu1 %9974, %v14520_v46   ;;  %v14521_v42 = vld [vmem:[#allocation23_spill] sm:$0xff]  ;;  %v13145_v5 = vpop.permute.xlu0 %3137 }
 0x780   : > { %v3666_v54 = vadd.f32 %v3665_v53, %v12850_v58  ;;  %v3667_v29 = vpop.f32.mrb[57].mxu1 }
 0x781   : > { %v3668_v38 = vpop.f32.mrb[58].mxu1  ;;  %5155 = vmatpush1.bf16.msra.mxu0 %v4097_v14  ;;  %5951 = vperm.xlu0 %9973, %v14521_v42   ;;  %v14522_v14 = vld [vmem:[#allocation20_spill] sm:$0xff]  ;;  %v13148_v29 = vpop.permute.xlu1 %3262 }
 0x782   : > { %v3972_v11 = vmul.f32 0.1, %v3666_v54  ;;  %v3669_v1 = vadd.f32 %v3668_v38, %v12853_v33  ;;  %v3670_v61 = vpop.f32.mrb[59].mxu1  ;;  %5156 = vmatprep.subr.bf16.mxu0 %v14475_v3  ;;  %vm3908_vm10 = vcmp.gt.f32.partialorder %v3666_v54, 0.0 }
 0x783   : > { %5955 = vperm.xlu1 %9974, %v14522_v14  }
 0x784   : > { %3880 = vmatmul.mubr.bf16.gmra.mrb[164].mxu1 %v10188_v30  ;;  %vm3909_vm11 = vcmp.gt.f32.partialorder %v3669_v1, 0.0  ;;  %v3973_v58 = vmul.f32 0.1, %v3669_v1  ;;  %v4036_v24 = vsel %vm3908_vm10, %v3666_v54, %v3972_v11  ;;  %v10191_v30 = vld [vmem:[%s14388_s4 + $0x1e0] ss:$8 sps:$4 sm:$0xff]  }
 0x785   : > { %3887 = vmatprep.mubr.bf16.mxu1 %v10189_v51  ;;  %5959 = vperm.xlu0 %9973, %v12582_v8   ;;  %v10192_v54 = vld [vmem:[%s14388_s4 + $0x1f4] ss:$8 sps:$4 sm:$0xff]  }
 0x786   : > { %v4037_v53 = vsel %vm3909_vm11, %v3669_v1, %v3973_v58  ;;  %v14523_v8 = vld [vmem:[#allocation22_spill] sm:$0xff]  ;;  %v13162_v58 = vpop.permute.xlu0 %3147 }
 0x787   : > { %v3673_v33 = vpop.f32.mrb[60].mxu1  ;;  %v4098_v38 = vpack.c.bf16 %v4037_v53, %v4036_v24  ;;  %5963 = vperm.xlu1 %9974, %v14523_v8   ;;  %v13164_v53 = vpop.permute.xlu1 %3272  ;;  %v10194_v8 = vld [vmem:[%s14388_s4 + $0x1f0] ss:$8 sps:$4 sm:$0xff]  }
 0x788   : > { %v3674_v61 = vadd.f32 %v3673_v33, %v12861_v7  ;;  %v3675_v46 = vpop.f32.mrb[61].mxu1  ;;  %v14524_v7 = vld [vmem:[#allocation25_spill] sm:$0xff]  ;;  %14525 = vst [vmem:[#allocation14_spill] sm:$0xff] %v13164_v53 }
 0x789   : > { %v3676_v51 = vpop.f32.mrb[62].mxu1  ;;  %5157 = vmatpush1.bf16.msra.mxu0 %v4098_v38  ;;  %5967 = vperm.xlu0 %9973, %v14524_v7   ;;  %v14526_v38 = vld [vmem:[#allocation24_spill] sm:$0xff] }
 0x78a   : > { %v3974_v11 = vmul.f32 0.1, %v3674_v61  ;;  %v3677_v1 = vadd.f32 %v3676_v51, %v12869_v20  ;;  %v3678_v42 = vpop.f32.mrb[63].mxu1  ;;  %5158 = vmatprep.subr.bf16.mxu0 %v14475_v3  ;;  %vm3910_vm12 = vcmp.gt.f32.partialorder %v3674_v61, 0.0  ;;  %v13172_v53 = vpop.permute.xlu0 %3157 }
 0x78b   : > { %5971 = vperm.xlu1 %9974, %v14526_v38   ;;  %v14529_v38 = vld [vmem:[#allocation27_spill] sm:$0xff] }
 0x78c   : > { %vm3911_vm13 = vcmp.gt.f32.partialorder %v3677_v1, 0.0  ;;  %v3975_v24 = vmul.f32 0.1, %v3677_v1  ;;  %3888 = vmatmul.mubr.bf16.gmra.mrb[168].mxu1 %v10191_v30  ;;  %v4038_v14 = vsel %vm3910_vm12, %v3674_v61, %v3974_v11  ;;  %v10197_v30 = vld [vmem:[#allocation6 + $0x4] ss:$8 sps:$4 sm:$0xff]  }
 0x78d   : > { %3895 = vmatprep.mubr.bf16.mxu1 %v10192_v54  ;;  %5975 = vperm.xlu0 %9973, %v12612_v60   ;;  %v13177_v60 = vpop.permute.xlu1 %3282 }
 0x78e   : > { %v4039_v33 = vsel %vm3911_vm13, %v3677_v1, %v3975_v24  ;;  %v14527_v1 = vld [vmem:[#allocation26_spill] sm:$0xff] }
 0x78f   : > { %v3681_v20 = vpop.f32.mrb[64].mxu1  ;;  %v4099_v46 = vpack.c.bf16 %v4039_v33, %v4038_v14  ;;  %5979 = vperm.xlu1 %9974, %v14527_v1  }
 0x790   : > { %v3682_v51 = vadd.f32 %v3681_v20, %v12879_v28  ;;  %v3683_v42 = vpop.f32.mrb[65].mxu1  ;;  %v14528_v28 = vld [vmem:[#allocation28_spill] sm:$0xff] }
 0x791   : > { %v3684_v7 = vpop.f32.mrb[66].mxu1  ;;  %5159 = vmatpush1.bf16.msra.mxu0 %v4099_v46  ;;  %5983 = vperm.xlu0 %9973, %v14528_v28   ;;  %v13182_v46 = vpop.permute.xlu0 %3167 }
 0x792   : > { %v3976_v61 = vmul.f32 0.1, %v3682_v51  ;;  %v3685_v54 = vadd.f32 %v3684_v7, %v12883_v4  ;;  %v3686_v11 = vpop.f32.mrb[67].mxu1  ;;  %5160 = vmatprep.subr.bf16.mxu0 %v14475_v3  ;;  %vm3912_vm14 = vcmp.gt.f32.partialorder %v3682_v51, 0.0  ;;  %v13185_v1 = vpop.permute.xlu1 %3292 }
 0x793   : > { %5987 = vperm.xlu1 %9974, %v14529_v38   ;;  %v10195_v11 = vld [vmem:[#allocation6] ss:$8 sps:$4 sm:$0xff]  }
 0x794   : > { %vm3913_vm15 = vcmp.gt.f32.partialorder %v3685_v54, 0.0  ;;  %v3977_v24 = vmul.f32 0.1, %v3685_v54  ;;  %3896 = vmatmul.mubr.bf16.gmra.mrb[172].mxu1 %v10194_v8  ;;  %v4040_v14 = vsel %vm3912_vm14, %v3682_v51, %v3976_v61  ;;  %v10198_v8 = vld [vmem:[#allocation6 + $0x14] ss:$8 sps:$4 sm:$0xff]  }
 0x795   : > { %6402 = vmatprep.mubr.bf16.mxu1 %v10197_v30  ;;  %5991 = vperm.xlu0 %9973, %v12642_v10   ;;  %v14531_v10 = vld [vmem:[#allocation31_spill] sm:$0xff] }
 0x796   : > { %v4041_v33 = vsel %vm3913_vm15, %v3685_v54, %v3977_v24  ;;  %v14530_v54 = vld [vmem:[#allocation29_spill] sm:$0xff]  ;;  %v13191_v24 = vpop.permute.xlu1 %4261 }
 0x797   : > { %v3689_v20 = vpop.f32.mrb[68].mxu1  ;;  %v4100_v4 = vpack.c.bf16 %v4041_v33, %v4040_v14  ;;  %5995 = vperm.xlu1 %9974, %v14530_v54   ;;  %14532 = vst [vmem:[#allocation13_spill] sm:$0xff] %v13191_v24  ;;  %v13193_v14 = vpop.permute.xlu0 %3177 }
 0x798   : > { %v3690_v42 = vadd.f32 %v3689_v20, %v13013_v17  ;;  %v3691_v7 = vpop.f32.mrb[69].mxu1  ;;  %v14533_v20 = vld [vmem:[#allocation30_spill] sm:$0xff] }
 0x799   : > { %v3692_v28 = vpop.f32.mrb[70].mxu1  ;;  %5161 = vmatpush1.bf16.msra.mxu0 %v4100_v4  ;;  %5999 = vperm.xlu0 %9973, %v14531_v10  }
 0x79a   : > { %v3978_v30 = vmul.f32 0.1, %v3690_v42  ;;  %v3693_v51 = vadd.f32 %v3692_v28, %v12892_v31  ;;  %v3694_v61 = vpop.f32.mrb[71].mxu1  ;;  %5162 = vmatprep.subr.bf16.mxu0 %v14475_v3  ;;  %vm3914_vm0 = vcmp.gt.f32.partialorder %v3690_v42, 0.0 }
 0x79b   : > { %6003 = vperm.xlu1 %9974, %v14533_v20   ;;  %v10200_v61 = vld [vmem:[#allocation6 + $0x10] ss:$8 sps:$4 sm:$0xff]  }
 0x79c   : > { %vm3915_vm2 = vcmp.gt.f32.partialorder %v3693_v51, 0.0  ;;  %v3979_v17 = vmul.f32 0.1, %v3693_v51  ;;  %6403 = vmatmul.mubr.bf16.vlgmr.msra.gmra.mrb[176].mxu1 %v10195_v11  ;;  %v4042_v33 = vsel %vm3914_vm0, %v3690_v42, %v3978_v30  ;;  %v10201_v11 = vld [vmem:[#allocation6 + $0x24] ss:$8 sps:$4 sm:$0xff]   ;;  %v13201_v30 = vpop.permute.xlu1 %4265 }
 0x79d   : > { %6410 = vmatprep.mubr.bf16.mxu1 %v10198_v8  ;;  %6007 = vperm.xlu0 %9973, %v12672_v32   ;;  %v14534_v42 = vld [vmem:[#allocation32_spill] sm:$0xff]  ;;  %v13204_v32 = vpop.permute.xlu0 %3187 }
 0x79e   : > { %v4043_v38 = vsel %vm3915_vm2, %v3693_v51, %v3979_v17  ;;  %v14535_v51 = vld [vmem:[#allocation34_spill] sm:$0xff] }
 0x79f   : > { %v3697_v31 = vpop.f32.mrb[72].mxu1  ;;  %v4101_v4 = vpack.c.bf16 %v4043_v38, %v4042_v33  ;;  %6011 = vperm.xlu1 %9974, %v14534_v42   ;;  %v14536_v38 = vld [vmem:[#allocation33_spill] sm:$0xff] }
 0x7a0   : > { %v3698_v7 = vadd.f32 %v3697_v31, %v13025_v55  ;;  %v3699_v28 = vpop.f32.mrb[73].mxu1  ;;  %v13209_v42 = vpop.permute.xlu1 %4273 }
 0x7a1   : > { %v3700_v54 = vpop.f32.mrb[74].mxu1  ;;  %5163 = vmatpush1.bf16.msra.mxu0 %v4101_v4  ;;  %6015 = vperm.xlu0 %9973, %v14535_v51   ;;  %v10203_v4 = vld [vmem:[#allocation6 + $0x20] ss:$8 sps:$4 sm:$0xff]   ;;  %v13211_v51 = vpop.permute.xlu0 %3197 }
 0x7a2   : > { %v3980_v8 = vmul.f32 0.1, %v3698_v7  ;;  %v3701_v10 = vadd.f32 %v3700_v54, %v12902_v0  ;;  %v3702_v24 = vpop.f32.mrb[75].mxu1  ;;  %5164 = vmatprep.subr.bf16.mxu0 %v14475_v3  ;;  %vm3916_vm3 = vcmp.gt.f32.partialorder %v3698_v7, 0.0  ;;  %v10204_v54 = vld [vmem:[#allocation6 + $0x34] ss:$8 sps:$4 sm:$0xff]  }
 0x7a3   : > { %6019 = vperm.xlu1 %9974, %v14536_v38  }
 0x7a4   : > { %vm3917_vm4 = vcmp.gt.f32.partialorder %v3701_v10, 0.0  ;;  %v3981_v55 = vmul.f32 0.1, %v3701_v10  ;;  %6411 = vmatmul.mubr.bf16.gmra.mrb[180].mxu1 %v10200_v61  ;;  %v4044_v17 = vsel %vm3916_vm3, %v3698_v7, %v3980_v8 }
 0x7a5   : > { %6418 = vmatprep.mubr.bf16.mxu1 %v10201_v11  ;;  %6023 = vperm.xlu0 %9973, %v12702_v36  }
 0x7a6   : > { %v4045_v33 = vsel %vm3917_vm4, %v3701_v10, %v3981_v55 }
 0x7a7   : > { %v3705_v0 = vpop.f32.mrb[76].mxu1  ;;  %v4102_v24 = vpack.c.bf16 %v4045_v33, %v4044_v17  ;;  %6027 = vperm.xlu1 %9974, %v12707_v13   ;;  %v13218_v17 = vpop.permute.xlu1 %4281 }
 0x7a8   : > { %v3706_v20 = vadd.f32 %v3705_v0, %v13033_v22  ;;  %v3707_v31 = vpop.f32.mrb[77].mxu1  ;;  %v10207_v0 = vld [vmem:[#allocation6 + $0x44] ss:$8 sps:$4 sm:$0xff]  }
 0x7a9   : > { %v3708_v28 = vpop.f32.mrb[78].mxu1  ;;  %5165 = vmatpush1.bf16.msra.mxu0 %v4102_v24  ;;  %6031 = vperm.xlu0 %9973, %v12723_v35   ;;  %v10206_v35 = vld [vmem:[#allocation6 + $0x30] ss:$8 sps:$4 sm:$0xff]  }
 0x7aa   : > { %v3982_v61 = vmul.f32 0.1, %v3706_v20  ;;  %v3709_v7 = vadd.f32 %v3708_v28, %v12911_v2  ;;  %v3710_v11 = vpop.f32.mrb[79].mxu1  ;;  %5166 = vmatprep.subr.bf16.mxu0 %v14475_v3  ;;  %vm3918_vm5 = vcmp.gt.f32.partialorder %v3706_v20, 0.0  ;;  %v13221_v2 = vpop.permute.xlu0 %3207 }
 0x7ab   : > { %6035 = vperm.xlu1 %9974, %v12718_v21   ;;  %v10209_v11 = vld [vmem:[#allocation6 + $0x40] ss:$8 sps:$4 sm:$0xff]  }
 0x7ac   : > { %vm3919_vm6 = vcmp.gt.f32.partialorder %v3709_v7, 0.0  ;;  %v3983_v36 = vmul.f32 0.1, %v3709_v7  ;;  %6419 = vmatmul.mubr.bf16.gmra.mrb[184].mxu1 %v10203_v4  ;;  %v4046_v22 = vsel %vm3918_vm5, %v3706_v20, %v3982_v61 }
 0x7ad   : > { %6426 = vmatprep.mubr.bf16.mxu1 %v10204_v54  ;;  %6039 = vperm.xlu0 %9973, %v12732_v6   ;;  %v13228_v6 = vpop.permute.xlu1 %4289  ;;  %v14537_v54 = vmov 3  }
 0x7ae   : > { %v4047_v8 = vsel %vm3919_vm6, %v3709_v7, %v3983_v36 }
 0x7af   : > { %v3713_v10 = vpop.f32.mrb[80].mxu1  ;;  %v4103_v55 = vpack.c.bf16 %v4047_v8, %v4046_v22  ;;  %6043 = vperm.xlu1 %9974, %v12737_v59   ;;  %v10777_v59 = vld [vmem:[%s14392_s8 + $0xf8] sm:$0xff] }
 0x7b0   : > { %v3714_v13 = vadd.f32 %v3713_v10, %v13045_v9  ;;  %v3715_v33 = vpop.f32.mrb[81].mxu1  ;;  %v13230_v9 = vpop.permute.xlu0 %3217  ;;  %v10210_v22 = vld [vmem:[#allocation6 + $0x54] ss:$8 sps:$4 sm:$0xff]  }
 0x7b1   : > { %v3716_v38 = vpop.f32.mrb[82].mxu1  ;;  %5167 = vmatpush1.bf16.msra.mxu0 %v4103_v55  ;;  %6047 = vperm.xlu0 %9973, %v12748_v49  }
 0x7b2   : > { %v3984_v24 = vmul.f32 0.1, %v3714_v13  ;;  %v3717_v20 = vadd.f32 %v3716_v38, %v12915_v56  ;;  %v3718_v31 = vpop.f32.mrb[83].mxu1  ;;  %5168 = vmatprep.subr.bf16.mxu0 %v14475_v3  ;;  %vm3920_vm7 = vcmp.gt.f32.partialorder %v3714_v13, 0.0 }
 0x7b3   : > { %9976 = vset.pattern.permute.xlu1 %v14537_v54 }
 0x7b4   : > { %vm3921_vm8 = vcmp.gt.f32.partialorder %v3717_v20, 0.0  ;;  %v3985_v21 = vmul.f32 0.1, %v3717_v20  ;;  %6427 = vmatmul.mubr.bf16.gmra.mrb[188].mxu1 %v10206_v35  ;;  %v4048_v4 = vsel %vm3920_vm7, %v3714_v13, %v3984_v24  ;;  %4381 = vperm.xlu1 %9976, %v10777_v59   ;;  %v13241_v13 = vpop.permute.xlu1 %4297  ;;  %v13246_v33 = vpop.permute.xlu0 %3227  ;;  %v10779_v24 = vld [vmem:[%s14392_s8 + $0x110] sm:$0xff] }
 0x7b5   : > { %6434 = vmatprep.mubr.bf16.mxu1 %v10207_v0  ;;  %9975 = vset.pattern.permute.xlu0 %v14537_v54 }
 0x7b6   : > { %v4049_v28 = vsel %vm3921_vm8, %v3717_v20, %v3985_v21  ;;  %4257 = vperm.xlu0 %9975, %v12970_v45   ;;  %v10212_v21 = vld [vmem:[#allocation6 + $0x50] ss:$8 sps:$4 sm:$0xff]  }
 0x7b7   : > { %v3721_v56 = vpop.f32.mrb[84].mxu1  ;;  %v4104_v61 = vpack.c.bf16 %v4049_v28, %v4048_v4  ;;  %v10213_v28 = vld [vmem:[#allocation6 + $0x64] ss:$8 sps:$4 sm:$0xff]  }
 0x7b8   : > { %v3722_v49 = vadd.f32 %v3721_v56, %v13059_v37  ;;  %v3723_v7 = vpop.f32.mrb[85].mxu1  ;;  %v10778_v37 = vld [vmem:[%s14392_s8 + $0x108] sm:$0xff]  ;;  %v13256_v54 = vpop.permute.xlu0 %3237 }
 0x7b9   : > { %v3724_v36 = vpop.f32.mrb[86].mxu1  ;;  %5169 = vmatpush1.bf16.msra.mxu0 %v4104_v61  ;;  %4389 = vperm.xlu1 %9976, %v10778_v37  }
 0x7ba   : > { %v3986_v8 = vmul.f32 0.1, %v3722_v49  ;;  %v3725_v10 = vadd.f32 %v3724_v36, %v12924_v52  ;;  %v3726_v55 = vpop.f32.mrb[87].mxu1  ;;  %5170 = vmatprep.subr.bf16.mxu0 %v14475_v3  ;;  %vm3922_vm9 = vcmp.gt.f32.partialorder %v3722_v49, 0.0  ;;  %4269 = vperm.xlu0 %9975, %v12987_v43   ;;  %v13254_v43 = vpop.permute.xlu1 %4305 }
 0x7bc   : > { %vm3923_vm10 = vcmp.gt.f32.partialorder %v3725_v10, 0.0  ;;  %v3987_v45 = vmul.f32 0.1, %v3725_v10  ;;  %6435 = vmatmul.mubr.bf16.gmra.mrb[192].mxu1 %v10209_v11  ;;  %v4050_v52 = vsel %vm3922_vm9, %v3722_v49, %v3986_v8  ;;  %v10781_v49 = vld [vmem:[%s14392_s8 + $0x38] sm:$0xff]  ;;  %v10782_v8 = vld [vmem:[%s14392_s8 + $0x130] sm:$0xff] }
 0x7bd   : > { %6442 = vmatprep.mubr.bf16.mxu1 %v10210_v22  ;;  %4393 = vperm.xlu1 %9976, %v10779_v24  }
 0x7be   : > { %v4051_v35 = vsel %vm3923_vm10, %v3725_v10, %v3987_v45  ;;  %4277 = vperm.xlu0 %9975, %v13000_v34   ;;  %v13266_v22 = vpop.permute.xlu1 %4313  ;;  %v13271_v10 = vpop.permute.xlu0 %3247  ;;  %v10215_v45 = vld [vmem:[#allocation6 + $0x60] ss:$8 sps:$4 sm:$0xff]  }
 0x7bf   : > { %v3729_v38 = vpop.f32.mrb[88].mxu1  ;;  %v4105_v0 = vpack.c.bf16 %v4051_v35, %v4050_v52  ;;  %v10783_v52 = vld [vmem:[%s14392_s8 + $0x48] sm:$0xff] }
 0x7c0   : > { %v3730_v20 = vadd.f32 %v3729_v38, %v13071_v48  ;;  %v3731_v31 = vpop.f32.mrb[89].mxu1  ;;  %v10780_v48 = vld [vmem:[%s14392_s8 + $0x120] sm:$0xff]  ;;  %v10216_v38 = vld [vmem:[#allocation6 + $0x74] ss:$8 sps:$4 sm:$0xff]  }
 0x7c1   : > { %v3732_v4 = vpop.f32.mrb[90].mxu1  ;;  %5171 = vmatpush1.bf16.msra.mxu0 %v4105_v0  ;;  %4401 = vperm.xlu1 %9976, %v10780_v48   ;;  %v10786_v48 = vld [vmem:[%s14392_s8 + $0x150] sm:$0xff] }
 0x7c2   : > { %v3988_v56 = vmul.f32 0.1, %v3730_v20  ;;  %v3733_v61 = vadd.f32 %v3732_v4, %v12934_v47  ;;  %v3734_v59 = vpop.f32.mrb[91].mxu1  ;;  %5172 = vmatprep.subr.bf16.mxu0 %v14475_v3  ;;  %vm3924_vm11 = vcmp.gt.f32.partialorder %v3730_v20, 0.0  ;;  %4285 = vperm.xlu0 %9975, %v10781_v49   ;;  %v13285_v4 = vpop.permute.xlu1 %4321 }
 0x7c4   : > { %vm3925_vm12 = vcmp.gt.f32.partialorder %v3733_v61, 0.0  ;;  %v3989_v34 = vmul.f32 0.1, %v3733_v61  ;;  %6443 = vmatmul.mubr.bf16.gmra.mrb[196].mxu1 %v10212_v21  ;;  %v4052_v7 = vsel %vm3924_vm11, %v3730_v20, %v3988_v56  ;;  %v10785_v21 = vld [vmem:[%s14392_s8 + $0x58] sm:$0xff] }
 0x7c5   : > { %6450 = vmatprep.mubr.bf16.mxu1 %v10213_v28  ;;  %4409 = vperm.xlu1 %9976, %v10782_v8  }
 0x7c6   : > { %v4053_v47 = vsel %vm3925_vm12, %v3733_v61, %v3989_v34  ;;  %4293 = vperm.xlu0 %9975, %v10783_v52  }
 0x7c7   : > { %v3737_v11 = vpop.f32.mrb[92].mxu1  ;;  %v4106_v36 = vpack.c.bf16 %v4053_v47, %v4052_v7  ;;  %v10218_v7 = vld [vmem:[#allocation6 + $0x70] ss:$8 sps:$4 sm:$0xff]   ;;  %v10787_v47 = vld [vmem:[%s14392_s8 + $0x68] sm:$0xff] }
 0x7c8   : > { %v3738_v55 = vadd.f32 %v3737_v11, %v13079_v50  ;;  %v3739_v37 = vpop.f32.mrb[93].mxu1  ;;  %v10784_v50 = vld [vmem:[%s14392_s8 + $0x140] sm:$0xff] }
 0x7c9   : > { %v3740_v35 = vpop.f32.mrb[94].mxu1  ;;  %5173 = vmatpush1.bf16.msra.mxu0 %v4106_v36  ;;  %4417 = vperm.xlu1 %9976, %v10784_v50   ;;  %v10219_v36 = vld [vmem:[#allocation6 + $0x84] ss:$8 sps:$4 sm:$0xff]   ;;  %v10790_v50 = vld [vmem:[%s14392_s8 + $0x170] sm:$0xff] }
 0x7ca   : > { %v3990_v0 = vmul.f32 0.1, %v3738_v55  ;;  %v3741_v24 = vadd.f32 %v3740_v35, %v12943_v39  ;;  %v3742_v20 = vpop.f32.mrb[95].mxu1  ;;  %5174 = vmatprep.subr.bf16.mxu0 %v14475_v3  ;;  %vm3926_vm13 = vcmp.gt.f32.partialorder %v3738_v55, 0.0  ;;  %4301 = vperm.xlu0 %9975, %v10785_v21   ;;  %v13287_v39 = vpop.permute.xlu0 %3257 }
 0x7cc   : > { %vm3927_vm14 = vcmp.gt.f32.partialorder %v3741_v24, 0.0  ;;  %v3991_v31 = vmul.f32 0.1, %v3741_v24  ;;  %6451 = vmatmul.mubr.bf16.gmra.mrb[200].mxu1 %v10215_v45  ;;  %v4054_v28 = vsel %vm3926_vm13, %v3738_v55, %v3990_v0  ;;  %v13298_v45 = vpop.permute.xlu1 %4329 }
 0x7cd   : > { %6458 = vmatprep.mubr.bf16.mxu1 %v10216_v38  ;;  %4425 = vperm.xlu1 %9976, %v10786_v48  }
 0x7ce   : > { %v4055_v56 = vsel %vm3927_vm14, %v3741_v24, %v3991_v31  ;;  %4309 = vperm.xlu0 %9975, %v10787_v47   ;;  %v13303_v52 = vpop.permute.xlu0 %3267 }
 0x7cf   : > { %v3745_v61 = vpop.f32.mrb[96].mxu1  ;;  %v4107_v59 = vpack.c.bf16 %v4055_v56, %v4054_v28  ;;  %v10221_v28 = vld [vmem:[#allocation6 + $0x80] ss:$8 sps:$4 sm:$0xff]  }
 0x7d0   : > { %v3746_v34 = vadd.f32 %v3745_v61, %v13091_v16  ;;  %v3747_v49 = vpop.f32.mrb[97].mxu1  ;;  %v10788_v16 = vld [vmem:[%s14392_s8 + $0x160] sm:$0xff]  ;;  %v10791_v56 = vld [vmem:[%s14392_s8 + $0x88] sm:$0xff]  ;;  %v13315_v48 = vpop.permute.xlu1 %4337 }
 0x7d1   : > { %v3748_v11 = vpop.f32.mrb[98].mxu1  ;;  %5175 = vmatpush1.bf16.msra.mxu0 %v4107_v59  ;;  %4433 = vperm.xlu1 %9976, %v10788_v16   ;;  %v10222_v59 = vld [vmem:[#allocation6 + $0x94] ss:$8 sps:$4 sm:$0xff]  }
 0x7d2   : > { %v3992_v8 = vmul.f32 0.1, %v3746_v34  ;;  %v3749_v55 = vadd.f32 %v3748_v11, %v12947_v63  ;;  %v3750_v37 = vpop.f32.mrb[99].mxu1  ;;  %5176 = vmatprep.subr.bf16.mxu0 %v14475_v3  ;;  %vm3928_vm15 = vcmp.gt.f32.partialorder %v3746_v34, 0.0  ;;  %v10789_v63 = vld [vmem:[%s14392_s8 + $0x78] sm:$0xff] }
 0x7d3   : > { %4317 = vperm.xlu0 %9975, %v10789_v63  }
 0x7d4   : > { %vm3929_vm0 = vcmp.gt.f32.partialorder %v3749_v55, 0.0  ;;  %v3993_v35 = vmul.f32 0.1, %v3749_v55  ;;  %6459 = vmatmul.mubr.bf16.gmra.mrb[204].mxu1 %v10218_v7  ;;  %v4056_v38 = vsel %vm3928_vm15, %v3746_v34, %v3992_v8  ;;  %v13317_v34 = vpop.permute.xlu0 %3277  ;;  %v13327_v16 = vpop.permute.xlu1 %4345 }
 0x7d5   : > { %6466 = vmatprep.mubr.bf16.mxu1 %v10219_v36  ;;  %4441 = vperm.xlu1 %9976, %v10790_v50   ;;  %v10793_v36 = vld [vmem:[%s14392_s8 + $0x98] sm:$0xff] }
 0x7d6   : > { %v4057_v0 = vsel %vm3929_vm0, %v3749_v55, %v3993_v35  ;;  %v10794_v35 = vld [vmem:[%s14392_s8 + $0x190] sm:$0xff] }
 0x7d7   : > { %v3753_v24 = vpop.f32.mrb[100].mxu1  ;;  %v4108_v20 = vpack.c.bf16 %v4057_v0, %v4056_v38  ;;  %4325 = vperm.xlu0 %9975, %v10791_v56  }
 0x7d8   : > { %v3754_v31 = vadd.f32 %v3753_v24, %v13107_v23  ;;  %v3755_v21 = vpop.f32.mrb[101].mxu1  ;;  %v10792_v23 = vld [vmem:[%s14392_s8 + $0x180] sm:$0xff]  ;;  %v13332_v63 = vpop.permute.xlu0 %3287  ;;  %v10224_v24 = vld [vmem:[#allocation6 + $0x90] ss:$8 sps:$4 sm:$0xff]  }
 0x7d9   : > { %v3756_v61 = vpop.f32.mrb[102].mxu1  ;;  %5177 = vmatpush1.bf16.msra.mxu0 %v4108_v20  ;;  %4449 = vperm.xlu1 %9976, %v10792_v23   ;;  %v10795_v20 = vld [vmem:[%s14392_s8 + $0xa8] sm:$0xff] }
 0x7da   : > { %v3994_v49 = vmul.f32 0.1, %v3754_v31  ;;  %v3757_v7 = vadd.f32 %v3756_v61, %v12956_v62  ;;  %v3758_v47 = vpop.f32.mrb[103].mxu1  ;;  %5178 = vmatprep.subr.bf16.mxu0 %v14475_v3  ;;  %vm3930_vm2 = vcmp.gt.f32.partialorder %v3754_v31, 0.0 }
 0x7db   : > { %4333 = vperm.xlu0 %9975, %v10793_v36   ;;  %v13348_v47 = vpop.permute.xlu1 %4353 }
 0x7dc   : > { %vm3931_vm3 = vcmp.gt.f32.partialorder %v3757_v7, 0.0  ;;  %v3995_v11 = vmul.f32 0.1, %v3757_v7  ;;  %6467 = vmatmul.mubr.bf16.gmra.mrb[208].mxu1 %v10221_v28  ;;  %v4058_v8 = vsel %vm3930_vm2, %v3754_v31, %v3994_v49  ;;  %v10225_v31 = vld [vmem:[#allocation6 + $0xa4] ss:$8 sps:$4 sm:$0xff]   ;;  %v14538_v28 = vld [vmem:[#allocation35_spill] sm:$0xff]  ;;  %v13343_v49 = vpop.permute.xlu0 %5795 }
 0x7dd   : > { %6474 = vmatprep.mubr.bf16.mxu1 %v10222_v59  ;;  %4457 = vperm.xlu1 %9976, %v10794_v35   ;;  %v10227_v35 = vld [vmem:[#allocation6 + $0xa0] ss:$8 sps:$4 sm:$0xff]  }
 0x7de   : > { %v4059_v62 = vsel %vm3931_vm3, %v3757_v7, %v3995_v11  ;;  %v10797_v7 = vld [vmem:[%s14392_s8 + $0xb8] sm:$0xff] }
 0x7df   : > { %v3761_v55 = vpop.f32.mrb[104].mxu1  ;;  %v4109_v37 = vpack.c.bf16 %v4059_v62, %v4058_v8  ;;  %4341 = vperm.xlu0 %9975, %v10795_v20   ;;  %v10798_v62 = vld [vmem:[%s14392_s8 + $0x1b0] sm:$0xff] }
 0x7e0   : > { %v3762_v38 = vadd.f32 %v3761_v55, %v13120_v12  ;;  %v3763_v0 = vpop.f32.mrb[105].mxu1  ;;  %v10796_v12 = vld [vmem:[%s14392_s8 + $0x1a0] sm:$0xff] }
 0x7e1   : > { %v3764_v50 = vpop.f32.mrb[106].mxu1  ;;  %5179 = vmatpush1.bf16.msra.mxu0 %v4109_v37  ;;  %4465 = vperm.xlu1 %9976, %v10796_v12   ;;  %v10799_v0 = vld [vmem:[%s14392_s8 + $0xc8] sm:$0xff]  ;;  %v10801_v12 = vld [vmem:[%s14392_s8 + $0xd8] sm:$0xff] }
 0x7e2   : > { %v3996_v21 = vmul.f32 0.1, %v3762_v38  ;;  %v3765_v56 = vadd.f32 %v3764_v50, %v14538_v28  ;;  %v3766_v61 = vpop.f32.mrb[107].mxu1  ;;  %5180 = vmatprep.subr.bf16.mxu0 %v14475_v3  ;;  %vm3932_vm4 = vcmp.gt.f32.partialorder %v3762_v38, 0.0  ;;  %v14539_v50 = vld [vmem:[#allocation36_spill] sm:$0xff]  ;;  %v13359_v28 = vpop.permute.xlu0 %5807 }
 0x7e3   : > { %4349 = vperm.xlu0 %9975, %v10797_v7  }
 0x7e4   : > { %vm3933_vm5 = vcmp.gt.f32.partialorder %v3765_v56, 0.0  ;;  %v3997_v59 = vmul.f32 0.1, %v3765_v56  ;;  %6475 = vmatmul.mubr.bf16.gmra.mrb[212].mxu1 %v10224_v24  ;;  %v4060_v23 = vsel %vm3932_vm4, %v3762_v38, %v3996_v21  ;;  %v10231_v38 = vld [vmem:[#allocation6 + $0xb4] ss:$8 sps:$4 sm:$0xff]  }
 0x7e5   : > { %6482 = vmatprep.mubr.bf16.mxu1 %v10225_v31  ;;  %4473 = vperm.xlu1 %9976, %v10798_v62  }
 0x7e6   : > { %v4061_v11 = vsel %vm3933_vm5, %v3765_v56, %v3997_v59  ;;  %v10800_v56 = vld [vmem:[%s14392_s8 + $0x1c0] sm:$0xff] }
 0x7e7   : > { %v3769_v36 = vpop.f32.mrb[108].mxu1  ;;  %v4110_v8 = vpack.c.bf16 %v4061_v11, %v4060_v23  ;;  %4357 = vperm.xlu0 %9975, %v10799_v0   ;;  %v13373_v0 = vpop.permute.xlu0 %5815 }
 0x7e8   : > { %v3770_v55 = vadd.f32 %v3769_v36, %v13130_v18  ;;  %v3771_v37 = vpop.f32.mrb[109].mxu1  ;;  %v13361_v18 = vpop.permute.xlu1 %4361  ;;  %v10802_v36 = vld [vmem:[%s14392_s8 + $0x1d0] sm:$0xff] }
 0x7e9   : > { %v3772_v24 = vpop.f32.mrb[110].mxu1  ;;  %5181 = vmatpush1.bf16.msra.mxu0 %v4110_v8  ;;  %4481 = vperm.xlu1 %9976, %v10800_v56   ;;  %v10228_v37 = vld [vmem:[#allocation4] ss:$16 sps:$4 sm:$0xff]  }
 0x7ea   : > { %v3998_v20 = vmul.f32 0.1, %v3770_v55  ;;  %v3773_v31 = vadd.f32 %v3772_v24, %v14539_v50  ;;  %v3774_v21 = vpop.f32.mrb[111].mxu1  ;;  %5182 = vmatprep.subr.bf16.mxu0 %v14475_v3  ;;  %vm3934_vm6 = vcmp.gt.f32.partialorder %v3770_v55, 0.0  ;;  %v10803_v24 = vld [vmem:[%s14392_s8 + $0xe8] sm:$0xff] }
 0x7eb   : > { %4365 = vperm.xlu0 %9975, %v10801_v12   ;;  %v14540_v21 = vld [vmem:[#allocation37_spill] sm:$0xff] }
 0x7ec   : > { %vm3935_vm7 = vcmp.gt.f32.partialorder %v3773_v31, 0.0  ;;  %v3999_v61 = vmul.f32 0.1, %v3773_v31  ;;  %6483 = vmatmul.mubr.bf16.gmra.mrb[216].mxu1 %v10227_v35  ;;  %v4062_v59 = vsel %vm3934_vm6, %v3770_v55, %v3998_v20  ;;  %v10233_v35 = vld [vmem:[#allocation6 + $0xb0] ss:$8 sps:$4 sm:$0xff]   ;;  %v13378_v50 = vpop.permute.xlu1 %4369 }
 0x7ed   : > { %6490 = vmatprep.mubr.bf16.mxu1 %v10231_v38  ;;  %4489 = vperm.xlu1 %9976, %v10802_v36   ;;  %v10234_v38 = vld [vmem:[#allocation4 + $0x24] ss:$16 sps:$4 sm:$0xff]  }
 0x7ee   : > { %v4063_v7 = vsel %vm3935_vm7, %v3773_v31, %v3999_v61  ;;  %v10236_v20 = vld [vmem:[#allocation6 + $0xc4] ss:$8 sps:$4 sm:$0xff]  }
 0x7ef   : > { %v3777_v23 = vpop.f32.mrb[112].mxu1  ;;  %v4111_v11 = vpack.c.bf16 %v4063_v7, %v4062_v59  ;;  %4373 = vperm.xlu0 %9975, %v10803_v24   ;;  %v10804_v61 = vld [vmem:[%s14392_s8 + $0x1e0] sm:$0xff] }
 0x7f0   : > { %v3778_v8 = vadd.f32 %v3777_v23, %v13145_v5  ;;  %v3779_v62 = vpop.f32.mrb[113].mxu1  ;;  %v13385_v23 = vpop.permute.xlu0 %5823 }
 0x7f1   : > { %v3780_v55 = vpop.f32.mrb[114].mxu1  ;;  %5183 = vmatpush1.bf16.msra.mxu0 %v4111_v11  ;;  %4497 = vperm.xlu1 %9976, %v10804_v61   ;;  %v10805_v11 = vld [vmem:[%s14392_s8 + $0x100] sm:$0xff]  ;;  %v13390_v24 = vpop.permute.xlu1 %4377 }
 0x7f2   : > { %v4000_v31 = vmul.f32 0.1, %v3778_v8  ;;  %v3781_v56 = vadd.f32 %v3780_v55, %v14540_v21  ;;  %v3782_v5 = vpop.f32.mrb[115].mxu1  ;;  %5441 = vmatprep.subr.bf16.mxu0 %v14475_v3  ;;  %vm3936_vm8 = vcmp.gt.f32.partialorder %v3778_v8, 0.0  ;;  %v10238_v55 = vld [vmem:[#allocation4 + $0x20] ss:$16 sps:$4 sm:$0xff]  }
 0x7f3   : > { %4385 = vperm.xlu0 %9975, %v10805_v11   ;;  %v10242_v21 = vld [vmem:[#allocation6 + $0xd4] ss:$8 sps:$4 sm:$0xff]  }
 0x7f4   : > { %vm3937_vm9 = vcmp.gt.f32.partialorder %v3781_v56, 0.0  ;;  %v4001_v12 = vmul.f32 0.1, %v3781_v56  ;;  %5185 = vmatmul.mubr.bf16.vlgmr.msra.gmra.mrb[96].mxu0 %v10228_v37  ;;  %6491 = vmatmul.mubr.bf16.gmra.mrb[220].mxu1 %v10233_v35  ;;  %v4064_v59 = vsel %vm3936_vm8, %v3778_v8, %v4000_v31  ;;  %v10806_v37 = vld [vmem:[%s14392_s8 + $0x1f0] sm:$0xff] }
 0x7f5   : > { %5192 = vmatprep.mubr.bf16.mxu0 %v10234_v38  ;;  %6498 = vmatprep.mubr.bf16.mxu1 %v10236_v20  ;;  %v10239_v38 = vld [vmem:[#allocation6 + $0xc0] ss:$8 sps:$4 sm:$0xff]   ;;  %v10240_v31 = vld [vmem:[#allocation4 + $0x44] ss:$16 sps:$4 sm:$0xff]  }
 0x7f6   : > { %v4065_v7 = vsel %vm3937_vm9, %v3781_v56, %v4001_v12  ;;  %4505 = vperm.xlu1 %9976, %v10806_v37   ;;  %v10807_v12 = vld [vmem:[%s14392_s8 + $0x118] sm:$0xff] }
 0x7f7   : > { %v3785_v36 = vpop.f32.mrb[116].mxu1  ;;  %v4112_v62 = vpack.c.bf16 %v4065_v7, %v4064_v59  ;;  %4397 = vperm.xlu0 %9975, %v10807_v12   ;;  %v13401_v59 = vpop.permute.xlu0 %5831  ;;  %v10248_v12 = vld [vmem:[#allocation6 + $0xe4] ss:$8 sps:$4 sm:$0xff]  }
 0x7f8   : > { %v3786_v35 = vadd.f32 %v3785_v36, %v13162_v58  ;;  %v3787_v8 = vpop.f32.mrb[117].mxu1 }
 0x7f9   : > { %v3788_v20 = vpop.f32.mrb[118].mxu1  ;;  %5442 = vmatpush1.bf16.msra.mxu0 %v4112_v62 }
 0x7fa   : > { %v4002_v56 = vmul.f32 0.1, %v3786_v35  ;;  %v3789_v5 = vadd.f32 %v3788_v20, %v13015_v41  ;;  %v3790_v61 = vpop.f32.mrb[119].mxu1  ;;  %5443 = vmatprep.subr.bf16.mxu0 %v14475_v3  ;;  %vm3938_vm10 = vcmp.gt.f32.partialorder %v3786_v35, 0.0  ;;  %v10808_v41 = vld [vmem:[%s14392_s8 + $0x128] sm:$0xff] }
 0x7fb   : > { %4405 = vperm.xlu0 %9975, %v10808_v41   ;;  %v10244_v20 = vld [vmem:[#allocation4 + $0x40] ss:$16 sps:$4 sm:$0xff]  }
 0x7fc   : > { %vm3939_vm11 = vcmp.gt.f32.partialorder %v3789_v5, 0.0  ;;  %v4003_v58 = vmul.f32 0.1, %v3789_v5  ;;  %5193 = vmatmul.mubr.bf16.gmra.mrb[100].mxu0 %v10238_v55  ;;  %6499 = vmatmul.mubr.bf16.gmra.mrb[224].mxu1 %v10239_v38  ;;  %v4066_v7 = vsel %vm3938_vm10, %v3786_v35, %v4002_v56  ;;  %v10245_v61 = vld [vmem:[#allocation6 + $0xd0] ss:$8 sps:$4 sm:$0xff]   ;;  %v13409_v56 = vpop.permute.xlu0 %5839 }
 0x7fd   : > { %5200 = vmatprep.mubr.bf16.mxu0 %v10240_v31  ;;  %6506 = vmatprep.mubr.bf16.mxu1 %v10242_v21  ;;  %v10246_v38 = vld [vmem:[#allocation4 + $0x64] ss:$16 sps:$4 sm:$0xff]  }
 0x7fe   : > { %v4067_v11 = vsel %vm3939_vm11, %v3789_v5, %v4003_v58  ;;  %v10809_v5 = vld [vmem:[%s14392_s8 + $0x138] sm:$0xff] }
 0x7ff   : > { %v3793_v36 = vpop.f32.mrb[120].mxu1  ;;  %v4113_v62 = vpack.c.bf16 %v4067_v11, %v4066_v7  ;;  %4413 = vperm.xlu0 %9975, %v10809_v5  }
 0x800   : > { %v3794_v37 = vadd.f32 %v3793_v36, %v13172_v53  ;;  %v3795_v8 = vpop.f32.mrb[121].mxu1 }
 0x801   : > { %v3796_v55 = vpop.f32.mrb[122].mxu1  ;;  %5444 = vmatpush1.bf16.msra.mxu0 %v4113_v62  ;;  %v10250_v8 = vld [vmem:[#allocation4 + $0x60] ss:$16 sps:$4 sm:$0xff]  }
 0x802   : > { %v4004_v31 = vmul.f32 0.1, %v3794_v37  ;;  %v3797_v35 = vadd.f32 %v3796_v55, %v13028_v57  ;;  %v3798_v21 = vpop.f32.mrb[123].mxu1  ;;  %5445 = vmatprep.subr.bf16.mxu0 %v14475_v3  ;;  %vm3940_vm12 = vcmp.gt.f32.partialorder %v3794_v37, 0.0  ;;  %v10810_v57 = vld [vmem:[%s14392_s8 + $0x148] sm:$0xff] }
 0x803   : > { %4421 = vperm.xlu0 %9975, %v10810_v57   ;;  %v10251_v55 = vld [vmem:[#allocation6 + $0xe0] ss:$8 sps:$4 sm:$0xff]   ;;  %v13418_v21 = vpop.permute.xlu0 %5847 }
 0x804   : > { %vm3941_vm13 = vcmp.gt.f32.partialorder %v3797_v35, 0.0  ;;  %v4005_v53 = vmul.f32 0.1, %v3797_v35  ;;  %5201 = vmatmul.mubr.bf16.gmra.mrb[104].mxu0 %v10244_v20  ;;  %6507 = vmatmul.mubr.bf16.gmra.mrb[228].mxu1 %v10245_v61  ;;  %v4068_v58 = vsel %vm3940_vm12, %v3794_v37, %v4004_v31  ;;  %v10252_v61 = vld [vmem:[#allocation4 + $0x84] ss:$16 sps:$4 sm:$0xff]  }
 0x805   : > { %5208 = vmatprep.mubr.bf16.mxu0 %v10246_v38  ;;  %6514 = vmatprep.mubr.bf16.mxu1 %v10248_v12  ;;  %v10254_v38 = vld [vmem:[#allocation6 + $0xf4] ss:$8 sps:$4 sm:$0xff]  }
 0x806   : > { %v4069_v7 = vsel %vm3941_vm13, %v3797_v35, %v4005_v53  ;;  %v10811_v35 = vld [vmem:[%s14392_s8 + $0x158] sm:$0xff] }
 0x807   : > { %v3801_v11 = vpop.f32.mrb[124].mxu1  ;;  %v4114_v41 = vpack.c.bf16 %v4069_v7, %v4068_v58  ;;  %4429 = vperm.xlu0 %9975, %v10811_v35   ;;  %v13425_v58 = vpop.permute.xlu0 %5855 }
 0x808   : > { %v3802_v36 = vadd.f32 %v3801_v11, %v13182_v46  ;;  %v3803_v62 = vpop.f32.mrb[125].mxu1 }
 0x809   : > { %v3804_v20 = vpop.f32.mrb[126].mxu1  ;;  %5446 = vmatpush1.bf16.msra.mxu0 %v4114_v41  ;;  %v10256_v62 = vld [vmem:[#allocation4 + $0x80] ss:$16 sps:$4 sm:$0xff]  }
 0x80a   : > { %v4006_v37 = vmul.f32 0.1, %v3802_v36  ;;  %v3805_v12 = vadd.f32 %v3804_v20, %v13041_v44  ;;  %v3806_v31 = vpop.f32.mrb[127].mxu1  ;;  %5447 = vmatprep.subr.bf16.mxu0 %v14475_v3  ;;  %vm3942_vm14 = vcmp.gt.f32.partialorder %v3802_v36, 0.0  ;;  %v10812_v44 = vld [vmem:[%s14392_s8 + $0x168] sm:$0xff] }
 0x80b   : > { %4437 = vperm.xlu0 %9975, %v10812_v44   ;;  %v10257_v20 = vld [vmem:[#allocation6 + $0xf0] ss:$8 sps:$4 sm:$0xff]   ;;  %v13436_v31 = vpop.permute.xlu0 %5863 }
 0x80c   : > { %vm3943_vm15 = vcmp.gt.f32.partialorder %v3805_v12, 0.0  ;;  %v4007_v46 = vmul.f32 0.1, %v3805_v12  ;;  %5209 = vmatmul.mubr.bf16.gmra.mrb[108].mxu0 %v10250_v8  ;;  %6515 = vmatmul.mubr.bf16.gmra.mrb[232].mxu1 %v10251_v55  ;;  %v4070_v5 = vsel %vm3942_vm14, %v3802_v36, %v4006_v37  ;;  %v10258_v55 = vld [vmem:[#allocation4 + $0xa4] ss:$16 sps:$4 sm:$0xff]  }
 0x80d   : > { %5216 = vmatprep.mubr.bf16.mxu0 %v10252_v61  ;;  %6522 = vmatprep.mubr.bf16.mxu1 %v10254_v38  ;;  %v10260_v61 = vld [vmem:[#allocation6 + $0x104] ss:$8 sps:$4 sm:$0xff]  }
 0x80e   : > { %v4071_v53 = vsel %vm3943_vm15, %v3805_v12, %v4007_v46  ;;  %v10813_v12 = vld [vmem:[%s14392_s8 + $0x178] sm:$0xff] }
 0x80f   : > { %v3809_v7 = vpop.f32.mrb[128].mxu1  ;;  %v4115_v57 = vpack.c.bf16 %v4071_v53, %v4070_v5  ;;  %4445 = vperm.xlu0 %9975, %v10813_v12  }
 0x810   : > { %v3810_v11 = vadd.f32 %v3809_v7, %v13193_v14  ;;  %v3811_v41 = vpop.f32.mrb[129].mxu1 }
 0x811   : > { %v3812_v8 = vpop.f32.mrb[130].mxu1  ;;  %5448 = vmatpush1.bf16.msra.mxu0 %v4115_v57  ;;  %v10262_v57 = vld [vmem:[#allocation4 + $0xa0] ss:$16 sps:$4 sm:$0xff]  }
 0x812   : > { %v4008_v36 = vmul.f32 0.1, %v3810_v11  ;;  %v3813_v38 = vadd.f32 %v3812_v8, %v13048_v40  ;;  %v3814_v37 = vpop.f32.mrb[131].mxu1  ;;  %5449 = vmatprep.subr.bf16.mxu0 %v14475_v3  ;;  %vm3944_vm0 = vcmp.gt.f32.partialorder %v3810_v11, 0.0  ;;  %v10814_v40 = vld [vmem:[%s14392_s8 + $0x188] sm:$0xff] }
 0x813   : > { %4453 = vperm.xlu0 %9975, %v10814_v40   ;;  %v10263_v41 = vld [vmem:[#allocation6 + $0x100] ss:$8 sps:$4 sm:$0xff]   ;;  %v10266_v8 = vld [vmem:[#allocation6 + $0x114] ss:$8 sps:$4 sm:$0xff]  }
 0x814   : > { %vm3945_vm2 = vcmp.gt.f32.partialorder %v3813_v38, 0.0  ;;  %v4009_v14 = vmul.f32 0.1, %v3813_v38  ;;  %5217 = vmatmul.mubr.bf16.gmra.mrb[112].mxu0 %v10256_v62  ;;  %6523 = vmatmul.mubr.bf16.gmra.mrb[236].mxu1 %v10257_v20  ;;  %v4072_v35 = vsel %vm3944_vm0, %v3810_v11, %v4008_v36  ;;  %v10264_v20 = vld [vmem:[#allocation4 + $0xc4] ss:$16 sps:$4 sm:$0xff]   ;;  %v13444_v36 = vpop.permute.xlu0 %5871 }
 0x815   : > { %5224 = vmatprep.mubr.bf16.mxu0 %v10258_v55  ;;  %6530 = vmatprep.mubr.bf16.mxu1 %v10260_v61 }
 0x816   : > { %v4073_v46 = vsel %vm3945_vm2, %v3813_v38, %v4009_v14  ;;  %v10815_v38 = vld [vmem:[%s14392_s8 + $0x198] sm:$0xff] }
 0x817   : > { %v3817_v5 = vpop.f32.mrb[132].mxu1  ;;  %v4116_v53 = vpack.c.bf16 %v4073_v46, %v4072_v35  ;;  %4461 = vperm.xlu0 %9975, %v10815_v38  }
 0x818   : > { %v3818_v44 = vadd.f32 %v3817_v5, %v13204_v32  ;;  %v3819_v7 = vpop.f32.mrb[133].mxu1  ;;  %v10268_v5 = vld [vmem:[#allocation4 + $0xc0] ss:$16 sps:$4 sm:$0xff]  }
 0x819   : > { %v3820_v62 = vpop.f32.mrb[134].mxu1  ;;  %5450 = vmatpush1.bf16.msra.mxu0 %v4116_v53  ;;  %v10269_v53 = vld [vmem:[#allocation6 + $0x110] ss:$8 sps:$4 sm:$0xff]   ;;  %v13453_v7 = vpop.permute.xlu0 %5879 }
 0x81a   : > { %v4010_v55 = vmul.f32 0.1, %v3818_v44  ;;  %v3821_v11 = vadd.f32 %v3820_v62, %v13061_v19  ;;  %v3822_v61 = vpop.f32.mrb[135].mxu1  ;;  %5451 = vmatprep.subr.bf16.mxu0 %v14475_v3  ;;  %vm3946_vm3 = vcmp.gt.f32.partialorder %v3818_v44, 0.0  ;;  %v10816_v19 = vld [vmem:[%s14392_s8 + $0x1a8] sm:$0xff] }
 0x81b   : > { %4469 = vperm.xlu0 %9975, %v10816_v19   ;;  %v10272_v62 = vld [vmem:[#allocation6 + $0x124] ss:$8 sps:$4 sm:$0xff]  }
 0x81c   : > { %vm3947_vm4 = vcmp.gt.f32.partialorder %v3821_v11, 0.0  ;;  %v4011_v32 = vmul.f32 0.1, %v3821_v11  ;;  %5225 = vmatmul.mubr.bf16.gmra.mrb[116].mxu0 %v10262_v57  ;;  %6531 = vmatmul.mubr.bf16.gmra.mrb[240].mxu1 %v10263_v41  ;;  %v4074_v37 = vsel %vm3946_vm3, %v3818_v44, %v4010_v55  ;;  %v10270_v41 = vld [vmem:[#allocation4 + $0xe4] ss:$16 sps:$4 sm:$0xff]   ;;  %v10817_v55 = vld [vmem:[%s14392_s8 + $0x1b8] sm:$0xff] }
 0x81d   : > { %5232 = vmatprep.mubr.bf16.mxu0 %v10264_v20  ;;  %6538 = vmatprep.mubr.bf16.mxu1 %v10266_v8  ;;  %v13460_v38 = vpop.permute.xlu0 %5887 }
 0x81e   : > { %v4075_v12 = vsel %vm3947_vm4, %v3821_v11, %v4011_v32 }
 0x81f   : > { %v3825_v14 = vpop.f32.mrb[136].mxu1  ;;  %v4117_v35 = vpack.c.bf16 %v4075_v12, %v4074_v37  ;;  %4477 = vperm.xlu0 %9975, %v10817_v55  }
 0x820   : > { %v3826_v46 = vadd.f32 %v3825_v14, %v13211_v51  ;;  %v3827_v40 = vpop.f32.mrb[137].mxu1  ;;  %v10274_v14 = vld [vmem:[#allocation4 + $0xe0] ss:$16 sps:$4 sm:$0xff]  }
 0x821   : > { %v3828_v57 = vpop.f32.mrb[138].mxu1  ;;  %5452 = vmatpush1.bf16.msra.mxu0 %v4117_v35  ;;  %v10275_v35 = vld [vmem:[#allocation6 + $0x120] ss:$8 sps:$4 sm:$0xff]  }
 0x822   : > { %v4012_v44 = vmul.f32 0.1, %v3826_v46  ;;  %v3829_v20 = vadd.f32 %v3828_v57, %v13074_v26  ;;  %v3830_v8 = vpop.f32.mrb[139].mxu1  ;;  %5453 = vmatprep.subr.bf16.mxu0 %v14475_v3  ;;  %vm3948_vm5 = vcmp.gt.f32.partialorder %v3826_v46, 0.0  ;;  %v10818_v26 = vld [vmem:[%s14392_s8 + $0x1c8] sm:$0xff]  ;;  %v14541_v57 = vld [vmem:[#allocation38_spill] sm:$0xff] }
 0x823   : > { %4485 = vperm.xlu0 %9975, %v10818_v26  }
 0x824   : > { %vm3949_vm6 = vcmp.gt.f32.partialorder %v3829_v20, 0.0  ;;  %v4013_v51 = vmul.f32 0.1, %v3829_v20  ;;  %5233 = vmatmul.mubr.bf16.gmra.mrb[120].mxu0 %v10268_v5  ;;  %6539 = vmatmul.mubr.bf16.gmra.mrb[244].mxu1 %v10269_v53  ;;  %v4076_v11 = vsel %vm3948_vm5, %v3826_v46, %v4012_v44  ;;  %v10276_v5 = vld [vmem:[#allocation4 + $0x104] ss:$16 sps:$4 sm:$0xff]   ;;  %v10819_v44 = vld [vmem:[%s14392_s8 + $0x1d8] sm:$0xff] }
 0x825   : > { %5240 = vmatprep.mubr.bf16.mxu0 %v10270_v41  ;;  %6546 = vmatprep.mubr.bf16.mxu1 %v10272_v62  ;;  %v10278_v53 = vld [vmem:[#allocation6 + $0x134] ss:$8 sps:$4 sm:$0xff]  }
 0x826   : > { %v4077_v61 = vsel %vm3949_vm6, %v3829_v20, %v4013_v51  ;;  %v13471_v20 = vpop.permute.xlu0 %5895  ;;  %v10820_v51 = vld [vmem:[%s14392_s8 + $0x1e8] sm:$0xff] }
 0x827   : > { %v3833_v32 = vpop.f32.mrb[140].mxu1  ;;  %v4118_v37 = vpack.c.bf16 %v4077_v61, %v4076_v11  ;;  %4493 = vperm.xlu0 %9975, %v10819_v44  }
 0x828   : > { %v3834_v12 = vadd.f32 %v3833_v32, %v13221_v2  ;;  %v3835_v19 = vpop.f32.mrb[141].mxu1 }
 0x829   : > { %v3836_v40 = vpop.f32.mrb[142].mxu1  ;;  %5454 = vmatpush1.bf16.msra.mxu0 %v4118_v37  ;;  %v10280_v37 = vld [vmem:[#allocation4 + $0x100] ss:$16 sps:$4 sm:$0xff]  }
 0x82a   : > { %v4014_v46 = vmul.f32 0.1, %v3834_v12  ;;  %v3837_v41 = vadd.f32 %v3836_v40, %v14541_v57  ;;  %v3838_v62 = vpop.f32.mrb[143].mxu1  ;;  %5455 = vmatprep.subr.bf16.mxu0 %v14475_v3  ;;  %vm3950_vm7 = vcmp.gt.f32.partialorder %v3834_v12, 0.0  ;;  %v10281_v19 = vld [vmem:[#allocation6 + $0x130] ss:$8 sps:$4 sm:$0xff]   ;;  %v13479_v57 = vpop.permute.xlu0 %5903 }
 0x82b   : > { %4501 = vperm.xlu0 %9975, %v10820_v51   ;;  %v10286_v40 = vld [vmem:[#allocation6 + $0x144] ss:$8 sps:$4 sm:$0xff]  }
 0x82c   : > { %vm3951_vm8 = vcmp.gt.f32.partialorder %v3837_v41, 0.0  ;;  %v4015_v2 = vmul.f32 0.1, %v3837_v41  ;;  %5241 = vmatmul.mubr.bf16.gmra.mrb[124].mxu0 %v10274_v14  ;;  %6547 = vmatmul.mubr.bf16.gmra.mrb[248].mxu1 %v10275_v35  ;;  %v4078_v8 = vsel %vm3950_vm7, %v3834_v12, %v4014_v46  ;;  %v10282_v35 = vld [vmem:[#allocation4 + $0x124] ss:$16 sps:$4 sm:$0xff]  }
 0x82d   : > { %5248 = vmatprep.mubr.bf16.mxu0 %v10276_v5  ;;  %6554 = vmatprep.mubr.bf16.mxu1 %v10278_v53  ;;  %v14542_v53 = vld [vmem:[#allocation12_spill] sm:$0xff] }
 0x82e   : > { %v4079_v55 = vsel %vm3951_vm8, %v3837_v41, %v4015_v2  ;;  %v10821_v41 = vld [vmem:[%s14392_s8 + $0x1f8] sm:$0xff] }
 0x82f   : > { %v3841_v11 = vpop.f32.mrb[144].mxu1  ;;  %v4119_v61 = vpack.c.bf16 %v4079_v55, %v4078_v8  ;;  %4509 = vperm.xlu0 %9975, %v10821_v41  }
 0x830   : > { %v3842_v26 = vadd.f32 %v3841_v11, %v13230_v9  ;;  %v3843_v32 = vpop.f32.mrb[145].mxu1  ;;  %v10284_v11 = vld [vmem:[#allocation6 + $0x140] ss:$8 sps:$4 sm:$0xff]  }
 0x831   : > { %v3844_v14 = vpop.f32.mrb[146].mxu1  ;;  %5456 = vmatpush1.bf16.msra.mxu0 %v4119_v61  ;;  %v10287_v61 = vld [vmem:[#allocation4 + $0x120] ss:$16 sps:$4 sm:$0xff]  }
 0x832   : > { %v4016_v5 = vmul.f32 0.1, %v3842_v26  ;;  %v3845_v12 = vadd.f32 %v3844_v14, %v14542_v53  ;;  %v3846_v46 = vpop.f32.mrb[147].mxu1  ;;  %5457 = vmatprep.subr.bf16.mxu0 %v14475_v3  ;;  %vm3952_vm9 = vcmp.gt.f32.partialorder %v3842_v26, 0.0  ;;  %v10288_v14 = vld [vmem:[#allocation4 + $0x144] ss:$16 sps:$4 sm:$0xff]  }
 0x833   : > { %v10292_v53 = vld [vmem:[#allocation6 + $0x154] ss:$8 sps:$4 sm:$0xff]  }
 0x834   : > { %vm3953_vm10 = vcmp.gt.f32.partialorder %v3845_v12, 0.0  ;;  %v4017_v9 = vmul.f32 0.1, %v3845_v12  ;;  %5249 = vmatmul.mubr.bf16.gmra.mrb[128].mxu0 %v10280_v37  ;;  %6555 = vmatmul.mubr.bf16.gmra.mrb[252].mxu1 %v10281_v19  ;;  %v4080_v62 = vsel %vm3952_vm9, %v3842_v26, %v4016_v5 }
 0x835   : > { %5256 = vmatprep.mubr.bf16.mxu0 %v10282_v35  ;;  %6562 = vmatprep.mubr.bf16.mxu1 %v10286_v40 }
 0x836   : > { %v4081_v44 = vsel %vm3953_vm10, %v3845_v12, %v4017_v9  ;;  %v10290_v9 = vld [vmem:[#allocation6 + $0x150] ss:$8 sps:$4 sm:$0xff]  }
 0x837   : > { %v3849_v2 = vpop.f32.mrb[148].mxu1  ;;  %v4120_v8 = vpack.c.bf16 %v4081_v44, %v4080_v62  ;;  %v10293_v62 = vld [vmem:[#allocation4 + $0x140] ss:$16 sps:$4 sm:$0xff]   ;;  %v10294_v44 = vld [vmem:[#allocation4 + $0x164] ss:$16 sps:$4 sm:$0xff]  }
 0x838   : > { %v3850_v55 = vadd.f32 %v3849_v2, %v13246_v33  ;;  %v3851_v51 = vpop.f32.mrb[149].mxu1  ;;  %v10298_v2 = vld [vmem:[#allocation6 + $0x164] ss:$8 sps:$4 sm:$0xff]  }
 0x839   : > { %v3852_v32 = vpop.f32.mrb[150].mxu1  ;;  %5458 = vmatpush1.bf16.msra.mxu0 %v4120_v8 }
 0x83a   : > { %v4018_v46 = vmul.f32 0.1, %v3850_v55  ;;  %v3853_v41 = vadd.f32 %v3852_v32, %v13109_v25  ;;  %v3854_v37 = vpop.f32.mrb[151].mxu1  ;;  %5459 = vmatprep.subr.bf16.mxu0 %v14475_v3  ;;  %vm3954_vm11 = vcmp.gt.f32.partialorder %v3850_v55, 0.0 }
 0x83b   : > { %v10299_v37 = vld [vmem:[#allocation4 + $0x160] ss:$16 sps:$4 sm:$0xff]  }
 0x83c   : > { %vm3955_vm12 = vcmp.gt.f32.partialorder %v3853_v41, 0.0  ;;  %v4019_v26 = vmul.f32 0.1, %v3853_v41  ;;  %5257 = vmatmul.mubr.bf16.gmra.mrb[132].mxu0 %v10287_v61  ;;  %6563 = vmatmul.mubr.bf16.gmra.mrb[0].mxu1 %v10284_v11  ;;  %v4082_v33 = vsel %vm3954_vm11, %v3850_v55, %v4018_v46 }
 0x83d   : > { %5264 = vmatprep.mubr.bf16.mxu0 %v10288_v14  ;;  %6570 = vmatprep.mubr.bf16.mxu1 %v10292_v53 }
 0x83e   : > { %v4083_v19 = vsel %vm3955_vm12, %v3853_v41, %v4019_v26  ;;  %v10296_v41 = vld [vmem:[#allocation6 + $0x160] ss:$8 sps:$4 sm:$0xff]   ;;  %v10300_v26 = vld [vmem:[#allocation4 + $0x184] ss:$16 sps:$4 sm:$0xff]  }
 0x83f   : > { %v3857_v35 = vpop.f32.mrb[152].mxu1  ;;  %v4121_v40 = vpack.c.bf16 %v4083_v19, %v4082_v33  ;;  %v10304_v33 = vld [vmem:[#allocation6 + $0x174] ss:$8 sps:$4 sm:$0xff]  }
 0x840   : > { %v3858_v5 = vadd.f32 %v3857_v35, %v13256_v54  ;;  %v3859_v12 = vpop.f32.mrb[153].mxu1 }
 0x841   : > { %v3860_v25 = vpop.f32.mrb[154].mxu1  ;;  %5460 = vmatpush1.bf16.msra.mxu0 %v4121_v40 }
 0x842   : > { %v4020_v8 = vmul.f32 0.1, %v3858_v5  ;;  %v3861_v51 = vadd.f32 %v3860_v25, %v13125_v15  ;;  %v3862_v61 = vpop.f32.mrb[155].mxu1  ;;  %5461 = vmatprep.subr.bf16.mxu0 %v14475_v3  ;;  %vm3956_vm13 = vcmp.gt.f32.partialorder %v3858_v5, 0.0 }
 0x843   : > { %v10310_v61 = vld [vmem:[#allocation6 + $0x184] ss:$8 sps:$4 sm:$0xff]  }
 0x844   : > { %vm3957_vm14 = vcmp.gt.f32.partialorder %v3861_v51, 0.0  ;;  %v4021_v55 = vmul.f32 0.1, %v3861_v51  ;;  %5265 = vmatmul.mubr.bf16.gmra.mrb[136].mxu0 %v10293_v62  ;;  %6571 = vmatmul.mubr.bf16.gmra.mrb[4].mxu1 %v10290_v9  ;;  %v4084_v54 = vsel %vm3956_vm13, %v3858_v5, %v4020_v8  ;;  %v10305_v8 = vld [vmem:[#allocation4 + $0x180] ss:$16 sps:$4 sm:$0xff]  }
 0x845   : > { %5272 = vmatprep.mubr.bf16.mxu0 %v10294_v44  ;;  %6578 = vmatprep.mubr.bf16.mxu1 %v10298_v2  ;;  %v10302_v2 = vld [vmem:[#allocation6 + $0x170] ss:$8 sps:$4 sm:$0xff]  }
 0x846   : > { %v4085_v11 = vsel %vm3957_vm14, %v3861_v51, %v4021_v55  ;;  %v10306_v51 = vld [vmem:[#allocation4 + $0x1a4] ss:$16 sps:$4 sm:$0xff]  }
 0x847   : > { %v3865_v32 = vpop.f32.mrb[156].mxu1  ;;  %v4122_v14 = vpack.c.bf16 %v4085_v11, %v4084_v54 }
 0x848   : > { %v3866_v53 = vadd.f32 %v3865_v32, %v13271_v10  ;;  %v3867_v46 = vpop.f32.mrb[157].mxu1 }
 0x849   : > { %v3868_v15 = vpop.f32.mrb[158].mxu1  ;;  %5462 = vmatpush1.bf16.msra.mxu0 %v4122_v14 }
 0x84a   : > { %v4022_v19 = vmul.f32 0.1, %v3866_v53  ;;  %v3869_v35 = vadd.f32 %v3868_v15, %v13136_v27  ;;  %v3870_v40 = vpop.f32.mrb[159].mxu1  ;;  %5463 = vmatprep.subr.bf16.mxu0 %v14475_v3  ;;  %vm3958_vm15 = vcmp.gt.f32.partialorder %v3866_v53, 0.0  ;;  %v10308_v15 = vld [vmem:[#allocation6 + $0x180] ss:$8 sps:$4 sm:$0xff]  }
 0x84b   : > { %v14543_v40 = vld [vmem:[#allocation14_spill] sm:$0xff] }
 0x84c   : > { %vm3959_vm0 = vcmp.gt.f32.partialorder %v3869_v35, 0.0  ;;  %v4023_v5 = vmul.f32 0.1, %v3869_v35  ;;  %5273 = vmatmul.mubr.bf16.gmra.mrb[140].mxu0 %v10299_v37  ;;  %6579 = vmatmul.mubr.bf16.gmra.mrb[8].mxu1 %v10296_v41  ;;  %v4086_v10 = vsel %vm3958_vm15, %v3866_v53, %v4022_v19  ;;  %v10316_v19 = vld [vmem:[#allocation6 + $0x194] ss:$8 sps:$4 sm:$0xff]  }
 0x84d   : > { %5280 = vmatprep.mubr.bf16.mxu0 %v10300_v26  ;;  %6586 = vmatprep.mubr.bf16.mxu1 %v10304_v33  ;;  %v10311_v26 = vld [vmem:[#allocation4 + $0x1a0] ss:$16 sps:$4 sm:$0xff]   ;;  %v10312_v33 = vld [vmem:[#allocation4 + $0x1c4] ss:$16 sps:$4 sm:$0xff]  }
 0x84e   : > { %v4087_v12 = vsel %vm3959_vm0, %v3869_v35, %v4023_v5 }
 0x84f   : > { %v3873_v9 = vpop.f32.mrb[160].mxu1  ;;  %v4123_v62 = vpack.c.bf16 %v4087_v12, %v4086_v10 }
 0x850   : > { %v3874_v25 = vadd.f32 %v3873_v9, %v13287_v39  ;;  %v3875_v44 = vpop.f32.mrb[161].mxu1 }
 0x851   : > { %v3876_v27 = vpop.f32.mrb[162].mxu1  ;;  %5464 = vmatpush1.bf16.msra.mxu0 %v4123_v62 }
 0x852   : > { %v4024_v55 = vmul.f32 0.1, %v3874_v25  ;;  %v3877_v54 = vadd.f32 %v3876_v27, %v13148_v29  ;;  %v3878_v11 = vpop.f32.mrb[163].mxu1  ;;  %5465 = vmatprep.subr.bf16.mxu0 %v14475_v3  ;;  %vm3960_vm2 = vcmp.gt.f32.partialorder %v3874_v25, 0.0  ;;  %v10317_v27 = vld [vmem:[#allocation4 + $0x1c0] ss:$16 sps:$4 sm:$0xff]  }
 0x854   : > { %vm3961_vm3 = vcmp.gt.f32.partialorder %v3877_v54, 0.0  ;;  %v4025_v32 = vmul.f32 0.1, %v3877_v54  ;;  %5281 = vmatmul.mubr.bf16.gmra.mrb[144].mxu0 %v10305_v8  ;;  %6587 = vmatmul.mubr.bf16.gmra.mrb[12].mxu1 %v10302_v2  ;;  %v4088_v39 = vsel %vm3960_vm2, %v3874_v25, %v4024_v55  ;;  %v10314_v8 = vld [vmem:[#allocation6 + $0x190] ss:$8 sps:$4 sm:$0xff]  }
 0x855   : > { %5288 = vmatprep.mubr.bf16.mxu0 %v10306_v51  ;;  %6594 = vmatprep.mubr.bf16.mxu1 %v10310_v61  ;;  %v10318_v61 = vld [vmem:[#allocation4 + $0x1e4] ss:$16 sps:$4 sm:$0xff]  }
 0x856   : > { %v4089_v14 = vsel %vm3961_vm3, %v3877_v54, %v4025_v32  ;;  %v10322_v55 = vld [vmem:[#allocation6 + $0x1a4] ss:$8 sps:$4 sm:$0xff]  }
 0x857   : > { %v3881_v53 = vpop.f32.mrb[164].mxu1  ;;  %v4124_v46 = vpack.c.bf16 %v4089_v14, %v4088_v39 }
 0x858   : > { %v3882_v41 = vadd.f32 %v3881_v53, %v13303_v52  ;;  %v3883_v37 = vpop.f32.mrb[165].mxu1 }
 0x859   : > { %v3884_v29 = vpop.f32.mrb[166].mxu1  ;;  %5466 = vmatpush1.bf16.msra.mxu0 %v4124_v46 }
 0x85a   : > { %v4026_v35 = vmul.f32 0.1, %v3882_v41  ;;  %v3885_v5 = vadd.f32 %v3884_v29, %v14543_v40  ;;  %v3886_v10 = vpop.f32.mrb[167].mxu1  ;;  %5467 = vmatprep.subr.bf16.mxu0 %v14475_v3  ;;  %vm3962_vm4 = vcmp.gt.f32.partialorder %v3882_v41, 0.0  ;;  %v10324_v29 = vld [vmem:[#allocation4 + $0x204] ss:$16 sps:$4 sm:$0xff]  }
 0x85c   : > { %vm3963_vm5 = vcmp.gt.f32.partialorder %v3885_v5, 0.0  ;;  %v4027_v12 = vmul.f32 0.1, %v3885_v5  ;;  %5289 = vmatmul.mubr.bf16.gmra.mrb[148].mxu0 %v10311_v26  ;;  %6595 = vmatmul.mubr.bf16.gmra.mrb[16].mxu1 %v10308_v15  ;;  %v4090_v52 = vsel %vm3962_vm4, %v3882_v41, %v4026_v35  ;;  %v10320_v15 = vld [vmem:[#allocation6 + $0x1a0] ss:$8 sps:$4 sm:$0xff]  }
 0x85d   : > { %5296 = vmatprep.mubr.bf16.mxu0 %v10312_v33  ;;  %6602 = vmatprep.mubr.bf16.mxu1 %v10316_v19  ;;  %v10323_v26 = vld [vmem:[#allocation4 + $0x1e0] ss:$16 sps:$4 sm:$0xff]   ;;  %v10328_v33 = vld [vmem:[#allocation6 + $0x1b4] ss:$8 sps:$4 sm:$0xff]  }
 0x85e   : > { %v4091_v9 = vsel %vm3963_vm5, %v3885_v5, %v4027_v12  ;;  %v5800_v12 = vpop.permute.xlu1 %5799 }
 0x85f   : > { %v3889_v62 = vpop.f32.mrb[168].mxu1  ;;  %v4125_v25 = vpack.c.bf16 %v4091_v9, %v4090_v52 }
 0x860   : > { %v3890_v44 = vadd.f32 %v3889_v62, %v13317_v34  ;;  %v3891_v2 = vpop.f32.mrb[169].mxu1  ;;  %v10326_v62 = vld [vmem:[#allocation6 + $0x1b0] ss:$8 sps:$4 sm:$0xff]  }
 0x861   : > { %v3892_v51 = vpop.f32.mrb[170].mxu1  ;;  %5468 = vmatpush1.bf16.msra.mxu0 %v4125_v25  ;;  %v10329_v25 = vld [vmem:[#allocation4 + $0x200] ss:$16 sps:$4 sm:$0xff]   ;;  %v10330_v2 = vld [vmem:[#allocation4 + $0x224] ss:$16 sps:$4 sm:$0xff]  }
 0x862   : > { %v4028_v54 = vmul.f32 0.1, %v3890_v44  ;;  %v3893_v11 = vadd.f32 %v3892_v51, %v13177_v60  ;;  %v3894_v32 = vpop.f32.mrb[171].mxu1  ;;  %5469 = vmatprep.subr.bf16.mxu0 %v14475_v3  ;;  %vm3964_vm6 = vcmp.gt.f32.partialorder %v3890_v44, 0.0 }
 0x863   : > { %v5804_v32 = vpop.permute.xlu1 %5803 }
 0x864   : > { %vm3965_vm7 = vcmp.gt.f32.partialorder %v3893_v11, 0.0  ;;  %v4029_v39 = vmul.f32 0.1, %v3893_v11  ;;  %5297 = vmatmul.mubr.bf16.gmra.mrb[152].mxu0 %v10317_v27  ;;  %6603 = vmatmul.mubr.bf16.gmra.mrb[20].mxu1 %v10314_v8  ;;  %v4092_v34 = vsel %vm3964_vm6, %v3890_v44, %v4028_v54  ;;  %v10334_v8 = vld [vmem:[#allocation6 + $0x1c4] ss:$8 sps:$4 sm:$0xff]  }
 0x865   : > { %5304 = vmatprep.mubr.bf16.mxu0 %v10318_v61  ;;  %6610 = vmatprep.mubr.bf16.mxu1 %v10322_v55 }
 0x866   : > { %v4093_v14 = vsel %vm3965_vm7, %v3893_v11, %v4029_v39 }
 0x867   : > { %v3897_v53 = vpop.f32.mrb[172].mxu1  ;;  %v4126_v46 = vpack.c.bf16 %v4093_v14, %v4092_v34  ;;  %v10332_v14 = vld [vmem:[#allocation6 + $0x1c0] ss:$8 sps:$4 sm:$0xff]  }
 0x868   : > { %v3898_v41 = vadd.f32 %v3897_v53, %v13332_v63  ;;  %v3899_v37 = vpop.f32.mrb[173].mxu1  ;;  %v10335_v53 = vld [vmem:[#allocation4 + $0x220] ss:$16 sps:$4 sm:$0xff]  }
 0x869   : > { %v3900_v60 = vpop.f32.mrb[174].mxu1  ;;  %5470 = vmatpush1.bf16.msra.mxu0 %v4126_v46  ;;  %v10336_v37 = vld [vmem:[#allocation4 + $0x244] ss:$16 sps:$4 sm:$0xff]  }
 0x86a   : > { %v4030_v19 = vmul.f32 0.1, %v3898_v41  ;;  %v3901_v35 = vadd.f32 %v3900_v60, %v13185_v1  ;;  %5471 = vmatprep.subr.bf16.mxu0 %v14475_v3  ;;  %v3902_v40 = vpop.f32.mrb[175].mxu1  ;;  %vm3966_vm8 = vcmp.gt.f32.partialorder %v3898_v41, 0.0 }
 0x86b   : > { %v5812_v40 = vpop.permute.xlu1 %5811 }
 0x86c   : > { %vm3967_vm9 = vcmp.gt.f32.partialorder %v3901_v35, 0.0  ;;  %v4031_v5 = vmul.f32 0.1, %v3901_v35  ;;  %5305 = vmatmul.mubr.bf16.gmra.mrb[156].mxu0 %v10323_v26  ;;  %6611 = vmatmul.mubr.bf16.gmra.mrb[24].mxu1 %v10320_v15  ;;  %v4094_v63 = vsel %vm3966_vm8, %v3898_v41, %v4030_v19  ;;  %v10340_v15 = vld [vmem:[#allocation6 + $0x1d4] ss:$8 sps:$4 sm:$0xff]  }
 0x86d   : > { %5312 = vmatprep.mubr.bf16.mxu0 %v10324_v29  ;;  %6618 = vmatprep.mubr.bf16.mxu1 %v10328_v33 }
 0x86e   : > { %v4095_v10 = vsel %vm3967_vm9, %v3901_v35, %v4031_v5 }
 0x86f   : > { %v4127_v52 = vpack.c.bf16 %v4095_v10, %v4094_v63  ;;  %v6404_v9 = vpop.f32.mrb[176].mxu1 }
 0x870   : > { %v6405_v44 = vadd.f32 %v6404_v9, %v13343_v49  ;;  %v6406_v1 = vpop.f32.mrb[177].mxu1 }
 0x871   : > { %5472 = vmatpush1.bf16.msra.mxu0 %v4127_v52  ;;  %v6407_v27 = vpop.f32.mrb[178].mxu1  ;;  %v10341_v52 = vld [vmem:[#allocation4 + $0x240] ss:$16 sps:$4 sm:$0xff]  }
 0x872   : > { %vm6659_vm10 = vcmp.gt.f32.partialorder %v6405_v44, 0.0  ;;  %v6723_v51 = vmul.f32 0.1, %v6405_v44  ;;  %v6408_v61 = vadd.f32 %v6407_v27, %v5800_v12  ;;  %v6409_v55 = vpop.f32.mrb[179].mxu1  ;;  %8196 = vmatprep.subr.bf16.mxu0 %v14475_v3  ;;  %v10338_v12 = vld [vmem:[#allocation6 + $0x1d0] ss:$8 sps:$4 sm:$0xff]  }
 0x874   : > { %5313 = vmatmul.mubr.bf16.gmra.mrb[160].mxu0 %v10329_v25  ;;  %6619 = vmatmul.mubr.bf16.gmra.mrb[28].mxu1 %v10326_v62  ;;  %v6787_v54 = vsel %vm6659_vm10, %v6405_v44, %v6723_v51  ;;  %vm6660_vm11 = vcmp.gt.f32.partialorder %v6408_v61, 0.0  ;;  %v6724_v11 = vmul.f32 0.1, %v6408_v61  ;;  %v10342_v25 = vld [vmem:[#allocation4 + $0x264] ss:$16 sps:$4 sm:$0xff]  }
 0x875   : > { %5320 = vmatprep.mubr.bf16.mxu0 %v10330_v2  ;;  %6626 = vmatprep.mubr.bf16.mxu1 %v10334_v8 }
 0x876   : > { %v6788_v49 = vsel %vm6660_vm11, %v6408_v61, %v6724_v11  ;;  %v5820_v61 = vpop.permute.xlu1 %5819 }
 0x877   : > { %v6851_v39 = vpack.c.bf16 %v6788_v49, %v6787_v54  ;;  %v6412_v34 = vpop.f32.mrb[180].mxu1  ;;  %v10347_v49 = vld [vmem:[#allocation4 + $0x260] ss:$16 sps:$4 sm:$0xff]  }
 0x878   : > { %v6413_v46 = vadd.f32 %v6412_v34, %v5804_v32  ;;  %v6414_v41 = vpop.f32.mrb[181].mxu1  ;;  %v10344_v32 = vld [vmem:[#allocation6 + $0x1e0] ss:$8 sps:$4 sm:$0xff]  }
 0x879   : > { %v6415_v26 = vpop.f32.mrb[182].mxu1  ;;  %7908 = vmatpush1.bf16.msra.mxu1 %v6851_v39 }
 0x87a   : > { %vm6661_vm12 = vcmp.gt.f32.partialorder %v6413_v46, 0.0  ;;  %v6725_v60 = vmul.f32 0.1, %v6413_v46  ;;  %v6416_v29 = vadd.f32 %v6415_v26, %v13359_v28  ;;  %v6417_v33 = vpop.f32.mrb[183].mxu1  ;;  %7909 = vmatprep.subr.bf16.mxu1 %v14475_v3  ;;  %v10346_v28 = vld [vmem:[#allocation6 + $0x1e4] ss:$8 sps:$4 sm:$0xff]  }
 0x87c   : > { %5321 = vmatmul.mubr.bf16.gmra.mrb[164].mxu0 %v10335_v53  ;;  %6627 = vmatmul.mubr.bf16.gmra.mrb[32].mxu1 %v10332_v14  ;;  %v6789_v19 = vsel %vm6661_vm12, %v6413_v46, %v6725_v60  ;;  %vm6662_vm13 = vcmp.gt.f32.partialorder %v6416_v29, 0.0  ;;  %v6726_v35 = vmul.f32 0.1, %v6416_v29  ;;  %v10348_v14 = vld [vmem:[#allocation4 + $0x284] ss:$16 sps:$4 sm:$0xff]   ;;  %v5828_v60 = vpop.permute.xlu1 %5827 }
 0x87d   : > { %5328 = vmatprep.mubr.bf16.mxu0 %v10336_v37  ;;  %6634 = vmatprep.mubr.bf16.mxu1 %v10340_v15 }
 0x87e   : > { %v6790_v5 = vsel %vm6662_vm13, %v6416_v29, %v6726_v35  ;;  %v10350_v35 = vld [vmem:[#allocation6 + $0x1f0] ss:$8 sps:$4 sm:$0xff]  }
 0x87f   : > { %v6852_v63 = vpack.c.bf16 %v6790_v5, %v6789_v19  ;;  %v6420_v10 = vpop.f32.mrb[184].mxu1 }
 0x880   : > { %v6421_v9 = vadd.f32 %v6420_v10, %v5812_v40  ;;  %v6422_v62 = vpop.f32.mrb[185].mxu1  ;;  %v10353_v40 = vld [vmem:[#allocation4 + $0x280] ss:$16 sps:$4 sm:$0xff]   ;;  %v10354_v10 = vld [vmem:[#allocation4 + $0x2a4] ss:$16 sps:$4 sm:$0xff]  }
 0x881   : > { %v6423_v44 = vpop.f32.mrb[186].mxu1  ;;  %7910 = vmatpush1.bf16.msra.mxu1 %v6852_v63 }
 0x882   : > { %vm6663_vm14 = vcmp.gt.f32.partialorder %v6421_v9, 0.0  ;;  %v6727_v1 = vmul.f32 0.1, %v6421_v9  ;;  %v6424_v2 = vadd.f32 %v6423_v44, %v13373_v0  ;;  %v6425_v8 = vpop.f32.mrb[187].mxu1  ;;  %7911 = vmatprep.subr.bf16.mxu1 %v14475_v3  ;;  %v10352_v0 = vld [vmem:[#allocation6 + $0x1f4] ss:$8 sps:$4 sm:$0xff]   ;;  %v5836_v44 = vpop.permute.xlu1 %5835 }
 0x884   : > { %5329 = vmatmul.mubr.bf16.gmra.mrb[168].mxu0 %v10341_v52  ;;  %6635 = vmatmul.mubr.bf16.gmra.mrb[36].mxu1 %v10338_v12  ;;  %v6791_v27 = vsel %vm6663_vm14, %v6421_v9, %v6727_v1  ;;  %vm6664_vm15 = vcmp.gt.f32.partialorder %v6424_v2, 0.0  ;;  %v6728_v51 = vmul.f32 0.1, %v6424_v2  ;;  %v10392_v12 = vld [vmem:[#allocation7 + $0x4] ss:$16 sps:$4 sm:$0xff]  }
 0x885   : > { %5336 = vmatprep.mubr.bf16.mxu0 %v10342_v25  ;;  %6642 = vmatprep.mubr.bf16.mxu1 %v10346_v28 }
 0x886   : > { %v6792_v55 = vsel %vm6664_vm15, %v6424_v2, %v6728_v51 }
 0x887   : > { %v6853_v54 = vpack.c.bf16 %v6792_v55, %v6791_v27  ;;  %v6428_v11 = vpop.f32.mrb[188].mxu1  ;;  %v10356_v27 = vld [vmem:[#allocation4 + $0x2a0] ss:$16 sps:$4 sm:$0xff]   ;;  %v10357_v55 = vld [vmem:[#allocation4 + $0x2c4] ss:$16 sps:$4 sm:$0xff]  }
 0x888   : > { %v6429_v39 = vadd.f32 %v6428_v11, %v5820_v61  ;;  %v6430_v34 = vpop.f32.mrb[189].mxu1 }
 0x889   : > { %v6431_v53 = vpop.f32.mrb[190].mxu1  ;;  %7912 = vmatpush1.bf16.msra.mxu1 %v6853_v54  ;;  %v5844_v34 = vpop.permute.xlu1 %5843 }
 0x88a   : > { %vm6665_vm0 = vcmp.gt.f32.partialorder %v6429_v39, 0.0  ;;  %v6729_v46 = vmul.f32 0.1, %v6429_v39  ;;  %v6432_v41 = vadd.f32 %v6431_v53, %v13385_v23  ;;  %v6433_v37 = vpop.f32.mrb[191].mxu1  ;;  %7913 = vmatprep.subr.bf16.mxu1 %v14475_v3 }
 0x88c   : > { %5337 = vmatmul.mubr.bf16.gmra.mrb[172].mxu0 %v10347_v49  ;;  %6643 = vmatmul.mubr.bf16.gmra.mrb[40].mxu1 %v10344_v32  ;;  %v6793_v15 = vsel %vm6665_vm0, %v6429_v39, %v6729_v46  ;;  %vm6666_vm2 = vcmp.gt.f32.partialorder %v6432_v41, 0.0  ;;  %v6730_v26 = vmul.f32 0.1, %v6432_v41  ;;  %v10359_v46 = vld [vmem:[#allocation4 + $0x2c0] ss:$16 sps:$4 sm:$0xff]  }
 0x88d   : > { %5344 = vmatprep.mubr.bf16.mxu0 %v10348_v14  ;;  %6650 = vmatprep.mubr.bf16.mxu1 %v10352_v0 }
 0x88e   : > { %v6794_v29 = vsel %vm6666_vm2, %v6432_v41, %v6730_v26  ;;  %v10360_v26 = vld [vmem:[#allocation4 + $0x2e4] ss:$16 sps:$4 sm:$0xff]  }
 0x88f   : > { %v6854_v33 = vpack.c.bf16 %v6794_v29, %v6793_v15  ;;  %v6436_v19 = vpop.f32.mrb[192].mxu1 }
 0x890   : > { %v6437_v5 = vadd.f32 %v6436_v19, %v5828_v60  ;;  %v6438_v63 = vpop.f32.mrb[193].mxu1 }
 0x891   : > { %v6439_v23 = vpop.f32.mrb[194].mxu1  ;;  %7914 = vmatpush1.bf16.msra.mxu1 %v6854_v33 }
 0x892   : > { %vm6667_vm3 = vcmp.gt.f32.partialorder %v6437_v5, 0.0  ;;  %v6731_v52 = vmul.f32 0.1, %v6437_v5  ;;  %v6440_v9 = vadd.f32 %v6439_v23, %v13401_v59  ;;  %v6441_v62 = vpop.f32.mrb[195].mxu1  ;;  %7915 = vmatprep.subr.bf16.mxu1 %v14475_v3 }
 0x894   : > { %5345 = vmatmul.mubr.bf16.gmra.mrb[176].mxu0 %v10353_v40  ;;  %6651 = vmatmul.mubr.bf16.gmra.mrb[44].mxu1 %v10350_v35  ;;  %v6795_v25 = vsel %vm6667_vm3, %v6437_v5, %v6731_v52  ;;  %vm6668_vm4 = vcmp.gt.f32.partialorder %v6440_v9, 0.0  ;;  %v6732_v28 = vmul.f32 0.1, %v6440_v9  ;;  %v5852_v35 = vpop.permute.xlu1 %5851 }
 0x895   : > { %5352 = vmatprep.mubr.bf16.mxu0 %v10354_v10  ;;  %7939 = vmatprep.mubr.bf16.mxu1 %v10392_v12  ;;  %v10362_v12 = vld [vmem:[#allocation4 + $0x2e0] ss:$16 sps:$4 sm:$0xff]  }
 0x896   : > { %v6796_v1 = vsel %vm6668_vm4, %v6440_v9, %v6732_v28  ;;  %v10363_v9 = vld [vmem:[#allocation4 + $0x304] ss:$16 sps:$4 sm:$0xff]  }
 0x897   : > { %v6855_v2 = vpack.c.bf16 %v6796_v1, %v6795_v25  ;;  %v6444_v8 = vpop.f32.mrb[196].mxu1 }
 0x898   : > { %v6445_v51 = vadd.f32 %v6444_v8, %v5836_v44  ;;  %v6446_v61 = vpop.f32.mrb[197].mxu1  ;;  %v5860_v1 = vpop.permute.xlu1 %5859 }
 0x899   : > { %v6447_v54 = vpop.f32.mrb[198].mxu1  ;;  %7916 = vmatpush1.bf16.msra.mxu1 %v6855_v2 }
 0x89a   : > { %vm6669_vm5 = vcmp.gt.f32.partialorder %v6445_v51, 0.0  ;;  %v6733_v59 = vmul.f32 0.1, %v6445_v51  ;;  %v6448_v11 = vadd.f32 %v6447_v54, %v13409_v56  ;;  %v6449_v32 = vpop.f32.mrb[199].mxu1  ;;  %7917 = vmatprep.subr.bf16.mxu1 %v14475_v3 }
 0x89c   : > { %5353 = vmatmul.mubr.bf16.gmra.mrb[180].mxu0 %v10356_v27  ;;  %v6797_v49 = vsel %vm6669_vm5, %v6445_v51, %v6733_v59  ;;  %vm6670_vm6 = vcmp.gt.f32.partialorder %v6448_v11, 0.0  ;;  %v6734_v39 = vmul.f32 0.1, %v6448_v11  ;;  %v10366_v59 = vld [vmem:[#allocation4 + $0x324] ss:$16 sps:$4 sm:$0xff]  }
 0x89d   : > { %5360 = vmatprep.mubr.bf16.mxu0 %v10357_v55  ;;  %v10365_v55 = vld [vmem:[#allocation4 + $0x300] ss:$16 sps:$4 sm:$0xff]  }
 0x89e   : > { %v6798_v14 = vsel %vm6670_vm6, %v6448_v11, %v6734_v39 }
 0x89f   : > { %v6856_v0 = vpack.c.bf16 %v6798_v14, %v6797_v49  ;;  %v6452_v53 = vpop.f32.mrb[200].mxu1 }
 0x8a0   : > { %v6453_v41 = vadd.f32 %v6452_v53, %v5844_v34  ;;  %v6454_v37 = vpop.f32.mrb[201].mxu1  ;;  %v5868_v34 = vpop.permute.xlu1 %5867 }
 0x8a1   : > { %v6455_v15 = vpop.f32.mrb[202].mxu1  ;;  %7918 = vmatpush1.bf16.msra.mxu1 %v6856_v0  ;;  %v10368_v37 = vld [vmem:[#allocation4 + $0x320] ss:$16 sps:$4 sm:$0xff]  }
 0x8a2   : > { %vm6671_vm7 = vcmp.gt.f32.partialorder %v6453_v41, 0.0  ;;  %v6735_v56 = vmul.f32 0.1, %v6453_v41  ;;  %v6456_v60 = vadd.f32 %v6455_v15, %v13418_v21  ;;  %v6457_v29 = vpop.f32.mrb[203].mxu1  ;;  %7919 = vmatprep.subr.bf16.mxu1 %v14475_v3 }
 0x8a4   : > { %5361 = vmatmul.mubr.bf16.gmra.mrb[184].mxu0 %v10359_v46  ;;  %v6799_v33 = vsel %vm6671_vm7, %v6453_v41, %v6735_v56  ;;  %vm6672_vm8 = vcmp.gt.f32.partialorder %v6456_v60, 0.0  ;;  %v6736_v19 = vmul.f32 0.1, %v6456_v60 }
 0x8a5   : > { %5368 = vmatprep.mubr.bf16.mxu0 %v10360_v26  ;;  %v10369_v26 = vld [vmem:[#allocation4 + $0x344] ss:$16 sps:$4 sm:$0xff]  }
 0x8a6   : > { %v6800_v40 = vsel %vm6672_vm8, %v6456_v60, %v6736_v19  ;;  %v5876_v19 = vpop.permute.xlu1 %5875 }
 0x8a7   : > { %v6857_v5 = vpack.c.bf16 %v6800_v40, %v6799_v33  ;;  %v6460_v63 = vpop.f32.mrb[204].mxu1 }
 0x8a8   : > { %v6461_v10 = vadd.f32 %v6460_v63, %v5852_v35  ;;  %v6462_v23 = vpop.f32.mrb[205].mxu1 }
 0x8a9   : > { %v6463_v52 = vpop.f32.mrb[206].mxu1  ;;  %7920 = vmatpush1.bf16.msra.mxu1 %v6857_v5  ;;  %v10371_v23 = vld [vmem:[#allocation4 + $0x340] ss:$16 sps:$4 sm:$0xff]  }
 0x8aa   : > { %vm6673_vm9 = vcmp.gt.f32.partialorder %v6461_v10, 0.0  ;;  %v6737_v21 = vmul.f32 0.1, %v6461_v10  ;;  %v6464_v62 = vadd.f32 %v6463_v52, %v13425_v58  ;;  %v6465_v25 = vpop.f32.mrb[207].mxu1  ;;  %7921 = vmatprep.subr.bf16.mxu1 %v14475_v3  ;;  %v10372_v52 = vld [vmem:[#allocation4 + $0x364] ss:$16 sps:$4 sm:$0xff]  }
 0x8ac   : > { %v6801_v28 = vsel %vm6673_vm9, %v6461_v10, %v6737_v21  ;;  %vm6674_vm10 = vcmp.gt.f32.partialorder %v6464_v62, 0.0  ;;  %v6738_v44 = vmul.f32 0.1, %v6464_v62  ;;  %5369 = vmatmul.mubr.bf16.gmra.mrb[188].mxu0 %v10362_v12 }
 0x8ad   : > { %5376 = vmatprep.mubr.bf16.mxu0 %v10363_v9 }
 0x8ae   : > { %v6802_v2 = vsel %vm6674_vm10, %v6464_v62, %v6738_v44 }
 0x8af   : > { %v6858_v8 = vpack.c.bf16 %v6802_v2, %v6801_v28  ;;  %v6468_v27 = vpop.f32.mrb[208].mxu1  ;;  %v5884_v28 = vpop.permute.xlu1 %5883 }
 0x8b0   : > { %v6469_v51 = vadd.f32 %v6468_v27, %v5860_v1  ;;  %v6470_v61 = vpop.f32.mrb[209].mxu1 }
 0x8b1   : > { %v6471_v54 = vpop.f32.mrb[210].mxu1  ;;  %7922 = vmatpush1.bf16.msra.mxu1 %v6858_v8 }
 0x8b2   : > { %vm6675_vm11 = vcmp.gt.f32.partialorder %v6469_v51, 0.0  ;;  %v6739_v58 = vmul.f32 0.1, %v6469_v51  ;;  %v6472_v11 = vadd.f32 %v6471_v54, %v13436_v31  ;;  %v6473_v32 = vpop.f32.mrb[211].mxu1  ;;  %7923 = vmatprep.subr.bf16.mxu1 %v14475_v3 }
 0x8b3   : > { %v5892_v32 = vpop.permute.xlu1 %5891 }
 0x8b4   : > { %v6803_v49 = vsel %vm6675_vm11, %v6469_v51, %v6739_v58  ;;  %vm6676_vm12 = vcmp.gt.f32.partialorder %v6472_v11, 0.0  ;;  %v6740_v39 = vmul.f32 0.1, %v6472_v11  ;;  %5377 = vmatmul.mubr.bf16.gmra.mrb[192].mxu0 %v10365_v55  ;;  %v10374_v51 = vld [vmem:[#allocation4 + $0x360] ss:$16 sps:$4 sm:$0xff]  }
 0x8b5   : > { %5384 = vmatprep.mubr.bf16.mxu0 %v10366_v59  ;;  %v10375_v55 = vld [vmem:[#allocation4 + $0x384] ss:$16 sps:$4 sm:$0xff]  }
 0x8b6   : > { %v6804_v14 = vsel %vm6676_vm12, %v6472_v11, %v6740_v39 }
 0x8b7   : > { %v6859_v0 = vpack.c.bf16 %v6804_v14, %v6803_v49  ;;  %v6476_v53 = vpop.f32.mrb[212].mxu1 }
 0x8b8   : > { %v6477_v46 = vadd.f32 %v6476_v53, %v5868_v34  ;;  %v6478_v41 = vpop.f32.mrb[213].mxu1  ;;  %v10377_v53 = vld [vmem:[#allocation4 + $0x380] ss:$16 sps:$4 sm:$0xff]  }
 0x8b9   : > { %v6479_v15 = vpop.f32.mrb[214].mxu1  ;;  %7924 = vmatpush1.bf16.msra.mxu1 %v6859_v0  ;;  %v10378_v41 = vld [vmem:[#allocation4 + $0x3a4] ss:$16 sps:$4 sm:$0xff]  }
 0x8ba   : > { %vm6677_vm13 = vcmp.gt.f32.partialorder %v6477_v46, 0.0  ;;  %v6741_v31 = vmul.f32 0.1, %v6477_v46  ;;  %v6480_v56 = vadd.f32 %v6479_v15, %v13444_v36  ;;  %v6481_v60 = vpop.f32.mrb[215].mxu1  ;;  %7925 = vmatprep.subr.bf16.mxu1 %v14475_v3 }
 0x8bc   : > { %v6805_v29 = vsel %vm6677_vm13, %v6477_v46, %v6741_v31  ;;  %vm6678_vm14 = vcmp.gt.f32.partialorder %v6480_v56, 0.0  ;;  %v6742_v33 = vmul.f32 0.1, %v6480_v56  ;;  %5385 = vmatmul.mubr.bf16.gmra.mrb[196].mxu0 %v10368_v37 }
 0x8bd   : > { %5392 = vmatprep.mubr.bf16.mxu0 %v10369_v26 }
 0x8be   : > { %v6806_v35 = vsel %vm6678_vm14, %v6480_v56, %v6742_v33  ;;  %v5900_v56 = vpop.permute.xlu1 %5899 }
 0x8bf   : > { %v6860_v40 = vpack.c.bf16 %v6806_v35, %v6805_v29  ;;  %v6484_v5 = vpop.f32.mrb[216].mxu1 }
 0x8c0   : > { %v6485_v63 = vadd.f32 %v6484_v5, %v5876_v19  ;;  %v6486_v10 = vpop.f32.mrb[217].mxu1 }
 0x8c1   : > { %v6487_v12 = vpop.f32.mrb[218].mxu1  ;;  %7926 = vmatpush1.bf16.msra.mxu1 %v6860_v40  ;;  %v10380_v40 = vld [vmem:[#allocation4 + $0x3a0] ss:$16 sps:$4 sm:$0xff]  }
 0x8c2   : > { %vm6679_vm15 = vcmp.gt.f32.partialorder %v6485_v63, 0.0  ;;  %v6743_v36 = vmul.f32 0.1, %v6485_v63  ;;  %v6488_v9 = vadd.f32 %v6487_v12, %v13453_v7  ;;  %v6489_v21 = vpop.f32.mrb[219].mxu1  ;;  %7927 = vmatprep.subr.bf16.mxu1 %v14475_v3 }
 0x8c3   : > { %v5912_v21 = vpop.permute.xlu0 %5911 }
 0x8c4   : > { %v6807_v62 = vsel %vm6679_vm15, %v6485_v63, %v6743_v36  ;;  %vm6680_vm0 = vcmp.gt.f32.partialorder %v6488_v9, 0.0  ;;  %v6744_v25 = vmul.f32 0.1, %v6488_v9  ;;  %5393 = vmatmul.mubr.bf16.gmra.mrb[200].mxu0 %v10371_v23  ;;  %v10381_v63 = vld [vmem:[#allocation4 + $0x3c4] ss:$16 sps:$4 sm:$0xff]   ;;  %v5908_v36 = vpop.permute.xlu1 %5907 }
 0x8c5   : > { %5400 = vmatprep.mubr.bf16.mxu0 %v10372_v52 }
 0x8c6   : > { %v6808_v44 = vsel %vm6680_vm0, %v6488_v9, %v6744_v25 }
 0x8c7   : > { %v6861_v1 = vpack.c.bf16 %v6808_v44, %v6807_v62  ;;  %v6492_v2 = vpop.f32.mrb[220].mxu1 }
 0x8c8   : > { %v6493_v8 = vadd.f32 %v6492_v2, %v5884_v28  ;;  %v6494_v27 = vpop.f32.mrb[221].mxu1 }
 0x8c9   : > { %v6495_v61 = vpop.f32.mrb[222].mxu1  ;;  %7928 = vmatpush1.bf16.msra.mxu1 %v6861_v1  ;;  %v10383_v1 = vld [vmem:[#allocation4 + $0x3c0] ss:$16 sps:$4 sm:$0xff]  }
 0x8ca   : > { %vm6681_vm2 = vcmp.gt.f32.partialorder %v6493_v8, 0.0  ;;  %v6745_v7 = vmul.f32 0.1, %v6493_v8  ;;  %v6496_v54 = vadd.f32 %v6495_v61, %v13460_v38  ;;  %v6497_v59 = vpop.f32.mrb[223].mxu1  ;;  %7929 = vmatprep.subr.bf16.mxu1 %v14475_v3 }
 0x8cb   : > { %v5920_v59 = vpop.permute.xlu0 %5919 }
 0x8cc   : > { %v6809_v58 = vsel %vm6681_vm2, %v6493_v8, %v6745_v7  ;;  %vm6682_vm3 = vcmp.gt.f32.partialorder %v6496_v54, 0.0  ;;  %v6746_v11 = vmul.f32 0.1, %v6496_v54  ;;  %5401 = vmatmul.mubr.bf16.gmra.mrb[204].mxu0 %v10374_v51  ;;  %v10384_v8 = vld [vmem:[#allocation4 + $0x3e4] ss:$16 sps:$4 sm:$0xff]   ;;  %v5916_v7 = vpop.permute.xlu1 %5915 }
 0x8cd   : > { %5408 = vmatprep.mubr.bf16.mxu0 %v10375_v55 }
 0x8ce   : > { %v6810_v49 = vsel %vm6682_vm3, %v6496_v54, %v6746_v11 }
 0x8cf   : > { %v6862_v39 = vpack.c.bf16 %v6810_v49, %v6809_v58  ;;  %v6500_v34 = vpop.f32.mrb[224].mxu1 }
 0x8d0   : > { %v6501_v14 = vadd.f32 %v6500_v34, %v5892_v32  ;;  %v6502_v0 = vpop.f32.mrb[225].mxu1 }
 0x8d1   : > { %v6503_v46 = vpop.f32.mrb[226].mxu1  ;;  %7930 = vmatpush1.bf16.msra.mxu1 %v6862_v39  ;;  %v10386_v39 = vld [vmem:[#allocation4 + $0x3e0] ss:$16 sps:$4 sm:$0xff]  }
 0x8d2   : > { %vm6683_vm4 = vcmp.gt.f32.partialorder %v6501_v14, 0.0  ;;  %v6747_v38 = vmul.f32 0.1, %v6501_v14  ;;  %v6504_v37 = vadd.f32 %v6503_v46, %v13471_v20  ;;  %v6505_v15 = vpop.f32.mrb[227].mxu1  ;;  %7931 = vmatprep.subr.bf16.mxu1 %v14475_v3 }
 0x8d3   : > { %v5924_v15 = vpop.permute.xlu1 %5923 }
 0x8d4   : > { %v6811_v26 = vsel %vm6683_vm4, %v6501_v14, %v6747_v38  ;;  %vm6684_vm5 = vcmp.gt.f32.partialorder %v6504_v37, 0.0  ;;  %v6748_v31 = vmul.f32 0.1, %v6504_v37  ;;  %5409 = vmatmul.mubr.bf16.gmra.mrb[208].mxu0 %v10377_v53  ;;  %v10389_v14 = vld [vmem:[#allocation4 + $0xc] ss:$16 sps:$4 sm:$0xff]  }
 0x8d5   : > { %5416 = vmatprep.mubr.bf16.mxu0 %v10378_v41 }
 0x8d6   : > { %v6812_v60 = vsel %vm6684_vm5, %v6504_v37, %v6748_v31 }
 0x8d7   : > { %v6863_v29 = vpack.c.bf16 %v6812_v60, %v6811_v26  ;;  %v6508_v33 = vpop.f32.mrb[228].mxu1 }
 0x8d8   : > { %v6509_v19 = vadd.f32 %v6508_v33, %v5900_v56  ;;  %v6510_v35 = vpop.f32.mrb[229].mxu1  ;;  %v10390_v33 = vld [vmem:[#allocation7] ss:$16 sps:$4 sm:$0xff]  }
 0x8d9   : > { %v6511_v5 = vpop.f32.mrb[230].mxu1  ;;  %7932 = vmatpush1.bf16.msra.mxu1 %v6863_v29  ;;  %v10387_v29 = vld [vmem:[#allocation4 + $0x8] ss:$16 sps:$4 sm:$0xff]  }
 0x8da   : > { %vm6685_vm6 = vcmp.gt.f32.partialorder %v6509_v19, 0.0  ;;  %v6749_v20 = vmul.f32 0.1, %v6509_v19  ;;  %v6512_v10 = vadd.f32 %v6511_v5, %v13479_v57  ;;  %v6513_v23 = vpop.f32.mrb[231].mxu1  ;;  %7933 = vmatprep.subr.bf16.mxu1 %v14475_v3  ;;  %v10422_v5 = vld [vmem:[#allocation7 + $0x24] ss:$16 sps:$4 sm:$0xff]  }
 0x8dc   : > { %v6813_v12 = vsel %vm6685_vm6, %v6509_v19, %v6749_v20  ;;  %vm6686_vm7 = vcmp.gt.f32.partialorder %v6512_v10, 0.0  ;;  %v6750_v52 = vmul.f32 0.1, %v6512_v10  ;;  %5417 = vmatmul.mubr.bf16.gmra.mrb[212].mxu0 %v10380_v40  ;;  %v5928_v19 = vpop.permute.xlu0 %5927  ;;  %v10393_v40 = vld [vmem:[#allocation4 + $0x2c] ss:$16 sps:$4 sm:$0xff]  }
 0x8dd   : > { %5424 = vmatprep.mubr.bf16.mxu0 %v10381_v63 }
 0x8de   : > { %v6814_v9 = vsel %vm6686_vm7, %v6512_v10, %v6750_v52 }
 0x8df   : > { %v6864_v62 = vpack.c.bf16 %v6814_v9, %v6813_v12  ;;  %v6516_v25 = vpop.f32.mrb[232].mxu1 }
 0x8e0   : > { %v6517_v28 = vadd.f32 %v6516_v25, %v5908_v36  ;;  %v6518_v44 = vpop.f32.mrb[233].mxu1  ;;  %v5932_v36 = vpop.permute.xlu1 %5931 }
 0x8e1   : > { %v6519_v2 = vpop.f32.mrb[234].mxu1  ;;  %7934 = vmatpush1.bf16.msra.mxu1 %v6864_v62  ;;  %v10420_v44 = vld [vmem:[#allocation7 + $0x20] ss:$16 sps:$4 sm:$0xff]  }
 0x8e2   : > { %vm6687_vm8 = vcmp.gt.f32.partialorder %v6517_v28, 0.0  ;;  %v6751_v57 = vmul.f32 0.1, %v6517_v28  ;;  %v6520_v27 = vadd.f32 %v6519_v2, %v5912_v21  ;;  %v6521_v51 = vpop.f32.mrb[235].mxu1  ;;  %7935 = vmatprep.subr.bf16.mxu1 %v14475_v3 }
 0x8e4   : > { %v6815_v61 = vsel %vm6687_vm8, %v6517_v28, %v6751_v57  ;;  %vm6688_vm9 = vcmp.gt.f32.partialorder %v6520_v27, 0.0  ;;  %v6752_v55 = vmul.f32 0.1, %v6520_v27  ;;  %5425 = vmatmul.mubr.bf16.gmra.mrb[216].mxu0 %v10383_v1  ;;  %v10395_v28 = vld [vmem:[#allocation4 + $0x28] ss:$16 sps:$4 sm:$0xff]   ;;  %v5936_v1 = vpop.permute.xlu0 %5935 }
 0x8e5   : > { %5432 = vmatprep.mubr.bf16.mxu0 %v10384_v8  ;;  %v10396_v8 = vld [vmem:[#allocation4 + $0x4c] ss:$16 sps:$4 sm:$0xff]   ;;  %v10428_v57 = vld [vmem:[#allocation7 + $0x44] ss:$16 sps:$4 sm:$0xff]  }
 0x8e6   : > { %v6816_v54 = vsel %vm6688_vm9, %v6520_v27, %v6752_v55 }
 0x8e7   : > { %v6865_v58 = vpack.c.bf16 %v6816_v54, %v6815_v61  ;;  %v6524_v11 = vpop.f32.mrb[236].mxu1 }
 0x8e8   : > { %v6525_v32 = vadd.f32 %v6524_v11, %v5916_v7  ;;  %v6526_v49 = vpop.f32.mrb[237].mxu1 }
 0x8e9   : > { %v6527_v34 = vpop.f32.mrb[238].mxu1  ;;  %7936 = vmatpush1.bf16.msra.mxu1 %v6865_v58 }
 0x8ea   : > { %vm6689_vm10 = vcmp.gt.f32.partialorder %v6525_v32, 0.0  ;;  %v6753_v0 = vmul.f32 0.1, %v6525_v32  ;;  %v6528_v53 = vadd.f32 %v6527_v34, %v5920_v59  ;;  %v6529_v46 = vpop.f32.mrb[239].mxu1  ;;  %7937 = vmatprep.subr.bf16.mxu1 %v14475_v3  ;;  %v5940_v59 = vpop.permute.xlu1 %5939  ;;  %v10426_v34 = vld [vmem:[#allocation7 + $0x40] ss:$16 sps:$4 sm:$0xff]  }
 0x8eb   : > { %v10434_v46 = vld [vmem:[#allocation7 + $0x64] ss:$16 sps:$4 sm:$0xff]  }
 0x8ec   : > { %v6817_v41 = vsel %vm6689_vm10, %v6525_v32, %v6753_v0  ;;  %vm6690_vm11 = vcmp.gt.f32.partialorder %v6528_v53, 0.0  ;;  %v6754_v38 = vmul.f32 0.1, %v6528_v53  ;;  %5433 = vmatmul.mubr.bf16.gmra.mrb[220].mxu0 %v10386_v39  ;;  %v10398_v39 = vld [vmem:[#allocation4 + $0x48] ss:$16 sps:$4 sm:$0xff]  }
 0x8ed   : > { %5473 = vmatprep.mubr.bf16.mxu0 %v10389_v14  ;;  %v5944_v14 = vpop.permute.xlu0 %5943 }
 0x8ee   : > { %v6818_v37 = vsel %vm6690_vm11, %v6528_v53, %v6754_v38  ;;  %v10399_v53 = vld [vmem:[#allocation4 + $0x6c] ss:$16 sps:$4 sm:$0xff]  }
 0x8ef   : > { %v6866_v26 = vpack.c.bf16 %v6818_v37, %v6817_v41  ;;  %v6532_v31 = vpop.f32.mrb[240].mxu1 }
 0x8f0   : > { %v6533_v56 = vadd.f32 %v6532_v31, %v5924_v15  ;;  %v6534_v60 = vpop.f32.mrb[241].mxu1 }
 0x8f1   : > { %v6535_v35 = vpop.f32.mrb[242].mxu1  ;;  %7938 = vmatpush1.bf16.msra.mxu1 %v6866_v26 }
 0x8f2   : > { %vm6691_vm12 = vcmp.gt.f32.partialorder %v6533_v56, 0.0  ;;  %v6755_v63 = vmul.f32 0.1, %v6533_v56  ;;  %v6536_v20 = vadd.f32 %v6535_v35, %v5928_v19  ;;  %v6537_v10 = vpop.f32.mrb[243].mxu1  ;;  %9540 = vmatprep.subr.bf16.mxu1 %v14475_v3  ;;  %v10401_v35 = vld [vmem:[#allocation4 + $0x68] ss:$16 sps:$4 sm:$0xff]  }
 0x8f3   : > { %v10440_v10 = vld [vmem:[#allocation7 + $0x84] ss:$16 sps:$4 sm:$0xff]  }
 0x8f4   : > { %v6819_v23 = vsel %vm6691_vm12, %v6533_v56, %v6755_v63  ;;  %vm6692_vm13 = vcmp.gt.f32.partialorder %v6536_v20, 0.0  ;;  %v6756_v12 = vmul.f32 0.1, %v6536_v20  ;;  %5474 = vmatmul.mubr.bf16.vlgmr.msra.gmra.mrb[96].mxu0 %v10387_v29  ;;  %7940 = vmatmul.mubr.bf16.vlgmr.msra.gmra.mrb[48].mxu1 %v10390_v33  ;;  %v5948_v56 = vpop.permute.xlu1 %5947 }
 0x8f5   : > { %5481 = vmatprep.mubr.bf16.mxu0 %v10393_v40  ;;  %7947 = vmatprep.mubr.bf16.mxu1 %v10422_v5  ;;  %v10432_v40 = vld [vmem:[#allocation7 + $0x60] ss:$16 sps:$4 sm:$0xff]   ;;  %v5952_v5 = vpop.permute.xlu0 %5951 }
 0x8f6   : > { %v6820_v52 = vsel %vm6692_vm13, %v6536_v20, %v6756_v12  ;;  %v10402_v20 = vld [vmem:[#allocation4 + $0x8c] ss:$16 sps:$4 sm:$0xff]  }
 0x8f7   : > { %v6867_v9 = vpack.c.bf16 %v6820_v52, %v6819_v23  ;;  %v6540_v21 = vpop.f32.mrb[244].mxu1 }
 0x8f8   : > { %v6541_v62 = vadd.f32 %v6540_v21, %v5932_v36  ;;  %v6542_v25 = vpop.f32.mrb[245].mxu1 }
 0x8f9   : > { %v6543_v2 = vpop.f32.mrb[246].mxu1  ;;  %8197 = vmatpush1.bf16.msra.mxu0 %v6867_v9  ;;  %9556 = vmatpush1.bf16.msra.mxu1 %v6867_v9 }
 0x8fa   : > { %vm6693_vm14 = vcmp.gt.f32.partialorder %v6541_v62, 0.0  ;;  %v6757_v27 = vmul.f32 0.1, %v6541_v62  ;;  %v6544_v51 = vadd.f32 %v6543_v2, %v5936_v1  ;;  %v6545_v61 = vpop.f32.mrb[247].mxu1  ;;  %8198 = vmatprep.subr.bf16.mxu0 %v14475_v3  ;;  %9541 = vmatprep.subr.bf16.mxu1 %v14475_v3  ;;  %v10404_v2 = vld [vmem:[#allocation4 + $0x88] ss:$16 sps:$4 sm:$0xff]  }
 0x8fb   : > { %v10446_v61 = vld [vmem:[#allocation7 + $0xa4] ss:$16 sps:$4 sm:$0xff]  }
 0x8fc   : > { %v6821_v55 = vsel %vm6693_vm14, %v6541_v62, %v6757_v27  ;;  %vm6694_vm15 = vcmp.gt.f32.partialorder %v6544_v51, 0.0  ;;  %v6758_v7 = vmul.f32 0.1, %v6544_v51  ;;  %5482 = vmatmul.mubr.bf16.gmra.mrb[100].mxu0 %v10395_v28  ;;  %7948 = vmatmul.mubr.bf16.gmra.mrb[52].mxu1 %v10420_v44  ;;  %v5956_v62 = vpop.permute.xlu1 %5955 }
 0x8fd   : > { %5489 = vmatprep.mubr.bf16.mxu0 %v10396_v8  ;;  %7955 = vmatprep.mubr.bf16.mxu1 %v10428_v57  ;;  %v10438_v8 = vld [vmem:[#allocation7 + $0x80] ss:$16 sps:$4 sm:$0xff]   ;;  %v5960_v57 = vpop.permute.xlu0 %5959 }
 0x8fe   : > { %v6822_v54 = vsel %vm6694_vm15, %v6544_v51, %v6758_v7  ;;  %v10405_v51 = vld [vmem:[#allocation4 + $0xac] ss:$16 sps:$4 sm:$0xff]  }
 0x8ff   : > { %v6868_v58 = vpack.c.bf16 %v6822_v54, %v6821_v55  ;;  %v6548_v11 = vpop.f32.mrb[248].mxu1 }
 0x900   : > { %v6549_v32 = vadd.f32 %v6548_v11, %v5940_v59  ;;  %v6550_v49 = vpop.f32.mrb[249].mxu1 }
 0x901   : > { %v6551_v0 = vpop.f32.mrb[250].mxu1  ;;  %8199 = vmatpush1.bf16.msra.mxu0 %v6868_v58  ;;  %9557 = vmatpush1.bf16.msra.mxu1 %v6868_v58 }
 0x902   : > { %vm6695_vm0 = vcmp.gt.f32.partialorder %v6549_v32, 0.0  ;;  %v6759_v41 = vmul.f32 0.1, %v6549_v32  ;;  %v6552_v38 = vadd.f32 %v6551_v0, %v5944_v14  ;;  %v6553_v37 = vpop.f32.mrb[251].mxu1  ;;  %8200 = vmatprep.subr.bf16.mxu0 %v14475_v3  ;;  %9542 = vmatprep.subr.bf16.mxu1 %v14475_v3  ;;  %v10407_v0 = vld [vmem:[#allocation4 + $0xa8] ss:$16 sps:$4 sm:$0xff]  }
 0x903   : > { %v10452_v37 = vld [vmem:[#allocation7 + $0xc4] ss:$16 sps:$4 sm:$0xff]  }
 0x904   : > { %v6823_v15 = vsel %vm6695_vm0, %v6549_v32, %v6759_v41  ;;  %vm6696_vm2 = vcmp.gt.f32.partialorder %v6552_v38, 0.0  ;;  %v6760_v26 = vmul.f32 0.1, %v6552_v38  ;;  %5490 = vmatmul.mubr.bf16.gmra.mrb[104].mxu0 %v10398_v39  ;;  %7956 = vmatmul.mubr.bf16.gmra.mrb[56].mxu1 %v10426_v34  ;;  %v5964_v32 = vpop.permute.xlu1 %5963 }
 0x905   : > { %5497 = vmatprep.mubr.bf16.mxu0 %v10399_v53  ;;  %7963 = vmatprep.mubr.bf16.mxu1 %v10434_v46  ;;  %v10444_v53 = vld [vmem:[#allocation7 + $0xa0] ss:$16 sps:$4 sm:$0xff]   ;;  %v5968_v46 = vpop.permute.xlu0 %5967 }
 0x906   : > { %v6824_v31 = vsel %vm6696_vm2, %v6552_v38, %v6760_v26  ;;  %v10408_v38 = vld [vmem:[#allocation4 + $0xcc] ss:$16 sps:$4 sm:$0xff]  }
 0x907   : > { %v6869_v60 = vpack.c.bf16 %v6824_v31, %v6823_v15  ;;  %v6556_v29 = vpop.f32.mrb[252].mxu1 }
 0x908   : > { %v6557_v33 = vadd.f32 %v6556_v29, %v5948_v56  ;;  %v6558_v19 = vpop.f32.mrb[253].mxu1 }
 0x909   : > { %v6559_v63 = vpop.f32.mrb[254].mxu1  ;;  %8201 = vmatpush1.bf16.msra.mxu0 %v6869_v60  ;;  %9558 = vmatpush1.bf16.msra.mxu1 %v6869_v60 }
 0x90a   : > { %vm6697_vm3 = vcmp.gt.f32.partialorder %v6557_v33, 0.0  ;;  %v6761_v23 = vmul.f32 0.1, %v6557_v33  ;;  %v6560_v12 = vadd.f32 %v6559_v63, %v5952_v5  ;;  %v6561_v52 = vpop.f32.mrb[255].mxu1  ;;  %8202 = vmatprep.subr.bf16.mxu0 %v14475_v3  ;;  %9543 = vmatprep.subr.bf16.mxu1 %v14475_v3  ;;  %v10410_v63 = vld [vmem:[#allocation4 + $0xc8] ss:$16 sps:$4 sm:$0xff]  }
 0x90b   : > { %v10458_v52 = vld [vmem:[#allocation7 + $0xe4] ss:$16 sps:$4 sm:$0xff]  }
 0x90c   : > { %v6825_v36 = vsel %vm6697_vm3, %v6557_v33, %v6761_v23  ;;  %vm6698_vm4 = vcmp.gt.f32.partialorder %v6560_v12, 0.0  ;;  %v6762_v9 = vmul.f32 0.1, %v6560_v12  ;;  %5498 = vmatmul.mubr.bf16.gmra.mrb[108].mxu0 %v10401_v35  ;;  %7964 = vmatmul.mubr.bf16.gmra.mrb[60].mxu1 %v10432_v40  ;;  %v5972_v33 = vpop.permute.xlu1 %5971 }
 0x90d   : > { %5505 = vmatprep.mubr.bf16.mxu0 %v10402_v20  ;;  %7971 = vmatprep.mubr.bf16.mxu1 %v10440_v10  ;;  %v10450_v20 = vld [vmem:[#allocation7 + $0xc0] ss:$16 sps:$4 sm:$0xff]   ;;  %v5976_v10 = vpop.permute.xlu0 %5975 }
 0x90e   : > { %v6826_v21 = vsel %vm6698_vm4, %v6560_v12, %v6762_v9  ;;  %v10411_v12 = vld [vmem:[#allocation4 + $0xec] ss:$16 sps:$4 sm:$0xff]  }
 0x90f   : > { %v6870_v25 = vpack.c.bf16 %v6826_v21, %v6825_v36  ;;  %v6564_v28 = vpop.f32.mrb[0].mxu1 }
 0x910   : > { %v6565_v44 = vadd.f32 %v6564_v28, %v5956_v62  ;;  %v6566_v1 = vpop.f32.mrb[1].mxu1 }
 0x911   : > { %v6567_v27 = vpop.f32.mrb[2].mxu1  ;;  %8203 = vmatpush1.bf16.msra.mxu0 %v6870_v25  ;;  %9559 = vmatpush1.bf16.msra.mxu1 %v6870_v25 }
 0x912   : > { %vm6699_vm5 = vcmp.gt.f32.partialorder %v6565_v44, 0.0  ;;  %v6763_v55 = vmul.f32 0.1, %v6565_v44  ;;  %v6568_v7 = vadd.f32 %v6567_v27, %v5960_v57  ;;  %v6569_v54 = vpop.f32.mrb[3].mxu1  ;;  %8204 = vmatprep.subr.bf16.mxu0 %v14475_v3  ;;  %9544 = vmatprep.subr.bf16.mxu1 %v14475_v3  ;;  %v10413_v27 = vld [vmem:[#allocation4 + $0xe8] ss:$16 sps:$4 sm:$0xff]  }
 0x913   : > { %v10464_v54 = vld [vmem:[#allocation7 + $0x104] ss:$16 sps:$4 sm:$0xff]  }
 0x914   : > { %v6827_v59 = vsel %vm6699_vm5, %v6565_v44, %v6763_v55  ;;  %vm6700_vm6 = vcmp.gt.f32.partialorder %v6568_v7, 0.0  ;;  %v6764_v58 = vmul.f32 0.1, %v6568_v7  ;;  %5506 = vmatmul.mubr.bf16.gmra.mrb[112].mxu0 %v10404_v2  ;;  %7972 = vmatmul.mubr.bf16.gmra.mrb[64].mxu1 %v10438_v8  ;;  %v5980_v44 = vpop.permute.xlu1 %5979 }
 0x915   : > { %5513 = vmatprep.mubr.bf16.mxu0 %v10405_v51  ;;  %7979 = vmatprep.mubr.bf16.mxu1 %v10446_v61  ;;  %v10456_v51 = vld [vmem:[#allocation7 + $0xe0] ss:$16 sps:$4 sm:$0xff]   ;;  %v5984_v61 = vpop.permute.xlu0 %5983 }
 0x916   : > { %v6828_v11 = vsel %vm6700_vm6, %v6568_v7, %v6764_v58  ;;  %v10414_v7 = vld [vmem:[#allocation4 + $0x10c] ss:$16 sps:$4 sm:$0xff]  }
 0x917   : > { %v6871_v49 = vpack.c.bf16 %v6828_v11, %v6827_v59  ;;  %v6572_v39 = vpop.f32.mrb[4].mxu1 }
 0x918   : > { %v6573_v34 = vadd.f32 %v6572_v39, %v5964_v32  ;;  %v6574_v14 = vpop.f32.mrb[5].mxu1 }
 0x919   : > { %v6575_v41 = vpop.f32.mrb[6].mxu1  ;;  %8205 = vmatpush1.bf16.msra.mxu0 %v6871_v49  ;;  %9560 = vmatpush1.bf16.msra.mxu1 %v6871_v49 }
 0x91a   : > { %vm6701_vm7 = vcmp.gt.f32.partialorder %v6573_v34, 0.0  ;;  %v6765_v15 = vmul.f32 0.1, %v6573_v34  ;;  %v6576_v26 = vadd.f32 %v6575_v41, %v5968_v46  ;;  %v6577_v31 = vpop.f32.mrb[7].mxu1  ;;  %8206 = vmatprep.subr.bf16.mxu0 %v14475_v3  ;;  %9545 = vmatprep.subr.bf16.mxu1 %v14475_v3  ;;  %v10416_v41 = vld [vmem:[#allocation4 + $0x108] ss:$16 sps:$4 sm:$0xff]  }
 0x91b   : > { %v10470_v31 = vld [vmem:[#allocation7 + $0x124] ss:$16 sps:$4 sm:$0xff]  }
 0x91c   : > { %v6829_v56 = vsel %vm6701_vm7, %v6573_v34, %v6765_v15  ;;  %vm6702_vm8 = vcmp.gt.f32.partialorder %v6576_v26, 0.0  ;;  %v6766_v60 = vmul.f32 0.1, %v6576_v26  ;;  %5514 = vmatmul.mubr.bf16.gmra.mrb[116].mxu0 %v10407_v0  ;;  %7980 = vmatmul.mubr.bf16.gmra.mrb[68].mxu1 %v10444_v53  ;;  %v5988_v34 = vpop.permute.xlu1 %5987 }
 0x91d   : > { %5521 = vmatprep.mubr.bf16.mxu0 %v10408_v38  ;;  %7987 = vmatprep.mubr.bf16.mxu1 %v10452_v37  ;;  %v10462_v38 = vld [vmem:[#allocation7 + $0x100] ss:$16 sps:$4 sm:$0xff]   ;;  %v5992_v37 = vpop.permute.xlu0 %5991 }
 0x91e   : > { %v6830_v29 = vsel %vm6702_vm8, %v6576_v26, %v6766_v60  ;;  %v10417_v26 = vld [vmem:[#allocation4 + $0x12c] ss:$16 sps:$4 sm:$0xff]  }
 0x91f   : > { %v6872_v19 = vpack.c.bf16 %v6830_v29, %v6829_v56  ;;  %v6580_v35 = vpop.f32.mrb[8].mxu1 }
 0x920   : > { %v6581_v40 = vadd.f32 %v6580_v35, %v5972_v33  ;;  %v6582_v5 = vpop.f32.mrb[9].mxu1 }
 0x921   : > { %v6583_v23 = vpop.f32.mrb[10].mxu1  ;;  %8207 = vmatpush1.bf16.msra.mxu0 %v6872_v19  ;;  %9561 = vmatpush1.bf16.msra.mxu1 %v6872_v19 }
 0x922   : > { %vm6703_vm9 = vcmp.gt.f32.partialorder %v6581_v40, 0.0  ;;  %v6767_v36 = vmul.f32 0.1, %v6581_v40  ;;  %v6584_v9 = vadd.f32 %v6583_v23, %v5976_v10  ;;  %v6585_v21 = vpop.f32.mrb[11].mxu1  ;;  %8208 = vmatprep.subr.bf16.mxu0 %v14475_v3  ;;  %9546 = vmatprep.subr.bf16.mxu1 %v14475_v3  ;;  %v10419_v23 = vld [vmem:[#allocation4 + $0x128] ss:$16 sps:$4 sm:$0xff]  }
 0x923   : > { %v10476_v21 = vld [vmem:[#allocation7 + $0x144] ss:$16 sps:$4 sm:$0xff]  }
 0x924   : > { %v6831_v62 = vsel %vm6703_vm9, %v6581_v40, %v6767_v36  ;;  %vm6704_vm10 = vcmp.gt.f32.partialorder %v6584_v9, 0.0  ;;  %v6768_v25 = vmul.f32 0.1, %v6584_v9  ;;  %5522 = vmatmul.mubr.bf16.gmra.mrb[120].mxu0 %v10410_v63  ;;  %7988 = vmatmul.mubr.bf16.gmra.mrb[72].mxu1 %v10450_v20  ;;  %v5996_v40 = vpop.permute.xlu1 %5995 }
 0x925   : > { %5529 = vmatprep.mubr.bf16.mxu0 %v10411_v12  ;;  %7995 = vmatprep.mubr.bf16.mxu1 %v10458_v52  ;;  %v10468_v12 = vld [vmem:[#allocation7 + $0x120] ss:$16 sps:$4 sm:$0xff]   ;;  %v6000_v52 = vpop.permute.xlu0 %5999 }
 0x926   : > { %v6832_v28 = vsel %vm6704_vm10, %v6584_v9, %v6768_v25  ;;  %v10423_v9 = vld [vmem:[#allocation4 + $0x14c] ss:$16 sps:$4 sm:$0xff]  }
 0x927   : > { %v6873_v1 = vpack.c.bf16 %v6832_v28, %v6831_v62  ;;  %v6588_v2 = vpop.f32.mrb[12].mxu1 }
 0x928   : > { %v6589_v8 = vadd.f32 %v6588_v2, %v5980_v44  ;;  %v6590_v57 = vpop.f32.mrb[13].mxu1 }
 0x929   : > { %v6591_v55 = vpop.f32.mrb[14].mxu1  ;;  %8209 = vmatpush1.bf16.msra.mxu0 %v6873_v1  ;;  %9562 = vmatpush1.bf16.msra.mxu1 %v6873_v1 }
 0x92a   : > { %vm6705_vm11 = vcmp.gt.f32.partialorder %v6589_v8, 0.0  ;;  %v6769_v59 = vmul.f32 0.1, %v6589_v8  ;;  %v6592_v58 = vadd.f32 %v6591_v55, %v5984_v61  ;;  %v6593_v11 = vpop.f32.mrb[15].mxu1  ;;  %8210 = vmatprep.subr.bf16.mxu0 %v14475_v3  ;;  %9547 = vmatprep.subr.bf16.mxu1 %v14475_v3  ;;  %v10425_v55 = vld [vmem:[#allocation4 + $0x148] ss:$16 sps:$4 sm:$0xff]  }
 0x92b   : > { %v10482_v11 = vld [vmem:[#allocation7 + $0x164] ss:$16 sps:$4 sm:$0xff]  }
 0x92c   : > { %v6833_v32 = vsel %vm6705_vm11, %v6589_v8, %v6769_v59  ;;  %vm6706_vm12 = vcmp.gt.f32.partialorder %v6592_v58, 0.0  ;;  %v6770_v49 = vmul.f32 0.1, %v6592_v58  ;;  %5530 = vmatmul.mubr.bf16.gmra.mrb[124].mxu0 %v10413_v27  ;;  %7996 = vmatmul.mubr.bf16.gmra.mrb[76].mxu1 %v10456_v51  ;;  %v6004_v8 = vpop.permute.xlu1 %6003 }
 0x92d   : > { %5537 = vmatprep.mubr.bf16.mxu0 %v10414_v7  ;;  %8003 = vmatprep.mubr.bf16.mxu1 %v10464_v54  ;;  %v10474_v7 = vld [vmem:[#allocation7 + $0x140] ss:$16 sps:$4 sm:$0xff]   ;;  %v6008_v54 = vpop.permute.xlu0 %6007 }
 0x92e   : > { %v6834_v39 = vsel %vm6706_vm12, %v6592_v58, %v6770_v49  ;;  %v10429_v58 = vld [vmem:[#allocation4 + $0x16c] ss:$16 sps:$4 sm:$0xff]  }
 0x92f   : > { %v6874_v14 = vpack.c.bf16 %v6834_v39, %v6833_v32  ;;  %v6596_v0 = vpop.f32.mrb[16].mxu1 }
 0x930   : > { %v6597_v53 = vadd.f32 %v6596_v0, %v5988_v34  ;;  %v6598_v46 = vpop.f32.mrb[17].mxu1 }
 0x931   : > { %v6599_v15 = vpop.f32.mrb[18].mxu1  ;;  %8211 = vmatpush1.bf16.msra.mxu0 %v6874_v14  ;;  %9563 = vmatpush1.bf16.msra.mxu1 %v6874_v14 }
 0x932   : > { %vm6707_vm13 = vcmp.gt.f32.partialorder %v6597_v53, 0.0  ;;  %v6771_v56 = vmul.f32 0.1, %v6597_v53  ;;  %v6600_v60 = vadd.f32 %v6599_v15, %v5992_v37  ;;  %v6601_v29 = vpop.f32.mrb[19].mxu1  ;;  %8212 = vmatprep.subr.bf16.mxu0 %v14475_v3  ;;  %9548 = vmatprep.subr.bf16.mxu1 %v14475_v3  ;;  %v10431_v15 = vld [vmem:[#allocation4 + $0x168] ss:$16 sps:$4 sm:$0xff]  }
 0x933   : > { %v10488_v29 = vld [vmem:[#allocation7 + $0x184] ss:$16 sps:$4 sm:$0xff]  }
 0x934   : > { %v6835_v33 = vsel %vm6707_vm13, %v6597_v53, %v6771_v56  ;;  %vm6708_vm14 = vcmp.gt.f32.partialorder %v6600_v60, 0.0  ;;  %v6772_v19 = vmul.f32 0.1, %v6600_v60  ;;  %5538 = vmatmul.mubr.bf16.gmra.mrb[128].mxu0 %v10416_v41  ;;  %8004 = vmatmul.mubr.bf16.gmra.mrb[80].mxu1 %v10462_v38  ;;  %v6012_v53 = vpop.permute.xlu1 %6011 }
 0x935   : > { %5545 = vmatprep.mubr.bf16.mxu0 %v10417_v26  ;;  %8011 = vmatprep.mubr.bf16.mxu1 %v10470_v31  ;;  %v10480_v26 = vld [vmem:[#allocation7 + $0x160] ss:$16 sps:$4 sm:$0xff]   ;;  %v6016_v31 = vpop.permute.xlu0 %6015 }
 0x936   : > { %v6836_v35 = vsel %vm6708_vm14, %v6600_v60, %v6772_v19  ;;  %v10435_v60 = vld [vmem:[#allocation4 + $0x18c] ss:$16 sps:$4 sm:$0xff]  }
 0x937   : > { %v6875_v5 = vpack.c.bf16 %v6836_v35, %v6835_v33  ;;  %v6604_v63 = vpop.f32.mrb[20].mxu1 }
 0x938   : > { %v6605_v20 = vadd.f32 %v6604_v63, %v5996_v40  ;;  %v6606_v10 = vpop.f32.mrb[21].mxu1 }
 0x939   : > { %v6607_v36 = vpop.f32.mrb[22].mxu1  ;;  %8213 = vmatpush1.bf16.msra.mxu0 %v6875_v5  ;;  %9564 = vmatpush1.bf16.msra.mxu1 %v6875_v5 }
 0x93a   : > { %vm6709_vm15 = vcmp.gt.f32.partialorder %v6605_v20, 0.0  ;;  %v6773_v62 = vmul.f32 0.1, %v6605_v20  ;;  %v6608_v25 = vadd.f32 %v6607_v36, %v6000_v52  ;;  %v6609_v28 = vpop.f32.mrb[23].mxu1  ;;  %8214 = vmatprep.subr.bf16.mxu0 %v14475_v3  ;;  %9549 = vmatprep.subr.bf16.mxu1 %v14475_v3  ;;  %v10437_v36 = vld [vmem:[#allocation4 + $0x188] ss:$16 sps:$4 sm:$0xff]  }
 0x93b   : > { %v10494_v28 = vld [vmem:[#allocation7 + $0x1a4] ss:$16 sps:$4 sm:$0xff]  }
 0x93c   : > { %v6837_v44 = vsel %vm6709_vm15, %v6605_v20, %v6773_v62  ;;  %vm6710_vm0 = vcmp.gt.f32.partialorder %v6608_v25, 0.0  ;;  %v6774_v1 = vmul.f32 0.1, %v6608_v25  ;;  %5546 = vmatmul.mubr.bf16.gmra.mrb[132].mxu0 %v10419_v23  ;;  %8012 = vmatmul.mubr.bf16.gmra.mrb[84].mxu1 %v10468_v12  ;;  %v6020_v20 = vpop.permute.xlu1 %6019 }
 0x93d   : > { %5553 = vmatprep.mubr.bf16.mxu0 %v10423_v9  ;;  %8019 = vmatprep.mubr.bf16.mxu1 %v10476_v21  ;;  %v10486_v9 = vld [vmem:[#allocation7 + $0x180] ss:$16 sps:$4 sm:$0xff]   ;;  %v6024_v21 = vpop.permute.xlu0 %6023 }
 0x93e   : > { %v6838_v2 = vsel %vm6710_vm0, %v6608_v25, %v6774_v1  ;;  %v10441_v25 = vld [vmem:[#allocation4 + $0x1ac] ss:$16 sps:$4 sm:$0xff]  }
 0x93f   : > { %v6876_v57 = vpack.c.bf16 %v6838_v2, %v6837_v44  ;;  %v6612_v27 = vpop.f32.mrb[24].mxu1 }
 0x940   : > { %v6613_v51 = vadd.f32 %v6612_v27, %v6004_v8  ;;  %v6614_v61 = vpop.f32.mrb[25].mxu1 }
 0x941   : > { %v6615_v59 = vpop.f32.mrb[26].mxu1  ;;  %8215 = vmatpush1.bf16.msra.mxu0 %v6876_v57  ;;  %9565 = vmatpush1.bf16.msra.mxu1 %v6876_v57 }
 0x942   : > { %vm6711_vm2 = vcmp.gt.f32.partialorder %v6613_v51, 0.0  ;;  %v6775_v32 = vmul.f32 0.1, %v6613_v51  ;;  %v6616_v49 = vadd.f32 %v6615_v59, %v6008_v54  ;;  %v6617_v39 = vpop.f32.mrb[27].mxu1  ;;  %8216 = vmatprep.subr.bf16.mxu0 %v14475_v3  ;;  %9550 = vmatprep.subr.bf16.mxu1 %v14475_v3  ;;  %v10443_v59 = vld [vmem:[#allocation4 + $0x1a8] ss:$16 sps:$4 sm:$0xff]  }
 0x943   : > { %v10500_v39 = vld [vmem:[#allocation7 + $0x1c4] ss:$16 sps:$4 sm:$0xff]  }
 0x944   : > { %v6839_v34 = vsel %vm6711_vm2, %v6613_v51, %v6775_v32  ;;  %vm6712_vm3 = vcmp.gt.f32.partialorder %v6616_v49, 0.0  ;;  %v6776_v14 = vmul.f32 0.1, %v6616_v49  ;;  %5554 = vmatmul.mubr.bf16.gmra.mrb[136].mxu0 %v10425_v55  ;;  %8020 = vmatmul.mubr.bf16.gmra.mrb[88].mxu1 %v10474_v7  ;;  %v6028_v51 = vpop.permute.xlu1 %6027 }
 0x945   : > { %5561 = vmatprep.mubr.bf16.mxu0 %v10429_v58  ;;  %8027 = vmatprep.mubr.bf16.mxu1 %v10482_v11  ;;  %v10492_v58 = vld [vmem:[#allocation7 + $0x1a0] ss:$16 sps:$4 sm:$0xff]   ;;  %v6032_v11 = vpop.permute.xlu0 %6031 }
 0x946   : > { %v6840_v0 = vsel %vm6712_vm3, %v6616_v49, %v6776_v14  ;;  %v10447_v49 = vld [vmem:[#allocation4 + $0x1cc] ss:$16 sps:$4 sm:$0xff]  }
 0x947   : > { %v6877_v46 = vpack.c.bf16 %v6840_v0, %v6839_v34  ;;  %v6620_v41 = vpop.f32.mrb[28].mxu1 }
 0x948   : > { %v6621_v38 = vadd.f32 %v6620_v41, %v6012_v53  ;;  %v6622_v37 = vpop.f32.mrb[29].mxu1 }
 0x949   : > { %v6623_v56 = vpop.f32.mrb[30].mxu1  ;;  %8217 = vmatpush1.bf16.msra.mxu0 %v6877_v46  ;;  %9566 = vmatpush1.bf16.msra.mxu1 %v6877_v46 }
 0x94a   : > { %vm6713_vm4 = vcmp.gt.f32.partialorder %v6621_v38, 0.0  ;;  %v6777_v33 = vmul.f32 0.1, %v6621_v38  ;;  %v6624_v19 = vadd.f32 %v6623_v56, %v6016_v31  ;;  %v6625_v35 = vpop.f32.mrb[31].mxu1  ;;  %8218 = vmatprep.subr.bf16.mxu0 %v14475_v3  ;;  %9551 = vmatprep.subr.bf16.mxu1 %v14475_v3  ;;  %v10449_v56 = vld [vmem:[#allocation4 + $0x1c8] ss:$16 sps:$4 sm:$0xff]  }
 0x94b   : > { %v10506_v35 = vld [vmem:[#allocation7 + $0x1e4] ss:$16 sps:$4 sm:$0xff]  }
 0x94c   : > { %v6841_v40 = vsel %vm6713_vm4, %v6621_v38, %v6777_v33  ;;  %vm6714_vm5 = vcmp.gt.f32.partialorder %v6624_v19, 0.0  ;;  %v6778_v5 = vmul.f32 0.1, %v6624_v19  ;;  %5562 = vmatmul.mubr.bf16.gmra.mrb[140].mxu0 %v10431_v15  ;;  %8028 = vmatmul.mubr.bf16.gmra.mrb[92].mxu1 %v10480_v26  ;;  %v6036_v38 = vpop.permute.xlu1 %6035 }
 0x94d   : > { %5569 = vmatprep.mubr.bf16.mxu0 %v10435_v60  ;;  %8035 = vmatprep.mubr.bf16.mxu1 %v10488_v29  ;;  %v10498_v60 = vld [vmem:[#allocation7 + $0x1c0] ss:$16 sps:$4 sm:$0xff]   ;;  %v6040_v29 = vpop.permute.xlu0 %6039 }
 0x94e   : > { %v6842_v63 = vsel %vm6714_vm5, %v6624_v19, %v6778_v5  ;;  %v10453_v19 = vld [vmem:[#allocation4 + $0x1ec] ss:$16 sps:$4 sm:$0xff]  }
 0x94f   : > { %v6878_v10 = vpack.c.bf16 %v6842_v63, %v6841_v40  ;;  %v6628_v23 = vpop.f32.mrb[32].mxu1 }
 0x950   : > { %v6629_v12 = vadd.f32 %v6628_v23, %v6020_v20  ;;  %v6630_v52 = vpop.f32.mrb[33].mxu1 }
 0x951   : > { %v6631_v62 = vpop.f32.mrb[34].mxu1  ;;  %8219 = vmatpush1.bf16.msra.mxu0 %v6878_v10  ;;  %9567 = vmatpush1.bf16.msra.mxu1 %v6878_v10  ;;  %v6044_v10 = vpop.permute.xlu1 %6043 }
 0x952   : > { %v6779_v44 = vmul.f32 0.1, %v6629_v12  ;;  %v6632_v1 = vadd.f32 %v6631_v62, %v6024_v21  ;;  %v6633_v2 = vpop.f32.mrb[35].mxu1  ;;  %8220 = vmatprep.subr.bf16.mxu0 %v14475_v3  ;;  %9552 = vmatprep.subr.bf16.mxu1 %v14475_v3  ;;  %vm6715_vm6 = vcmp.gt.f32.partialorder %v6629_v12, 0.0  ;;  %v6048_v52 = vpop.permute.xlu0 %6047  ;;  %v11033_v21 = vmov 5  }
 0x953   : > { %9977 = vset.pattern.permute.xlu1 %v11033_v21  ;;  %9978 = vset.pattern.permute.xlu0 %v11033_v21  ;;  %v10823_v2 = vld [vmem:[%s14392_s8 + $0x8] sm:$0xff]  ;;  %v10837_v21 = vld [vmem:[%s14392_s8 + $0x80] sm:$0xff] }
 0x954   : > { %vm6716_vm7 = vcmp.gt.f32.partialorder %v6632_v1, 0.0  ;;  %v6780_v8 = vmul.f32 0.1, %v6632_v1  ;;  %5570 = vmatmul.mubr.bf16.gmra.mrb[144].mxu0 %v10437_v36  ;;  %8036 = vmatmul.mubr.bf16.gmra.mrb[96].mxu1 %v10486_v9  ;;  %v6843_v57 = vsel %vm6715_vm6, %v6629_v12, %v6779_v44  ;;  %v10504_v44 = vld [vmem:[#allocation7 + $0x1e0] ss:$16 sps:$4 sm:$0xff]  }
 0x955   : > { %5577 = vmatprep.mubr.bf16.mxu0 %v10441_v25  ;;  %8043 = vmatprep.mubr.bf16.mxu1 %v10494_v28  ;;  %v10455_v28 = vld [vmem:[#allocation4 + $0x1e8] ss:$16 sps:$4 sm:$0xff]  }
 0x956   : > { %v6844_v27 = vsel %vm6716_vm7, %v6632_v1, %v6780_v8  ;;  %v10822_v1 = vld [vmem:[%s14392_s8] sm:$0xff]  ;;  %7016 = vperm.xlu0 %9978, %v10823_v2   ;;  %v10838_v2 = vld [vmem:[%s14392_s8 + $0x78] sm:$0xff] }
 0x957   : > { %v6879_v61 = vpack.c.bf16 %v6844_v27, %v6843_v57  ;;  %v6636_v55 = vpop.f32.mrb[36].mxu1  ;;  %7012 = vperm.xlu1 %9977, %v10822_v1   ;;  %v10459_v57 = vld [vmem:[#allocation4 + $0x20c] ss:$16 sps:$4 sm:$0xff]   ;;  %v10512_v27 = vld [vmem:[#allocation7 + $0x204] ss:$16 sps:$4 sm:$0xff]  }
 0x958   : > { %v6637_v7 = vadd.f32 %v6636_v55, %v6028_v51  ;;  %v6638_v54 = vpop.f32.mrb[37].mxu1  ;;  %v10536_v1 = vld [vmem:[#allocation7 + $0x284] ss:$16 sps:$4 sm:$0xff]  }
 0x959   : > { %v6639_v32 = vpop.f32.mrb[38].mxu1  ;;  %8221 = vmatpush1.bf16.msra.mxu0 %v6879_v61  ;;  %9568 = vmatpush1.bf16.msra.mxu1 %v6879_v61 }
 0x95a   : > { %v6781_v34 = vmul.f32 0.1, %v6637_v7  ;;  %v6640_v14 = vadd.f32 %v6639_v32, %v6032_v11  ;;  %v6641_v0 = vpop.f32.mrb[39].mxu1  ;;  %8222 = vmatprep.subr.bf16.mxu0 %v14475_v3  ;;  %9553 = vmatprep.subr.bf16.mxu1 %v14475_v3  ;;  %vm6717_vm8 = vcmp.gt.f32.partialorder %v6637_v7, 0.0  ;;  %v10824_v11 = vld [vmem:[%s14392_s8 + $0x10] sm:$0xff] }
 0x95b   : > { %7020 = vperm.xlu1 %9977, %v10824_v11   ;;  %v10518_v0 = vld [vmem:[#allocation7 + $0x224] ss:$16 sps:$4 sm:$0xff]   ;;  %v10842_v11 = vld [vmem:[%s14392_s8 + $0x98] sm:$0xff] }
 0x95c   : > { %vm6718_vm9 = vcmp.gt.f32.partialorder %v6640_v14, 0.0  ;;  %v6782_v53 = vmul.f32 0.1, %v6640_v14  ;;  %5578 = vmatmul.mubr.bf16.gmra.mrb[148].mxu0 %v10443_v59  ;;  %8044 = vmatmul.mubr.bf16.gmra.mrb[100].mxu1 %v10492_v58  ;;  %v6845_v46 = vsel %vm6717_vm8, %v6637_v7, %v6781_v34  ;;  %v13572_v7 = vpop.permute.xlu0 %4257  ;;  %v10510_v34 = vld [vmem:[#allocation7 + $0x200] ss:$16 sps:$4 sm:$0xff]  }
 0x95d   : > { %5585 = vmatprep.mubr.bf16.mxu0 %v10447_v49  ;;  %8051 = vmatprep.mubr.bf16.mxu1 %v10500_v39  ;;  %v10461_v39 = vld [vmem:[#allocation4 + $0x208] ss:$16 sps:$4 sm:$0xff]  }
 0x95e   : > { %v6846_v41 = vsel %vm6718_vm9, %v6640_v14, %v6782_v53  ;;  %v10465_v14 = vld [vmem:[#allocation4 + $0x22c] ss:$16 sps:$4 sm:$0xff]  }
 0x95f   : > { %v6880_v37 = vpack.c.bf16 %v6846_v41, %v6845_v46  ;;  %v6644_v15 = vpop.f32.mrb[40].mxu1  ;;  %v10826_v53 = vld [vmem:[%s14392_s8 + $0x18] sm:$0xff]  ;;  %v10827_v46 = vld [vmem:[%s14392_s8 + $0x30] sm:$0xff] }
 0x960   : > { %v6645_v26 = vadd.f32 %v6644_v15, %v6036_v38  ;;  %v6646_v31 = vpop.f32.mrb[41].mxu1  ;;  %v13580_v49 = vpop.permute.xlu0 %4269  ;;  %7024 = vperm.xlu1 %9977, %v10826_v53   ;;  %v10828_v38 = vld [vmem:[%s14392_s8 + $0x28] sm:$0xff]  ;;  %v10540_v53 = vld [vmem:[#allocation7 + $0x2a0] ss:$16 sps:$4 sm:$0xff]  }
 0x961   : > { %v6647_v33 = vpop.f32.mrb[42].mxu1  ;;  %8223 = vmatpush1.bf16.msra.mxu0 %v6880_v37  ;;  %9569 = vmatpush1.bf16.msra.mxu1 %v6880_v37  ;;  %v10829_v37 = vld [vmem:[%s14392_s8 + $0x40] sm:$0xff] }
 0x962   : > { %v6783_v40 = vmul.f32 0.1, %v6645_v26  ;;  %v6648_v5 = vadd.f32 %v6647_v33, %v6040_v29  ;;  %v6649_v63 = vpop.f32.mrb[43].mxu1  ;;  %8224 = vmatprep.subr.bf16.mxu0 %v14475_v3  ;;  %9554 = vmatprep.subr.bf16.mxu1 %v14475_v3  ;;  %vm6719_vm10 = vcmp.gt.f32.partialorder %v6645_v26, 0.0  ;;  %v10516_v31 = vld [vmem:[#allocation7 + $0x220] ss:$16 sps:$4 sm:$0xff]  }
 0x963   : > { %v10830_v29 = vld [vmem:[%s14392_s8 + $0x38] sm:$0xff]  ;;  %v10831_v33 = vld [vmem:[%s14392_s8 + $0x50] sm:$0xff] }
 0x964   : > { %vm6720_vm11 = vcmp.gt.f32.partialorder %v6648_v5, 0.0  ;;  %v6784_v20 = vmul.f32 0.1, %v6648_v5  ;;  %5586 = vmatmul.mubr.bf16.gmra.mrb[152].mxu0 %v10449_v56  ;;  %8052 = vmatmul.mubr.bf16.gmra.mrb[104].mxu1 %v10498_v60  ;;  %v6847_v23 = vsel %vm6719_vm10, %v6645_v26, %v6783_v40  ;;  %v13588_v41 = vpop.permute.xlu0 %4277  ;;  %v10467_v26 = vld [vmem:[#allocation4 + $0x228] ss:$16 sps:$4 sm:$0xff]   ;;  %v10833_v40 = vld [vmem:[%s14392_s8 + $0x60] sm:$0xff] }
 0x965   : > { %5593 = vmatprep.mubr.bf16.mxu0 %v10453_v19  ;;  %8059 = vmatprep.mubr.bf16.mxu1 %v10506_v35  ;;  %v10471_v56 = vld [vmem:[#allocation4 + $0x24c] ss:$16 sps:$4 sm:$0xff]   ;;  %v10524_v60 = vld [vmem:[#allocation7 + $0x244] ss:$16 sps:$4 sm:$0xff]   ;;  %v10473_v63 = vld [vmem:[#allocation4 + $0x248] ss:$16 sps:$4 sm:$0xff]  }
 0x966   : > { %v6848_v12 = vsel %vm6720_vm11, %v6648_v5, %v6784_v20  ;;  %7032 = vperm.xlu1 %9977, %v10828_v38   ;;  %v10832_v35 = vld [vmem:[%s14392_s8 + $0x48] sm:$0xff]  ;;  %v10522_v20 = vld [vmem:[#allocation7 + $0x240] ss:$16 sps:$4 sm:$0xff]   ;;  %v10548_v38 = vld [vmem:[#allocation7 + $0x2c4] ss:$16 sps:$4 sm:$0xff]  }
 0x967   : > { %v6881_v36 = vpack.c.bf16 %v6848_v12, %v6847_v23  ;;  %v6652_v9 = vpop.f32.mrb[44].mxu1  ;;  %v10530_v23 = vld [vmem:[#allocation7 + $0x264] ss:$16 sps:$4 sm:$0xff]   ;;  %v10834_v12 = vld [vmem:[%s14392_s8 + $0x58] sm:$0xff] }
 0x968   : > { %v6653_v62 = vadd.f32 %v6652_v9, %v6044_v10  ;;  %v6654_v25 = vpop.f32.mrb[45].mxu1  ;;  %v13596_v15 = vpop.permute.xlu0 %4285  ;;  %v10477_v10 = vld [vmem:[#allocation4 + $0x26c] ss:$16 sps:$4 sm:$0xff]  }
 0x969   : > { %v6655_v8 = vpop.f32.mrb[46].mxu1  ;;  %8225 = vmatpush1.bf16.msra.mxu0 %v6881_v36  ;;  %9570 = vmatpush1.bf16.msra.mxu1 %v6881_v36  ;;  %v10836_v9 = vld [vmem:[%s14392_s8 + $0x68] sm:$0xff] }
 0x96a   : > { %v6785_v51 = vmul.f32 0.1, %v6653_v62  ;;  %v6656_v61 = vadd.f32 %v6655_v8, %v6048_v52  ;;  %8226 = vmatprep.subr.bf16.mxu0 %v14475_v3  ;;  %9555 = vmatprep.subr.bf16.mxu1 %v14475_v3  ;;  %v6657_v55 = vpop.f32.mrb[47].mxu1  ;;  %vm6721_vm12 = vcmp.gt.f32.partialorder %v6653_v62, 0.0  ;;  %v10825_v3 = vld [vmem:[%s14392_s8 + $0x20] sm:$0xff]  ;;  %v10835_v52 = vld [vmem:[%s14392_s8 + $0x70] sm:$0xff] }
 0x96b   : > { %7028 = vperm.xlu0 %9978, %v10825_v3   ;;  %7040 = vperm.xlu1 %9977, %v10830_v29   ;;  %v10479_v25 = vld [vmem:[#allocation4 + $0x268] ss:$16 sps:$4 sm:$0xff]   ;;  %v10839_v8 = vld [vmem:[%s14392_s8 + $0x90] sm:$0xff] }
 0x96c   : > { %vm6722_vm13 = vcmp.gt.f32.partialorder %v6656_v61, 0.0  ;;  %v6786_v54 = vmul.f32 0.1, %v6656_v61  ;;  %5594 = vmatmul.mubr.bf16.gmra.mrb[156].mxu0 %v10455_v28  ;;  %8060 = vmatmul.mubr.bf16.gmra.mrb[108].mxu1 %v10504_v44  ;;  %v6849_v59 = vsel %vm6721_vm12, %v6653_v62, %v6785_v51  ;;  %v13604_v19 = vpop.permute.xlu0 %4293  ;;  %v10528_v28 = vld [vmem:[#allocation7 + $0x260] ss:$16 sps:$4 sm:$0xff]  }
 0x96d   : > { %5601 = vmatprep.mubr.bf16.mxu0 %v10459_v57  ;;  %8067 = vmatprep.mubr.bf16.mxu1 %v10512_v27  ;;  %v10483_v44 = vld [vmem:[#allocation4 + $0x28c] ss:$16 sps:$4 sm:$0xff]   ;;  %v10841_v51 = vld [vmem:[%s14392_s8 + $0xa0] sm:$0xff]  ;;  %v10485_v55 = vld [vmem:[#allocation4 + $0x288] ss:$16 sps:$4 sm:$0xff]  }
 0x96e   : > { %v6850_v58 = vsel %vm6722_vm13, %v6656_v61, %v6786_v54  ;;  %v10840_v27 = vld [vmem:[%s14392_s8 + $0x88] sm:$0xff]  ;;  %v10534_v54 = vld [vmem:[#allocation7 + $0x280] ss:$16 sps:$4 sm:$0xff]  }
 0x96f   : > { %v6882_v32 = vpack.c.bf16 %v6850_v58, %v6849_v59  ;;  %7036 = vperm.xlu0 %9978, %v10827_v46   ;;  %7048 = vperm.xlu1 %9977, %v10832_v35   ;;  %v10489_v59 = vld [vmem:[#allocation4 + $0x2ac] ss:$16 sps:$4 sm:$0xff]   ;;  %v10542_v58 = vld [vmem:[#allocation7 + $0x2a4] ss:$16 sps:$4 sm:$0xff]   ;;  %v10546_v35 = vld [vmem:[#allocation7 + $0x2c0] ss:$16 sps:$4 sm:$0xff]  }
 0x970   : > { %v13612_v5 = vpop.permute.xlu0 %4301  ;;  %v10843_v3 = vld [vmem:[%s14392_s8 + $0xb0] sm:$0xff]  ;;  %v10495_v46 = vld [vmem:[#allocation4 + $0x2cc] ss:$16 sps:$4 sm:$0xff]  }
 0x971   : > { %8227 = vmatpush1.bf16.msra.mxu0 %v6882_v32  ;;  %9571 = vmatpush1.bf16.msra.mxu1 %v6882_v32 }
 0x973   : > { %7044 = vperm.xlu0 %9978, %v10829_v37   ;;  %7056 = vperm.xlu1 %9977, %v10834_v12   ;;  %v10846_v37 = vld [vmem:[%s14392_s8 + $0xb8] sm:$0xff]  ;;  %v13686_v12 = vpop.permute.xlu1 %4381 }
 0x974   : > { %5602 = vmatmul.mubr.bf16.gmra.mrb[160].mxu0 %v10461_v39  ;;  %8068 = vmatmul.mubr.bf16.gmra.mrb[112].mxu1 %v10510_v34  ;;  %v13620_v36 = vpop.permute.xlu0 %4309  ;;  %v10844_v39 = vld [vmem:[%s14392_s8 + $0xa8] sm:$0xff]  ;;  %v10845_v34 = vld [vmem:[%s14392_s8 + $0xc0] sm:$0xff] }
 0x975   : > { %5609 = vmatprep.mubr.bf16.mxu0 %v10465_v14  ;;  %8075 = vmatprep.mubr.bf16.mxu1 %v10518_v0  ;;  %v10491_v0 = vld [vmem:[#allocation4 + $0x2a8] ss:$16 sps:$4 sm:$0xff]  }
 0x977   : > { %7052 = vperm.xlu0 %9978, %v10831_v33   ;;  %7064 = vperm.xlu1 %9977, %v10836_v9   ;;  %v10497_v33 = vld [vmem:[#allocation4 + $0x2c8] ss:$16 sps:$4 sm:$0xff]   ;;  %v10853_v9 = vld [vmem:[%s14392_s8 + $0x100] sm:$0xff] }
 0x978   : > { %v13628_v62 = vpop.permute.xlu0 %4317 }
 0x97b   : > { %7060 = vperm.xlu0 %9978, %v10833_v40   ;;  %7072 = vperm.xlu1 %9977, %v10838_v2   ;;  %v10501_v40 = vld [vmem:[#allocation4 + $0x2ec] ss:$16 sps:$4 sm:$0xff]   ;;  %v10560_v2 = vld [vmem:[#allocation7 + $0x304] ss:$16 sps:$4 sm:$0xff]  }
 0x97c   : > { %5610 = vmatmul.mubr.bf16.gmra.mrb[164].mxu0 %v10467_v26  ;;  %8076 = vmatmul.mubr.bf16.gmra.mrb[116].mxu1 %v10516_v31  ;;  %v13636_v57 = vpop.permute.xlu0 %4325  ;;  %v10847_v26 = vld [vmem:[%s14392_s8 + $0xd0] sm:$0xff] }
 0x97d   : > { %5617 = vmatprep.mubr.bf16.mxu0 %v10471_v56  ;;  %8083 = vmatprep.mubr.bf16.mxu1 %v10524_v60  ;;  %v10848_v56 = vld [vmem:[%s14392_s8 + $0xc8] sm:$0xff]  ;;  %v10849_v60 = vld [vmem:[%s14392_s8 + $0xe0] sm:$0xff] }
 0x97f   : > { %7068 = vperm.xlu0 %9978, %v10835_v52   ;;  %7080 = vperm.xlu1 %9977, %v10840_v27   ;;  %v10852_v52 = vld [vmem:[%s14392_s8 + $0xe8] sm:$0xff]  ;;  %v10855_v27 = vld [vmem:[%s14392_s8 + $0x110] sm:$0xff] }
 0x980   : > { %v13644_v61 = vpop.permute.xlu0 %4333 }
 0x983   : > { %7076 = vperm.xlu0 %9978, %v10837_v21   ;;  %7088 = vperm.xlu1 %9977, %v10842_v11  }
 0x984   : > { %5618 = vmatmul.mubr.bf16.gmra.mrb[168].mxu0 %v10473_v63  ;;  %8084 = vmatmul.mubr.bf16.gmra.mrb[120].mxu1 %v10522_v20  ;;  %v13652_v32 = vpop.permute.xlu0 %4341  ;;  %v10554_v63 = vld [vmem:[#allocation7 + $0x2e4] ss:$16 sps:$4 sm:$0xff]   ;;  %v10850_v20 = vld [vmem:[%s14392_s8 + $0xd8] sm:$0xff] }
 0x985   : > { %5625 = vmatprep.mubr.bf16.mxu0 %v10477_v10  ;;  %8091 = vmatprep.mubr.bf16.mxu1 %v10530_v23  ;;  %v10851_v10 = vld [vmem:[%s14392_s8 + $0xf0] sm:$0xff] }
 0x987   : > { %7084 = vperm.xlu0 %9978, %v10839_v8   ;;  %7096 = vperm.xlu1 %9977, %v10844_v39   ;;  %v10854_v8 = vld [vmem:[%s14392_s8 + $0xf8] sm:$0xff]  ;;  %v10558_v39 = vld [vmem:[#allocation7 + $0x300] ss:$16 sps:$4 sm:$0xff]  }
 0x988   : > { %v13660_v14 = vpop.permute.xlu0 %4349 }
 0x98b   : > { %7092 = vperm.xlu0 %9978, %v10841_v51   ;;  %7104 = vperm.xlu1 %9977, %v10846_v37  }
 0x98c   : > { %5626 = vmatmul.mubr.bf16.gmra.mrb[172].mxu0 %v10479_v25  ;;  %8092 = vmatmul.mubr.bf16.gmra.mrb[124].mxu1 %v10528_v28  ;;  %v13668_v31 = vpop.permute.xlu0 %4357  ;;  %v13696_v25 = vpop.permute.xlu1 %4389  ;;  %v10503_v28 = vld [vmem:[#allocation4 + $0x2e8] ss:$16 sps:$4 sm:$0xff]  }
 0x98d   : > { %5633 = vmatprep.mubr.bf16.mxu0 %v10483_v44  ;;  %8099 = vmatprep.mubr.bf16.mxu1 %v10536_v1  ;;  %v10552_v44 = vld [vmem:[#allocation7 + $0x2e0] ss:$16 sps:$4 sm:$0xff]   ;;  %v10507_v1 = vld [vmem:[#allocation4 + $0x30c] ss:$16 sps:$4 sm:$0xff]  }
 0x98f   : > { %7100 = vperm.xlu0 %9978, %v10843_v3   ;;  %7112 = vperm.xlu1 %9977, %v10848_v56   ;;  %v10509_v3 = vld [vmem:[#allocation4 + $0x308] ss:$16 sps:$4 sm:$0xff]   ;;  %v10861_v56 = vld [vmem:[%s14392_s8 + $0x140] sm:$0xff] }
 0x990   : > { %v13676_v29 = vpop.permute.xlu0 %4365  ;;  %v13704_v51 = vpop.permute.xlu1 %4393 }
 0x993   : > { %7108 = vperm.xlu0 %9978, %v10845_v34   ;;  %7120 = vperm.xlu1 %9977, %v10850_v20   ;;  %v10513_v34 = vld [vmem:[#allocation4 + $0x32c] ss:$16 sps:$4 sm:$0xff]   ;;  %v10571_v20 = vld [vmem:[#allocation7 + $0x344] ss:$16 sps:$4 sm:$0xff]  }
 0x994   : > { %5634 = vmatmul.mubr.bf16.gmra.mrb[176].mxu0 %v10485_v55  ;;  %8100 = vmatmul.mubr.bf16.gmra.mrb[128].mxu1 %v10534_v54  ;;  %v13684_v23 = vpop.permute.xlu0 %4373  ;;  %v10856_v54 = vld [vmem:[%s14392_s8 + $0x108] sm:$0xff] }
 0x995   : > { %5641 = vmatprep.mubr.bf16.mxu0 %v10489_v59  ;;  %8107 = vmatprep.mubr.bf16.mxu1 %v10542_v58  ;;  %v10857_v59 = vld [vmem:[%s14392_s8 + $0x120] sm:$0xff]  ;;  %v13714_v58 = vpop.permute.xlu1 %4401 }
 0x997   : > { %7116 = vperm.xlu0 %9978, %v10847_v26   ;;  %7128 = vperm.xlu1 %9977, %v10852_v52   ;;  %v10860_v26 = vld [vmem:[%s14392_s8 + $0x128] sm:$0xff]  ;;  %v10863_v52 = vld [vmem:[%s14392_s8 + $0x150] sm:$0xff] }
 0x998   : > { %v13694_v21 = vpop.permute.xlu0 %4385 }
 0x99b   : > { %7124 = vperm.xlu0 %9978, %v10849_v60   ;;  %7136 = vperm.xlu1 %9977, %v10854_v8  }
 0x99c   : > { %5642 = vmatmul.mubr.bf16.gmra.mrb[180].mxu0 %v10491_v0  ;;  %8108 = vmatmul.mubr.bf16.gmra.mrb[132].mxu1 %v10540_v53  ;;  %v13706_v55 = vpop.permute.xlu0 %4397  ;;  %v10565_v0 = vld [vmem:[#allocation7 + $0x324] ss:$16 sps:$4 sm:$0xff]   ;;  %v10858_v53 = vld [vmem:[%s14392_s8 + $0x118] sm:$0xff] }
 0x99d   : > { %5649 = vmatprep.mubr.bf16.mxu0 %v10495_v46  ;;  %8115 = vmatprep.mubr.bf16.mxu1 %v10548_v38  ;;  %v10859_v46 = vld [vmem:[%s14392_s8 + $0x130] sm:$0xff]  ;;  %v13724_v38 = vpop.permute.xlu1 %4409 }
 0x99f   : > { %7132 = vperm.xlu0 %9978, %v10851_v10   ;;  %7144 = vperm.xlu1 %9977, %v10856_v54   ;;  %v10862_v10 = vld [vmem:[%s14392_s8 + $0x138] sm:$0xff]  ;;  %v10569_v54 = vld [vmem:[#allocation7 + $0x340] ss:$16 sps:$4 sm:$0xff]  }
 0x9a0   : > { %v13716_v11 = vpop.permute.xlu0 %4405 }
 0x9a1   : > { %v13734_v60 = vpop.permute.xlu1 %4417 }
 0x9a3   : > { %7140 = vperm.xlu0 %9978, %v10853_v9   ;;  %7152 = vperm.xlu1 %9977, %v10858_v53  }
 0x9a4   : > { %5650 = vmatmul.mubr.bf16.gmra.mrb[184].mxu0 %v10497_v33  ;;  %8116 = vmatmul.mubr.bf16.gmra.mrb[136].mxu1 %v10546_v35  ;;  %v13726_v37 = vpop.permute.xlu0 %4413  ;;  %v10515_v35 = vld [vmem:[#allocation4 + $0x328] ss:$16 sps:$4 sm:$0xff]  }
 0x9a5   : > { %5657 = vmatprep.mubr.bf16.mxu0 %v10501_v40  ;;  %8123 = vmatprep.mubr.bf16.mxu1 %v10554_v63  ;;  %v10563_v40 = vld [vmem:[#allocation7 + $0x320] ss:$16 sps:$4 sm:$0xff]   ;;  %v10519_v63 = vld [vmem:[#allocation4 + $0x34c] ss:$16 sps:$4 sm:$0xff]   ;;  %v13744_v9 = vpop.permute.xlu1 %4425 }
 0x9a7   : > { %7148 = vperm.xlu0 %9978, %v10855_v27   ;;  %7160 = vperm.xlu1 %9977, %v10860_v26   ;;  %v10521_v27 = vld [vmem:[#allocation4 + $0x348] ss:$16 sps:$4 sm:$0xff]   ;;  %v10869_v26 = vld [vmem:[%s14392_s8 + $0x180] sm:$0xff] }
 0x9a8   : > { %v13736_v33 = vpop.permute.xlu0 %4421 }
 0x9ab   : > { %7156 = vperm.xlu0 %9978, %v10857_v59   ;;  %7168 = vperm.xlu1 %9977, %v10862_v10   ;;  %v10525_v59 = vld [vmem:[#allocation4 + $0x36c] ss:$16 sps:$4 sm:$0xff]   ;;  %v10575_v10 = vld [vmem:[#allocation7 + $0x360] ss:$16 sps:$4 sm:$0xff]  }
 0x9ac   : > { %5658 = vmatmul.mubr.bf16.gmra.mrb[188].mxu0 %v10503_v28  ;;  %8124 = vmatmul.mubr.bf16.gmra.mrb[140].mxu1 %v10552_v44  ;;  %v13746_v28 = vpop.permute.xlu0 %4429  ;;  %v10864_v44 = vld [vmem:[%s14392_s8 + $0x148] sm:$0xff] }
 0x9ad   : > { %5665 = vmatprep.mubr.bf16.mxu0 %v10507_v1  ;;  %8131 = vmatprep.mubr.bf16.mxu1 %v10560_v2  ;;  %v10865_v1 = vld [vmem:[%s14392_s8 + $0x160] sm:$0xff]  ;;  %v13754_v2 = vpop.permute.xlu1 %4433 }
 0x9af   : > { %7164 = vperm.xlu0 %9978, %v10859_v46   ;;  %7176 = vperm.xlu1 %9977, %v10864_v44   ;;  %v10868_v46 = vld [vmem:[%s14392_s8 + $0x168] sm:$0xff] }
 0x9b0   : > { %v13756_v8 = vpop.permute.xlu0 %4437 }
 0x9b3   : > { %7172 = vperm.xlu0 %9978, %v10861_v56  }
 0x9b4   : > { %5666 = vmatmul.mubr.bf16.gmra.mrb[192].mxu0 %v10509_v3  ;;  %8132 = vmatmul.mubr.bf16.gmra.mrb[144].mxu1 %v10558_v39  ;;  %v10577_v3 = vld [vmem:[#allocation7 + $0x364] ss:$16 sps:$4 sm:$0xff]   ;;  %v10866_v39 = vld [vmem:[%s14392_s8 + $0x158] sm:$0xff]  ;;  %v13766_v53 = vpop.permute.xlu0 %4445 }
 0x9b5   : > { %5673 = vmatprep.mubr.bf16.mxu0 %v10513_v34  ;;  %8139 = vmatprep.mubr.bf16.mxu1 %v10565_v0  ;;  %v10867_v34 = vld [vmem:[%s14392_s8 + $0x170] sm:$0xff]  ;;  %v13764_v0 = vpop.permute.xlu1 %4441 }
 0x9b6   : > { %7184 = vperm.xlu1 %9977, %v10866_v39   ;;  %v10870_v39 = vld [vmem:[%s14392_s8 + $0x178] sm:$0xff] }
 0x9b7   : > { %7180 = vperm.xlu0 %9978, %v10863_v52  }
 0x9b8   : > { %v13785_v52 = vpop.permute.xlu0 %4453 }
 0x9ba   : > { %7192 = vperm.xlu1 %9977, %v10868_v46  }
 0x9bb   : > { %7188 = vperm.xlu0 %9978, %v10865_v1   ;;  %v10531_v1 = vld [vmem:[#allocation4 + $0x38c] ss:$16 sps:$4 sm:$0xff]  }
 0x9bc   : > { %5674 = vmatmul.mubr.bf16.gmra.mrb[196].mxu0 %v10515_v35  ;;  %8140 = vmatmul.mubr.bf16.gmra.mrb[148].mxu1 %v10563_v40  ;;  %v13782_v35 = vpop.permute.xlu1 %4449  ;;  %v13800_v46 = vpop.permute.xlu0 %4461 }
 0x9bd   : > { %5681 = vmatprep.mubr.bf16.mxu0 %v10519_v63  ;;  %8147 = vmatprep.mubr.bf16.mxu1 %v10571_v20  ;;  %v10527_v20 = vld [vmem:[#allocation4 + $0x368] ss:$16 sps:$4 sm:$0xff]  }
 0x9be   : > { %7200 = vperm.xlu1 %9977, %v10870_v39  }
 0x9bf   : > { %7196 = vperm.xlu0 %9978, %v10867_v34  }
 0x9c0   : > { %v13796_v34 = vpop.permute.xlu1 %4457 }
 0x9c3   : > { %7204 = vperm.xlu0 %9978, %v10869_v26   ;;  %v10872_v26 = vld [vmem:[%s14392_s8 + $0x188] sm:$0xff] }
 0x9c4   : > { %5682 = vmatmul.mubr.bf16.gmra.mrb[200].mxu0 %v10521_v27  ;;  %8148 = vmatmul.mubr.bf16.gmra.mrb[152].mxu1 %v10569_v54  ;;  %v10583_v27 = vld [vmem:[#allocation7 + $0x384] ss:$16 sps:$4 sm:$0xff]   ;;  %v14544_v54 = vld [vmem:[#allocation13_spill] sm:$0xff] }
 0x9c5   : > { %5689 = vmatprep.mubr.bf16.mxu0 %v10525_v59  ;;  %8155 = vmatprep.mubr.bf16.mxu1 %v10577_v3 }
 0x9c6   : > { %7208 = vperm.xlu1 %9977, %v10872_v26   ;;  %v10874_v26 = vld [vmem:[%s14392_s8 + $0x198] sm:$0xff] }
 0x9c7   : > { %v5475_v56 = vpop.f32.mrb[96].mxu0 }
 0x9c8   : > { %v9572_v40 = vadd.f32 %v5475_v56, %v13572_v7  ;;  %v5477_v63 = vpop.f32.mrb[97].mxu0  ;;  %v10871_v7 = vld [vmem:[%s14392_s8 + $0x190] sm:$0xff]  ;;  %v10873_v56 = vld [vmem:[%s14392_s8 + $0x1a0] sm:$0xff] }
 0x9c9   : > { %v5478_v44 = vpop.f32.mrb[98].mxu0  ;;  %7212 = vperm.xlu0 %9978, %v10871_v7   ;;  %v13808_v63 = vpop.permute.xlu1 %4465 }
 0x9ca   : > { %8485 = vst.msk [vmem:[%s13780_s25] sm:$0xff] %vm1027_vm1, %v9572_v40  ;;  %v9573_v59 = vadd.f32 %v5478_v44, %v14544_v54  ;;  %v5480_v3 = vpop.f32.mrb[99].mxu0  ;;  %v10533_v44 = vld [vmem:[#allocation4 + $0x388] ss:$16 sps:$4 sm:$0xff]   ;;  %7216 = vperm.xlu1 %9977, %v10874_v26   ;;  %v10543_v26 = vld [vmem:[#allocation4 + $0x3cc] ss:$16 sps:$4 sm:$0xff]  }
 0x9cb   : > { %v10589_v3 = vld [vmem:[#allocation7 + $0x3a4] ss:$16 sps:$4 sm:$0xff]  }
 0x9cc   : > { %8486 = vst.msk [vmem:[%s13780_s25 + $0x8] sm:$0xff] %vm1027_vm1, %v9573_v59  ;;  %5690 = vmatmul.mubr.bf16.gmra.mrb[204].mxu0 %v10527_v20  ;;  %8156 = vmatmul.mubr.bf16.gmra.mrb[156].mxu1 %v10575_v10  ;;  %v10537_v59 = vld [vmem:[#allocation4 + $0x3ac] ss:$16 sps:$4 sm:$0xff]  }
 0x9cd   : > { %5697 = vmatprep.mubr.bf16.mxu0 %v10531_v1  ;;  %8163 = vmatprep.mubr.bf16.mxu1 %v10583_v27  ;;  %v10581_v1 = vld [vmem:[#allocation7 + $0x380] ss:$16 sps:$4 sm:$0xff]   ;;  %v13811_v27 = vpop.permute.xlu0 %4469 }
 0x9ce   : > { %7220 = vperm.xlu0 %9978, %v10873_v56   ;;  %v13822_v56 = vpop.permute.xlu1 %4473 }
 0x9cf   : > { %v5483_v40 = vpop.f32.mrb[100].mxu0 }
 0x9d0   : > { %v9574_v20 = vadd.f32 %v5483_v40, %v13201_v30  ;;  %v5485_v10 = vpop.f32.mrb[101].mxu0  ;;  %v10875_v30 = vld [vmem:[%s14392_s8 + $0x1b0] sm:$0xff] }
 0x9d1   : > { %v5486_v54 = vpop.f32.mrb[102].mxu0  ;;  %v13826_v40 = vpop.permute.xlu0 %4477 }
 0x9d2   : > { %8487 = vst.msk [vmem:[%s13780_s25 + $0x10] sm:$0xff] %vm1027_vm1, %v9574_v20  ;;  %v9575_v39 = vadd.f32 %v5486_v54, %v13580_v49  ;;  %v5488_v7 = vpop.f32.mrb[103].mxu0  ;;  %7228 = vperm.xlu0 %9978, %v10875_v30   ;;  %14545 = vst [vmem:[#allocation15_spill] sm:$0xff] %v13826_v40  ;;  %v10876_v49 = vld [vmem:[%s14392_s8 + $0x1a8] sm:$0xff]  ;;  %v10877_v20 = vld [vmem:[%s14392_s8 + $0x1c0] sm:$0xff]  ;;  %v13834_v54 = vpop.permute.xlu1 %4481 }
 0x9d3   : > { %7224 = vperm.xlu1 %9977, %v10876_v49   ;;  %14546 = vst [vmem:[#allocation17_spill] sm:$0xff] %v13834_v54  ;;  %v10595_v30 = vld [vmem:[#allocation7 + $0x3c4] ss:$16 sps:$4 sm:$0xff]  }
 0x9d4   : > { %8488 = vst.msk [vmem:[%s13780_s25 + $0x18] sm:$0xff] %vm1027_vm1, %v9575_v39  ;;  %5698 = vmatmul.mubr.bf16.gmra.mrb[208].mxu0 %v10533_v44  ;;  %8164 = vmatmul.mubr.bf16.gmra.mrb[160].mxu1 %v10581_v1  ;;  %v10587_v39 = vld [vmem:[#allocation7 + $0x3a0] ss:$16 sps:$4 sm:$0xff]  }
 0x9d5   : > { %5705 = vmatprep.mubr.bf16.mxu0 %v10537_v59  ;;  %8171 = vmatprep.mubr.bf16.mxu1 %v10589_v3  ;;  %v10539_v59 = vld [vmem:[#allocation4 + $0x3a8] ss:$16 sps:$4 sm:$0xff]   ;;  %v13837_v3 = vpop.permute.xlu0 %4485 }
 0x9d6   : > { %7236 = vperm.xlu0 %9978, %v10877_v20   ;;  %14547 = vst [vmem:[#allocation16_spill] sm:$0xff] %v13837_v3  ;;  %v10878_v20 = vld [vmem:[%s14392_s8 + $0x1b8] sm:$0xff] }
 0x9d7   : > { %v5491_v10 = vpop.f32.mrb[104].mxu0  ;;  %7232 = vperm.xlu1 %9977, %v10878_v20  }
 0x9d8   : > { %v9576_v44 = vadd.f32 %v5491_v10, %v13209_v42  ;;  %v5493_v1 = vpop.f32.mrb[105].mxu0  ;;  %v10879_v42 = vld [vmem:[%s14392_s8 + $0x1d0] sm:$0xff]  ;;  %v13848_v10 = vpop.permute.xlu1 %4489 }
 0x9d9   : > { %v5494_v7 = vpop.f32.mrb[106].mxu0  ;;  %14548 = vst [vmem:[#allocation19_spill] sm:$0xff] %v13848_v10 }
 0x9da   : > { %8489 = vst.msk [vmem:[%s13780_s25 + $0x20] sm:$0xff] %vm1027_vm1, %v9576_v44  ;;  %v9577_v49 = vadd.f32 %v5494_v7, %v13588_v41  ;;  %v5496_v40 = vpop.f32.mrb[107].mxu0  ;;  %7244 = vperm.xlu0 %9978, %v10879_v42   ;;  %v13852_v44 = vpop.permute.xlu0 %4493  ;;  %v10880_v41 = vld [vmem:[%s14392_s8 + $0x1c8] sm:$0xff] }
 0x9db   : > { %14549 = vst [vmem:[#allocation18_spill] sm:$0xff] %v13852_v44  ;;  %7240 = vperm.xlu1 %9977, %v10880_v41   ;;  %v10881_v40 = vld [vmem:[%s14392_s8 + $0x1e0] sm:$0xff]  ;;  %v10549_v42 = vld [vmem:[#allocation4 + $0x3ec] ss:$16 sps:$4 sm:$0xff]  }
 0x9dc   : > { %8490 = vst.msk [vmem:[%s13780_s25 + $0x28] sm:$0xff] %vm1027_vm1, %v9577_v49  ;;  %5706 = vmatmul.mubr.bf16.gmra.mrb[212].mxu0 %v10539_v59  ;;  %8172 = vmatmul.mubr.bf16.gmra.mrb[164].mxu1 %v10587_v39  ;;  %v13860_v7 = vpop.permute.xlu1 %4497  ;;  %v10593_v49 = vld [vmem:[#allocation7 + $0x3c0] ss:$16 sps:$4 sm:$0xff]   ;;  %v10601_v44 = vld [vmem:[#allocation7 + $0x3e4] ss:$16 sps:$4 sm:$0xff]  }
 0x9dd   : > { %5713 = vmatprep.mubr.bf16.mxu0 %v10543_v26  ;;  %8179 = vmatprep.mubr.bf16.mxu1 %v10595_v30  ;;  %14550 = vst [vmem:[#allocation21_spill] sm:$0xff] %v13860_v7  ;;  %v10545_v26 = vld [vmem:[#allocation4 + $0x3c8] ss:$16 sps:$4 sm:$0xff]  }
 0x9de   : > { %7252 = vperm.xlu0 %9978, %v10881_v40   ;;  %v13863_v30 = vpop.permute.xlu0 %4501  ;;  %v10882_v40 = vld [vmem:[%s14392_s8 + $0x1d8] sm:$0xff] }
 0x9df   : > { %v5499_v1 = vpop.f32.mrb[108].mxu0  ;;  %14551 = vst [vmem:[#allocation23_spill] sm:$0xff] %v13863_v30  ;;  %7248 = vperm.xlu1 %9977, %v10882_v40   ;;  %v10608_v30 = vld [vmem:[#allocation7 + $0x34c] ss:$16 sps:$4 sm:$0xff]  }
 0x9e0   : > { %v9578_v59 = vadd.f32 %v5499_v1, %v13218_v17  ;;  %v5501_v39 = vpop.f32.mrb[109].mxu0  ;;  %v10883_v17 = vld [vmem:[%s14392_s8 + $0x1f0] sm:$0xff]  ;;  %v13874_v1 = vpop.permute.xlu1 %4505 }
 0x9e1   : > { %v5502_v20 = vpop.f32.mrb[110].mxu0  ;;  %14552 = vst [vmem:[#allocation20_spill] sm:$0xff] %v13874_v1 }
 0x9e2   : > { %8491 = vst.msk [vmem:[%s13780_s25 + $0x30] sm:$0xff] %vm1027_vm1, %v9578_v59  ;;  %v9579_v41 = vadd.f32 %v5502_v20, %v13596_v15  ;;  %v5504_v10 = vpop.f32.mrb[111].mxu0  ;;  %7260 = vperm.xlu0 %9978, %v10883_v17   ;;  %v13878_v59 = vpop.permute.xlu0 %4509  ;;  %v10884_v20 = vld [vmem:[%s14392_s8 + $0x1e8] sm:$0xff] }
 0x9e3   : > { %14553 = vst [vmem:[#allocation22_spill] sm:$0xff] %v13878_v59  ;;  %v7941_v15 = vpop.f32.mrb[48].mxu1  ;;  %7256 = vperm.xlu1 %9977, %v10884_v20  }
 0x9e4   : > { %8492 = vst.msk [vmem:[%s13780_s25 + $0x38] sm:$0xff] %vm1027_vm1, %v9579_v41  ;;  %5714 = vmatmul.mubr.bf16.gmra.mrb[216].mxu0 %v10545_v26  ;;  %8180 = vmatmul.mubr.bf16.gmra.mrb[168].mxu1 %v10593_v49  ;;  %v7943_v10 = vpop.f32.mrb[49].mxu1  ;;  %v7013_v17 = vpop.permute.xlu1 %7012  ;;  %v10551_v49 = vld [vmem:[#allocation4 + $0x3e8] ss:$16 sps:$4 sm:$0xff]   ;;  %v10599_v41 = vld [vmem:[#allocation7 + $0x3e0] ss:$16 sps:$4 sm:$0xff]  }
 0x9e5   : > { %5721 = vmatprep.mubr.bf16.mxu0 %v10549_v42  ;;  %8187 = vmatprep.mubr.bf16.mxu1 %v10601_v44  ;;  %v7944_v39 = vpop.f32.mrb[50].mxu1  ;;  %v13884_v59 = vadd.f32 %v7941_v15, %v7013_v17  ;;  %v10557_v10 = vld [vmem:[#allocation7 + $0xc] ss:$16 sps:$4 sm:$0xff]  }
 0x9e6   : > { %v7946_v42 = vpop.f32.mrb[51].mxu1  ;;  %v7017_v7 = vpop.permute.xlu0 %7016 }
 0x9e7   : > { %v5507_v40 = vpop.f32.mrb[112].mxu0  ;;  %v13889_v54 = vadd.f32 %v7944_v39, %v7017_v7  ;;  %v7949_v15 = vpop.f32.mrb[52].mxu1  ;;  %v10555_v42 = vld [vmem:[#allocation7 + $0x8] ss:$16 sps:$4 sm:$0xff]  }
 0x9e8   : > { %v9580_v1 = vadd.f32 %v5507_v40, %v13228_v6  ;;  %v5509_v26 = vpop.f32.mrb[113].mxu0  ;;  %v10885_v6 = vld [vmem:[%s14392_s8 + $0x1f8] sm:$0xff]  ;;  %v7021_v40 = vpop.permute.xlu1 %7020 }
 0x9e9   : > { %v5510_v44 = vpop.f32.mrb[114].mxu0  ;;  %7264 = vperm.xlu1 %9977, %v10885_v6  }
 0x9ea   : > { %8493 = vst.msk [vmem:[%s13780_s25 + $0x40] sm:$0xff] %vm1027_vm1, %v9580_v1  ;;  %v9581_v3 = vadd.f32 %v5510_v44, %v13604_v19  ;;  %v5512_v20 = vpop.f32.mrb[115].mxu0  ;;  %v7951_v1 = vpop.f32.mrb[53].mxu1  ;;  %v10606_v44 = vld [vmem:[#allocation7 + $0x348] ss:$16 sps:$4 sm:$0xff]  }
 0x9eb   : > { %v7952_v17 = vpop.f32.mrb[54].mxu1  ;;  %v13897_v20 = vadd.f32 %v7949_v15, %v7021_v40 }
 0x9ec   : > { %8494 = vst.msk [vmem:[%s13780_s25 + $0x48] sm:$0xff] %vm1027_vm1, %v9581_v3  ;;  %5722 = vmatmul.mubr.bf16.gmra.mrb[220].mxu0 %v10551_v49  ;;  %8188 = vmatmul.mubr.bf16.gmra.mrb[172].mxu1 %v10599_v41  ;;  %v7954_v7 = vpop.f32.mrb[55].mxu1  ;;  %v10561_v49 = vld [vmem:[#allocation7 + $0x2c] ss:$16 sps:$4 sm:$0xff]   ;;  %v7025_v6 = vpop.permute.xlu1 %7024 }
 0x9ed   : > { %8228 = vmatprep.mubr.bf16.mxu0 %v10557_v10  ;;  %8436 = vmatprep.mubr.bf16.mxu1 %v10608_v30  ;;  %v10614_v41 = vld [vmem:[#allocation7 + $0x36c] ss:$16 sps:$4 sm:$0xff]   ;;  %v13902_v1 = vadd.f32 %v7952_v17, %v7025_v6 }
 0x9ef   : > { %v5515_v19 = vpop.f32.mrb[116].mxu0 }
 0x9f0   : > { %v9582_v39 = vadd.f32 %v5515_v19, %v13241_v13  ;;  %v5517_v26 = vpop.f32.mrb[117].mxu0  ;;  %v7957_v13 = vpop.f32.mrb[56].mxu1 }
 0x9f1   : > { %v5518_v3 = vpop.f32.mrb[118].mxu0  ;;  %v7959_v15 = vpop.f32.mrb[57].mxu1 }
 0x9f2   : > { %8495 = vst.msk [vmem:[%s13780_s25 + $0x50] sm:$0xff] %vm1027_vm1, %v9582_v39  ;;  %v9583_v30 = vadd.f32 %v5518_v3, %v13612_v5  ;;  %v5520_v10 = vpop.f32.mrb[119].mxu0  ;;  %v7960_v40 = vpop.f32.mrb[58].mxu1  ;;  %v10566_v5 = vld [vmem:[#allocation7 + $0x28] ss:$16 sps:$4 sm:$0xff]  }
 0x9f3   : > { %v7033_v7 = vpop.permute.xlu1 %7032  ;;  %v10612_v3 = vld [vmem:[#allocation7 + $0x368] ss:$16 sps:$4 sm:$0xff]   ;;  %v7962_v6 = vpop.f32.mrb[59].mxu1 }
 0x9f4   : > { %8496 = vst.msk [vmem:[%s13780_s25 + $0x58] sm:$0xff] %vm1027_vm1, %v9583_v30  ;;  %8229 = vmatmul.mubr.bf16.vlgmr.msra.gmra.mrb[224].mxu0 %v10555_v42  ;;  %8437 = vmatmul.mubr.bf16.vlgmr.msra.gmra.mrb[152].mxu1 %v10606_v44  ;;  %v13907_v17 = vadd.f32 %v7960_v40, %v7033_v7  ;;  %v10567_v42 = vld [vmem:[#allocation7 + $0x4c] ss:$16 sps:$4 sm:$0xff]   ;;  %v7029_v10 = vpop.permute.xlu0 %7028 }
 0x9f5   : > { %8236 = vmatprep.mubr.bf16.mxu0 %v10561_v49  ;;  %8444 = vmatprep.mubr.bf16.mxu1 %v10614_v41  ;;  %v10620_v44 = vld [vmem:[#allocation7 + $0x38c] ss:$16 sps:$4 sm:$0xff]   ;;  %v13912_v15 = vadd.f32 %v7957_v13, %v7029_v10 }
 0x9f7   : > { %v5523_v19 = vpop.f32.mrb[120].mxu0 }
 0x9f8   : > { %v9584_v39 = vadd.f32 %v5523_v19, %v13254_v43  ;;  %v5525_v26 = vpop.f32.mrb[121].mxu0  ;;  %v7965_v43 = vpop.f32.mrb[60].mxu1 }
 0x9f9   : > { %v5526_v30 = vpop.f32.mrb[122].mxu0  ;;  %v7967_v40 = vpop.f32.mrb[61].mxu1 }
 0x9fa   : > { %8497 = vst.msk [vmem:[%s13780_s25 + $0x60] sm:$0xff] %vm1027_vm1, %v9584_v39  ;;  %v9585_v49 = vadd.f32 %v5526_v30, %v13620_v36  ;;  %v5528_v41 = vpop.f32.mrb[123].mxu0  ;;  %v7968_v19 = vpop.f32.mrb[62].mxu1  ;;  %v10572_v36 = vld [vmem:[#allocation7 + $0x48] ss:$16 sps:$4 sm:$0xff]  }
 0x9fb   : > { %v7041_v26 = vpop.permute.xlu1 %7040  ;;  %v10618_v30 = vld [vmem:[#allocation7 + $0x388] ss:$16 sps:$4 sm:$0xff]   ;;  %v7970_v10 = vpop.f32.mrb[63].mxu1 }
 0x9fc   : > { %8498 = vst.msk [vmem:[%s13780_s25 + $0x68] sm:$0xff] %vm1027_vm1, %v9585_v49  ;;  %8237 = vmatmul.mubr.bf16.gmra.mrb[228].mxu0 %v10566_v5  ;;  %8445 = vmatmul.mubr.bf16.gmra.mrb[156].mxu1 %v10612_v3  ;;  %v13917_v13 = vadd.f32 %v7968_v19, %v7041_v26  ;;  %v10573_v5 = vld [vmem:[#allocation7 + $0x6c] ss:$16 sps:$4 sm:$0xff]   ;;  %v7037_v41 = vpop.permute.xlu0 %7036 }
 0x9fd   : > { %8244 = vmatprep.mubr.bf16.mxu0 %v10567_v42  ;;  %8452 = vmatprep.mubr.bf16.mxu1 %v10620_v44  ;;  %v10626_v3 = vld [vmem:[#allocation7 + $0x3ac] ss:$16 sps:$4 sm:$0xff]   ;;  %v13922_v40 = vadd.f32 %v7965_v43, %v7037_v41 }
 0x9ff   : > { %v5531_v7 = vpop.f32.mrb[124].mxu0 }
 0xa00   : > { %v9586_v39 = vadd.f32 %v5531_v7, %v13266_v22  ;;  %v5533_v6 = vpop.f32.mrb[125].mxu0  ;;  %v7973_v22 = vpop.f32.mrb[64].mxu1 }
 0xa01   : > { %v5534_v49 = vpop.f32.mrb[126].mxu0  ;;  %v7975_v19 = vpop.f32.mrb[65].mxu1 }
 0xa02   : > { %8499 = vst.msk [vmem:[%s13780_s25 + $0x70] sm:$0xff] %vm1027_vm1, %v9586_v39  ;;  %v9587_v42 = vadd.f32 %v5534_v49, %v13628_v62  ;;  %v5536_v44 = vpop.f32.mrb[127].mxu0  ;;  %v7976_v7 = vpop.f32.mrb[66].mxu1  ;;  %v10578_v62 = vld [vmem:[#allocation7 + $0x68] ss:$16 sps:$4 sm:$0xff]  }
 0xa03   : > { %v7049_v6 = vpop.permute.xlu1 %7048  ;;  %v10624_v49 = vld [vmem:[#allocation7 + $0x3a8] ss:$16 sps:$4 sm:$0xff]   ;;  %v7978_v41 = vpop.f32.mrb[67].mxu1 }
 0xa04   : > { %8500 = vst.msk [vmem:[%s13780_s25 + $0x78] sm:$0xff] %vm1027_vm1, %v9587_v42  ;;  %8245 = vmatmul.mubr.bf16.gmra.mrb[232].mxu0 %v10572_v36  ;;  %8453 = vmatmul.mubr.bf16.gmra.mrb[160].mxu1 %v10618_v30  ;;  %v13927_v43 = vadd.f32 %v7976_v7, %v7049_v6  ;;  %v10579_v36 = vld [vmem:[#allocation7 + $0x8c] ss:$16 sps:$4 sm:$0xff]   ;;  %v7045_v44 = vpop.permute.xlu0 %7044 }
 0xa05   : > { %8252 = vmatprep.mubr.bf16.mxu0 %v10573_v5  ;;  %8460 = vmatprep.mubr.bf16.mxu1 %v10626_v3  ;;  %v10632_v30 = vld [vmem:[#allocation7 + $0x3cc] ss:$16 sps:$4 sm:$0xff]   ;;  %v13932_v19 = vadd.f32 %v7973_v22, %v7045_v44 }
 0xa07   : > { %v5539_v26 = vpop.f32.mrb[128].mxu0 }
 0xa08   : > { %v9588_v39 = vadd.f32 %v5539_v26, %v13285_v4  ;;  %v5541_v10 = vpop.f32.mrb[129].mxu0  ;;  %v7981_v4 = vpop.f32.mrb[68].mxu1 }
 0xa09   : > { %v5542_v42 = vpop.f32.mrb[130].mxu0  ;;  %v7983_v7 = vpop.f32.mrb[69].mxu1 }
 0xa0a   : > { %8501 = vst.msk [vmem:[%s13780_s25 + $0x80] sm:$0xff] %vm1027_vm1, %v9588_v39  ;;  %v9589_v5 = vadd.f32 %v5542_v42, %v13636_v57  ;;  %v5544_v3 = vpop.f32.mrb[131].mxu0  ;;  %v7984_v26 = vpop.f32.mrb[70].mxu1  ;;  %v10584_v57 = vld [vmem:[#allocation7 + $0x88] ss:$16 sps:$4 sm:$0xff]  }
 0xa0b   : > { %v7057_v10 = vpop.permute.xlu1 %7056  ;;  %v10630_v42 = vld [vmem:[#allocation7 + $0x3c8] ss:$16 sps:$4 sm:$0xff]   ;;  %v7986_v44 = vpop.f32.mrb[71].mxu1 }
 0xa0c   : > { %8502 = vst.msk [vmem:[%s13780_s25 + $0x88] sm:$0xff] %vm1027_vm1, %v9589_v5  ;;  %8253 = vmatmul.mubr.bf16.gmra.mrb[236].mxu0 %v10578_v62  ;;  %8461 = vmatmul.mubr.bf16.gmra.mrb[164].mxu1 %v10624_v49  ;;  %v13937_v22 = vadd.f32 %v7984_v26, %v7057_v10  ;;  %v10585_v62 = vld [vmem:[#allocation7 + $0xac] ss:$16 sps:$4 sm:$0xff]   ;;  %v7053_v3 = vpop.permute.xlu0 %7052 }
 0xa0d   : > { %8260 = vmatprep.mubr.bf16.mxu0 %v10579_v36  ;;  %8468 = vmatprep.mubr.bf16.mxu1 %v10632_v30  ;;  %v10638_v49 = vld [vmem:[#allocation7 + $0x3ec] ss:$16 sps:$4 sm:$0xff]   ;;  %v13942_v7 = vadd.f32 %v7981_v4, %v7053_v3 }
 0xa0f   : > { %v5547_v6 = vpop.f32.mrb[132].mxu0 }
 0xa10   : > { %v9590_v39 = vadd.f32 %v5547_v6, %v13298_v45  ;;  %v5549_v41 = vpop.f32.mrb[133].mxu0  ;;  %v7989_v45 = vpop.f32.mrb[72].mxu1 }
 0xa11   : > { %v5550_v5 = vpop.f32.mrb[134].mxu0  ;;  %v7991_v26 = vpop.f32.mrb[73].mxu1 }
 0xa12   : > { %8503 = vst.msk [vmem:[%s13780_s25 + $0x90] sm:$0xff] %vm1027_vm1, %v9590_v39  ;;  %v9591_v36 = vadd.f32 %v5550_v5, %v13644_v61  ;;  %v5552_v30 = vpop.f32.mrb[135].mxu0  ;;  %v7992_v6 = vpop.f32.mrb[74].mxu1  ;;  %v10590_v61 = vld [vmem:[#allocation7 + $0xa8] ss:$16 sps:$4 sm:$0xff]  }
 0xa13   : > { %v7065_v41 = vpop.permute.xlu1 %7064  ;;  %v10636_v5 = vld [vmem:[#allocation7 + $0x3e8] ss:$16 sps:$4 sm:$0xff]   ;;  %v7994_v3 = vpop.f32.mrb[75].mxu1 }
 0xa14   : > { %8504 = vst.msk [vmem:[%s13780_s25 + $0x98] sm:$0xff] %vm1027_vm1, %v9591_v36  ;;  %8261 = vmatmul.mubr.bf16.gmra.mrb[240].mxu0 %v10584_v57  ;;  %8469 = vmatmul.mubr.bf16.gmra.mrb[168].mxu1 %v10630_v42  ;;  %v13947_v4 = vadd.f32 %v7992_v6, %v7065_v41  ;;  %v10591_v57 = vld [vmem:[#allocation7 + $0xcc] ss:$16 sps:$4 sm:$0xff]   ;;  %v7061_v42 = vpop.permute.xlu0 %7060  ;;  %v10596_v3 = vld [vmem:[#allocation7 + $0xc8] ss:$16 sps:$4 sm:$0xff]  }
 0xa15   : > { %8268 = vmatprep.mubr.bf16.mxu0 %v10585_v62  ;;  %8476 = vmatprep.mubr.bf16.mxu1 %v10638_v49  ;;  %v13952_v30 = vadd.f32 %v7989_v45, %v7061_v42  ;;  %v10597_v42 = vld [vmem:[#allocation7 + $0xec] ss:$16 sps:$4 sm:$0xff]  }
 0xa17   : > { %v5555_v10 = vpop.f32.mrb[136].mxu0  ;;  %v7073_v41 = vpop.permute.xlu1 %7072 }
 0xa18   : > { %v9592_v39 = vadd.f32 %v5555_v10, %v13315_v48  ;;  %v5557_v44 = vpop.f32.mrb[137].mxu0  ;;  %v7997_v48 = vpop.f32.mrb[76].mxu1 }
 0xa19   : > { %v5558_v36 = vpop.f32.mrb[138].mxu0  ;;  %v7999_v26 = vpop.f32.mrb[77].mxu1 }
 0xa1a   : > { %8505 = vst.msk [vmem:[%s13780_s25 + $0xa0] sm:$0xff] %vm1027_vm1, %v9592_v39  ;;  %v9593_v62 = vadd.f32 %v5558_v36, %v13652_v32  ;;  %v5560_v49 = vpop.f32.mrb[139].mxu0  ;;  %v8000_v6 = vpop.f32.mrb[78].mxu1 }
 0xa1b   : > { %v13957_v32 = vadd.f32 %v8000_v6, %v7073_v41  ;;  %v8002_v45 = vpop.f32.mrb[79].mxu1 }
 0xa1c   : > { %8506 = vst.msk [vmem:[%s13780_s25 + $0xa8] sm:$0xff] %vm1027_vm1, %v9593_v62  ;;  %8269 = vmatmul.mubr.bf16.gmra.mrb[244].mxu0 %v10590_v61  ;;  %8477 = vmatmul.mubr.bf16.gmra.mrb[172].mxu1 %v10636_v5  ;;  %v7069_v62 = vpop.permute.xlu0 %7068 }
 0xa1d   : > { %8276 = vmatprep.mubr.bf16.mxu0 %v10591_v57  ;;  %v13962_v57 = vadd.f32 %v7997_v48, %v7069_v62 }
 0xa1f   : > { %v5563_v10 = vpop.f32.mrb[140].mxu0 }
 0xa20   : > { %v9594_v44 = vadd.f32 %v5563_v10, %v13327_v16  ;;  %v5565_v39 = vpop.f32.mrb[141].mxu0  ;;  %v8005_v16 = vpop.f32.mrb[80].mxu1 }
 0xa21   : > { %v5566_v36 = vpop.f32.mrb[142].mxu0  ;;  %v8007_v49 = vpop.f32.mrb[81].mxu1 }
 0xa22   : > { %8507 = vst.msk [vmem:[%s13780_s25 + $0xb0] sm:$0xff] %vm1027_vm1, %v9594_v44  ;;  %v9595_v61 = vadd.f32 %v5566_v36, %v13660_v14  ;;  %v5568_v5 = vpop.f32.mrb[143].mxu0  ;;  %v8008_v26 = vpop.f32.mrb[82].mxu1  ;;  %v10602_v44 = vld [vmem:[#allocation7 + $0xe8] ss:$16 sps:$4 sm:$0xff]  }
 0xa23   : > { %v7081_v10 = vpop.permute.xlu1 %7080  ;;  %v8010_v14 = vpop.f32.mrb[83].mxu1  ;;  %v10605_v36 = vld [vmem:[#allocation7 + $0x10c] ss:$16 sps:$4 sm:$0xff]  }
 0xa24   : > { %8508 = vst.msk [vmem:[%s13780_s25 + $0xb8] sm:$0xff] %vm1027_vm1, %v9595_v61  ;;  %8277 = vmatmul.mubr.bf16.gmra.mrb[248].mxu0 %v10596_v3  ;;  %v13967_v45 = vadd.f32 %v8008_v26, %v7081_v10  ;;  %v7077_v62 = vpop.permute.xlu0 %7076 }
 0xa25   : > { %8284 = vmatprep.mubr.bf16.mxu0 %v10597_v42  ;;  %v13972_v61 = vadd.f32 %v8005_v16, %v7077_v62 }
 0xa27   : > { %v5571_v6 = vpop.f32.mrb[144].mxu0 }
 0xa28   : > { %v9596_v41 = vadd.f32 %v5571_v6, %v13348_v47  ;;  %v5573_v39 = vpop.f32.mrb[145].mxu0  ;;  %v8013_v47 = vpop.f32.mrb[84].mxu1 }
 0xa29   : > { %v5574_v48 = vpop.f32.mrb[146].mxu0  ;;  %v8015_v5 = vpop.f32.mrb[85].mxu1 }
 0xa2a   : > { %8509 = vst.msk [vmem:[%s13780_s25 + $0xc0] sm:$0xff] %vm1027_vm1, %v9596_v41  ;;  %v9597_v3 = vadd.f32 %v5574_v48, %v13668_v31  ;;  %v5576_v42 = vpop.f32.mrb[147].mxu0  ;;  %v8016_v49 = vpop.f32.mrb[86].mxu1  ;;  %v10603_v41 = vld [vmem:[#allocation7 + $0x108] ss:$16 sps:$4 sm:$0xff]  }
 0xa2b   : > { %v7089_v6 = vpop.permute.xlu1 %7088  ;;  %v8018_v31 = vpop.f32.mrb[87].mxu1  ;;  %v10611_v48 = vld [vmem:[#allocation7 + $0x12c] ss:$16 sps:$4 sm:$0xff]  }
 0xa2c   : > { %8510 = vst.msk [vmem:[%s13780_s25 + $0xc8] sm:$0xff] %vm1027_vm1, %v9597_v3  ;;  %8285 = vmatmul.mubr.bf16.gmra.mrb[252].mxu0 %v10602_v44  ;;  %v13977_v14 = vadd.f32 %v8016_v49, %v7089_v6  ;;  %v7085_v62 = vpop.permute.xlu0 %7084 }
 0xa2d   : > { %8292 = vmatprep.mubr.bf16.mxu0 %v10605_v36  ;;  %v13982_v3 = vadd.f32 %v8013_v47, %v7085_v62 }
 0xa2f   : > { %v5579_v26 = vpop.f32.mrb[148].mxu0 }
 0xa30   : > { %v9598_v10 = vadd.f32 %v5579_v26, %v13361_v18  ;;  %v5581_v39 = vpop.f32.mrb[149].mxu0  ;;  %v8021_v18 = vpop.f32.mrb[88].mxu1 }
 0xa31   : > { %v5582_v16 = vpop.f32.mrb[150].mxu0  ;;  %v8023_v42 = vpop.f32.mrb[89].mxu1 }
 0xa32   : > { %8511 = vst.msk [vmem:[%s13780_s25 + $0xd0] sm:$0xff] %vm1027_vm1, %v9598_v10  ;;  %v9599_v44 = vadd.f32 %v5582_v16, %v13676_v29  ;;  %v5584_v36 = vpop.f32.mrb[151].mxu0  ;;  %v8024_v5 = vpop.f32.mrb[90].mxu1  ;;  %v10609_v10 = vld [vmem:[#allocation7 + $0x128] ss:$16 sps:$4 sm:$0xff]  }
 0xa33   : > { %v7097_v26 = vpop.permute.xlu1 %7096  ;;  %v8026_v29 = vpop.f32.mrb[91].mxu1  ;;  %v10617_v16 = vld [vmem:[#allocation7 + $0x14c] ss:$16 sps:$4 sm:$0xff]  }
 0xa34   : > { %8512 = vst.msk [vmem:[%s13780_s25 + $0xd8] sm:$0xff] %vm1027_vm1, %v9599_v44  ;;  %8293 = vmatmul.mubr.bf16.gmra.mrb[0].mxu0 %v10603_v41  ;;  %v13987_v31 = vadd.f32 %v8024_v5, %v7097_v26  ;;  %v7093_v62 = vpop.permute.xlu0 %7092 }
 0xa35   : > { %8300 = vmatprep.mubr.bf16.mxu0 %v10611_v48  ;;  %v13992_v44 = vadd.f32 %v8021_v18, %v7093_v62 }
 0xa36   : > { %14554 = vst [vmem:[#allocation25_spill] sm:$0xff] %v13987_v31 }
 0xa37   : > { %v5587_v49 = vpop.f32.mrb[152].mxu0 }
 0xa38   : > { %v9600_v6 = vadd.f32 %v5587_v49, %v13378_v50  ;;  %v5589_v39 = vpop.f32.mrb[153].mxu0  ;;  %v8029_v50 = vpop.f32.mrb[92].mxu1 }
 0xa39   : > { %v5590_v47 = vpop.f32.mrb[154].mxu0  ;;  %v8031_v36 = vpop.f32.mrb[93].mxu1 }
 0xa3a   : > { %8513 = vst.msk [vmem:[%s13780_s25 + $0xe0] sm:$0xff] %vm1027_vm1, %v9600_v6  ;;  %v9601_v41 = vadd.f32 %v5590_v47, %v13684_v23  ;;  %v5592_v48 = vpop.f32.mrb[155].mxu0  ;;  %v8032_v42 = vpop.f32.mrb[94].mxu1  ;;  %v10615_v6 = vld [vmem:[#allocation7 + $0x148] ss:$16 sps:$4 sm:$0xff]  }
 0xa3b   : > { %v7105_v49 = vpop.permute.xlu1 %7104  ;;  %v8034_v23 = vpop.f32.mrb[95].mxu1  ;;  %v10623_v47 = vld [vmem:[#allocation7 + $0x16c] ss:$16 sps:$4 sm:$0xff]  }
 0xa3c   : > { %8514 = vst.msk [vmem:[%s13780_s25 + $0xe8] sm:$0xff] %vm1027_vm1, %v9601_v41  ;;  %8301 = vmatmul.mubr.bf16.gmra.mrb[4].mxu0 %v10609_v10  ;;  %v13997_v29 = vadd.f32 %v8032_v42, %v7105_v49  ;;  %v7101_v62 = vpop.permute.xlu0 %7100  ;;  %v8037_v48 = vpop.f32.mrb[96].mxu1 }
 0xa3d   : > { %8308 = vmatprep.mubr.bf16.mxu0 %v10617_v16  ;;  %v14002_v41 = vadd.f32 %v8029_v50, %v7101_v62 }
 0xa3e   : > { %14555 = vst [vmem:[#allocation24_spill] sm:$0xff] %v13997_v29 }
 0xa3f   : > { %v5595_v5 = vpop.f32.mrb[156].mxu0  ;;  %14556 = vst [vmem:[#allocation26_spill] sm:$0xff] %v14002_v41  ;;  %v7113_v36 = vpop.permute.xlu1 %7112 }
 0xa40   : > { %v9602_v26 = vadd.f32 %v5595_v5, %v13390_v24  ;;  %v5597_v39 = vpop.f32.mrb[157].mxu0  ;;  %v8039_v24 = vpop.f32.mrb[97].mxu1 }
 0xa41   : > { %v5598_v18 = vpop.f32.mrb[158].mxu0  ;;  %v8040_v42 = vpop.f32.mrb[98].mxu1 }
 0xa42   : > { %8515 = vst.msk [vmem:[%s13780_s25 + $0xf0] sm:$0xff] %vm1027_vm1, %v9602_v26  ;;  %v9603_v10 = vadd.f32 %v5598_v18, %v13686_v12  ;;  %v5600_v16 = vpop.f32.mrb[159].mxu0  ;;  %v8042_v5 = vpop.f32.mrb[99].mxu1  ;;  %v10621_v12 = vld [vmem:[#allocation7 + $0x168] ss:$16 sps:$4 sm:$0xff]   ;;  %v14007_v18 = vadd.f32 %v8040_v42, %v7113_v36 }
 0xa43   : > { %v8045_v39 = vpop.f32.mrb[100].mxu1  ;;  %v7109_v50 = vpop.permute.xlu0 %7108  ;;  %v10629_v16 = vld [vmem:[#allocation7 + $0x18c] ss:$16 sps:$4 sm:$0xff]  }
 0xa44   : > { %8516 = vst.msk [vmem:[%s13780_s25 + $0xf8] sm:$0xff] %vm1027_vm1, %v9603_v10  ;;  %8309 = vmatmul.mubr.bf16.gmra.mrb[8].mxu0 %v10615_v6  ;;  %14557 = vst [vmem:[#allocation28_spill] sm:$0xff] %v14007_v18  ;;  %v14009_v10 = vadd.f32 %v8037_v48, %v7109_v50  ;;  %v8047_v6 = vpop.f32.mrb[101].mxu1  ;;  %v7121_v5 = vpop.permute.xlu1 %7120  ;;  %v10635_v18 = vld [vmem:[#allocation7 + $0x1ac] ss:$16 sps:$4 sm:$0xff]  }
 0xa45   : > { %8316 = vmatprep.mubr.bf16.mxu0 %v10623_v47  ;;  %v8048_v29 = vpop.f32.mrb[102].mxu1  ;;  %v10627_v6 = vld [vmem:[#allocation7 + $0x188] ss:$16 sps:$4 sm:$0xff]  }
 0xa46   : > { %14558 = vst [vmem:[#allocation27_spill] sm:$0xff] %v14009_v10 }
 0xa47   : > { %v5603_v49 = vpop.f32.mrb[160].mxu0 }
 0xa48   : > { %v9604_v26 = vadd.f32 %v5603_v49, %v13694_v21  ;;  %v5605_v23 = vpop.f32.mrb[161].mxu0  ;;  %v8050_v21 = vpop.f32.mrb[103].mxu1 }
 0xa49   : > { %v5606_v62 = vpop.f32.mrb[162].mxu0  ;;  %v8053_v36 = vpop.f32.mrb[104].mxu1 }
 0xa4a   : > { %8517 = vst.msk [vmem:[%s13780_s25 + $0x100] sm:$0xff] %vm1027_vm1, %v9604_v26  ;;  %v9605_v47 = vadd.f32 %v5606_v62, %v13696_v25  ;;  %v5608_v24 = vpop.f32.mrb[163].mxu0  ;;  %v8055_v42 = vpop.f32.mrb[105].mxu1  ;;  %v14017_v25 = vadd.f32 %v8048_v29, %v7121_v5 }
 0xa4b   : > { %v7129_v49 = vpop.permute.xlu1 %7128  ;;  %v8056_v48 = vpop.f32.mrb[106].mxu1 }
 0xa4c   : > { %8518 = vst.msk [vmem:[%s13780_s25 + $0x108] sm:$0xff] %vm1027_vm1, %v9605_v47  ;;  %8317 = vmatmul.mubr.bf16.gmra.mrb[12].mxu0 %v10621_v12  ;;  %14559 = vst [vmem:[#allocation29_spill] sm:$0xff] %v14017_v25  ;;  %v8058_v62 = vpop.f32.mrb[107].mxu1  ;;  %v7117_v21 = vpop.permute.xlu0 %7116 }
 0xa4d   : > { %8324 = vmatprep.mubr.bf16.mxu0 %v10629_v16  ;;  %v8061_v47 = vpop.f32.mrb[108].mxu1  ;;  %v14022_v42 = vadd.f32 %v8045_v39, %v7117_v21  ;;  %v14027_v39 = vadd.f32 %v8056_v48, %v7129_v49 }
 0xa4e   : > { %v8063_v10 = vpop.f32.mrb[109].mxu1 }
 0xa4f   : > { %v5611_v23 = vpop.f32.mrb[164].mxu0  ;;  %14560 = vst [vmem:[#allocation31_spill] sm:$0xff] %v14022_v42  ;;  %v7137_v41 = vpop.permute.xlu1 %7136  ;;  %14561 = vst [vmem:[#allocation30_spill] sm:$0xff] %v14027_v39 }
 0xa50   : > { %v9606_v50 = vadd.f32 %v5611_v23, %v13704_v51  ;;  %v5613_v26 = vpop.f32.mrb[165].mxu0  ;;  %v8064_v51 = vpop.f32.mrb[110].mxu1 }
 0xa51   : > { %v5614_v24 = vpop.f32.mrb[166].mxu0  ;;  %v8066_v29 = vpop.f32.mrb[111].mxu1 }
 0xa52   : > { %8519 = vst.msk [vmem:[%s13780_s25 + $0x110] sm:$0xff] %vm1027_vm1, %v9606_v50  ;;  %v9607_v12 = vadd.f32 %v5614_v24, %v13706_v55  ;;  %v5616_v16 = vpop.f32.mrb[167].mxu0  ;;  %v8069_v5 = vpop.f32.mrb[112].mxu1  ;;  %v10633_v24 = vld [vmem:[#allocation7 + $0x1a8] ss:$16 sps:$4 sm:$0xff]  }
 0xa53   : > { %v7125_v23 = vpop.permute.xlu0 %7124  ;;  %v8071_v50 = vpop.f32.mrb[113].mxu1 }
 0xa54   : > { %8520 = vst.msk [vmem:[%s13780_s25 + $0x118] sm:$0xff] %vm1027_vm1, %v9607_v12  ;;  %8325 = vmatmul.mubr.bf16.gmra.mrb[16].mxu0 %v10627_v6  ;;  %v7145_v10 = vpop.permute.xlu1 %7144  ;;  %v14029_v16 = vadd.f32 %v8053_v36, %v7125_v23  ;;  %v10641_v6 = vld [vmem:[#allocation7 + $0x1cc] ss:$16 sps:$4 sm:$0xff]   ;;  %v8072_v21 = vpop.f32.mrb[114].mxu1 }
 0xa55   : > { %8332 = vmatprep.mubr.bf16.mxu0 %v10635_v18  ;;  %v8074_v25 = vpop.f32.mrb[115].mxu1 }
 0xa56   : > { %14562 = vst [vmem:[#allocation32_spill] sm:$0xff] %v14029_v16  ;;  %v8077_v42 = vpop.f32.mrb[116].mxu1  ;;  %v14039_v25 = vadd.f32 %v8064_v51, %v7137_v41 }
 0xa57   : > { %v5619_v26 = vpop.f32.mrb[168].mxu0  ;;  %v7133_v36 = vpop.permute.xlu0 %7132 }
 0xa58   : > { %v9608_v55 = vadd.f32 %v5619_v26, %v13714_v58  ;;  %v5621_v62 = vpop.f32.mrb[169].mxu0  ;;  %v8079_v58 = vpop.f32.mrb[117].mxu1  ;;  %14563 = vst [vmem:[#allocation34_spill] sm:$0xff] %v14039_v25 }
 0xa59   : > { %v5622_v12 = vpop.f32.mrb[170].mxu0  ;;  %v7153_v26 = vpop.permute.xlu1 %7152  ;;  %v10639_v62 = vld [vmem:[#allocation7 + $0x1c8] ss:$16 sps:$4 sm:$0xff]  }
 0xa5a   : > { %8521 = vst.msk [vmem:[%s13780_s25 + $0x120] sm:$0xff] %vm1027_vm1, %v9608_v55  ;;  %v9609_v18 = vadd.f32 %v5622_v12, %v13716_v11  ;;  %v5624_v29 = vpop.f32.mrb[171].mxu0  ;;  %v8080_v49 = vpop.f32.mrb[118].mxu1  ;;  %v14041_v12 = vadd.f32 %v8061_v47, %v7133_v36 }
 0xa5b   : > { %v8082_v48 = vpop.f32.mrb[119].mxu1  ;;  %v10644_v29 = vld [vmem:[#allocation7 + $0x1ec] ss:$16 sps:$4 sm:$0xff]   ;;  %v7141_v16 = vpop.permute.xlu0 %7140 }
 0xa5c   : > { %8522 = vst.msk [vmem:[%s13780_s25 + $0x128] sm:$0xff] %vm1027_vm1, %v9609_v18  ;;  %8333 = vmatmul.mubr.bf16.gmra.mrb[20].mxu0 %v10633_v24  ;;  %v14036_v50 = vpop.f32.mrb[120].mxu1  ;;  %14564 = vst [vmem:[#allocation33_spill] sm:$0xff] %v14041_v12 }
 0xa5d   : > { %8340 = vmatprep.mubr.bf16.mxu0 %v10641_v6  ;;  %v8087_v24 = vpop.f32.mrb[121].mxu1  ;;  %v7161_v58 = vpop.permute.xlu1 %7160 }
 0xa5e   : > { %v8088_v39 = vpop.f32.mrb[122].mxu1  ;;  %v14057_v24 = vadd.f32 %v8069_v5, %v7141_v16 }
 0xa5f   : > { %v5627_v23 = vpop.f32.mrb[172].mxu0  ;;  %v8090_v31 = vpop.f32.mrb[123].mxu1 }
 0xa60   : > { %v9610_v55 = vadd.f32 %v5627_v23, %v13724_v38  ;;  %v5629_v11 = vpop.f32.mrb[173].mxu0  ;;  %v14048_v38 = vpop.f32.mrb[124].mxu1  ;;  %v14055_v31 = vadd.f32 %v8072_v21, %v7145_v10 }
 0xa61   : > { %v5630_v18 = vpop.f32.mrb[174].mxu0  ;;  %v8095_v41 = vpop.f32.mrb[125].mxu1  ;;  %v10642_v11 = vld [vmem:[#allocation7 + $0x1e8] ss:$16 sps:$4 sm:$0xff]  }
 0xa62   : > { %8523 = vst.msk [vmem:[%s13780_s25 + $0x130] sm:$0xff] %vm1027_vm1, %v9610_v55  ;;  %v9611_v6 = vadd.f32 %v5630_v18, %v13726_v37  ;;  %v5632_v48 = vpop.f32.mrb[175].mxu0  ;;  %v14050_v47 = vpop.permute.xlu1 %7168  ;;  %14565 = vst [vmem:[#allocation35_spill] sm:$0xff] %v14055_v31 }
 0xa63   : > { %v14052_v51 = vpop.f32.mrb[126].mxu1  ;;  %v7149_v23 = vpop.permute.xlu0 %7148 }
 0xa64   : > { %8524 = vst.msk [vmem:[%s13780_s25 + $0x138] sm:$0xff] %vm1027_vm1, %v9611_v6  ;;  %8341 = vmatmul.mubr.bf16.gmra.mrb[24].mxu0 %v10639_v62  ;;  %v8098_v62 = vpop.f32.mrb[127].mxu1  ;;  %v10647_v6 = vld [vmem:[#allocation7 + $0x20c] ss:$16 sps:$4 sm:$0xff]  }
 0xa65   : > { %8348 = vmatprep.mubr.bf16.mxu0 %v10644_v29 }
 0xa66   : > { %v14064_v12 = vpop.permute.xlu1 %7176 }
 0xa67   : > { %v5635_v36 = vpop.f32.mrb[176].mxu0  ;;  %v14059_v29 = vpop.f32.mrb[128].mxu1 }
 0xa68   : > { %v9612_v37 = vadd.f32 %v5635_v36, %v13734_v60  ;;  %v5637_v55 = vpop.f32.mrb[177].mxu0  ;;  %v8103_v25 = vpop.f32.mrb[129].mxu1 }
 0xa69   : > { %v5638_v18 = vpop.f32.mrb[178].mxu0  ;;  %v14066_v60 = vpop.f32.mrb[130].mxu1  ;;  %v14073_v25 = vadd.f32 %v8080_v49, %v7153_v26  ;;  %v14075_v55 = vadd.f32 %v8077_v42, %v7149_v23 }
 0xa6a   : > { %8525 = vst.msk [vmem:[%s13780_s25 + $0x140] sm:$0xff] %vm1027_vm1, %v9612_v37  ;;  %v9613_v48 = vadd.f32 %v5638_v18, %v13736_v33  ;;  %v5640_v41 = vpop.f32.mrb[179].mxu0  ;;  %v8106_v5 = vpop.f32.mrb[131].mxu1  ;;  %v10645_v37 = vld [vmem:[#allocation7 + $0x208] ss:$16 sps:$4 sm:$0xff]  }
 0xa6b   : > { %v7157_v10 = vpop.permute.xlu0 %7156  ;;  %14566 = vst [vmem:[#allocation36_spill] sm:$0xff] %v14073_v25  ;;  %v14077_v41 = vpop.permute.xlu1 %7184 }
 0xa6c   : > { %8526 = vst.msk [vmem:[%s13780_s25 + $0x148] sm:$0xff] %vm1027_vm1, %v9613_v48  ;;  %8349 = vmatmul.mubr.bf16.gmra.mrb[28].mxu0 %v10642_v11  ;;  %v10650_v48 = vld [vmem:[#allocation7 + $0x22c] ss:$16 sps:$4 sm:$0xff]  }
 0xa6d   : > { %8356 = vmatprep.mubr.bf16.mxu0 %v10647_v6 }
 0xa6f   : > { %v5643_v16 = vpop.f32.mrb[180].mxu0  ;;  %v14070_v21 = vpop.f32.mrb[132].mxu1 }
 0xa70   : > { %v9614_v36 = vadd.f32 %v5643_v16, %v13744_v9  ;;  %v5645_v33 = vpop.f32.mrb[181].mxu0  ;;  %v8111_v62 = vpop.f32.mrb[133].mxu1 }
 0xa71   : > { %v5646_v18 = vpop.f32.mrb[182].mxu0  ;;  %v14082_v5 = vpop.f32.mrb[134].mxu1  ;;  %v14092_v33 = vadd.f32 %v14036_v50, %v7157_v10 }
 0xa72   : > { %8527 = vst.msk [vmem:[%s13780_s25 + $0x150] sm:$0xff] %vm1027_vm1, %v9614_v36  ;;  %v9615_v11 = vadd.f32 %v5646_v18, %v13746_v28  ;;  %v5648_v6 = vpop.f32.mrb[183].mxu0  ;;  %v8114_v31 = vpop.f32.mrb[135].mxu1  ;;  %v10648_v36 = vld [vmem:[#allocation7 + $0x228] ss:$16 sps:$4 sm:$0xff]   ;;  %v14089_v28 = vadd.f32 %v8088_v39, %v7161_v58 }
 0xa73   : > { %v7165_v9 = vpop.permute.xlu0 %7164  ;;  %v7193_v42 = vpop.permute.xlu1 %7192  ;;  %v10653_v18 = vld [vmem:[#allocation7 + $0x24c] ss:$16 sps:$4 sm:$0xff]  }
 0xa74   : > { %8528 = vst.msk [vmem:[%s13780_s25 + $0x158] sm:$0xff] %vm1027_vm1, %v9615_v11  ;;  %8357 = vmatmul.mubr.bf16.gmra.mrb[32].mxu0 %v10645_v37 }
 0xa75   : > { %8364 = vmatprep.mubr.bf16.mxu0 %v10650_v48 }
 0xa77   : > { %v5651_v26 = vpop.f32.mrb[184].mxu0  ;;  %v14086_v49 = vpop.f32.mrb[136].mxu1 }
 0xa78   : > { %v9616_v23 = vadd.f32 %v5651_v26, %v13754_v2  ;;  %v5653_v16 = vpop.f32.mrb[185].mxu0  ;;  %v8119_v31 = vpop.f32.mrb[137].mxu1 }
 0xa79   : > { %v5654_v62 = vpop.f32.mrb[186].mxu0  ;;  %v8120_v37 = vpop.f32.mrb[138].mxu1  ;;  %v10656_v31 = vld [vmem:[#allocation7 + $0x26c] ss:$16 sps:$4 sm:$0xff]  }
 0xa7a   : > { %8529 = vst.msk [vmem:[%s13780_s25 + $0x160] sm:$0xff] %vm1027_vm1, %v9616_v23  ;;  %v9617_v48 = vadd.f32 %v5654_v62, %v13756_v8  ;;  %v5656_v11 = vpop.f32.mrb[187].mxu0  ;;  %v7173_v6 = vpop.permute.xlu0 %7172  ;;  %v10651_v23 = vld [vmem:[#allocation7 + $0x248] ss:$16 sps:$4 sm:$0xff]   ;;  %v14104_v8 = vadd.f32 %v14052_v51, %v14050_v47 }
 0xa7b   : > { %v8122_v25 = vpop.f32.mrb[139].mxu1  ;;  %v7201_v2 = vpop.permute.xlu1 %7200 }
 0xa7c   : > { %8530 = vst.msk [vmem:[%s13780_s25 + $0x168] sm:$0xff] %vm1027_vm1, %v9617_v48  ;;  %8365 = vmatmul.mubr.bf16.gmra.mrb[36].mxu0 %v10648_v36  ;;  %v14107_v25 = vadd.f32 %v14048_v38, %v7165_v9 }
 0xa7d   : > { %8372 = vmatprep.mubr.bf16.mxu0 %v10653_v18 }
 0xa7e   : > { %v7181_v39 = vpop.permute.xlu0 %7180 }
 0xa7f   : > { %v5659_v50 = vpop.f32.mrb[188].mxu0  ;;  %v14099_v58 = vpop.f32.mrb[140].mxu1 }
 0xa80   : > { %v9618_v10 = vadd.f32 %v5659_v50, %v13764_v0  ;;  %v5661_v26 = vpop.f32.mrb[189].mxu0  ;;  %v8127_v16 = vpop.f32.mrb[141].mxu1  ;;  %v14116_v0 = vadd.f32 %v14066_v60, %v14064_v12 }
 0xa81   : > { %v5662_v36 = vpop.f32.mrb[190].mxu0  ;;  %v8128_v62 = vpop.f32.mrb[142].mxu1  ;;  %v14120_v26 = vadd.f32 %v14059_v29, %v7173_v6  ;;  %v14131_v29 = vadd.f32 %v8120_v37, %v7193_v42 }
 0xa82   : > { %8531 = vst.msk [vmem:[%s13780_s25 + $0x170] sm:$0xff] %vm1027_vm1, %v9618_v10  ;;  %v9619_v18 = vadd.f32 %v5662_v36, %v13766_v53  ;;  %v5664_v48 = vpop.f32.mrb[191].mxu0  ;;  %v8130_v11 = vpop.f32.mrb[143].mxu1  ;;  %v10654_v53 = vld [vmem:[#allocation7 + $0x268] ss:$16 sps:$4 sm:$0xff]   ;;  %v14140_v37 = vadd.f32 %v8128_v62, %v7201_v2 }
 0xa83   : > { %v7209_v38 = vpop.permute.xlu1 %7208  ;;  %v7189_v47 = vpop.permute.xlu0 %7188  ;;  %v10660_v62 = vld [vmem:[#allocation7 + $0x2a8] ss:$16 sps:$4 sm:$0xff]  }
 0xa84   : > { %8532 = vst.msk [vmem:[%s13780_s25 + $0x178] sm:$0xff] %vm1027_vm1, %v9619_v18  ;;  %8373 = vmatmul.mubr.bf16.gmra.mrb[40].mxu0 %v10651_v23  ;;  %v10659_v23 = vld [vmem:[#allocation7 + $0x28c] ss:$16 sps:$4 sm:$0xff]  }
 0xa85   : > { %8380 = vmatprep.mubr.bf16.mxu0 %v10656_v31 }
 0xa87   : > { %v5667_v51 = vpop.f32.mrb[192].mxu0  ;;  %v8133_v9 = vpop.f32.mrb[144].mxu1 }
 0xa88   : > { %v9620_v50 = vadd.f32 %v5667_v51, %v13782_v35  ;;  %v5669_v10 = vpop.f32.mrb[193].mxu0  ;;  %v8135_v16 = vpop.f32.mrb[145].mxu1  ;;  %v14129_v35 = vadd.f32 %v14082_v5, %v14077_v41 }
 0xa89   : > { %v5670_v36 = vpop.f32.mrb[194].mxu0  ;;  %v8136_v18 = vpop.f32.mrb[146].mxu1  ;;  %v10657_v10 = vld [vmem:[#allocation7 + $0x288] ss:$16 sps:$4 sm:$0xff]   ;;  %v14135_v16 = vadd.f32 %v14070_v21, %v7181_v39  ;;  %v14149_v21 = vadd.f32 %v14086_v49, %v7189_v47 }
 0xa8a   : > { %8533 = vst.msk [vmem:[%s13780_s25 + $0x180] sm:$0xff] %vm1027_vm1, %v9620_v50  ;;  %v9621_v12 = vadd.f32 %v5670_v36, %v13785_v52  ;;  %v5672_v60 = vpop.f32.mrb[195].mxu0  ;;  %v8138_v31 = vpop.f32.mrb[147].mxu1 }
 0xa8b   : > { %v7197_v6 = vpop.permute.xlu0 %7196  ;;  %v7217_v48 = vpop.permute.xlu1 %7216 }
 0xa8c   : > { %8534 = vst.msk [vmem:[%s13780_s25 + $0x188] sm:$0xff] %vm1027_vm1, %v9621_v12  ;;  %8381 = vmatmul.mubr.bf16.gmra.mrb[44].mxu0 %v10654_v53  ;;  %v10662_v12 = vld [vmem:[#allocation7 + $0x2ac] ss:$16 sps:$4 sm:$0xff]  }
 0xa8d   : > { %8388 = vmatprep.mubr.bf16.mxu0 %v10659_v23  ;;  %v14142_v23 = vadd.f32 %v8136_v18, %v7209_v38  ;;  %v10665_v38 = vld [vmem:[#allocation7 + $0x2cc] ss:$16 sps:$4 sm:$0xff]  }
 0xa8f   : > { %v5675_v11 = vpop.f32.mrb[196].mxu0  ;;  %v8141_v51 = vpop.f32.mrb[148].mxu1 }
 0xa90   : > { %v9622_v50 = vadd.f32 %v5675_v11, %v13796_v34  ;;  %v5677_v52 = vpop.f32.mrb[197].mxu0  ;;  %v8143_v53 = vpop.f32.mrb[149].mxu1 }
 0xa91   : > { %v5678_v36 = vpop.f32.mrb[198].mxu0  ;;  %v8144_v41 = vpop.f32.mrb[150].mxu1  ;;  %v14156_v52 = vadd.f32 %v14099_v58, %v7197_v6  ;;  %v14567_v58 = vld [vmem:[#allocation15_spill] sm:$0xff] }
 0xa92   : > { %8535 = vst.msk [vmem:[%s13780_s25 + $0x190] sm:$0xff] %vm1027_vm1, %v9622_v50  ;;  %v9623_v5 = vadd.f32 %v5678_v36, %v13800_v46  ;;  %v5680_v42 = vpop.f32.mrb[199].mxu0  ;;  %v14144_v34 = vadd.f32 %v8144_v41, %v7217_v48  ;;  %v8146_v60 = vpop.f32.mrb[151].mxu1  ;;  %v10663_v36 = vld [vmem:[#allocation7 + $0x2c8] ss:$16 sps:$4 sm:$0xff]  }
 0xa93   : > { %v7205_v31 = vpop.permute.xlu0 %7204  ;;  %v14568_v41 = vld [vmem:[#allocation17_spill] sm:$0xff] }
 0xa94   : > { %8536 = vst.msk [vmem:[%s13780_s25 + $0x198] sm:$0xff] %vm1027_vm1, %v9623_v5  ;;  %8389 = vmatmul.mubr.bf16.gmra.mrb[48].mxu0 %v10657_v10  ;;  %v14158_v49 = vadd.f32 %v8133_v9, %v7205_v31  ;;  %v10671_v31 = vld [vmem:[#allocation7 + $0x30c] ss:$16 sps:$4 sm:$0xff]  }
 0xa95   : > { %8396 = vmatprep.mubr.bf16.mxu0 %v10662_v12  ;;  %v10668_v12 = vld [vmem:[#allocation7 + $0x2ec] ss:$16 sps:$4 sm:$0xff]  }
 0xa97   : > { %v5683_v39 = vpop.f32.mrb[200].mxu0  ;;  %v7213_v18 = vpop.permute.xlu0 %7212 }
 0xa98   : > { %v9624_v46 = vadd.f32 %v5683_v39, %v13808_v63  ;;  %v5685_v2 = vpop.f32.mrb[201].mxu0  ;;  %v14160_v47 = vadd.f32 %v8141_v51, %v7213_v18  ;;  %v14569_v39 = vld [vmem:[#allocation16_spill] sm:$0xff] }
 0xa99   : > { %v5686_v11 = vpop.f32.mrb[202].mxu0 }
 0xa9a   : > { %8537 = vst.msk [vmem:[%s13780_s25 + $0x1a0] sm:$0xff] %vm1027_vm1, %v9624_v46  ;;  %v9625_v48 = vadd.f32 %v5686_v11, %v13811_v27  ;;  %v5688_v50 = vpop.f32.mrb[203].mxu0  ;;  %v14570_v11 = vld [vmem:[#allocation19_spill] sm:$0xff] }
 0xa9c   : > { %8538 = vst.msk [vmem:[%s13780_s25 + $0x1a8] sm:$0xff] %vm1027_vm1, %v9625_v48  ;;  %8397 = vmatmul.mubr.bf16.gmra.mrb[52].mxu0 %v10660_v62  ;;  %v10669_v48 = vld [vmem:[#allocation7 + $0x308] ss:$16 sps:$4 sm:$0xff]  }
 0xa9d   : > { %8404 = vmatprep.mubr.bf16.mxu0 %v10665_v38 }
 0xa9f   : > { %v5691_v63 = vpop.f32.mrb[204].mxu0 }
 0xaa0   : > { %v9626_v10 = vadd.f32 %v5691_v63, %v13822_v56  ;;  %v5693_v53 = vpop.f32.mrb[205].mxu0  ;;  %v10666_v56 = vld [vmem:[#allocation7 + $0x2e8] ss:$16 sps:$4 sm:$0xff]   ;;  %v10674_v63 = vld [vmem:[#allocation7 + $0x32c] ss:$16 sps:$4 sm:$0xff]  }
 0xaa1   : > { %v5694_v27 = vpop.f32.mrb[206].mxu0 }
 0xaa2   : > { %8539 = vst.msk [vmem:[%s13780_s25 + $0x1b0] sm:$0xff] %vm1027_vm1, %v9626_v10  ;;  %v9627_v9 = vadd.f32 %v5694_v27, %v14567_v58  ;;  %v5696_v6 = vpop.f32.mrb[207].mxu0  ;;  %v14571_v10 = vld [vmem:[#allocation18_spill] sm:$0xff] }
 0xaa3   : > { %v10672_v6 = vld [vmem:[#allocation7 + $0x328] ss:$16 sps:$4 sm:$0xff]  }
 0xaa4   : > { %8540 = vst.msk [vmem:[%s13780_s25 + $0x1b8] sm:$0xff] %vm1027_vm1, %v9627_v9  ;;  %8405 = vmatmul.mubr.bf16.gmra.mrb[56].mxu0 %v10663_v36 }
 0xaa5   : > { %8412 = vmatprep.mubr.bf16.mxu0 %v10668_v12  ;;  %v14572_v12 = vld [vmem:[#allocation21_spill] sm:$0xff] }
 0xaa7   : > { %v5699_v51 = vpop.f32.mrb[208].mxu0 }
 0xaa8   : > { %v9628_v5 = vadd.f32 %v5699_v51, %v14568_v41  ;;  %v5701_v42 = vpop.f32.mrb[209].mxu0  ;;  %v14573_v41 = vld [vmem:[#allocation23_spill] sm:$0xff] }
 0xaa9   : > { %v5702_v60 = vpop.f32.mrb[210].mxu0 }
 0xaaa   : > { %8541 = vst.msk [vmem:[%s13780_s25 + $0x1c0] sm:$0xff] %vm1027_vm1, %v9628_v5  ;;  %v9629_v46 = vadd.f32 %v5702_v60, %v14569_v39  ;;  %v5704_v2 = vpop.f32.mrb[211].mxu0  ;;  %v14574_v60 = vld [vmem:[#allocation20_spill] sm:$0xff] }
 0xaab   : > { %v14575_v2 = vld [vmem:[#allocation22_spill] sm:$0xff] }
 0xaac   : > { %8542 = vst.msk [vmem:[%s13780_s25 + $0x1c8] sm:$0xff] %vm1027_vm1, %v9629_v46  ;;  %8413 = vmatmul.mubr.bf16.gmra.mrb[60].mxu0 %v10666_v56 }
 0xaad   : > { %8420 = vmatprep.mubr.bf16.mxu0 %v10671_v31 }
 0xaaf   : > { %v5707_v62 = vpop.f32.mrb[212].mxu0 }
 0xab0   : > { %v9630_v38 = vadd.f32 %v5707_v62, %v14570_v11  ;;  %v5709_v18 = vpop.f32.mrb[213].mxu0 }
 0xab1   : > { %v5710_v50 = vpop.f32.mrb[214].mxu0  ;;  %v7221_v18 = vpop.permute.xlu0 %7220 }
 0xab2   : > { %8543 = vst.msk [vmem:[%s13780_s25 + $0x1d0] sm:$0xff] %vm1027_vm1, %v9630_v38  ;;  %v9631_v53 = vadd.f32 %v5710_v50, %v14571_v10  ;;  %v5712_v36 = vpop.f32.mrb[215].mxu0  ;;  %v7225_v38 = vpop.permute.xlu1 %7224 }
 0xab4   : > { %8544 = vst.msk [vmem:[%s13780_s25 + $0x1d8] sm:$0xff] %vm1027_vm1, %v9631_v53  ;;  %8421 = vmatmul.mubr.bf16.gmra.mrb[64].mxu0 %v10669_v48 }
 0xab5   : > { %8428 = vmatprep.mubr.bf16.mxu0 %v10674_v63 }
 0xab7   : > { %v5715_v27 = vpop.f32.mrb[216].mxu0 }
 0xab8   : > { %v9632_v58 = vadd.f32 %v5715_v27, %v14572_v12  ;;  %v5717_v9 = vpop.f32.mrb[217].mxu0 }
 0xab9   : > { %v5718_v51 = vpop.f32.mrb[218].mxu0 }
 0xaba   : > { %8545 = vst.msk [vmem:[%s13780_s25 + $0x1e0] sm:$0xff] %vm1027_vm1, %v9632_v58  ;;  %v9633_v5 = vadd.f32 %v5718_v51, %v14573_v41  ;;  %v5720_v42 = vpop.f32.mrb[219].mxu0  ;;  %v7229_v41 = vpop.permute.xlu0 %7228 }
 0xabc   : > { %8546 = vst.msk [vmem:[%s13780_s25 + $0x1e8] sm:$0xff] %vm1027_vm1, %v9633_v5  ;;  %8429 = vmatmul.mubr.bf16.gmra.mrb[68].mxu0 %v10672_v6 }
 0xabf   : > { %v5723_v56 = vpop.f32.mrb[220].mxu0 }
 0xac0   : > { %v9634_v31 = vadd.f32 %v5723_v56, %v14574_v60  ;;  %v5725_v39 = vpop.f32.mrb[221].mxu0 }
 0xac1   : > { %v5726_v46 = vpop.f32.mrb[222].mxu0 }
 0xac2   : > { %8547 = vst.msk [vmem:[%s13780_s25 + $0x1f0] sm:$0xff] %vm1027_vm1, %v9634_v31  ;;  %v9635_v62 = vadd.f32 %v5726_v46, %v14575_v2  ;;  %v5728_v11 = vpop.f32.mrb[223].mxu0 }
 0xac4   : > { %8548 = vst.msk [vmem:[%s13780_s25 + $0x1f8] sm:$0xff] %vm1027_vm1, %v9635_v62 }
 0xac7   : > { %v8230_v48 = vpop.f32.mrb[224].mxu0  ;;  %v8438_v50 = vpop.f32.mrb[152].mxu1 }
 0xac8   : > { %v8231_v63 = vadd.f32 %v8230_v48, %v13884_v59  ;;  %v8232_v10 = vpop.f32.mrb[225].mxu0  ;;  %v8440_v53 = vpop.f32.mrb[153].mxu1  ;;  %v9740_v36 = vadd.f32 %v8438_v50, %v7221_v18 }
 0xac9   : > { %v8233_v27 = vpop.f32.mrb[226].mxu0  ;;  %v8441_v12 = vpop.f32.mrb[154].mxu1 }
 0xaca   : > { %8549 = vst.msk [vmem:[%s14199_s29] sm:$0xff] %vm1027_vm1, %v8231_v63  ;;  %v8234_v58 = vadd.f32 %v8233_v27, %v13889_v54  ;;  %v8235_v9 = vpop.f32.mrb[227].mxu0  ;;  %v9741_v6 = vadd.f32 %v8441_v12, %v7225_v38  ;;  %v8443_v51 = vpop.f32.mrb[155].mxu1  ;;  %8601 = vst.msk [vmem:[%s14199_s29 + $0x1a0] sm:$0xff] %vm1027_vm1, %v9740_v36 }
 0xacb   : > { %v7233_v59 = vpop.permute.xlu1 %7232  ;;  %v7237_v18 = vpop.permute.xlu0 %7236 }
 0xacc   : > { %8550 = vst.msk [vmem:[%s14199_s29 + $0x8] sm:$0xff] %vm1027_vm1, %v8234_v58  ;;  %8602 = vst.msk [vmem:[%s14199_s29 + $0x1a8] sm:$0xff] %vm1027_vm1, %v9741_v6 }
 0xacf   : > { %v8238_v5 = vpop.f32.mrb[228].mxu0  ;;  %v8446_v42 = vpop.f32.mrb[156].mxu1 }
 0xad0   : > { %v8239_v56 = vadd.f32 %v8238_v5, %v13897_v20  ;;  %v8240_v54 = vpop.f32.mrb[229].mxu0  ;;  %v8448_v60 = vpop.f32.mrb[157].mxu1  ;;  %v9742_v31 = vadd.f32 %v8446_v42, %v7229_v41 }
 0xad1   : > { %v8241_v39 = vpop.f32.mrb[230].mxu0  ;;  %v8449_v46 = vpop.f32.mrb[158].mxu1 }
 0xad2   : > { %8551 = vst.msk [vmem:[%s14199_s29 + $0x10] sm:$0xff] %vm1027_vm1, %v8239_v56  ;;  %v8242_v2 = vadd.f32 %v8241_v39, %v13902_v1  ;;  %v8243_v62 = vpop.f32.mrb[231].mxu0  ;;  %v9743_v11 = vadd.f32 %v8449_v46, %v7233_v59  ;;  %v8451_v38 = vpop.f32.mrb[159].mxu1  ;;  %8603 = vst.msk [vmem:[%s14199_s29 + $0x1b0] sm:$0xff] %vm1027_vm1, %v9742_v31 }
 0xad3   : > { %v7241_v20 = vpop.permute.xlu1 %7240  ;;  %v7245_v51 = vpop.permute.xlu0 %7244 }
 0xad4   : > { %8552 = vst.msk [vmem:[%s14199_s29 + $0x18] sm:$0xff] %vm1027_vm1, %v8242_v2  ;;  %8604 = vst.msk [vmem:[%s14199_s29 + $0x1b8] sm:$0xff] %vm1027_vm1, %v9743_v11 }
 0xad7   : > { %v8246_v48 = vpop.f32.mrb[232].mxu0  ;;  %v8454_v50 = vpop.f32.mrb[160].mxu1 }
 0xad8   : > { %v8247_v63 = vadd.f32 %v8246_v48, %v13912_v15  ;;  %v8248_v1 = vpop.f32.mrb[233].mxu0  ;;  %v8456_v10 = vpop.f32.mrb[161].mxu1  ;;  %v9744_v53 = vadd.f32 %v8454_v50, %v7237_v18 }
 0xad9   : > { %v8249_v36 = vpop.f32.mrb[234].mxu0  ;;  %v8457_v27 = vpop.f32.mrb[162].mxu1 }
 0xada   : > { %8553 = vst.msk [vmem:[%s14199_s29 + $0x20] sm:$0xff] %vm1027_vm1, %v8247_v63  ;;  %v8250_v12 = vadd.f32 %v8249_v36, %v13907_v17  ;;  %v8251_v58 = vpop.f32.mrb[235].mxu0  ;;  %v9745_v9 = vadd.f32 %v8457_v27, %v7241_v20  ;;  %v8459_v6 = vpop.f32.mrb[163].mxu1  ;;  %8605 = vst.msk [vmem:[%s14199_s29 + $0x1c0] sm:$0xff] %vm1027_vm1, %v9744_v53 }
 0xadb   : > { %v7249_v15 = vpop.permute.xlu1 %7248  ;;  %v7253_v62 = vpop.permute.xlu0 %7252 }
 0xadc   : > { %8554 = vst.msk [vmem:[%s14199_s29 + $0x28] sm:$0xff] %vm1027_vm1, %v8250_v12  ;;  %8606 = vst.msk [vmem:[%s14199_s29 + $0x1c8] sm:$0xff] %vm1027_vm1, %v9745_v9 }
 0xadf   : > { %v8254_v59 = vpop.f32.mrb[236].mxu0  ;;  %v8462_v41 = vpop.f32.mrb[164].mxu1 }
 0xae0   : > { %v8255_v5 = vadd.f32 %v8254_v59, %v13922_v40  ;;  %v8256_v17 = vpop.f32.mrb[237].mxu0  ;;  %v8464_v42 = vpop.f32.mrb[165].mxu1  ;;  %v9746_v56 = vadd.f32 %v8462_v41, %v7245_v51 }
 0xae1   : > { %v8257_v54 = vpop.f32.mrb[238].mxu0  ;;  %v8465_v60 = vpop.f32.mrb[166].mxu1 }
 0xae2   : > { %8555 = vst.msk [vmem:[%s14199_s29 + $0x30] sm:$0xff] %vm1027_vm1, %v8255_v5  ;;  %v8258_v31 = vadd.f32 %v8257_v54, %v13917_v13  ;;  %v8259_v39 = vpop.f32.mrb[239].mxu0  ;;  %v9747_v46 = vadd.f32 %v8465_v60, %v7249_v15  ;;  %v8467_v2 = vpop.f32.mrb[167].mxu1  ;;  %8607 = vst.msk [vmem:[%s14199_s29 + $0x1d0] sm:$0xff] %vm1027_vm1, %v9746_v56 }
 0xae3   : > { %v7257_v40 = vpop.permute.xlu1 %7256 }
 0xae4   : > { %8556 = vst.msk [vmem:[%s14199_s29 + $0x38] sm:$0xff] %vm1027_vm1, %v8258_v31  ;;  %8608 = vst.msk [vmem:[%s14199_s29 + $0x1d8] sm:$0xff] %vm1027_vm1, %v9747_v46 }
 0xae7   : > { %v8262_v11 = vpop.f32.mrb[240].mxu0  ;;  %v8470_v38 = vpop.f32.mrb[168].mxu1 }
 0xae8   : > { %v8263_v20 = vadd.f32 %v8262_v11, %v13932_v19  ;;  %v8264_v13 = vpop.f32.mrb[241].mxu0  ;;  %v8472_v18 = vpop.f32.mrb[169].mxu1  ;;  %v9748_v48 = vadd.f32 %v8470_v38, %v7253_v62 }
 0xae9   : > { %v8265_v50 = vpop.f32.mrb[242].mxu0  ;;  %v8473_v63 = vpop.f32.mrb[170].mxu1 }
 0xaea   : > { %8557 = vst.msk [vmem:[%s14199_s29 + $0x40] sm:$0xff] %vm1027_vm1, %v8263_v20  ;;  %v8266_v1 = vadd.f32 %v8265_v50, %v13927_v43  ;;  %v8267_v10 = vpop.f32.mrb[243].mxu0  ;;  %v9749_v53 = vadd.f32 %v8473_v63, %v7257_v40  ;;  %v8475_v36 = vpop.f32.mrb[171].mxu1  ;;  %8609 = vst.msk [vmem:[%s14199_s29 + $0x1e0] sm:$0xff] %vm1027_vm1, %v9748_v48 }
 0xaeb   : > { %v7261_v19 = vpop.permute.xlu0 %7260  ;;  %v7265_v27 = vpop.permute.xlu1 %7264  ;;  %v14576_v36 = vld [vmem:[#allocation25_spill] sm:$0xff] }
 0xaec   : > { %8558 = vst.msk [vmem:[%s14199_s29 + $0x48] sm:$0xff] %vm1027_vm1, %v8266_v1  ;;  %8610 = vst.msk [vmem:[%s14199_s29 + $0x1e8] sm:$0xff] %vm1027_vm1, %v9749_v53 }
 0xaef   : > { %v8270_v12 = vpop.f32.mrb[244].mxu0  ;;  %v8478_v58 = vpop.f32.mrb[172].mxu1 }
 0xaf0   : > { %v8271_v9 = vadd.f32 %v8270_v12, %v13942_v7  ;;  %v8272_v43 = vpop.f32.mrb[245].mxu0  ;;  %v8480_v6 = vpop.f32.mrb[173].mxu1  ;;  %v9750_v15 = vadd.f32 %v8478_v58, %v7261_v19 }
 0xaf1   : > { %v8273_v51 = vpop.f32.mrb[246].mxu0  ;;  %v8481_v59 = vpop.f32.mrb[174].mxu1  ;;  %v14578_v43 = vld [vmem:[#allocation24_spill] sm:$0xff] }
 0xaf2   : > { %8559 = vst.msk [vmem:[%s14199_s29 + $0x50] sm:$0xff] %vm1027_vm1, %v8271_v9  ;;  %v8274_v41 = vadd.f32 %v8273_v51, %v13937_v22  ;;  %v8275_v5 = vpop.f32.mrb[247].mxu0  ;;  %v9751_v17 = vadd.f32 %v8481_v59, %v7265_v27  ;;  %8611 = vst.msk [vmem:[%s14199_s29 + $0x1f0] sm:$0xff] %vm1027_vm1, %v9750_v15  ;;  %v8483_v42 = vpop.f32.mrb[175].mxu1  ;;  %v14579_v51 = vld [vmem:[#allocation27_spill] sm:$0xff] }
 0xaf4   : > { %8560 = vst.msk [vmem:[%s14199_s29 + $0x58] sm:$0xff] %vm1027_vm1, %v8274_v41  ;;  %8612 = vst.msk [vmem:[%s14199_s29 + $0x1f8] sm:$0xff] %vm1027_vm1, %v9751_v17  ;;  %v14580_v17 = vld [vmem:[#allocation28_spill] sm:$0xff] }
 0xaf7   : > { %v8278_v7 = vpop.f32.mrb[248].mxu0 }
 0xaf8   : > { %v8279_v56 = vadd.f32 %v8278_v7, %v13952_v30  ;;  %v8280_v54 = vpop.f32.mrb[249].mxu0 }
 0xaf9   : > { %v8281_v60 = vpop.f32.mrb[250].mxu0  ;;  %v14581_v54 = vld [vmem:[#allocation31_spill] sm:$0xff] }
 0xafa   : > { %8561 = vst.msk [vmem:[%s14199_s29 + $0x60] sm:$0xff] %vm1027_vm1, %v8279_v56  ;;  %v8282_v22 = vadd.f32 %v8281_v60, %v13947_v4  ;;  %v8283_v31 = vpop.f32.mrb[251].mxu0 }
 0xafc   : > { %8562 = vst.msk [vmem:[%s14199_s29 + $0x68] sm:$0xff] %vm1027_vm1, %v8282_v22 }
 0xaff   : > { %v8286_v39 = vpop.f32.mrb[252].mxu0 }
 0xb00   : > { %v8287_v46 = vadd.f32 %v8286_v39, %v13962_v57  ;;  %v8288_v2 = vpop.f32.mrb[253].mxu0  ;;  %v14582_v39 = vld [vmem:[#allocation29_spill] sm:$0xff] }
 0xb01   : > { %v8289_v40 = vpop.f32.mrb[254].mxu0 }
 0xb02   : > { %8563 = vst.msk [vmem:[%s14199_s29 + $0x70] sm:$0xff] %vm1027_vm1, %v8287_v46  ;;  %v8290_v30 = vadd.f32 %v8289_v40, %v13957_v32  ;;  %v8291_v62 = vpop.f32.mrb[255].mxu0 }
 0xb04   : > { %8564 = vst.msk [vmem:[%s14199_s29 + $0x78] sm:$0xff] %vm1027_vm1, %v8290_v30  ;;  %v14583_v30 = vld [vmem:[#allocation32_spill] sm:$0xff] }
 0xb07   : > { %v8294_v11 = vpop.f32.mrb[0].mxu0 }
 0xb08   : > { %v8295_v4 = vadd.f32 %v8294_v11, %v13972_v61  ;;  %v8296_v38 = vpop.f32.mrb[1].mxu0 }
 0xb09   : > { %v8297_v20 = vpop.f32.mrb[2].mxu0  ;;  %v14584_v38 = vld [vmem:[#allocation30_spill] sm:$0xff] }
 0xb0a   : > { %8565 = vst.msk [vmem:[%s14199_s29 + $0x80] sm:$0xff] %vm1027_vm1, %v8295_v4  ;;  %v8298_v57 = vadd.f32 %v8297_v20, %v13967_v45  ;;  %v8299_v13 = vpop.f32.mrb[3].mxu0 }
 0xb0c   : > { %8566 = vst.msk [vmem:[%s14199_s29 + $0x88] sm:$0xff] %vm1027_vm1, %v8298_v57 }
 0xb0f   : > { %v8302_v18 = vpop.f32.mrb[4].mxu0 }
 0xb10   : > { %v8303_v32 = vadd.f32 %v8302_v18, %v13982_v3  ;;  %v8304_v48 = vpop.f32.mrb[5].mxu0  ;;  %v14585_v18 = vld [vmem:[#allocation33_spill] sm:$0xff] }
 0xb11   : > { %v8305_v50 = vpop.f32.mrb[6].mxu0 }
 0xb12   : > { %8567 = vst.msk [vmem:[%s14199_s29 + $0x90] sm:$0xff] %vm1027_vm1, %v8303_v32  ;;  %v8306_v61 = vadd.f32 %v8305_v50, %v13977_v14  ;;  %v8307_v63 = vpop.f32.mrb[7].mxu0  ;;  %v14577_v14 = vld [vmem:[#allocation26_spill] sm:$0xff] }
 0xb14   : > { %8568 = vst.msk [vmem:[%s14199_s29 + $0x98] sm:$0xff] %vm1027_vm1, %v8306_v61  ;;  %v14586_v61 = vld [vmem:[#allocation34_spill] sm:$0xff] }
 0xb17   : > { %v8310_v1 = vpop.f32.mrb[8].mxu0 }
 0xb18   : > { %v8311_v45 = vadd.f32 %v8310_v1, %v13992_v44  ;;  %v8312_v10 = vpop.f32.mrb[9].mxu0 }
 0xb19   : > { %v8313_v53 = vpop.f32.mrb[10].mxu0 }
 0xb1a   : > { %8569 = vst.msk [vmem:[%s14199_s29 + $0xa0] sm:$0xff] %vm1027_vm1, %v8311_v45  ;;  %v8314_v3 = vadd.f32 %v8313_v53, %v14576_v36  ;;  %v8315_v19 = vpop.f32.mrb[11].mxu0 }
 0xb1c   : > { %8570 = vst.msk [vmem:[%s14199_s29 + $0xa8] sm:$0xff] %vm1027_vm1, %v8314_v3  ;;  %v14587_v3 = vld [vmem:[#allocation35_spill] sm:$0xff] }
 0xb1f   : > { %v8318_v27 = vpop.f32.mrb[12].mxu0 }
 0xb20   : > { %v8319_v12 = vadd.f32 %v8318_v27, %v14577_v14  ;;  %v8320_v58 = vpop.f32.mrb[13].mxu0 }
 0xb21   : > { %v8321_v9 = vpop.f32.mrb[14].mxu0 }
 0xb22   : > { %8571 = vst.msk [vmem:[%s14199_s29 + $0xb0] sm:$0xff] %vm1027_vm1, %v8319_v12  ;;  %v8322_v44 = vadd.f32 %v8321_v9, %v14578_v43  ;;  %v8323_v6 = vpop.f32.mrb[15].mxu0  ;;  %v14588_v43 = vld [vmem:[#allocation36_spill] sm:$0xff] }
 0xb24   : > { %8572 = vst.msk [vmem:[%s14199_s29 + $0xb8] sm:$0xff] %vm1027_vm1, %v8322_v44 }
 0xb27   : > { %v8326_v15 = vpop.f32.mrb[16].mxu0 }
 0xb28   : > { %v8327_v59 = vadd.f32 %v8326_v15, %v14579_v51  ;;  %v8328_v41 = vpop.f32.mrb[17].mxu0 }
 0xb29   : > { %v8329_v5 = vpop.f32.mrb[18].mxu0 }
 0xb2a   : > { %8573 = vst.msk [vmem:[%s14199_s29 + $0xc0] sm:$0xff] %vm1027_vm1, %v8327_v59  ;;  %v8330_v42 = vadd.f32 %v8329_v5, %v14580_v17  ;;  %v8331_v7 = vpop.f32.mrb[19].mxu0 }
 0xb2c   : > { %8574 = vst.msk [vmem:[%s14199_s29 + $0xc8] sm:$0xff] %vm1027_vm1, %v8330_v42 }
 0xb2f   : > { %v8334_v56 = vpop.f32.mrb[20].mxu0 }
 0xb30   : > { %v8335_v60 = vadd.f32 %v8334_v56, %v14581_v54  ;;  %v8336_v22 = vpop.f32.mrb[21].mxu0 }
 0xb31   : > { %v8337_v31 = vpop.f32.mrb[22].mxu0 }
 0xb32   : > { %8575 = vst.msk [vmem:[%s14199_s29 + $0xd0] sm:$0xff] %vm1027_vm1, %v8335_v60  ;;  %v8338_v46 = vadd.f32 %v8337_v31, %v14582_v39  ;;  %v8339_v2 = vpop.f32.mrb[23].mxu0 }
 0xb34   : > { %8576 = vst.msk [vmem:[%s14199_s29 + $0xd8] sm:$0xff] %vm1027_vm1, %v8338_v46 }
 0xb37   : > { %v8342_v40 = vpop.f32.mrb[24].mxu0 }
 0xb38   : > { %v8343_v62 = vadd.f32 %v8342_v40, %v14583_v30  ;;  %v8344_v11 = vpop.f32.mrb[25].mxu0 }
 0xb39   : > { %v8345_v4 = vpop.f32.mrb[26].mxu0 }
 0xb3a   : > { %8577 = vst.msk [vmem:[%s14199_s29 + $0xe0] sm:$0xff] %vm1027_vm1, %v8343_v62  ;;  %v8346_v20 = vadd.f32 %v8345_v4, %v14584_v38  ;;  %v8347_v57 = vpop.f32.mrb[27].mxu0 }
 0xb3c   : > { %8578 = vst.msk [vmem:[%s14199_s29 + $0xe8] sm:$0xff] %vm1027_vm1, %v8346_v20 }
 0xb3f   : > { %v8350_v13 = vpop.f32.mrb[28].mxu0 }
 0xb40   : > { %v8351_v32 = vadd.f32 %v8350_v13, %v14585_v18  ;;  %v8352_v48 = vpop.f32.mrb[29].mxu0 }
 0xb41   : > { %v8353_v50 = vpop.f32.mrb[30].mxu0 }
 0xb42   : > { %8579 = vst.msk [vmem:[%s14199_s29 + $0xf0] sm:$0xff] %vm1027_vm1, %v8351_v32  ;;  %v8354_v63 = vadd.f32 %v8353_v50, %v14586_v61  ;;  %v8355_v1 = vpop.f32.mrb[31].mxu0 }
 0xb44   : > { %8580 = vst.msk [vmem:[%s14199_s29 + $0xf8] sm:$0xff] %vm1027_vm1, %v8354_v63 }
 0xb47   : > { %v8358_v45 = vpop.f32.mrb[32].mxu0 }
 0xb48   : > { %v8359_v10 = vadd.f32 %v8358_v45, %v14057_v24  ;;  %v8360_v53 = vpop.f32.mrb[33].mxu0 }
 0xb49   : > { %v8361_v36 = vpop.f32.mrb[34].mxu0 }
 0xb4a   : > { %8581 = vst.msk [vmem:[%s14199_s29 + $0x100] sm:$0xff] %vm1027_vm1, %v8359_v10  ;;  %v8362_v19 = vadd.f32 %v8361_v36, %v14587_v3  ;;  %v8363_v27 = vpop.f32.mrb[35].mxu0 }
 0xb4c   : > { %8582 = vst.msk [vmem:[%s14199_s29 + $0x108] sm:$0xff] %vm1027_vm1, %v8362_v19 }
 0xb4f   : > { %v8366_v14 = vpop.f32.mrb[36].mxu0 }
 0xb50   : > { %v8367_v12 = vadd.f32 %v8366_v14, %v14075_v55  ;;  %v8368_v58 = vpop.f32.mrb[37].mxu0 }
 0xb51   : > { %v8369_v9 = vpop.f32.mrb[38].mxu0 }
 0xb52   : > { %8583 = vst.msk [vmem:[%s14199_s29 + $0x110] sm:$0xff] %vm1027_vm1, %v8367_v12  ;;  %v8370_v24 = vadd.f32 %v8369_v9, %v14588_v43  ;;  %v8371_v44 = vpop.f32.mrb[39].mxu0 }
 0xb54   : > { %8584 = vst.msk [vmem:[%s14199_s29 + $0x118] sm:$0xff] %vm1027_vm1, %v8370_v24 }
 0xb57   : > { %v8374_v6 = vpop.f32.mrb[40].mxu0 }
 0xb58   : > { %v8375_v15 = vadd.f32 %v8374_v6, %v14092_v33  ;;  %v8376_v51 = vpop.f32.mrb[41].mxu0 }
 0xb59   : > { %v8377_v59 = vpop.f32.mrb[42].mxu0 }
 0xb5a   : > { %8585 = vst.msk [vmem:[%s14199_s29 + $0x120] sm:$0xff] %vm1027_vm1, %v8375_v15  ;;  %v8378_v55 = vadd.f32 %v8377_v59, %v14089_v28  ;;  %v8379_v41 = vpop.f32.mrb[43].mxu0 }
 0xb5c   : > { %8586 = vst.msk [vmem:[%s14199_s29 + $0x128] sm:$0xff] %vm1027_vm1, %v8378_v55 }
 0xb5f   : > { %v8382_v5 = vpop.f32.mrb[44].mxu0 }
 0xb60   : > { %v8383_v17 = vadd.f32 %v8382_v5, %v14107_v25  ;;  %v8384_v42 = vpop.f32.mrb[45].mxu0 }
 0xb61   : > { %v8385_v7 = vpop.f32.mrb[46].mxu0 }
 0xb62   : > { %8587 = vst.msk [vmem:[%s14199_s29 + $0x130] sm:$0xff] %vm1027_vm1, %v8383_v17  ;;  %v8386_v33 = vadd.f32 %v8385_v7, %v14104_v8  ;;  %v8387_v56 = vpop.f32.mrb[47].mxu0 }
 0xb64   : > { %8588 = vst.msk [vmem:[%s14199_s29 + $0x138] sm:$0xff] %vm1027_vm1, %v8386_v33 }
 0xb67   : > { %v8390_v54 = vpop.f32.mrb[48].mxu0 }
 0xb68   : > { %v8391_v28 = vadd.f32 %v8390_v54, %v14120_v26  ;;  %v8392_v60 = vpop.f32.mrb[49].mxu0 }
 0xb69   : > { %v8393_v22 = vpop.f32.mrb[50].mxu0 }
 0xb6a   : > { %8589 = vst.msk [vmem:[%s14199_s29 + $0x140] sm:$0xff] %vm1027_vm1, %v8391_v28  ;;  %v8394_v25 = vadd.f32 %v8393_v22, %v14116_v0  ;;  %v8395_v31 = vpop.f32.mrb[51].mxu0 }
 0xb6c   : > { %8590 = vst.msk [vmem:[%s14199_s29 + $0x148] sm:$0xff] %vm1027_vm1, %v8394_v25 }
 0xb6f   : > { %v8398_v39 = vpop.f32.mrb[52].mxu0 }
 0xb70   : > { %v8399_v8 = vadd.f32 %v8398_v39, %v14135_v16  ;;  %v8400_v46 = vpop.f32.mrb[53].mxu0 }
 0xb71   : > { %v8401_v2 = vpop.f32.mrb[54].mxu0 }
 0xb72   : > { %8591 = vst.msk [vmem:[%s14199_s29 + $0x150] sm:$0xff] %vm1027_vm1, %v8399_v8  ;;  %v8402_v26 = vadd.f32 %v8401_v2, %v14129_v35  ;;  %v8403_v40 = vpop.f32.mrb[55].mxu0 }
 0xb74   : > { %8592 = vst.msk [vmem:[%s14199_s29 + $0x158] sm:$0xff] %vm1027_vm1, %v8402_v26 }
 0xb77   : > { %v8406_v30 = vpop.f32.mrb[56].mxu0 }
 0xb78   : > { %v8407_v0 = vadd.f32 %v8406_v30, %v14149_v21  ;;  %v8408_v62 = vpop.f32.mrb[57].mxu0 }
 0xb79   : > { %v8409_v11 = vpop.f32.mrb[58].mxu0 }
 0xb7a   : > { %8593 = vst.msk [vmem:[%s14199_s29 + $0x160] sm:$0xff] %vm1027_vm1, %v8407_v0  ;;  %v8410_v16 = vadd.f32 %v8409_v11, %v14131_v29  ;;  %v8411_v4 = vpop.f32.mrb[59].mxu0 }
 0xb7c   : > { %8594 = vst.msk [vmem:[%s14199_s29 + $0x168] sm:$0xff] %vm1027_vm1, %v8410_v16 }
 0xb7f   : > { %v8414_v38 = vpop.f32.mrb[60].mxu0 }
 0xb80   : > { %v8415_v35 = vadd.f32 %v8414_v38, %v14156_v52  ;;  %v8416_v20 = vpop.f32.mrb[61].mxu0 }
 0xb81   : > { %v8417_v57 = vpop.f32.mrb[62].mxu0 }
 0xb82   : > { %8595 = vst.msk [vmem:[%s14199_s29 + $0x170] sm:$0xff] %vm1027_vm1, %v8415_v35  ;;  %v8418_v21 = vadd.f32 %v8417_v57, %v14140_v37  ;;  %v8419_v13 = vpop.f32.mrb[63].mxu0 }
 0xb84   : > { %8596 = vst.msk [vmem:[%s14199_s29 + $0x178] sm:$0xff] %vm1027_vm1, %v8418_v21 }
 0xb87   : > { %v8422_v18 = vpop.f32.mrb[64].mxu0 }
 0xb88   : > { %v8423_v29 = vadd.f32 %v8422_v18, %v14158_v49  ;;  %v8424_v32 = vpop.f32.mrb[65].mxu0 }
 0xb89   : > { %v8425_v48 = vpop.f32.mrb[66].mxu0 }
 0xb8a   : > { %8597 = vst.msk [vmem:[%s14199_s29 + $0x180] sm:$0xff] %vm1027_vm1, %v8423_v29  ;;  %v8426_v52 = vadd.f32 %v8425_v48, %v14142_v23  ;;  %v8427_v50 = vpop.f32.mrb[67].mxu0 }
 0xb8c   : > { %8598 = vst.msk [vmem:[%s14199_s29 + $0x188] sm:$0xff] %vm1027_vm1, %v8426_v52 }
 0xb8f   : > { %v8430_v61 = vpop.f32.mrb[68].mxu0 }
 0xb90   : > { %v8431_v63 = vadd.f32 %v8430_v61, %v14160_v47  ;;  %v8432_v37 = vpop.f32.mrb[69].mxu0 }
 0xb91   : > { %v8433_v1 = vpop.f32.mrb[70].mxu0 }
 0xb92   : > { %8599 = vst.msk [vmem:[%s14199_s29 + $0x190] sm:$0xff] %vm1027_vm1, %v8431_v63  ;;  %v8434_v45 = vadd.f32 %v8433_v1, %v14144_v34  ;;  %v8435_v10 = vpop.f32.mrb[71].mxu0 }
 0xb94   : > { %8600 = vst.msk [vmem:[%s14199_s29 + $0x198] sm:$0xff] %vm1027_vm1, %v8434_v45 }
 0xb95 PF: > { %s24_s13 = sadd.s32 1, %s11016_s13  }
 0xb96   : > { %p21_p1 = scmp.ge.s32.totalorder %s24_s13, 4  }
 0xb98   :  { %23 = sbr.rel (!%p21_p1) target bundleno = 3 (0x3), region = 115 }
 0xb9f   :  { %8650 = vsyncpa [#allocation3], 1 }
 0xba0   :  { %8652 = vsyncpa [#allocation3 + $0x1], 1 }
 0xba1   :  { %8653 = vsyncpa [#allocation5], 1 }
 0xba2   :  { %8654 = vsyncpa [#allocation8], 1 }

</bundles_post_ra>
